<compile_context>
chip_gen: v7x
topology: tpu7x:2x2x1
jax: 0.10.0
libtpu: 0.0.40
codegen_flags: <defaults>
</compile_context>

<pallas_src>
import jax
import jax.numpy as jnp
from jax.experimental import pallas as pl
from jax.experimental.pallas import tpu as pltpu

# Lane layout of the fused output slab: lanes [0, nc) = classifier logits,
# lane nc = rating, lanes 126/127 = attention weights, rest zero.
_ATTN_LANE0 = 126
_SLAB_WIDTH = 128


# -----------------------------------------------------------------------------
# Small host-side helpers (run at trace time / once at startup).
# -----------------------------------------------------------------------------
def _round_up(x, m):
    return ((x + m - 1) // m) * m


def _device_kind():
    try:
        return jax.devices()[0].device_kind.lower()
    except Exception:  # pragma: no cover - defensive
        return ""


_BUFFERED_ONE_OK = None


def _buffered_one_ok():
    """Probe once whether pipeline_mode=pl.Buffered(1) compiles on this build."""
    global _BUFFERED_ONE_OK
    if _BUFFERED_ONE_OK is not None:
        return _BUFFERED_ONE_OK

    def _copy(x_ref, o_ref):
        o_ref[...] = x_ref[...]

    try:
        with jax.ensure_compile_time_eval():
            spec = pl.BlockSpec((8, 128), lambda i: (0, 0),
                                pipeline_mode=pl.Buffered(1))
            out = pl.pallas_call(
                _copy,
                out_shape=jax.ShapeDtypeStruct((8, 128), jnp.float32),
                grid=(1,),
                in_specs=[spec],
                out_specs=pl.BlockSpec((8, 128), lambda i: (0, 0)),
            )(jnp.zeros((8, 128), jnp.float32))
            jax.block_until_ready(out)
        _BUFFERED_ONE_OK = True
    except Exception:
        _BUFFERED_ONE_OK = False
    return _BUFFERED_ONE_OK


# -----------------------------------------------------------------------------
# Pallas kernel: full multi-modal head for one batch tile.
# -----------------------------------------------------------------------------
def mm_sentiment_kernel(
    pooled_ref,                 # [TB, C]    spatially-pooled image (f32)
    pooler_ref,                 # [TB, 768]  surrogate BERT pooler_output (f32)
    bb_w_ref, bb_b_ref,         # surrogate backbone:  [C, 2048] bf16, [1, 2048] f32
    fc_w_ref, fc_b_ref,         # image_encoder.fc:    [2048, 512] bf16, [1, 512] f32
    proj_w_ref, proj_b_ref,     # text_projector:      [768, 512] bf16, [1, 512] f32
    a1wi_ref, a1wt_ref, a1_b_ref,   # attention[0] split: 2x[512,512] bf16, [1,512] f32
    a2_w_ref, a2_b_ref,         # attention[2]:        [512, 2] bf16, [1, 2] f32
    f1wi_ref, f1wt_ref, f1_b_ref,   # fusion[0] split:    2x[512,512] bf16, [1,512] f32
    f2_w_ref, f2_b_ref,         # fusion[3]:           [512, 128] bf16, [1, 128] f32
    head_w_ref, head_b_ref,     # fused cls+reg head:  [128, 128] bf16, [1, 128] f32
    out_ref,                    # out: [TB, 128] lane-dense slab (f32)
):
    f32 = jnp.float32
    bf16 = jnp.bfloat16

    # ---- image branch (GAP already done in wrapper) -------------------------
    pooled = pooled_ref[...]                                         # [TB, C]
    bb = jnp.dot(pooled.astype(bf16), bb_w_ref[...],
                 preferred_element_type=f32) + bb_b_ref[...]
    bb = jnp.maximum(bb, 0.0)                                        # [TB, 2048]
    img_f = jnp.dot(bb.astype(bf16), fc_w_ref[...],
                    preferred_element_type=f32) + fc_b_ref[...]      # [TB, 512]

    # ---- text branch (pooler computed in wrapper) ----------------------------
    text_f = jnp.dot(pooler_ref[...].astype(bf16), proj_w_ref[...],
                     preferred_element_type=f32) + proj_b_ref[...]   # [TB, 512]

    # ---- attention over modalities (concat replaced by split-weight dots) ---
    h = jnp.tanh(
        jnp.dot(img_f.astype(bf16), a1wi_ref[...], preferred_element_type=f32)
        + jnp.dot(text_f.astype(bf16), a1wt_ref[...], preferred_element_type=f32)
        + a1_b_ref[...])                                             # [TB, 512]
    attn_logits = jnp.dot(h.astype(bf16), a2_w_ref[...],
                          preferred_element_type=f32) + a2_b_ref[...]  # [TB, 2]
    # 2-way softmax == sigmoid of the logit difference: exactly normalized,
    # no cross-lane reductions (EUP + VPU only).
    w0 = 1.0 / (1.0 + jnp.exp(attn_logits[:, 1:2] - attn_logits[:, 0:1]))
    w1 = 1.0 - w0                                                    # [TB, 1]

    # ---- attended fusion (dropout = identity) --------------------------------
    img_att = img_f * w0                                             # [TB, 512]
    txt_att = text_f * w1                                            # [TB, 512]
    f1 = jnp.maximum(
        jnp.dot(img_att.astype(bf16), f1wi_ref[...], preferred_element_type=f32)
        + jnp.dot(txt_att.astype(bf16), f1wt_ref[...], preferred_element_type=f32)
        + f1_b_ref[...], 0.0)                                        # [TB, 512]
    fused = jnp.maximum(
        jnp.dot(f1.astype(bf16), f2_w_ref[...], preferred_element_type=f32)
        + f2_b_ref[...], 0.0)                                        # [TB, 128]

    # ---- fused heads: single lane-dense [TB, 128] output slab ----------------
    slab = jnp.dot(fused.astype(bf16), head_w_ref[...],
                   preferred_element_type=f32) + head_b_ref[...]     # [TB, 128]
    lanes = jax.lax.broadcasted_iota(jnp.int32, slab.shape, 1)
    slab = (slab
            + jnp.where(lanes == _ATTN_LANE0, w0, 0.0)
            + jnp.where(lanes == _ATTN_LANE0 + 1, w1, 0.0))
    out_ref[...] = slab


# -----------------------------------------------------------------------------
# One-time weight preparation (hoisted out of the jitted forward).
# -----------------------------------------------------------------------------
def prepare_params(params):
    bf16 = jnp.bfloat16
    f32 = jnp.float32
    nc = params["cls_w"].shape[1]
    assert nc + 1 <= _ATTN_LANE0

    # Fuse the tiny classifier + regressor into one lane-dense [128, 128] head:
    # cols [0, nc) = classifier, col nc = regressor, rest zero.
    head_w = jnp.zeros((128, _SLAB_WIDTH), f32)
    head_w = head_w.at[:, :nc].set(params["cls_w"])
    head_w = head_w.at[:, nc:nc + 1].set(params["reg_w"])
    head_b = jnp.zeros((1, _SLAB_WIDTH), f32)
    head_b = head_b.at[:, :nc].set(params["cls_b"])
    head_b = head_b.at[:, nc:nc + 1].set(params["reg_b"])

    weights = (
        params["bb_w"].astype(bf16), params["bb_b"].astype(f32),
        params["fc_w"].astype(bf16), params["fc_b"].astype(f32),
        params["proj_w"].astype(bf16), params["proj_b"].astype(f32),
        # concat-weights split into image / text 512-row halves
        params["a1_w"][:512].astype(bf16), params["a1_w"][512:].astype(bf16),
        params["a1_b"].astype(f32),
        params["a2_w"].astype(bf16), params["a2_b"].astype(f32),
        params["f1_w"][:512].astype(bf16), params["f1_w"][512:].astype(bf16),
        params["f1_b"].astype(f32),
        params["f2_w"].astype(bf16), params["f2_b"].astype(f32),
        head_w.astype(bf16), head_b,
    )
    # Trigger the Buffered(1) probe outside any jit trace.
    _buffered_one_ok()
    return {"tok_emb": params["tok_emb"].astype(f32), "weights": weights}


# -----------------------------------------------------------------------------
# Forward wrapper.
# -----------------------------------------------------------------------------
def multimodal_sentiment_forward(image, input_ids, attention_mask, prep,
                                 num_classes=2):
    f32 = jnp.float32
    B, C, H, W = image.shape
    nc = num_classes

    # ---- XLA preamble: GAP (image), embedding gather + masked-mean pool (text)
    pooled = jnp.mean(image.reshape(B, C, H * W).astype(f32), axis=2)     # [B, C]
    emb = jnp.take(prep["tok_emb"], input_ids, axis=0)                    # [B, S, 768]
    mask = attention_mask.astype(f32)                                     # [B, S]
    masked_sum = jnp.einsum("bs,bsd->bd", mask, emb)                      # [B, 768]
    denom = jnp.maximum(jnp.sum(mask, axis=1, keepdims=True), 1.0)
    pooler = jnp.tanh(masked_sum / denom)                                 # [B, 768]

    # ---- per-generation tiling / VMEM budget --------------------------------
    kind = _device_kind()
    is_v7 = "v7" in kind
    wide_mxu = ("v6" in kind) or is_v7          # 2x256x256 MXU on v6e / v7x
    vmem_limit = (32 << 20) if is_v7 else (64 << 20)
    max_tb = 256 if wide_mxu else 128           # v5e's 4x128 MXU is full at 128

    if is_v7:
        # Ensure >= 2 batch tiles so both v7x TensorCores get work.
        TB = max(8, min(max_tb, _round_up(pl.cdiv(B, 2), 8)))
        B_pad = max(_round_up(B, TB), 2 * TB)
    else:
        TB = max(8, min(max_tb, _round_up(B, 8)))
        B_pad = _round_up(B, TB)

    if B_pad != B:
        pad = B_pad - B
        pooled = jnp.pad(pooled, ((0, pad), (0, 0)))
        pooler = jnp.pad(pooler, ((0, pad), (0, 0)))
    grid = (B_pad // TB,)

    weights = prep["weights"]

    use_single_buf = _buffered_one_ok()

    def resident(arr):
        # Full-array block, constant index map -> stays in VMEM across tiles;
        # single-buffered (no re-DMA, half the VMEM) when supported.
        z = (0,) * arr.ndim
        kwargs = {"pipeline_mode": pl.Buffered(1)} if use_single_buf else {}
        return pl.BlockSpec(arr.shape, lambda i, _z=z: _z, **kwargs)

    in_specs = [
        pl.BlockSpec((TB, C), lambda i: (i, 0)),
        pl.BlockSpec((TB, 768), lambda i: (i, 0)),
    ] + [resident(w) for w in weights]

    out_spec = pl.BlockSpec((TB, _SLAB_WIDTH), lambda i: (i, 0))

    slab = pl.pallas_call(
        mm_sentiment_kernel,
        out_shape=jax.ShapeDtypeStruct((B_pad, _SLAB_WIDTH), f32),
        grid=grid,
        in_specs=in_specs,
        out_specs=out_spec,
        compiler_params=pltpu.CompilerParams(
            dimension_semantics=("parallel",),
            vmem_limit_bytes=vmem_limit,
        ),
    )(pooled, pooler, *weights)

    slab = slab[:B]
    sentiment_logits = slab[:, :nc]
    rating_pred = slab[:, nc:nc + 1]
    attention_weights = slab[:, _ATTN_LANE0:_ATTN_LANE0 + 2]
    return sentiment_logits, rating_pred, attention_weights


# -----------------------------------------------------------------------------
# Deterministic parameter initialization (shapes from the PyTorch __init__).
# -----------------------------------------------------------------------------
def init_params(key, num_classes=2, vocab=100, image_channels=3):
    def linear(k, fan_in, fan_out):
        k1, k2 = jax.random.split(k)
        w = jax.random.normal(k1, (fan_in, fan_out), jnp.float32) / jnp.sqrt(
            jnp.float32(fan_in)
        )
        b = 0.01 * jax.random.normal(k2, (1, fan_out), jnp.float32)
        return w, b

    ks = jax.random.split(key, 12)
    p = {}
    p["tok_emb"] = 0.02 * jax.random.normal(ks[0], (vocab, 768), jnp.float32)
    p["bb_w"], p["bb_b"] = linear(ks[1], image_channels, 2048)   # backbone surrogate
    p["fc_w"], p["fc_b"] = linear(ks[2], 2048, 512)              # image_encoder.fc
    p["proj_w"], p["proj_b"] = linear(ks[3], 768, 512)           # text_projector
    p["a1_w"], p["a1_b"] = linear(ks[4], 1024, 512)              # attention[0]
    p["a2_w"], p["a2_b"] = linear(ks[5], 512, 2)                 # attention[2]
    p["f1_w"], p["f1_b"] = linear(ks[6], 1024, 512)              # fusion[0]
    p["f2_w"], p["f2_b"] = linear(ks[7], 512, 128)               # fusion[3]
    p["cls_w"], p["cls_b"] = linear(ks[8], 128, num_classes)     # classifier
    p["reg_w"], p["reg_b"] = linear(ks[9], 128, 1)               # regressor
    return p


if __name__ == "__main__":
    key = jax.random.PRNGKey(0)
    k_img, k_ids, k_param = jax.random.split(key, 3)

    B, C, H, W = 2, 3, 16, 16
    S = 8
    VOCAB = 100
    NUM_CLASSES = 2

    image = jax.random.normal(k_img, (B, C, H, W), jnp.float32)
    input_ids = jax.random.randint(k_ids, (B, S), 0, VOCAB, dtype=jnp.int32)
    attention_mask = jnp.ones((B, S), dtype=jnp.int32)

    params = init_params(k_param, num_classes=NUM_CLASSES, vocab=VOCAB,
                         image_channels=C)
    prep = jax.block_until_ready(prepare_params(params))   # one-time weight prep

    fwd = jax.jit(multimodal_sentiment_forward, static_argnames=("num_classes",))
    sentiment_logits, rating_pred, attention_weights = fwd(
        image, input_ids, attention_mask, prep, num_classes=NUM_CLASSES
    )
    jax.block_until_ready((sentiment_logits, rating_pred, attention_weights))

    assert sentiment_logits.shape == (B, NUM_CLASSES)
    assert rating_pred.shape == (B, 1)
    assert attention_weights.shape == (B, 2)
    # sigmoid-reformulated 2-way softmax is exactly normalized
    assert jnp.allclose(jnp.sum(attention_weights, axis=1), 1.0, atol=1e-5)
    assert jnp.all(attention_weights >= 0.0) and jnp.all(attention_weights <= 1.0)
    assert jnp.all(jnp.isfinite(sentiment_logits))
    assert jnp.all(jnp.isfinite(rating_pred))

    print("KERNEL_OK")
</pallas_src>

<mosaic_0001>
module attributes {stable_mosaic.version = 11 : i64} {
  func.func @_copy(%arg0: i32, %arg1: memref<8x128xf32, #tpu.memory_space<vmem>>, %arg2: memref<8x128xf32, #tpu.memory_space<vmem>>) attributes {dimension_semantics = [#tpu.dimension_semantics<arbitrary>], iteration_bounds = array<i64: 1>, scalar_prefetch = 0 : i64, scratch_operands = 0 : i64, tpu.core_type = #tpu.core_type<tc>, window_params = [{pipeline_mode = #tpu.pipeline_mode<synchronous>, transform_indices = @transform_0, window_bounds = array<i64: 8, 128>}, {pipeline_mode = #tpu.pipeline_mode<synchronous>, transform_indices = @transform_1, window_bounds = array<i64: 8, 128>}]} {
    %c0 = arith.constant 0 : index
    %c0_0 = arith.constant 0 : index
    %0 = vector.load %arg1[%c0, %c0_0] : memref<8x128xf32, #tpu.memory_space<vmem>>, vector<8x128xf32>
    %c0_1 = arith.constant 0 : index
    %c0_2 = arith.constant 0 : index
    %1 = vector.load %arg2[%c0_1, %c0_2] : memref<8x128xf32, #tpu.memory_space<vmem>>, vector<8x128xf32>
    tpu.vector_store %arg2[%c0_1, %c0_2], %0 {strides = array<i32>} : memref<8x128xf32, #tpu.memory_space<vmem>>, vector<8x128xf32>,
    return
  }
  func.func @transform_0(%arg0: i32) -> (i32, i32) {
    %c0_i32 = arith.constant 0 : i32
    %c0_i32_0 = arith.constant 0 : i32
    %c0_i32_1 = arith.constant 0 : i32
    return %c0_i32, %c0_i32_0 : i32, i32
  }
  func.func @transform_1(%arg0: i32) -> (i32, i32) {
    %c0_i32 = arith.constant 0 : i32
    %c0_i32_0 = arith.constant 0 : i32
    %c0_i32_1 = arith.constant 0 : i32
    return %c0_i32, %c0_i32_0 : i32, i32
  }
}

module attributes {stable_mosaic.version = 11 : i64} {
  func.func @mm_sentiment_kernel(%arg0: i32, %arg1: memref<8x3xf32, #tpu.memory_space<vmem>>, %arg2: memref<8x768xf32, #tpu.memory_space<vmem>>, %arg3: memref<3x2048xbf16, #tpu.memory_space<vmem>>, %arg4: memref<1x2048xf32, #tpu.memory_space<vmem>>, %arg5: memref<2048x512xbf16, #tpu.memory_space<vmem>>, %arg6: memref<1x512xf32, #tpu.memory_space<vmem>>, %arg7: memref<768x512xbf16, #tpu.memory_space<vmem>>, %arg8: memref<1x512xf32, #tpu.memory_space<vmem>>, %arg9: memref<512x512xbf16, #tpu.memory_space<vmem>>, %arg10: memref<512x512xbf16, #tpu.memory_space<vmem>>, %arg11: memref<1x512xf32, #tpu.memory_space<vmem>>, %arg12: memref<512x2xbf16, #tpu.memory_space<vmem>>, %arg13: memref<1x2xf32, #tpu.memory_space<vmem>>, %arg14: memref<512x512xbf16, #tpu.memory_space<vmem>>, %arg15: memref<512x512xbf16, #tpu.memory_space<vmem>>, %arg16: memref<1x512xf32, #tpu.memory_space<vmem>>, %arg17: memref<512x128xbf16, #tpu.memory_space<vmem>>, %arg18: memref<1x128xf32, #tpu.memory_space<vmem>>, %arg19: memref<128x128xbf16, #tpu.memory_space<vmem>>, %arg20: memref<1x128xf32, #tpu.memory_space<vmem>>, %arg21: memref<8x128xf32, #tpu.memory_space<vmem>>) attributes {dimension_semantics = [#tpu.dimension_semantics<parallel>], iteration_bounds = array<i64: 1>, scalar_prefetch = 0 : i64, scratch_operands = 0 : i64, tpu.core_type = #tpu.core_type<tc>, window_params = [{transform_indices = @transform_0, window_bounds = array<i64: 8, 3>}, {transform_indices = @transform_1, window_bounds = array<i64: 8, 768>}, {pipeline_mode = #tpu.pipeline_mode<synchronous>, transform_indices = @transform_2, window_bounds = array<i64: 3, 2048>}, {pipeline_mode = #tpu.pipeline_mode<synchronous>, transform_indices = @transform_3, window_bounds = array<i64: 1, 2048>}, {pipeline_mode = #tpu.pipeline_mode<synchronous>, transform_indices = @transform_4, window_bounds = array<i64: 2048, 512>}, {pipeline_mode = #tpu.pipeline_mode<synchronous>, transform_indices = @transform_5, window_bounds = array<i64: 1, 512>}, {pipeline_mode = #tpu.pipeline_mode<synchronous>, transform_indices = @transform_6, window_bounds = array<i64: 768, 512>}, {pipeline_mode = #tpu.pipeline_mode<synchronous>, transform_indices = @transform_7, window_bounds = array<i64: 1, 512>}, {pipeline_mode = #tpu.pipeline_mode<synchronous>, transform_indices = @transform_8, window_bounds = array<i64: 512, 512>}, {pipeline_mode = #tpu.pipeline_mode<synchronous>, transform_indices = @transform_9, window_bounds = array<i64: 512, 512>}, {pipeline_mode = #tpu.pipeline_mode<synchronous>, transform_indices = @transform_10, window_bounds = array<i64: 1, 512>}, {pipeline_mode = #tpu.pipeline_mode<synchronous>, transform_indices = @transform_11, window_bounds = array<i64: 512, 2>}, {pipeline_mode = #tpu.pipeline_mode<synchronous>, transform_indices = @transform_12, window_bounds = array<i64: 1, 2>}, {pipeline_mode = #tpu.pipeline_mode<synchronous>, transform_indices = @transform_13, window_bounds = array<i64: 512, 512>}, {pipeline_mode = #tpu.pipeline_mode<synchronous>, transform_indices = @transform_14, window_bounds = array<i64: 512, 512>}, {pipeline_mode = #tpu.pipeline_mode<synchronous>, transform_indices = @transform_15, window_bounds = array<i64: 1, 512>}, {pipeline_mode = #tpu.pipeline_mode<synchronous>, transform_indices = @transform_16, window_bounds = array<i64: 512, 128>}, {pipeline_mode = #tpu.pipeline_mode<synchronous>, transform_indices = @transform_17, window_bounds = array<i64: 1, 128>}, {pipeline_mode = #tpu.pipeline_mode<synchronous>, transform_indices = @transform_18, window_bounds = array<i64: 128, 128>}, {pipeline_mode = #tpu.pipeline_mode<synchronous>, transform_indices = @transform_19, window_bounds = array<i64: 1, 128>}, {transform_indices = @transform_20, window_bounds = array<i64: 8, 128>}]} {
    %c0 = arith.constant 0 : index
    %c0_0 = arith.constant 0 : index
    %0 = vector.load %arg1[%c0, %c0_0] : memref<8x3xf32, #tpu.memory_space<vmem>>, vector<8x3xf32>
    %1 = arith.truncf %0 : vector<8x3xf32> to vector<8x3xbf16>
    %c0_1 = arith.constant 0 : index
    %c0_2 = arith.constant 0 : index
    %2 = vector.load %arg3[%c0_1, %c0_2] : memref<3x2048xbf16, #tpu.memory_space<vmem>>, vector<3x2048xbf16>
    %cst = arith.constant dense<0.000000e+00> : vector<8x2048xf32>
    %3 = tpu.matmul %1, %2, %cst {dimension_numbers = #tpu.dot_dimension_numbers<[1], [0], [0], [1], [0, 0, 1, 1], [], []>} : vector<8x3xbf16>, vector<3x2048xbf16>, vector<8x2048xf32> -> vector<8x2048xf32>
    %c0_3 = arith.constant 0 : index
    %c0_4 = arith.constant 0 : index
    %4 = vector.load %arg4[%c0_3, %c0_4] : memref<1x2048xf32, #tpu.memory_space<vmem>>, vector<1x2048xf32>
    %5 = vector.broadcast %4 : vector<1x2048xf32> to vector<8x2048xf32>
    %6 = arith.addf %3, %5 : vector<8x2048xf32>
    %cst_5 = arith.constant 0.000000e+00 : f32
    %7 = vector.broadcast %cst_5 : f32 to vector<8x2048xf32>
    %8 = arith.maximumf %6, %7 : vector<8x2048xf32>
    %9 = arith.truncf %8 : vector<8x2048xf32> to vector<8x2048xbf16>
    %c0_6 = arith.constant 0 : index
    %c0_7 = arith.constant 0 : index
    %10 = vector.load %arg5[%c0_6, %c0_7] : memref<2048x512xbf16, #tpu.memory_space<vmem>>, vector<2048x512xbf16>
    %cst_8 = arith.constant dense<0.000000e+00> : vector<8x512xf32>
    %11 = tpu.matmul %9, %10, %cst_8 {dimension_numbers = #tpu.dot_dimension_numbers<[1], [0], [0], [1], [0, 0, 1, 1], [], []>} : vector<8x2048xbf16>, vector<2048x512xbf16>, vector<8x512xf32> -> vector<8x512xf32>
    %c0_9 = arith.constant 0 : index
    %c0_10 = arith.constant 0 : index
    %12 = vector.load %arg6[%c0_9, %c0_10] : memref<1x512xf32, #tpu.memory_space<vmem>>, vector<1x512xf32>
    %13 = vector.broadcast %12 : vector<1x512xf32> to vector<8x512xf32>
    %14 = arith.addf %11, %13 : vector<8x512xf32>
    %c0_11 = arith.constant 0 : index
    %c0_12 = arith.constant 0 : index
    %15 = vector.load %arg2[%c0_11, %c0_12] : memref<8x768xf32, #tpu.memory_space<vmem>>, vector<8x768xf32>
    %16 = arith.truncf %15 : vector<8x768xf32> to vector<8x768xbf16>
    %c0_13 = arith.constant 0 : index
    %c0_14 = arith.constant 0 : index
    %17 = vector.load %arg7[%c0_13, %c0_14] : memref<768x512xbf16, #tpu.memory_space<vmem>>, vector<768x512xbf16>
    %cst_15 = arith.constant dense<0.000000e+00> : vector<8x512xf32>
    %18 = tpu.matmul %16, %17, %cst_15 {dimension_numbers = #tpu.dot_dimension_numbers<[1], [0], [0], [1], [0, 0, 1, 1], [], []>} : vector<8x768xbf16>, vector<768x512xbf16>, vector<8x512xf32> -> vector<8x512xf32>
    %c0_16 = arith.constant 0 : index
    %c0_17 = arith.constant 0 : index
    %19 = vector.load %arg8[%c0_16, %c0_17] : memref<1x512xf32, #tpu.memory_space<vmem>>, vector<1x512xf32>
    %20 = vector.broadcast %19 : vector<1x512xf32> to vector<8x512xf32>
    %21 = arith.addf %18, %20 : vector<8x512xf32>
    %22 = arith.truncf %14 : vector<8x512xf32> to vector<8x512xbf16>
    %c0_18 = arith.constant 0 : index
    %c0_19 = arith.constant 0 : index
    %23 = vector.load %arg9[%c0_18, %c0_19] : memref<512x512xbf16, #tpu.memory_space<vmem>>, vector<512x512xbf16>
    %cst_20 = arith.constant dense<0.000000e+00> : vector<8x512xf32>
    %24 = tpu.matmul %22, %23, %cst_20 {dimension_numbers = #tpu.dot_dimension_numbers<[1], [0], [0], [1], [0, 0, 1, 1], [], []>} : vector<8x512xbf16>, vector<512x512xbf16>, vector<8x512xf32> -> vector<8x512xf32>
    %25 = arith.truncf %21 : vector<8x512xf32> to vector<8x512xbf16>
    %c0_21 = arith.constant 0 : index
    %c0_22 = arith.constant 0 : index
    %26 = vector.load %arg10[%c0_21, %c0_22] : memref<512x512xbf16, #tpu.memory_space<vmem>>, vector<512x512xbf16>
    %cst_23 = arith.constant dense<0.000000e+00> : vector<8x512xf32>
    %27 = tpu.matmul %25, %26, %cst_23 {dimension_numbers = #tpu.dot_dimension_numbers<[1], [0], [0], [1], [0, 0, 1, 1], [], []>} : vector<8x512xbf16>, vector<512x512xbf16>, vector<8x512xf32> -> vector<8x512xf32>
    %28 = arith.addf %24, %27 : vector<8x512xf32>
    %c0_24 = arith.constant 0 : index
    %c0_25 = arith.constant 0 : index
    %29 = vector.load %arg11[%c0_24, %c0_25] : memref<1x512xf32, #tpu.memory_space<vmem>>, vector<1x512xf32>
    %30 = vector.broadcast %29 : vector<1x512xf32> to vector<8x512xf32>
    %31 = arith.addf %28, %30 : vector<8x512xf32>
    %32 = math.tanh %31 : vector<8x512xf32>
    %33 = arith.truncf %32 : vector<8x512xf32> to vector<8x512xbf16>
    %c0_26 = arith.constant 0 : index
    %c0_27 = arith.constant 0 : index
    %34 = vector.load %arg12[%c0_26, %c0_27] : memref<512x2xbf16, #tpu.memory_space<vmem>>, vector<512x2xbf16>
    %cst_28 = arith.constant dense<0.000000e+00> : vector<8x2xf32>
    %35 = tpu.matmul %33, %34, %cst_28 {dimension_numbers = #tpu.dot_dimension_numbers<[1], [0], [0], [1], [0, 0, 1, 1], [], []>} : vector<8x512xbf16>, vector<512x2xbf16>, vector<8x2xf32> -> vector<8x2xf32>
    %c0_29 = arith.constant 0 : index
    %c0_30 = arith.constant 0 : index
    %36 = vector.load %arg13[%c0_29, %c0_30] : memref<1x2xf32, #tpu.memory_space<vmem>>, vector<1x2xf32>
    %37 = vector.broadcast %36 : vector<1x2xf32> to vector<8x2xf32>
    %38 = arith.addf %35, %37 : vector<8x2xf32>
    %39 = vector.extract_strided_slice %38 {offsets = [0, 1], sizes = [8, 1], strides = [1, 1]} : vector<8x2xf32> to vector<8x1xf32>
    %40 = vector.extract_strided_slice %38 {offsets = [0, 0], sizes = [8, 1], strides = [1, 1]} : vector<8x2xf32> to vector<8x1xf32>
    %41 = arith.subf %39, %40 : vector<8x1xf32>
    %42 = math.exp %41 : vector<8x1xf32>
    %cst_31 = arith.constant 1.000000e+00 : f32
    %43 = vector.broadcast %cst_31 : f32 to vector<8x1xf32>
    %44 = arith.addf %43, %42 : vector<8x1xf32>
    %cst_32 = arith.constant 1.000000e+00 : f32
    %45 = vector.broadcast %cst_32 : f32 to vector<8x1xf32>
    %46 = arith.divf %45, %44 : vector<8x1xf32>
    %cst_33 = arith.constant 1.000000e+00 : f32
    %47 = vector.broadcast %cst_33 : f32 to vector<8x1xf32>
    %48 = arith.subf %47, %46 : vector<8x1xf32>
    %49 = vector.broadcast %46 : vector<8x1xf32> to vector<8x512xf32>
    %50 = arith.mulf %14, %49 : vector<8x512xf32>
    %51 = vector.broadcast %48 : vector<8x1xf32> to vector<8x512xf32>
    %52 = arith.mulf %21, %51 : vector<8x512xf32>
    %53 = arith.truncf %50 : vector<8x512xf32> to vector<8x512xbf16>
    %c0_34 = arith.constant 0 : index
    %c0_35 = arith.constant 0 : index
    %54 = vector.load %arg14[%c0_34, %c0_35] : memref<512x512xbf16, #tpu.memory_space<vmem>>, vector<512x512xbf16>
    %cst_36 = arith.constant dense<0.000000e+00> : vector<8x512xf32>
    %55 = tpu.matmul %53, %54, %cst_36 {dimension_numbers = #tpu.dot_dimension_numbers<[1], [0], [0], [1], [0, 0, 1, 1], [], []>} : vector<8x512xbf16>, vector<512x512xbf16>, vector<8x512xf32> -> vector<8x512xf32>
    %56 = arith.truncf %52 : vector<8x512xf32> to vector<8x512xbf16>
    %c0_37 = arith.constant 0 : index
    %c0_38 = arith.constant 0 : index
    %57 = vector.load %arg15[%c0_37, %c0_38] : memref<512x512xbf16, #tpu.memory_space<vmem>>, vector<512x512xbf16>
    %cst_39 = arith.constant dense<0.000000e+00> : vector<8x512xf32>
    %58 = tpu.matmul %56, %57, %cst_39 {dimension_numbers = #tpu.dot_dimension_numbers<[1], [0], [0], [1], [0, 0, 1, 1], [], []>} : vector<8x512xbf16>, vector<512x512xbf16>, vector<8x512xf32> -> vector<8x512xf32>
    %59 = arith.addf %55, %58 : vector<8x512xf32>
    %c0_40 = arith.constant 0 : index
    %c0_41 = arith.constant 0 : index
    %60 = vector.load %arg16[%c0_40, %c0_41] : memref<1x512xf32, #tpu.memory_space<vmem>>, vector<1x512xf32>
    %61 = vector.broadcast %60 : vector<1x512xf32> to vector<8x512xf32>
    %62 = arith.addf %59, %61 : vector<8x512xf32>
    %cst_42 = arith.constant 0.000000e+00 : f32
    %63 = vector.broadcast %cst_42 : f32 to vector<8x512xf32>
    %64 = arith.maximumf %62, %63 : vector<8x512xf32>
    %65 = arith.truncf %64 : vector<8x512xf32> to vector<8x512xbf16>
    %c0_43 = arith.constant 0 : index
    %c0_44 = arith.constant 0 : index
    %66 = vector.load %arg17[%c0_43, %c0_44] : memref<512x128xbf16, #tpu.memory_space<vmem>>, vector<512x128xbf16>
    %cst_45 = arith.constant dense<0.000000e+00> : vector<8x128xf32>
    %67 = tpu.matmul %65, %66, %cst_45 {dimension_numbers = #tpu.dot_dimension_numbers<[1], [0], [0], [1], [0, 0, 1, 1], [], []>} : vector<8x512xbf16>, vector<512x128xbf16>, vector<8x128xf32> -> vector<8x128xf32>
    %c0_46 = arith.constant 0 : index
    %c0_47 = arith.constant 0 : index
    %68 = vector.load %arg18[%c0_46, %c0_47] : memref<1x128xf32, #tpu.memory_space<vmem>>, vector<1x128xf32>
    %69 = vector.broadcast %68 : vector<1x128xf32> to vector<8x128xf32>
    %70 = arith.addf %67, %69 : vector<8x128xf32>
    %cst_48 = arith.constant 0.000000e+00 : f32
    %71 = vector.broadcast %cst_48 : f32 to vector<8x128xf32>
    %72 = arith.maximumf %70, %71 : vector<8x128xf32>
    %73 = arith.truncf %72 : vector<8x128xf32> to vector<8x128xbf16>
    %c0_49 = arith.constant 0 : index
    %c0_50 = arith.constant 0 : index
    %74 = vector.load %arg19[%c0_49, %c0_50] : memref<128x128xbf16, #tpu.memory_space<vmem>>, vector<128x128xbf16>
    %cst_51 = arith.constant dense<0.000000e+00> : vector<8x128xf32>
    %75 = tpu.matmul %73, %74, %cst_51 {dimension_numbers = #tpu.dot_dimension_numbers<[1], [0], [0], [1], [0, 0, 1, 1], [], []>} : vector<8x128xbf16>, vector<128x128xbf16>, vector<8x128xf32> -> vector<8x128xf32>
    %c0_52 = arith.constant 0 : index
    %c0_53 = arith.constant 0 : index
    %76 = vector.load %arg20[%c0_52, %c0_53] : memref<1x128xf32, #tpu.memory_space<vmem>>, vector<1x128xf32>
    %77 = vector.broadcast %76 : vector<1x128xf32> to vector<8x128xf32>
    %78 = arith.addf %75, %77 : vector<8x128xf32>
    %79 = tpu.iota {dimensions = array<i32: 1>} : vector<8x128xi32>
    %c126_i32 = arith.constant 126 : i32
    %80 = vector.broadcast %c126_i32 : i32 to vector<8x128xi32>
    %81 = arith.cmpi eq, %79, %80 : vector<8x128xi32>
    %cst_54 = arith.constant 0.000000e+00 : f32
    %82 = vector.shape_cast %46 : vector<8x1xf32> to vector<8x1xf32>
    %83 = vector.broadcast %82 : vector<8x1xf32> to vector<8x128xf32>
    %84 = vector.broadcast %cst_54 : f32 to vector<8x128xf32>
    %85 = arith.select %81, %83, %84 : vector<8x128xi1>, vector<8x128xf32>
    %86 = arith.addf %78, %85 : vector<8x128xf32>
    %c127_i32 = arith.constant 127 : i32
    %87 = vector.broadcast %c127_i32 : i32 to vector<8x128xi32>
    %88 = arith.cmpi eq, %79, %87 : vector<8x128xi32>
    %cst_55 = arith.constant 0.000000e+00 : f32
    %89 = vector.shape_cast %48 : vector<8x1xf32> to vector<8x1xf32>
    %90 = vector.broadcast %89 : vector<8x1xf32> to vector<8x128xf32>
    %91 = vector.broadcast %cst_55 : f32 to vector<8x128xf32>
    %92 = arith.select %88, %90, %91 : vector<8x128xi1>, vector<8x128xf32>
    %93 = arith.addf %86, %92 : vector<8x128xf32>
    %c0_56 = arith.constant 0 : index
    %c0_57 = arith.constant 0 : index
    %94 = vector.load %arg21[%c0_56, %c0_57] : memref<8x128xf32, #tpu.memory_space<vmem>>, vector<8x128xf32>
    tpu.vector_store %arg21[%c0_56, %c0_57], %93 {strides = array<i32>} : memref<8x128xf32, #tpu.memory_space<vmem>>, vector<8x128xf32>,
    return
  }
  func.func @transform_0(%arg0: i32) -> (i32, i32) {
    %c0_i32 = arith.constant 0 : i32
    %c0_i32_0 = arith.constant 0 : i32
    return %arg0, %c0_i32 : i32, i32
  }
  func.func @transform_1(%arg0: i32) -> (i32, i32) {
    %c0_i32 = arith.constant 0 : i32
    %c0_i32_0 = arith.constant 0 : i32
    return %arg0, %c0_i32 : i32, i32
  }
  func.func @transform_2(%arg0: i32) -> (i32, i32) {
    %c0_i32 = arith.constant 0 : i32
    %c0_i32_0 = arith.constant 0 : i32
    %c0_i32_1 = arith.constant 0 : i32
    return %c0_i32, %c0_i32_0 : i32, i32
  }
  func.func @transform_3(%arg0: i32) -> (i32, i32) {
    %c0_i32 = arith.constant 0 : i32
    %c0_i32_0 = arith.constant 0 : i32
    %c0_i32_1 = arith.constant 0 : i32
    return %c0_i32, %c0_i32_0 : i32, i32
  }
  func.func @transform_4(%arg0: i32) -> (i32, i32) {
    %c0_i32 = arith.constant 0 : i32
    %c0_i32_0 = arith.constant 0 : i32
    %c0_i32_1 = arith.constant 0 : i32
    return %c0_i32, %c0_i32_0 : i32, i32
  }
  func.func @transform_5(%arg0: i32) -> (i32, i32) {
    %c0_i32 = arith.constant 0 : i32
    %c0_i32_0 = arith.constant 0 : i32
    %c0_i32_1 = arith.constant 0 : i32
    return %c0_i32, %c0_i32_0 : i32, i32
  }
  func.func @transform_6(%arg0: i32) -> (i32, i32) {
    %c0_i32 = arith.constant 0 : i32
    %c0_i32_0 = arith.constant 0 : i32
    %c0_i32_1 = arith.constant 0 : i32
    return %c0_i32, %c0_i32_0 : i32, i32
  }
  func.func @transform_7(%arg0: i32) -> (i32, i32) {
    %c0_i32 = arith.constant 0 : i32
    %c0_i32_0 = arith.constant 0 : i32
    %c0_i32_1 = arith.constant 0 : i32
    return %c0_i32, %c0_i32_0 : i32, i32
  }
  func.func @transform_8(%arg0: i32) -> (i32, i32) {
    %c0_i32 = arith.constant 0 : i32
    %c0_i32_0 = arith.constant 0 : i32
    %c0_i32_1 = arith.constant 0 : i32
    return %c0_i32, %c0_i32_0 : i32, i32
  }
  func.func @transform_9(%arg0: i32) -> (i32, i32) {
    %c0_i32 = arith.constant 0 : i32
    %c0_i32_0 = arith.constant 0 : i32
    %c0_i32_1 = arith.constant 0 : i32
    return %c0_i32, %c0_i32_0 : i32, i32
  }
  func.func @transform_10(%arg0: i32) -> (i32, i32) {
    %c0_i32 = arith.constant 0 : i32
    %c0_i32_0 = arith.constant 0 : i32
    %c0_i32_1 = arith.constant 0 : i32
    return %c0_i32, %c0_i32_0 : i32, i32
  }
  func.func @transform_11(%arg0: i32) -> (i32, i32) {
    %c0_i32 = arith.constant 0 : i32
    %c0_i32_0 = arith.constant 0 : i32
    %c0_i32_1 = arith.constant 0 : i32
    return %c0_i32, %c0_i32_0 : i32, i32
  }
  func.func @transform_12(%arg0: i32) -> (i32, i32) {
    %c0_i32 = arith.constant 0 : i32
    %c0_i32_0 = arith.constant 0 : i32
    %c0_i32_1 = arith.constant 0 : i32
    return %c0_i32, %c0_i32_0 : i32, i32
  }
  func.func @transform_13(%arg0: i32) -> (i32, i32) {
    %c0_i32 = arith.constant 0 : i32
    %c0_i32_0 = arith.constant 0 : i32
    %c0_i32_1 = arith.constant 0 : i32
    return %c0_i32, %c0_i32_0 : i32, i32
  }
  func.func @transform_14(%arg0: i32) -> (i32, i32) {
    %c0_i32 = arith.constant 0 : i32
    %c0_i32_0 = arith.constant 0 : i32
    %c0_i32_1 = arith.constant 0 : i32
    return %c0_i32, %c0_i32_0 : i32, i32
  }
  func.func @transform_15(%arg0: i32) -> (i32, i32) {
    %c0_i32 = arith.constant 0 : i32
    %c0_i32_0 = arith.constant 0 : i32
    %c0_i32_1 = arith.constant 0 : i32
    return %c0_i32, %c0_i32_0 : i32, i32
  }
  func.func @transform_16(%arg0: i32) -> (i32, i32) {
    %c0_i32 = arith.constant 0 : i32
    %c0_i32_0 = arith.constant 0 : i32
    %c0_i32_1 = arith.constant 0 : i32
    return %c0_i32, %c0_i32_0 : i32, i32
  }
  func.func @transform_17(%arg0: i32) -> (i32, i32) {
    %c0_i32 = arith.constant 0 : i32
    %c0_i32_0 = arith.constant 0 : i32
    %c0_i32_1 = arith.constant 0 : i32
    return %c0_i32, %c0_i32_0 : i32, i32
  }
  func.func @transform_18(%arg0: i32) -> (i32, i32) {
    %c0_i32 = arith.constant 0 : i32
    %c0_i32_0 = arith.constant 0 : i32
    %c0_i32_1 = arith.constant 0 : i32
    return %c0_i32, %c0_i32_0 : i32, i32
  }
  func.func @transform_19(%arg0: i32) -> (i32, i32) {
    %c0_i32 = arith.constant 0 : i32
    %c0_i32_0 = arith.constant 0 : i32
    %c0_i32_1 = arith.constant 0 : i32
    return %c0_i32, %c0_i32_0 : i32, i32
  }
  func.func @transform_20(%arg0: i32) -> (i32, i32) {
    %c0_i32 = arith.constant 0 : i32
    %c0_i32_0 = arith.constant 0 : i32
    return %arg0, %c0_i32 : i32, i32
  }
}

</mosaic_0001>

<bundles_post_ra>
// kernel: tpu_custom_call.1
= control target key start
LH: loop header
LB: loop body
LE: loop exit
PB: predicated region body
PF: predicated region fallthrough
CT: control target
= control target key end

     0   :  { %6 = vsyncpa [#allocation3], 0  ;;  %s124_s0 = inlined_call_operand.hbm [shape: f32[8,128], index: 0, kind: input, shape index: {}]   ;;  %s125_s1 = inlined_call_operand.hbm [shape: f32[8,128], index: 1, kind: output, shape index: {}]  }
   0x1   :  { %7 = vsyncpa [#allocation4], 0  ;;  %s88_s6 = smov [#allocation2]   ;;  %s40_s10 = scalar_lea.hbm %s124_s0, 128 }
   0x2   :  { %s14_s7 = sshll.u32 %s88_s6, 4  ;;  %p41_p0 = scmp.ne.s32.totalorder %s124_s0, %s40_s10  ;;  %s15_s7 = int_to_ptr.vmem [resolvable:$true] %s14_s7 }
   0x3   :  { %p44_p1 = scmp.lt.u32.totalorder %s40_s10, %s124_s0 }
   0x5   :  { %p46_p2 = pnand %p44_p1, %p41_p0 }
   0x7   :  { %49 = shalt.err (!%p46_p2)
}
   0x8   :  { %s50_s15 = scalar_lea.vmem %s15_s7, 128  ;;  %p55_p4 = scmp.lt.s32.totalorder %s15_s7, %s15_s7 }
   0x9   :  { %p51_p3 = scmp.ne.s32.totalorder %s15_s7, %s50_s15  ;;  %p56_p5 = scmp.lt.s32.totalorder %s50_s15, %s50_s15 }
   0xb   :  { %p57_p6 = por %p56_p5, %p55_p4 }
   0xd   :  { %p58_p7 = pnand %p57_p6, %p51_p3 }
   0xf   :  { %61 = shalt.err (!%p58_p7)
}
  0x10   :  { %17 = dma.hbm_to_vmem [thread:$0]  %s124_s0, 128, %s15_s7, [#allocation3]  }
  0x11   :  { %84 = dma.done.wait [#allocation3], 128  }
  0x12   :  { %85 = vsyncadd [#allocation3], 4294967168  ;;  %s89_s18 = smov [#allocation5]   ;;  %v21_v0 = vld [vmem:[#allocation2] sm:$0xff] }
  0x13   :  { %s29_s19 = sshll.u32 %s89_s18, 4  ;;  %22 = vst [vmem:[#allocation5] sm:$0xff] %v21_v0  ;;  %s30_s19 = int_to_ptr.vmem [resolvable:$true] %s29_s19 }
  0x14   :  { %s62_s20 = scalar_lea.vmem %s30_s19, 128  ;;  %p67_p9 = scmp.lt.s32.totalorder %s30_s19, %s30_s19 }
  0x15   :  { %p63_p8 = scmp.ne.s32.totalorder %s30_s19, %s62_s20  ;;  %p68_p10 = scmp.lt.s32.totalorder %s62_s20, %s62_s20 }
  0x17   :  { %p69_p11 = por %p68_p10, %p67_p9 }
  0x19   :  { %p70_p12 = pnand %p69_p11, %p63_p8 }
  0x1b   :  { %73 = shalt.err (!%p70_p12)
}
  0x1c   :  { %s74_s23 = scalar_lea.hbm %s125_s1, 128 }
  0x1d   :  { %p75_p13 = scmp.ne.s32.totalorder %s125_s1, %s74_s23  ;;  %p78_p0 = scmp.lt.u32.totalorder %s74_s23, %s125_s1 }
  0x1f   :  { %p80_p1 = pnand %p78_p0, %p75_p13 }
  0x21   :  { %83 = shalt.err (!%p80_p1)
}
  0x22   :  { %32 = dma.vmem_to_hbm [thread:$0]  %s30_s19, 128, %s125_s1, [#allocation4]  }
  0x23   :  { %86 = dma.done.wait [#allocation4], 128  }
  0x24   :  { %87 = vsyncadd [#allocation4], 4294967168 }
  0x25   :  { %36 = vsyncpa [#allocation3], 1 }
  0x26   :  { %37 = vsyncpa [#allocation4], 1 }

// kernel: multimodal_sentiment_forward.1
= control target key start
LH: loop header
LB: loop body
LE: loop exit
PB: predicated region body
PF: predicated region fallthrough
CT: control target
= control target key end

     0   :  { %s15430_s0 = inlined_call_operand.hbm [shape: f32[8,3], index: 0, kind: input, shape index: {}]   ;;  %s15431_s1 = inlined_call_operand.hbm [shape: f32[8,768], index: 1, kind: input, shape index: {}]   ;;  %s15432_s2 = inlined_call_operand.hbm [shape: bf16[3,2048], index: 2, kind: input, shape index: {}]   ;;  %s15433_s3 = inlined_call_operand.hbm [shape: f32[1,2048], index: 3, kind: input, shape index: {}]   ;;  %s15434_s4 = inlined_call_operand.hbm [shape: bf16[2048,512], index: 4, kind: input, shape index: {}]   ;;  %s15435_s5 = inlined_call_operand.hbm [shape: f32[1,512], index: 5, kind: input, shape index: {}]   ;;  %s15436_s6 = inlined_call_operand.hbm [shape: bf16[768,512], index: 6, kind: input, shape index: {}]   ;;  %s15437_s7 = inlined_call_operand.hbm [shape: f32[1,512], index: 7, kind: input, shape index: {}]   ;;  %s15438_s8 = inlined_call_operand.hbm [shape: bf16[512,512], index: 8, kind: input, shape index: {}]   ;;  %s15439_s9 = inlined_call_operand.hbm [shape: bf16[512,512], index: 9, kind: input, shape index: {}]   ;;  %s15440_s10 = inlined_call_operand.hbm [shape: f32[1,512], index: 10, kind: input, shape index: {}]   ;;  %s15441_s11 = inlined_call_operand.hbm [shape: bf16[512,2], index: 11, kind: input, shape index: {}]   ;;  %s15442_s12 = inlined_call_operand.hbm [shape: f32[1,2], index: 12, kind: input, shape index: {}]   ;;  %s15443_s13 = inlined_call_operand.hbm [shape: bf16[512,512], index: 13, kind: input, shape index: {}]   ;;  %s15444_s14 = inlined_call_operand.hbm [shape: bf16[512,512], index: 14, kind: input, shape index: {}]   ;;  %s15445_s15 = inlined_call_operand.hbm [shape: f32[1,512], index: 15, kind: input, shape index: {}]   ;;  %s15446_s16 = inlined_call_operand.hbm [shape: bf16[512,128], index: 16, kind: input, shape index: {}]   ;;  %s15447_s17 = inlined_call_operand.hbm [shape: f32[1,128], index: 17, kind: input, shape index: {}]   ;;  %s15448_s18 = inlined_call_operand.hbm [shape: bf16[128,128], index: 18, kind: input, shape index: {}]   ;;  %s15449_s19 = inlined_call_operand.hbm [shape: f32[1,128], index: 19, kind: input, shape index: {}]   ;;  %s15450_s20 = inlined_call_operand.hbm [shape: f32[8,128], index: 20, kind: output, shape index: {}]  }
   0x1   :  { %15456 = sst [smem:[#allocation47_spill]] %s15430_s0 }
   0x2   :  { %15457 = sst [smem:[#allocation48_spill]] %s15431_s1 }
   0x3   :  { %15458 = sst [smem:[#allocation49_spill]] %s15432_s2 }
   0x4   :  { %15459 = sst [smem:[#allocation50_spill]] %s15433_s3 }
   0x5   :  { %15460 = sst [smem:[#allocation51_spill]] %s15434_s4 }
   0x6   :  { %25 = vsyncpa [#allocation3], 0 }
   0x7   :  { %26 = vsyncpa [#allocation6], 0 }
   0x8   :  { %27 = vsyncpa [#allocation9], 0 }
   0x9   :  { %28 = vsyncpa [#allocation12], 0 }
   0xa   :  { %29 = vsyncpa [#allocation15], 0 }
   0xb   :  { %30 = vsyncpa [#allocation18], 0 }
   0xc   :  { %31 = vsyncpa [#allocation21], 0 }
   0xd   :  { %32 = vsyncpa [#allocation24], 0 }
   0xe   :  { %33 = vsyncpa [#allocation27], 0 }
   0xf   :  { %34 = vsyncpa [#allocation30], 0 }
  0x10   :  { %35 = vsyncpa [#allocation33], 0 }
  0x11   :  { %36 = vsyncpa [#allocation4], 0  ;;  %s14680_s1 = smov [#allocation5]   ;;  %s14681_s23 = smov [#allocation8]  }
  0x12   :  { %s53_s22 = sshll.u32 %s14680_s1, 4  ;;  %s73_s24 = sshll.u32 %s14681_s23, 4  ;;  %s54_s22 = int_to_ptr.vmem [resolvable:$true] %s53_s22  ;;  %s74_s24 = int_to_ptr.vmem [resolvable:$true] %s73_s24 }
  0x13   :  { %s15461_s3 = sld [smem:[#allocation48_spill]] }
  0x19   :  { %s14194_s26 = scalar_lea.hbm %s15461_s3, 768 }
  0x1a   :  { %p14195_p0 = scmp.ne.s32.totalorder %s15461_s3, %s14194_s26  ;;  %p14198_p1 = scmp.lt.u32.totalorder %s14194_s26, %s15461_s3 }
  0x1c   :  { %p14200_p2 = pnand %p14198_p1, %p14195_p0 }
  0x1e   :  { %14203 = shalt.err (!%p14200_p2)
}
  0x1f   :  { %s14204_s30 = scalar_lea.vmem %s54_s22, 768  ;;  %p14209_p4 = scmp.lt.s32.totalorder %s54_s22, %s54_s22 }
  0x20   :  { %p14205_p3 = scmp.ne.s32.totalorder %s54_s22, %s14204_s30  ;;  %p14210_p5 = scmp.lt.s32.totalorder %s14204_s30, %s14204_s30 }
  0x22   :  { %p14211_p6 = por %p14210_p5, %p14209_p4 }
  0x24   :  { %p14212_p7 = pnand %p14211_p6, %p14205_p3 }
  0x26   :  { %14215 = shalt.err (!%p14212_p7)
}
  0x27   :  { %56 = dma.hbm_to_vmem [thread:$0]  %s15461_s3, 768, %s54_s22, [#allocation6]  }
  0x28   :  { %s15462_s2 = sld [smem:[#allocation50_spill]] }
  0x2e   :  { %s14216_s25 = scalar_lea.hbm %s15462_s2, 256 }
  0x2f   :  { %p14217_p8 = scmp.ne.s32.totalorder %s15462_s2, %s14216_s25  ;;  %p14220_p9 = scmp.lt.u32.totalorder %s14216_s25, %s15462_s2 }
  0x31   :  { %p14222_p10 = pnand %p14220_p9, %p14217_p8 }
  0x33   :  { %14225 = shalt.err (!%p14222_p10)
}
  0x34   :  { %s14226_s29 = scalar_lea.vmem %s74_s24, 256  ;;  %p14231_p12 = scmp.lt.s32.totalorder %s74_s24, %s74_s24 }
  0x35   :  { %p14227_p11 = scmp.ne.s32.totalorder %s74_s24, %s14226_s29  ;;  %p14232_p13 = scmp.lt.s32.totalorder %s14226_s29, %s14226_s29 }
  0x37   :  { %p14233_p0 = por %p14232_p13, %p14231_p12 }
  0x39   :  { %p14234_p1 = pnand %p14233_p0, %p14227_p11 }
  0x3b   :  { %14237 = shalt.err (!%p14234_p1)
}
  0x3c   :  { %76 = dma.hbm_to_vmem [thread:$0]  %s15462_s2, 256, %s74_s24, [#allocation9]  }
  0x3d   :  { %s14682_s30 = smov [#allocation11]   ;;  %s14683_s21 = smov [#allocation14]  }
  0x3e   :  { %s95_s0 = sshll.u32 %s14682_s30, 4  ;;  %s117_s1 = sshll.u32 %s14683_s21, 4  ;;  %s96_s0 = int_to_ptr.vmem [resolvable:$true] %s95_s0  ;;  %s118_s1 = int_to_ptr.vmem [resolvable:$true] %s117_s1 }
  0x3f   :  { %s14238_s27 = scalar_lea.hbm %s15435_s5, 64 }
  0x40   :  { %p14239_p2 = scmp.ne.s32.totalorder %s15435_s5, %s14238_s27  ;;  %p14242_p3 = scmp.lt.u32.totalorder %s14238_s27, %s15435_s5 }
  0x42   :  { %p14244_p4 = pnand %p14242_p3, %p14239_p2 }
  0x44   :  { %14247 = shalt.err (!%p14244_p4)
}
  0x45   :  { %s14248_s24 = scalar_lea.vmem %s96_s0, 64  ;;  %p14253_p6 = scmp.lt.s32.totalorder %s96_s0, %s96_s0 }
  0x46   :  { %p14249_p5 = scmp.ne.s32.totalorder %s96_s0, %s14248_s24  ;;  %p14254_p7 = scmp.lt.s32.totalorder %s14248_s24, %s14248_s24 }
  0x48   :  { %p14255_p8 = por %p14254_p7, %p14253_p6 }
  0x4a   :  { %p14256_p9 = pnand %p14255_p8, %p14249_p5 }
  0x4c   :  { %14259 = shalt.err (!%p14256_p9)
}
  0x4d   :  { %98 = dma.hbm_to_vmem [thread:$0]  %s15435_s5, 64, %s96_s0, [#allocation12]  }
  0x4e   :  { %s14260_s21 = scalar_lea.hbm %s15437_s7, 64 }
  0x4f   :  { %p14261_p10 = scmp.ne.s32.totalorder %s15437_s7, %s14260_s21  ;;  %p14264_p11 = scmp.lt.u32.totalorder %s14260_s21, %s15437_s7 }
  0x51   :  { %p14266_p12 = pnand %p14264_p11, %p14261_p10 }
  0x53   :  { %14269 = shalt.err (!%p14266_p12)
}
  0x54   :  { %s14270_s26 = scalar_lea.vmem %s118_s1, 64  ;;  %p14275_p0 = scmp.lt.s32.totalorder %s118_s1, %s118_s1 }
  0x55   :  { %p14271_p13 = scmp.ne.s32.totalorder %s118_s1, %s14270_s26  ;;  %p14276_p1 = scmp.lt.s32.totalorder %s14270_s26, %s14270_s26 }
  0x57   :  { %p14277_p2 = por %p14276_p1, %p14275_p0 }
  0x59   :  { %p14278_p3 = pnand %p14277_p2, %p14271_p13 }
  0x5b   :  { %14281 = shalt.err (!%p14278_p3)
}
  0x5c   :  { %120 = dma.hbm_to_vmem [thread:$0]  %s15437_s7, 64, %s118_s1, [#allocation15]  }
  0x5d   :  { %s14684_s4 = smov [#allocation17]   ;;  %s14685_s24 = smov [#allocation20]  }
  0x5e   :  { %s138_s29 = sshll.u32 %s14684_s4, 4  ;;  %s160_s2 = sshll.u32 %s14685_s24, 4  ;;  %s139_s29 = int_to_ptr.vmem [resolvable:$true] %s138_s29  ;;  %s14865_s2 = int_to_ptr.vmem [resolvable:$true] %s160_s2 }
  0x5f   :  { %s14282_s30 = scalar_lea.hbm %s15439_s9, 16384 }
  0x60   :  { %p14283_p4 = scmp.ne.s32.totalorder %s15439_s9, %s14282_s30  ;;  %p14286_p5 = scmp.lt.u32.totalorder %s14282_s30, %s15439_s9 }
  0x62   :  { %p14288_p6 = pnand %p14286_p5, %p14283_p4 }
  0x64   :  { %14291 = shalt.err (!%p14288_p6)
}
  0x65   :  { %s14292_s7 = scalar_lea.vmem %s139_s29, 16384  ;;  %p14297_p8 = scmp.lt.s32.totalorder %s139_s29, %s139_s29 }
  0x66   :  { %p14293_p7 = scmp.ne.s32.totalorder %s139_s29, %s14292_s7  ;;  %p14298_p9 = scmp.lt.s32.totalorder %s14292_s7, %s14292_s7 }
  0x68   :  { %p14299_p10 = por %p14298_p9, %p14297_p8 }
  0x6a   :  { %p14300_p11 = pnand %p14299_p10, %p14293_p7 }
  0x6c   :  { %14303 = shalt.err (!%p14300_p11)
}
  0x6d   :  { %s14686_s1 = smov 256   ;;  %s14687_s28 = smov 16  }
  0x6e   :  { %144 = dma.hbm_to_vmem [thread:$0]  %s15439_s9, 16384, %s139_s29, [#allocation18], %s14686_s1, %s14686_s1, %s14687_s28  }
  0x6f   :  { %s14304_s24 = scalar_lea.hbm %s15441_s11, 4096 }
  0x70   :  { %p14305_p12 = scmp.ne.s32.totalorder %s15441_s11, %s14304_s24  ;;  %p14308_p13 = scmp.lt.u32.totalorder %s14304_s24, %s15441_s11 }
  0x72   :  { %p14310_p0 = pnand %p14308_p13, %p14305_p12 }
  0x74   :  { %14313 = shalt.err (!%p14310_p0)
}
  0x75   :  { %s14314_s23 = scalar_lea.vmem %s14865_s2, 4096  ;;  %p14319_p2 = scmp.lt.s32.totalorder %s14865_s2, %s14865_s2 }
  0x76   :  { %p14315_p1 = scmp.ne.s32.totalorder %s14865_s2, %s14314_s23  ;;  %p14320_p3 = scmp.lt.s32.totalorder %s14314_s23, %s14314_s23 }
  0x78   :  { %p14321_p4 = por %p14320_p3, %p14319_p2 }
  0x7a   :  { %p14322_p5 = pnand %p14321_p4, %p14315_p1 }
  0x7c   :  { %14325 = shalt.err (!%p14322_p5)
}
  0x7d   :  { %s14688_s9 = smov 64   ;;  %s14689_s29 = smov 4  }
  0x7e   :  { %166 = dma.hbm_to_vmem [thread:$0]  %s15441_s11, 4096, %s14865_s2, [#allocation21], %s14688_s9, %s14688_s9, %s14689_s29  }
  0x7f   :  { %s14690_s7 = smov [#allocation23]   ;;  %s14691_s5 = smov [#allocation26]  }
  0x80   :  { %s182_s26 = sshll.u32 %s14690_s7, 4  ;;  %s207_s0 = sshll.u32 %s14691_s5, 4  ;;  %s183_s26 = int_to_ptr.vmem [resolvable:$true] %s182_s26  ;;  %s208_s0 = int_to_ptr.vmem [resolvable:$true] %s207_s0 }
  0x81   :  { %s14326_s22 = scalar_lea.hbm %s15443_s13, 16384 }
  0x82   :  { %p14327_p6 = scmp.ne.s32.totalorder %s15443_s13, %s14326_s22  ;;  %p14330_p7 = scmp.lt.u32.totalorder %s14326_s22, %s15443_s13 }
  0x84   :  { %p14332_p8 = pnand %p14330_p7, %p14327_p6 }
  0x86   :  { %14335 = shalt.err (!%p14332_p8)
}
  0x87   :  { %s14336_s11 = scalar_lea.vmem %s183_s26, 16384  ;;  %p14341_p10 = scmp.lt.s32.totalorder %s183_s26, %s183_s26 }
  0x88   :  { %p14337_p9 = scmp.ne.s32.totalorder %s183_s26, %s14336_s11  ;;  %p14342_p11 = scmp.lt.s32.totalorder %s14336_s11, %s14336_s11 }
  0x8a   :  { %p14343_p12 = por %p14342_p11, %p14341_p10 }
  0x8c   :  { %p14344_p13 = pnand %p14343_p12, %p14337_p9 }
  0x8e   :  { %14347 = shalt.err (!%p14344_p13)
}
  0x8f   :  { %188 = dma.hbm_to_vmem [thread:$0]  %s15443_s13, 16384, %s183_s26, [#allocation24], %s14686_s1, %s14686_s1, %s14687_s28  }
  0x90   :  { %s14348_s5 = scalar_lea.hbm %s15445_s15, 64 }
  0x91   :  { %p14349_p0 = scmp.ne.s32.totalorder %s15445_s15, %s14348_s5  ;;  %p14352_p1 = scmp.lt.u32.totalorder %s14348_s5, %s15445_s15 }
  0x93   :  { %p14354_p2 = pnand %p14352_p1, %p14349_p0 }
  0x95   :  { %14357 = shalt.err (!%p14354_p2)
}
  0x96   :  { %s14358_s30 = scalar_lea.vmem %s208_s0, 64  ;;  %p14363_p4 = scmp.lt.s32.totalorder %s208_s0, %s208_s0 }
  0x97   :  { %p14359_p3 = scmp.ne.s32.totalorder %s208_s0, %s14358_s30  ;;  %p14364_p5 = scmp.lt.s32.totalorder %s14358_s30, %s14358_s30 }
  0x99   :  { %p14365_p6 = por %p14364_p5, %p14363_p4 }
  0x9b   :  { %p14366_p7 = pnand %p14365_p6, %p14359_p3 }
  0x9d   :  { %14369 = shalt.err (!%p14366_p7)
}
  0x9e   :  { %210 = dma.hbm_to_vmem [thread:$0]  %s15445_s15, 64, %s208_s0, [#allocation27]  }
  0x9f   :  { %s14692_s21 = smov [#allocation29]   ;;  %s14693_s11 = smov [#allocation2]  }
  0xa0   :  { %s229_s23 = sshll.u32 %s14692_s21, 4  ;;  %s43_s2 = sshll.u32 %s14693_s11, 4  ;;  %s230_s23 = int_to_ptr.vmem [resolvable:$true] %s229_s23  ;;  %s44_s2 = int_to_ptr.vmem [resolvable:$true] %s43_s2 }
  0xa1   :  { %s14370_s7 = scalar_lea.hbm %s15447_s17, 16 }
  0xa2   :  { %p14371_p8 = scmp.ne.s32.totalorder %s15447_s17, %s14370_s7  ;;  %p14374_p9 = scmp.lt.u32.totalorder %s14370_s7, %s15447_s17 }
  0xa4   :  { %p14376_p10 = pnand %p14374_p9, %p14371_p8 }
  0xa6   :  { %14379 = shalt.err (!%p14376_p10)
}
  0xa7   :  { %s14380_s15 = scalar_lea.vmem %s230_s23, 16  ;;  %s14384_s0 = scalar_lea.vmem %s230_s23, 32 }
  0xa8   :  { %p14381_p11 = scmp.ne.s32.totalorder %s230_s23, %s14380_s15  ;;  %p14385_p12 = scmp.lt.s32.totalorder %s230_s23, %s230_s23 }
  0xa9   :  { %p14386_p13 = scmp.lt.s32.totalorder %s14384_s0, %s14380_s15 }
  0xab   :  { %p14387_p0 = por %p14386_p13, %p14385_p12 }
  0xad   :  { %p14388_p1 = pnand %p14387_p0, %p14381_p11 }
  0xaf   :  { %14391 = shalt.err (!%p14388_p1)
}
  0xb0   :  { %232 = dma.hbm_to_vmem [thread:$0]  %s15447_s17, 16, %s230_s23, [#allocation30]  }
  0xb1   :  { %s15463_s21 = sld [smem:[#allocation47_spill]] }
  0xb7   :  { %s14392_s11 = scalar_lea.hbm %s15463_s21, 128 }
  0xb8   :  { %p14393_p2 = scmp.ne.s32.totalorder %s15463_s21, %s14392_s11  ;;  %p14396_p3 = scmp.lt.u32.totalorder %s14392_s11, %s15463_s21 }
  0xba   :  { %p14398_p4 = pnand %p14396_p3, %p14393_p2 }
  0xbc   :  { %14401 = shalt.err (!%p14398_p4)
}
  0xbd   :  { %s14402_s4 = scalar_lea.vmem %s44_s2, 128  ;;  %p14407_p6 = scmp.lt.s32.totalorder %s44_s2, %s44_s2 }
  0xbe   :  { %p14403_p5 = scmp.ne.s32.totalorder %s44_s2, %s14402_s4  ;;  %p14408_p7 = scmp.lt.s32.totalorder %s14402_s4, %s14402_s4 }
  0xc0   :  { %p14409_p8 = por %p14408_p7, %p14407_p6 }
  0xc2   :  { %p14410_p9 = pnand %p14409_p8, %p14403_p5 }
  0xc4   :  { %14413 = shalt.err (!%p14410_p9)
}
  0xc5   :  { %46 = dma.hbm_to_vmem [thread:$0]  %s15463_s21, 128, %s44_s2, [#allocation3]  }
  0xc6   :  { %s14694_s24 = smov [#allocation7]   ;;  %s14695_s15 = smov [#allocation10]  }
  0xc7   :  { %s63_s22 = sshll.u32 %s14694_s24, 4  ;;  %s82_s0 = sshll.u32 %s14695_s15, 4  ;;  %s64_s22 = int_to_ptr.vmem [resolvable:$true] %s63_s22  ;;  %s14953_s0 = int_to_ptr.vmem [resolvable:$true] %s82_s0 }
  0xc8   :  { %s15464_s13 = sld [smem:[#allocation49_spill]] }
  0xce   :  { %s14414_s26 = scalar_lea.hbm %s15464_s13, 512 }
  0xcf   :  { %p14415_p10 = scmp.ne.s32.totalorder %s15464_s13, %s14414_s26  ;;  %p14418_p11 = scmp.lt.u32.totalorder %s14414_s26, %s15464_s13 }
  0xd1   :  { %p14420_p12 = pnand %p14418_p11, %p14415_p10 }
  0xd3   :  { %14423 = shalt.err (!%p14420_p12)
}
  0xd4   :  { %s14424_s2 = scalar_lea.vmem %s64_s22, 512  ;;  %p14429_p0 = scmp.lt.s32.totalorder %s64_s22, %s64_s22 }
  0xd5   :  { %p14425_p13 = scmp.ne.s32.totalorder %s64_s22, %s14424_s2  ;;  %p14430_p1 = scmp.lt.s32.totalorder %s14424_s2, %s14424_s2 }
  0xd7   :  { %p14431_p2 = por %p14430_p1, %p14429_p0 }
  0xd9   :  { %p14432_p3 = pnand %p14431_p2, %p14425_p13 }
  0xdb   :  { %14435 = shalt.err (!%p14432_p3)
}
  0xdc   :  { %66 = dma.hbm_to_vmem [thread:$0]  %s15464_s13, 512, %s64_s22, [#allocation6]  }
  0xdd   :  { %s15465_s23 = sld [smem:[#allocation51_spill]] }
  0xe3   :  { %s14436_s24 = scalar_lea.hbm %s15465_s23, 65536 }
  0xe4   :  { %p14437_p4 = scmp.ne.s32.totalorder %s15465_s23, %s14436_s24  ;;  %p14440_p5 = scmp.lt.u32.totalorder %s14436_s24, %s15465_s23 }
  0xe6   :  { %p14442_p6 = pnand %p14440_p5, %p14437_p4 }
  0xe8   :  { %14445 = shalt.err (!%p14442_p6)
}
  0xe9   :  { %s14446_s11 = scalar_lea.vmem %s14953_s0, 65536  ;;  %p14451_p8 = scmp.lt.s32.totalorder %s14953_s0, %s14953_s0 }
  0xea   :  { %p14447_p7 = scmp.ne.s32.totalorder %s14953_s0, %s14446_s11  ;;  %p14452_p9 = scmp.lt.s32.totalorder %s14446_s11, %s14446_s11 }
  0xec   :  { %p14453_p10 = por %p14452_p9, %p14451_p8 }
  0xee   :  { %p14454_p11 = pnand %p14453_p10, %p14447_p7 }
  0xf0   :  { %14457 = shalt.err (!%p14454_p11)
}
  0xf1   :  { %88 = dma.hbm_to_vmem [thread:$0]  %s15465_s23, 65536, %s14953_s0, [#allocation9], %s14686_s1, %s14686_s1, %s14687_s28  }
  0xf2   :  { %s14696_s25 = smov [#allocation13]   ;;  %s14697_s7 = smov [#allocation16]  }
  0xf3   :  { %s104_s27 = sshll.u32 %s14696_s25, 4  ;;  %s126_s2 = sshll.u32 %s14697_s7, 4  ;;  %s105_s27 = int_to_ptr.vmem [resolvable:$true] %s104_s27  ;;  %s14987_s2 = int_to_ptr.vmem [resolvable:$true] %s126_s2 }
  0xf4   :  { %s14458_s4 = scalar_lea.hbm %s15436_s6, 24576 }
  0xf5   :  { %p14459_p12 = scmp.ne.s32.totalorder %s15436_s6, %s14458_s4  ;;  %p14462_p13 = scmp.lt.u32.totalorder %s14458_s4, %s15436_s6 }
  0xf7   :  { %p14464_p0 = pnand %p14462_p13, %p14459_p12 }
  0xf9   :  { %14467 = shalt.err (!%p14464_p0)
}
  0xfa   :  { %s14468_s0 = scalar_lea.vmem %s105_s27, 24576  ;;  %p14473_p2 = scmp.lt.s32.totalorder %s105_s27, %s105_s27 }
  0xfb   :  { %p14469_p1 = scmp.ne.s32.totalorder %s105_s27, %s14468_s0  ;;  %p14474_p3 = scmp.lt.s32.totalorder %s14468_s0, %s14468_s0 }
  0xfd   :  { %p14475_p4 = por %p14474_p3, %p14473_p2 }
  0xff   :  { %p14476_p5 = pnand %p14475_p4, %p14469_p1 }
 0x101   :  { %14479 = shalt.err (!%p14476_p5)
}
 0x102   :  { %110 = dma.hbm_to_vmem [thread:$0]  %s15436_s6, 24576, %s105_s27, [#allocation12], %s14686_s1, %s14686_s1, %s14687_s28  }
 0x103   :  { %s14480_s22 = scalar_lea.hbm %s15438_s8, 16384 }
 0x104   :  { %p14481_p6 = scmp.ne.s32.totalorder %s15438_s8, %s14480_s22  ;;  %p14484_p7 = scmp.lt.u32.totalorder %s14480_s22, %s15438_s8 }
 0x106   :  { %p14486_p8 = pnand %p14484_p7, %p14481_p6 }
 0x108   :  { %14489 = shalt.err (!%p14486_p8)
}
 0x109   :  { %s14490_s5 = scalar_lea.vmem %s14987_s2, 16384  ;;  %p14495_p10 = scmp.lt.s32.totalorder %s14987_s2, %s14987_s2 }
 0x10a   :  { %p14491_p9 = scmp.ne.s32.totalorder %s14987_s2, %s14490_s5  ;;  %p14496_p11 = scmp.lt.s32.totalorder %s14490_s5, %s14490_s5 }
 0x10c   :  { %p14497_p12 = por %p14496_p11, %p14495_p10 }
 0x10e   :  { %p14498_p13 = pnand %p14497_p12, %p14491_p9 }
 0x110   :  { %14501 = shalt.err (!%p14498_p13)
}
 0x111   :  { %132 = dma.hbm_to_vmem [thread:$0]  %s15438_s8, 16384, %s14987_s2, [#allocation15], %s14686_s1, %s14686_s1, %s14687_s28  }
 0x112   :  { %s14698_s4 = smov [#allocation19]   ;;  %s14699_s24 = smov [#allocation22]  }
 0x113   :  { %s151_s17 = sshll.u32 %s14698_s4, 4  ;;  %s173_s15 = sshll.u32 %s14699_s24, 4  ;;  %s152_s17 = int_to_ptr.vmem [resolvable:$true] %s151_s17  ;;  %s174_s15 = int_to_ptr.vmem [resolvable:$true] %s173_s15 }
 0x114   :  { %s14502_s23 = scalar_lea.hbm %s15440_s10, 64 }
 0x115   :  { %p14503_p0 = scmp.ne.s32.totalorder %s15440_s10, %s14502_s23  ;;  %p14506_p1 = scmp.lt.u32.totalorder %s14502_s23, %s15440_s10 }
 0x117   :  { %p14508_p2 = pnand %p14506_p1, %p14503_p0 }
 0x119   :  { %14511 = shalt.err (!%p14508_p2)
}
 0x11a   :  { %s14512_s8 = scalar_lea.vmem %s152_s17, 64  ;;  %p14517_p4 = scmp.lt.s32.totalorder %s152_s17, %s152_s17 }
 0x11b   :  { %p14513_p3 = scmp.ne.s32.totalorder %s152_s17, %s14512_s8  ;;  %p14518_p5 = scmp.lt.s32.totalorder %s14512_s8, %s14512_s8 }
 0x11d   :  { %p14519_p6 = por %p14518_p5, %p14517_p4 }
 0x11f   :  { %p14520_p7 = pnand %p14519_p6, %p14513_p3 }
 0x121   :  { %14523 = shalt.err (!%p14520_p7)
}
 0x122   :  { %154 = dma.hbm_to_vmem [thread:$0]  %s15440_s10, 64, %s152_s17, [#allocation18]  }
 0x123   :  { %s14524_s21 = scalar_lea.hbm %s15442_s12, 16 }
 0x124   :  { %p14525_p8 = scmp.ne.s32.totalorder %s15442_s12, %s14524_s21  ;;  %p14528_p9 = scmp.lt.u32.totalorder %s14524_s21, %s15442_s12 }
 0x126   :  { %p14530_p10 = pnand %p14528_p9, %p14525_p8 }
 0x128   :  { %14533 = shalt.err (!%p14530_p10)
}
 0x129   :  { %s14534_s24 = scalar_lea.vmem %s174_s15, 16  ;;  %s14538_s3 = scalar_lea.vmem %s174_s15, 32 }
 0x12a   :  { %p14535_p11 = scmp.ne.s32.totalorder %s174_s15, %s14534_s24  ;;  %p14539_p12 = scmp.lt.s32.totalorder %s174_s15, %s174_s15 }
 0x12b   :  { %p14540_p13 = scmp.lt.s32.totalorder %s14538_s3, %s14534_s24 }
 0x12d   :  { %p14541_p0 = por %p14540_p13, %p14539_p12 }
 0x12f   :  { %p14542_p1 = pnand %p14541_p0, %p14535_p11 }
 0x131   :  { %14545 = shalt.err (!%p14542_p1)
}
 0x132   :  { %176 = dma.hbm_to_vmem [thread:$0]  %s15442_s12, 16, %s174_s15, [#allocation21]  }
 0x133   :  { %s14700_s0 = smov [#allocation25]   ;;  %s14701_s30 = smov [#allocation28]  }
 0x134   :  { %s194_s23 = sshll.u32 %s14700_s0, 4  ;;  %s216_s26 = sshll.u32 %s14701_s30, 4  ;;  %s195_s23 = int_to_ptr.vmem [resolvable:$true] %s194_s23  ;;  %s15048_s26 = int_to_ptr.vmem [resolvable:$true] %s216_s26 }
 0x135   :  { %s14546_s8 = scalar_lea.hbm %s15444_s14, 16384 }
 0x136   :  { %p14547_p2 = scmp.ne.s32.totalorder %s15444_s14, %s14546_s8  ;;  %p14550_p3 = scmp.lt.u32.totalorder %s14546_s8, %s15444_s14 }
 0x138   :  { %p14552_p4 = pnand %p14550_p3, %p14547_p2 }
 0x13a   :  { %14555 = shalt.err (!%p14552_p4)
}
 0x13b   :  { %s14556_s12 = scalar_lea.vmem %s195_s23, 16384  ;;  %p14561_p6 = scmp.lt.s32.totalorder %s195_s23, %s195_s23 }
 0x13c   :  { %p14557_p5 = scmp.ne.s32.totalorder %s195_s23, %s14556_s12  ;;  %p14562_p7 = scmp.lt.s32.totalorder %s14556_s12, %s14556_s12 }
 0x13e   :  { %p14563_p8 = por %p14562_p7, %p14561_p6 }
 0x140   :  { %p14564_p9 = pnand %p14563_p8, %p14557_p5 }
 0x142   :  { %14567 = shalt.err (!%p14564_p9)
}
 0x143   :  { %200 = dma.hbm_to_vmem [thread:$0]  %s15444_s14, 16384, %s195_s23, [#allocation24], %s14686_s1, %s14686_s1, %s14687_s28  }
 0x144   :  { %s14568_s27 = scalar_lea.hbm %s15446_s16, 4096 }
 0x145   :  { %p14569_p10 = scmp.ne.s32.totalorder %s15446_s16, %s14568_s27  ;;  %p14572_p11 = scmp.lt.u32.totalorder %s14568_s27, %s15446_s16 }
 0x147   :  { %p14574_p12 = pnand %p14572_p11, %p14569_p10 }
 0x149   :  { %14577 = shalt.err (!%p14574_p12)
}
 0x14a   :  { %s14578_s17 = scalar_lea.vmem %s15048_s26, 4096  ;;  %p14583_p0 = scmp.lt.s32.totalorder %s15048_s26, %s15048_s26 }
 0x14b   :  { %p14579_p13 = scmp.ne.s32.totalorder %s15048_s26, %s14578_s17  ;;  %p14584_p1 = scmp.lt.s32.totalorder %s14578_s17, %s14578_s17 }
 0x14d   :  { %p14585_p2 = por %p14584_p1, %p14583_p0 }
 0x14f   :  { %p14586_p3 = pnand %p14585_p2, %p14579_p13 }
 0x151   :  { %14589 = shalt.err (!%p14586_p3)
}
 0x152   :  { %222 = dma.hbm_to_vmem [thread:$0]  %s15446_s16, 4096, %s15048_s26, [#allocation27], %s14688_s9, %s14688_s9, %s14689_s29  }
 0x153   :  { %s14702_s28 = smov [#allocation31]   ;;  %s14703_s23 = smov [#allocation32]  }
 0x154   :  { %s238_s0 = sshll.u32 %s14702_s28, 4  ;;  %s251_s30 = sshll.u32 %s14703_s23, 4  ;;  %s239_s0 = int_to_ptr.vmem [resolvable:$true] %s238_s0  ;;  %s252_s30 = int_to_ptr.vmem [resolvable:$true] %s251_s30 }
 0x155   :  { %s14590_s8 = scalar_lea.hbm %s15448_s18, 1024 }
 0x156   :  { %p14591_p4 = scmp.ne.s32.totalorder %s15448_s18, %s14590_s8  ;;  %p14594_p5 = scmp.lt.u32.totalorder %s14590_s8, %s15448_s18 }
 0x158   :  { %p14596_p6 = pnand %p14594_p5, %p14591_p4 }
 0x15a   :  { %14599 = shalt.err (!%p14596_p6)
}
 0x15b   :  { %s14600_s16 = scalar_lea.vmem %s239_s0, 1024  ;;  %p14605_p8 = scmp.lt.s32.totalorder %s239_s0, %s239_s0 }
 0x15c   :  { %p14601_p7 = scmp.ne.s32.totalorder %s239_s0, %s14600_s16  ;;  %p14606_p9 = scmp.lt.s32.totalorder %s14600_s16, %s14600_s16 }
 0x15e   :  { %p14607_p10 = por %p14606_p9, %p14605_p8 }
 0x160   :  { %p14608_p11 = pnand %p14607_p10, %p14601_p7 }
 0x162   :  { %14611 = shalt.err (!%p14608_p11)
}
 0x163   :  { %244 = dma.hbm_to_vmem [thread:$0]  %s15448_s18, 1024, %s239_s0, [#allocation30], %s14688_s9, %s14688_s9, %s14689_s29  }
 0x164   :  { %s14612_s5 = scalar_lea.hbm %s15449_s19, 16 }
 0x165   :  { %p14613_p12 = scmp.ne.s32.totalorder %s15449_s19, %s14612_s5  ;;  %p14616_p13 = scmp.lt.u32.totalorder %s14612_s5, %s15449_s19 }
 0x167   :  { %p14618_p0 = pnand %p14616_p13, %p14613_p12 }
 0x169   :  { %14621 = shalt.err (!%p14618_p0)
}
 0x16a   :  { %s14622_s3 = scalar_lea.vmem %s252_s30, 16  ;;  %s14626_s10 = scalar_lea.vmem %s252_s30, 32 }
 0x16b   :  { %p14623_p1 = scmp.ne.s32.totalorder %s252_s30, %s14622_s3  ;;  %p14627_p2 = scmp.lt.s32.totalorder %s252_s30, %s252_s30 }
 0x16c   :  { %p14628_p3 = scmp.lt.s32.totalorder %s14626_s10, %s14622_s3 }
 0x16e   :  { %p14629_p4 = por %p14628_p3, %p14627_p2 }
 0x170   :  { %p14630_p5 = pnand %p14629_p4, %p14623_p1 }
 0x172   :  { %14633 = shalt.err (!%p14630_p5)
}
 0x173   :  { %254 = dma.hbm_to_vmem [thread:$0]  %s15449_s19, 16, %s252_s30, [#allocation33]  }
 0x174   :  { %14656 = dma.done.wait [#allocation3], 128  }
 0x175   :  { %14657 = vsyncadd [#allocation3], 4294967168 }
 0x176   :  { %14658 = dma.done.wait [#allocation6], 1280  }
 0x177   :  { %14659 = vsyncadd [#allocation6], 4294966016 }
 0x178   :  { %14660 = dma.done.wait [#allocation9], 65792  }
 0x179   :  { %14661 = vsyncadd [#allocation9], 4294901504 }
 0x17a   :  { %14662 = dma.done.wait [#allocation12], 24640  }
 0x17b   :  { %14663 = vsyncadd [#allocation12], 4294942656 }
 0x17c   :  { %14664 = dma.done.wait [#allocation15], 16448  }
 0x17d   :  { %14665 = vsyncadd [#allocation15], 4294950848 }
 0x17e   :  { %14666 = dma.done.wait [#allocation18], 16448  }
 0x17f   :  { %14667 = vsyncadd [#allocation18], 4294950848 }
 0x180   :  { %14668 = dma.done.wait [#allocation21], 4112  }
 0x181   :  { %14669 = vsyncadd [#allocation21], 4294963184 }
 0x182   :  { %14670 = dma.done.wait [#allocation24], 32768  }
 0x183   :  { %14671 = vsyncadd [#allocation24], 4294934528 }
 0x184   :  { %14672 = dma.done.wait [#allocation27], 4160  }
 0x185   :  { %14673 = vsyncadd [#allocation27], 4294963136 }
 0x186   :  { %14674 = dma.done.wait [#allocation30], 1040  }
 0x187   :  { %14675 = vsyncadd [#allocation30], 4294966256 }
 0x188   :  { %14676 = dma.done.wait [#allocation33], 16  }
 0x189   :  { %14677 = vsyncadd [#allocation33], 4294967280  ;;  %v326_v0 = vlaneseq  ;;  %v14704_v1 = vmov 1983009808   ;;  %vm482_vm0 = vcmask 1040384   ;;  %v14705_v4 = vmov 0  }
 0x18a   :  { %v412_v2 = vunpack.c.l.s4 %v14704_v1  ;;  %566 = vmatprep.mubr.bf16.mxu1 %v14705_v4  ;;  %730 = vmatprep.mubr.bf16.mxu0 %v14705_v4  ;;  %vm483_vm1 = vcmask 1041408   ;;  %v14706_v7 = vmov 65535   ;;  %v318_v9 = vld [vmem:[#allocation7] sm:$0xff]  ;;  %v319_v10 = vld [vmem:[#allocation7 + $0x8] sm:$0xff]  ;;  %v320_v15 = vld [vmem:[#allocation7 + $0x10] sm:$0xff]  ;;  %vm478_vm2 = vcmask 23552  }
 0x18b   :  { %v15113_v3 = vshrl.u32 %v326_v0, 7  ;;  %v484_v8 = vsel %vm482_vm0, 4294967295, %v14706_v7  ;;  %v410_v11 = vcombine.high %v318_v9, %v318_v9  ;;  %v321_v16 = vld [vmem:[#allocation7 + $0x18] sm:$0xff]  ;;  %v316_v22 = vld [vmem:[#allocation2] sm:$0xff]  ;;  %v427_v27 = vcombine.high %v319_v10, %v319_v10  ;;  %v12286_v38 = vld [vmem:[#allocation10 + $0x4] ss:$16 sps:$4 sm:$0xff]  }
 0x18c   :  { %v413_v5 = vunpack.c.0.s8 %v412_v2  ;;  %v15121_v13 = vsel %vm483_vm1, %v484_v8, 0  ;;  %v15130_v29 = vpack.c.bf16 %v316_v22, %v316_v22  ;;  %v444_v40 = vcombine.high %v320_v15, %v320_v15  ;;  %v12284_v44 = vld [vmem:[#allocation10] ss:$16 sps:$4 sm:$0xff]   ;;  %v12292_v45 = vld [vmem:[#allocation10 + $0x24] ss:$16 sps:$4 sm:$0xff]   ;;  %s14707_s19 = smov 1  }
 0x18d   :  { %v461_v47 = vcombine.high %v321_v16, %v321_v16  ;;  %v12290_v48 = vld [vmem:[#allocation10 + $0x20] ss:$16 sps:$4 sm:$0xff]   ;;  %v12298_v49 = vld [vmem:[#allocation10 + $0x44] ss:$16 sps:$4 sm:$0xff]   ;;  %v12289_v63 = vld [vmem:[#allocation10 + $0xc] ss:$16 sps:$4 sm:$0xff]  }
 0x18e   :  { %v15118_v6 = vsub.s32 %v413_v5, %v15113_v3  ;;  %v12296_v53 = vld [vmem:[#allocation10 + $0x40] ss:$16 sps:$4 sm:$0xff]   ;;  %v12304_v54 = vld [vmem:[#allocation10 + $0x64] ss:$16 sps:$4 sm:$0xff]   ;;  %vm14710_vm3 = vmmov 0   ;;  %s14711_s29 = smov [#allocation34]  }
 0x18f   :  { %v12302_v56 = vld [vmem:[#allocation10 + $0x60] ss:$16 sps:$4 sm:$0xff]   ;;  %v12310_v57 = vld [vmem:[#allocation10 + $0x84] ss:$16 sps:$4 sm:$0xff]   ;;  %s10731_s17 = sshll.u32 %s14711_s29, 4  ;;  %s10732_s17 = int_to_ptr.vmem [resolvable:$true] %s10731_s17 }
 0x190   :  { %v417_v12 = vrot.slane %v318_v9, %v15118_v6  ;;  %v434_v14 = vrot.slane %v319_v10, %v15118_v6  ;;  %v451_v17 = vrot.slane %v320_v15, %v15118_v6  ;;  %v424_v19 = vrot.slane %v410_v11, %v15118_v6  ;;  %v12308_v60 = vld [vmem:[#allocation10 + $0x80] ss:$16 sps:$4 sm:$0xff]   ;;  %v12316_v61 = vld [vmem:[#allocation10 + $0xa4] ss:$16 sps:$4 sm:$0xff]   ;;  %v12287_v9 = vld [vmem:[#allocation10 + $0x8] ss:$16 sps:$4 sm:$0xff]   ;;  %p14639_p7 = scmp.lt.s32.totalorder %s10732_s17, %s10732_s17 }
 0x191   :  { %v468_v20 = vrot.slane %v321_v16, %v15118_v6  ;;  %v441_v35 = vrot.slane %v427_v27, %v15118_v6  ;;  %v458_v43 = vrot.slane %v444_v40, %v15118_v6  ;;  %v475_v52 = vrot.slane %v461_v47, %v15118_v6  ;;  %v12314_v62 = vld [vmem:[#allocation10 + $0xa0] ss:$16 sps:$4 sm:$0xff]   ;;  %v12322_v1 = vld [vmem:[#allocation10 + $0xc4] ss:$16 sps:$4 sm:$0xff]   ;;  %v12295_v10 = vld [vmem:[#allocation10 + $0x2c] ss:$16 sps:$4 sm:$0xff]  }
 0x192   :  { %v425_v18 = vcombine.high %v417_v12, %v417_v12  ;;  %v487_v21 = vand.u32 %v15121_v13, %v417_v12  ;;  %v459_v23 = vcombine.high %v451_v17, %v451_v17  ;;  %v426_v25 = vcombine.high %v424_v19, %v424_v19  ;;  %v12320_v5 = vld [vmem:[#allocation10 + $0xc0] ss:$16 sps:$4 sm:$0xff]   ;;  %v12328_v6 = vld [vmem:[#allocation10 + $0xe4] ss:$16 sps:$4 sm:$0xff]   ;;  %v12299_v16 = vld [vmem:[#allocation10 + $0x48] ss:$16 sps:$4 sm:$0xff]  }
 0x193   :  { %v442_v26 = vcombine.high %v434_v14, %v434_v14  ;;  %v511_v31 = vand.u32 %v15121_v13, %v451_v17  ;;  %v476_v32 = vcombine.high %v468_v20, %v468_v20  ;;  %v493_v33 = vand.u32 %v15121_v13, %v424_v19  ;;  %v12326_v7 = vld [vmem:[#allocation10 + $0xe0] ss:$16 sps:$4 sm:$0xff]   ;;  %v12334_v8 = vld [vmem:[#allocation10 + $0x104] ss:$16 sps:$4 sm:$0xff]   ;;  %v12307_v17 = vld [vmem:[#allocation10 + $0x6c] ss:$16 sps:$4 sm:$0xff]  }
 0x194   :  { %v490_v24 = vand.u32 %v15121_v13, %v425_v18  ;;  %v514_v28 = vand.u32 %v15121_v13, %v459_v23  ;;  %v496_v30 = vand.u32 %v15121_v13, %v426_v25  ;;  %v523_v37 = vand.u32 %v15121_v13, %v468_v20  ;;  %v12332_v11 = vld [vmem:[#allocation10 + $0x100] ss:$16 sps:$4 sm:$0xff]   ;;  %v12340_v12 = vld [vmem:[#allocation10 + $0x124] ss:$16 sps:$4 sm:$0xff]   ;;  %v12305_v20 = vld [vmem:[#allocation10 + $0x68] ss:$16 sps:$4 sm:$0xff]  }
 0x195   :  { %v502_v34 = vand.u32 %v15121_v13, %v442_v26  ;;  %v526_v36 = vand.u32 %v15121_v13, %v476_v32  ;;  %v443_v39 = vcombine.high %v441_v35, %v441_v35  ;;  %v499_v41 = vand.u32 %v15121_v13, %v434_v14  ;;  %v12301_v14 = vld [vmem:[#allocation10 + $0x4c] ss:$16 sps:$4 sm:$0xff]   ;;  %v12338_v15 = vld [vmem:[#allocation10 + $0x120] ss:$16 sps:$4 sm:$0xff]   ;;  %v12352_v19 = vld [vmem:[#allocation10 + $0x164] ss:$16 sps:$4 sm:$0xff]  }
 0x196   :  { %534 = vmatprep.subr.bf16.mxu1 %v490_v24  ;;  %698 = vmatprep.subr.bf16.mxu0 %v514_v28  ;;  %v460_v46 = vcombine.high %v458_v43, %v458_v43  ;;  %v505_v50 = vand.u32 %v15121_v13, %v441_v35  ;;  %v477_v55 = vcombine.high %v475_v52, %v475_v52  ;;  %v12344_v18 = vld [vmem:[#allocation10 + $0x140] ss:$16 sps:$4 sm:$0xff]   ;;  %v12358_v23 = vld [vmem:[#allocation10 + $0x184] ss:$16 sps:$4 sm:$0xff]   ;;  %v12311_v24 = vld [vmem:[#allocation10 + $0x88] ss:$16 sps:$4 sm:$0xff]  }
 0x197   :  { %535 = vmatpush1.bf16.msra.mxu1 %v487_v21  ;;  %699 = vmatpush1.bf16.msra.mxu0 %v511_v31  ;;  %v508_v42 = vand.u32 %v15121_v13, %v443_v39  ;;  %v517_v58 = vand.u32 %v15121_v13, %v458_v43  ;;  %v529_v2 = vand.u32 %v15121_v13, %v475_v52  ;;  %v12313_v21 = vld [vmem:[#allocation10 + $0x8c] ss:$16 sps:$4 sm:$0xff]   ;;  %v12350_v22 = vld [vmem:[#allocation10 + $0x160] ss:$16 sps:$4 sm:$0xff]   ;;  %v12364_v27 = vld [vmem:[#allocation10 + $0x1a4] ss:$16 sps:$4 sm:$0xff]  }
 0x198   :  { %575 = vmatprep.subr.bf16.mxu1 %v496_v30  ;;  %780 = vmatprep.subr.bf16.mxu0 %v526_v36  ;;  %v520_v51 = vand.u32 %v15121_v13, %v460_v46  ;;  %v532_v59 = vand.u32 %v15121_v13, %v477_v55  ;;  %v12293_v13 = vld [vmem:[#allocation10 + $0x28] ss:$16 sps:$4 sm:$0xff]   ;;  %v12319_v25 = vld [vmem:[#allocation10 + $0xac] ss:$16 sps:$4 sm:$0xff]   ;;  %v12356_v26 = vld [vmem:[#allocation10 + $0x180] ss:$16 sps:$4 sm:$0xff]  }
 0x199   :  { %v12317_v28 = vld [vmem:[#allocation10 + $0xa8] ss:$16 sps:$4 sm:$0xff]   ;;  %v12362_v30 = vld [vmem:[#allocation10 + $0x1a0] ss:$16 sps:$4 sm:$0xff]   ;;  %v12331_v32 = vld [vmem:[#allocation10 + $0xec] ss:$16 sps:$4 sm:$0xff]  }
 0x19a   :  { %10750 = vmatmul.mubr.msk.bf16.vlgmr.msra.gmra.mrb[0].mxu1 %vm478_vm2, %v15130_v29  ;;  %10754 = vmatmul.mubr.msk.bf16.vlgmr.msra.gmra.mrb[0].mxu0 %vm478_vm2, %v15130_v29  ;;  %v12323_v31 = vld [vmem:[#allocation10 + $0xc8] ss:$16 sps:$4 sm:$0xff]   ;;  %v12343_v36 = vld [vmem:[#allocation10 + $0x12c] ss:$16 sps:$4 sm:$0xff]   ;;  %v12376_v46 = vld [vmem:[#allocation10 + $0x1e4] ss:$16 sps:$4 sm:$0xff]  }
 0x19b   :  { %576 = vmatpush1.bf16.msra.mxu1 %v493_v33  ;;  %607 = vmatprep.mubr.bf16.mxu1 %v14705_v4  ;;  %v12329_v33 = vld [vmem:[#allocation10 + $0xe8] ss:$16 sps:$4 sm:$0xff]   ;;  %v12355_v40 = vld [vmem:[#allocation10 + $0x16c] ss:$16 sps:$4 sm:$0xff]   ;;  %s14634_s14 = scalar_lea.vmem %s10732_s17, 128 }
 0x19c   :  { %616 = vmatprep.subr.bf16.mxu1 %v502_v34  ;;  %781 = vmatpush1.bf16.msra.mxu0 %v523_v37  ;;  %v12337_v34 = vld [vmem:[#allocation10 + $0x10c] ss:$16 sps:$4 sm:$0xff]   ;;  %v12335_v35 = vld [vmem:[#allocation10 + $0x108] ss:$16 sps:$4 sm:$0xff]   ;;  %p14635_p6 = scmp.ne.s32.totalorder %s10732_s17, %s14634_s14  ;;  %p14640_p8 = scmp.lt.s32.totalorder %s14634_s14, %s14634_s14 }
 0x19d   :  { %812 = vmatprep.mubr.bf16.mxu0 %v14705_v4  ;;  %3988 = vmatprep.subr.bf16.mxu0 %v12286_v38  ;;  %v12341_v37 = vld [vmem:[#allocation10 + $0x128] ss:$16 sps:$4 sm:$0xff]   ;;  %v12349_v38 = vld [vmem:[#allocation10 + $0x14c] ss:$16 sps:$4 sm:$0xff]  }
 0x19e   :  { %v12347_v39 = vld [vmem:[#allocation10 + $0x148] ss:$16 sps:$4 sm:$0xff]   ;;  %v12361_v43 = vld [vmem:[#allocation10 + $0x18c] ss:$16 sps:$4 sm:$0xff]   ;;  %p14641_p9 = por %p14640_p8, %p14639_p7 }
 0x19f   :  { %v12367_v47 = vld [vmem:[#allocation10 + $0x1ac] ss:$16 sps:$4 sm:$0xff]   ;;  %v12371_v52 = vld [vmem:[#allocation10 + $0x1c8] ss:$16 sps:$4 sm:$0xff]  }
 0x1a0   :  { %v12385_v55 = vld [vmem:[#allocation10 + $0x20c] ss:$16 sps:$4 sm:$0xff]   ;;  %p14642_p10 = pnand %p14641_p9, %p14635_p6 }
 0x1a2   :  { %10751 = vmatmul.mubr.msk.bf16.vlgmr.msra.gmra.mrb[4].mxu1 %vm478_vm2, %v15130_v29  ;;  %10756 = vmatmul.mubr.msk.bf16.vlgmr.msra.gmra.mrb[4].mxu0 %vm478_vm2, %v15130_v29 }
 0x1a3   :  { %617 = vmatpush1.bf16.msra.mxu1 %v499_v41  ;;  %648 = vmatprep.mubr.bf16.mxu1 %v14705_v4  ;;  %v12353_v41 = vld [vmem:[#allocation10 + $0x168] ss:$16 sps:$4 sm:$0xff]  }
 0x1a4   :  { %657 = vmatprep.subr.bf16.mxu1 %v508_v42  ;;  %3989 = vmatpush1.bf16.msra.mxu0 %v12284_v44  ;;  %v12370_v42 = vld [vmem:[#allocation10 + $0x1c4] ss:$16 sps:$4 sm:$0xff]   ;;  %v12368_v44 = vld [vmem:[#allocation10 + $0x1c0] ss:$16 sps:$4 sm:$0xff]  }
 0x1a5   :  { %3990 = vmatprep.subr.bf16.mxu0 %v12292_v45  ;;  %v12359_v45 = vld [vmem:[#allocation10 + $0x188] ss:$16 sps:$4 sm:$0xff]  }
 0x1a8   :  { %3991 = vmatpush1.bf16.msra.mxu0 %v12290_v48  ;;  %v12374_v48 = vld [vmem:[#allocation10 + $0x1e0] ss:$16 sps:$4 sm:$0xff]  }
 0x1a9   :  { %3992 = vmatprep.subr.bf16.mxu0 %v12298_v49  ;;  %v12365_v49 = vld [vmem:[#allocation10 + $0x1a8] ss:$16 sps:$4 sm:$0xff]  }
 0x1aa   :  { %10752 = vmatmul.mubr.msk.bf16.vlgmr.msra.gmra.mrb[8].mxu1 %vm478_vm2, %v15130_v29 }
 0x1ab   :  { %658 = vmatpush1.bf16.msra.mxu1 %v505_v50  ;;  %689 = vmatprep.mubr.bf16.mxu1 %v14705_v4  ;;  %v12382_v50 = vld [vmem:[#allocation10 + $0x204] ss:$16 sps:$4 sm:$0xff]  }
 0x1ac   :  { %739 = vmatprep.subr.bf16.mxu1 %v520_v51  ;;  %3993 = vmatpush1.bf16.msra.mxu0 %v12296_v53  ;;  %v12373_v51 = vld [vmem:[#allocation10 + $0x1cc] ss:$16 sps:$4 sm:$0xff]  }
 0x1ad   :  { %3994 = vmatprep.subr.bf16.mxu0 %v12304_v54  ;;  %v12379_v53 = vld [vmem:[#allocation10 + $0x1ec] ss:$16 sps:$4 sm:$0xff]   ;;  %v12377_v54 = vld [vmem:[#allocation10 + $0x1e8] ss:$16 sps:$4 sm:$0xff]  }
 0x1b0   :  { %3995 = vmatpush1.bf16.msra.mxu0 %v12302_v56  ;;  %v15171_v56 = vsub.s32 0, %v15113_v3 }
 0x1b1   :  { %3996 = vmatprep.subr.bf16.mxu0 %v12310_v57  ;;  %v15173_v57 = vld [vmem:[#allocation8] sm:$0xff] }
 0x1b2   :  { %10753 = vmatmul.mubr.msk.bf16.vlgmr.msra.gmra.mrb[12].mxu1 %vm478_vm2, %v15130_v29 }
 0x1b3   :  { %740 = vmatpush1.bf16.msra.mxu1 %v517_v58  ;;  %771 = vmatprep.mubr.bf16.mxu1 %v14705_v4  ;;  %v15176_v58 = vsub.s32 1, %v15113_v3 }
 0x1b4   :  { %821 = vmatprep.subr.bf16.mxu1 %v532_v59  ;;  %3997 = vmatpush1.bf16.msra.mxu0 %v12308_v60  ;;  %v329_v59 = vrot.slane %v15173_v57, %v15171_v56 }
 0x1b5   :  { %3998 = vmatprep.subr.bf16.mxu0 %v12316_v61  ;;  %v333_v60 = vrot.slane %v15173_v57, %v15176_v58 }
 0x1b8   :  { %3999 = vmatpush1.bf16.msra.mxu0 %v12314_v62 }
 0x1b9   :  { %4000 = vmatprep.subr.bf16.mxu0 %v12322_v1 }
 0x1ba   :  { %10755 = vmatmul.mubr.msk.bf16.vlgmr.msra.gmra.mrb[16].mxu1 %vm478_vm2, %v15130_v29 }
 0x1bb   :  { %822 = vmatpush1.bf16.msra.mxu1 %v529_v2  ;;  %853 = vmatprep.mubr.bf16.mxu1 %v14705_v4  ;;  %v12346_v4 = vld [vmem:[#allocation10 + $0x144] ss:$16 sps:$4 sm:$0xff]  }
 0x1bc   :  { %4316 = vmatprep.subr.bf16.mxu1 %v12289_v63  ;;  %4001 = vmatpush1.bf16.msra.mxu0 %v12320_v5  ;;  %v15183_v5 = vsub.s32 3, %v15113_v3 }
 0x1bd   :  { %4002 = vmatprep.subr.bf16.mxu0 %v12328_v6 }
 0x1c0   :  { %4003 = vmatpush1.bf16.msra.mxu0 %v12326_v7 }
 0x1c1   :  { %4004 = vmatprep.subr.bf16.mxu0 %v12334_v8 }
 0x1c2   :  { %10757 = vmatmul.mubr.msk.bf16.vlgmr.msra.gmra.mrb[20].mxu1 %vm478_vm2, %v15130_v29  ;;  %v12325_v29 = vld [vmem:[#allocation10 + $0xcc] ss:$16 sps:$4 sm:$0xff]  }
 0x1c3   :  { %4317 = vmatpush1.bf16.msra.mxu1 %v12287_v9  ;;  %v12380_v9 = vld [vmem:[#allocation10 + $0x200] ss:$16 sps:$4 sm:$0xff]  }
 0x1c4   :  { %4318 = vmatprep.subr.bf16.mxu1 %v12295_v10  ;;  %4005 = vmatpush1.bf16.msra.mxu0 %v12332_v11  ;;  %v12383_v10 = vld [vmem:[#allocation10 + $0x208] ss:$16 sps:$4 sm:$0xff]  }
 0x1c5   :  { %4006 = vmatprep.subr.bf16.mxu0 %v12340_v12  ;;  %v341_v12 = vrot.slane %v15173_v57, %v15183_v5 }
 0x1c7   :  { %4319 = vmatpush1.bf16.msra.mxu1 %v12293_v13 }
 0x1c8   :  { %4320 = vmatprep.subr.bf16.mxu1 %v12301_v14  ;;  %4007 = vmatpush1.bf16.msra.mxu0 %v12338_v15  ;;  %v12388_v14 = vld [vmem:[#allocation10 + $0x224] ss:$16 sps:$4 sm:$0xff]   ;;  %v12391_v15 = vld [vmem:[#allocation10 + $0x22c] ss:$16 sps:$4 sm:$0xff]  }
 0x1c9   :  { %4008 = vmatprep.subr.bf16.mxu0 %v12346_v4 }
 0x1cb   :  { %4321 = vmatpush1.bf16.msra.mxu1 %v12299_v16 }
 0x1cc   :  { %4322 = vmatprep.subr.bf16.mxu1 %v12307_v17  ;;  %4009 = vmatpush1.bf16.msra.mxu0 %v12344_v18  ;;  %v12386_v17 = vld [vmem:[#allocation10 + $0x220] ss:$16 sps:$4 sm:$0xff]   ;;  %v12389_v18 = vld [vmem:[#allocation10 + $0x228] ss:$16 sps:$4 sm:$0xff]  }
 0x1cd   :  { %4010 = vmatprep.subr.bf16.mxu0 %v12352_v19 }
 0x1cf   :  { %4323 = vmatpush1.bf16.msra.mxu1 %v12305_v20 }
 0x1d0   :  { %4324 = vmatprep.subr.bf16.mxu1 %v12313_v21  ;;  %4011 = vmatpush1.bf16.msra.mxu0 %v12350_v22  ;;  %v12394_v21 = vld [vmem:[#allocation10 + $0x244] ss:$16 sps:$4 sm:$0xff]   ;;  %v12397_v22 = vld [vmem:[#allocation10 + $0x24c] ss:$16 sps:$4 sm:$0xff]  }
 0x1d1   :  { %4012 = vmatprep.subr.bf16.mxu0 %v12358_v23 }
 0x1d3   :  { %4325 = vmatpush1.bf16.msra.mxu1 %v12311_v24 }
 0x1d4   :  { %4326 = vmatprep.subr.bf16.mxu1 %v12319_v25  ;;  %4013 = vmatpush1.bf16.msra.mxu0 %v12356_v26  ;;  %v12392_v25 = vld [vmem:[#allocation10 + $0x240] ss:$16 sps:$4 sm:$0xff]   ;;  %v12395_v26 = vld [vmem:[#allocation10 + $0x248] ss:$16 sps:$4 sm:$0xff]  }
 0x1d5   :  { %4014 = vmatprep.subr.bf16.mxu0 %v12364_v27 }
 0x1d7   :  { %4327 = vmatpush1.bf16.msra.mxu1 %v12317_v28  ;;  %v12400_v28 = vld [vmem:[#allocation10 + $0x264] ss:$16 sps:$4 sm:$0xff]  }
 0x1d8   :  { %4328 = vmatprep.subr.bf16.mxu1 %v12325_v29  ;;  %4015 = vmatpush1.bf16.msra.mxu0 %v12362_v30  ;;  %v12403_v29 = vld [vmem:[#allocation10 + $0x26c] ss:$16 sps:$4 sm:$0xff]  }
 0x1d9   :  { %4016 = vmatprep.subr.bf16.mxu0 %v12370_v42 }
 0x1db   :  { %4329 = vmatpush1.bf16.msra.mxu1 %v12323_v31  ;;  %v12398_v31 = vld [vmem:[#allocation10 + $0x260] ss:$16 sps:$4 sm:$0xff]  }
 0x1dc   :  { %4330 = vmatprep.subr.bf16.mxu1 %v12331_v32  ;;  %4017 = vmatpush1.bf16.msra.mxu0 %v12368_v44  ;;  %v12407_v44 = vld [vmem:[#allocation10 + $0x288] ss:$16 sps:$4 sm:$0xff]  }
 0x1dd   :  { %4018 = vmatprep.subr.bf16.mxu0 %v12376_v46  ;;  %v12412_v46 = vld [vmem:[#allocation10 + $0x2a4] ss:$16 sps:$4 sm:$0xff]  }
 0x1df   :  { %4331 = vmatpush1.bf16.msra.mxu1 %v12329_v33 }
 0x1e0   :  { %4332 = vmatprep.subr.bf16.mxu1 %v12337_v34  ;;  %4019 = vmatpush1.bf16.msra.mxu0 %v12374_v48  ;;  %v12401_v34 = vld [vmem:[#allocation10 + $0x268] ss:$16 sps:$4 sm:$0xff]  }
 0x1e1   :  { %4029 = vmatprep.subr.bf16.mxu0 %v12382_v50  ;;  %v12410_v50 = vld [vmem:[#allocation10 + $0x2a0] ss:$16 sps:$4 sm:$0xff]  }
 0x1e3   :  { %4333 = vmatpush1.bf16.msra.mxu1 %v12335_v35  ;;  %v12406_v35 = vld [vmem:[#allocation10 + $0x284] ss:$16 sps:$4 sm:$0xff]  }
 0x1e4   :  { %4334 = vmatprep.subr.bf16.mxu1 %v12343_v36 }
 0x1e7   :  { %4335 = vmatpush1.bf16.msra.mxu1 %v12341_v37 }
 0x1e8   :  { %4336 = vmatprep.subr.bf16.mxu1 %v12349_v38  ;;  %v12409_v38 = vld [vmem:[#allocation10 + $0x28c] ss:$16 sps:$4 sm:$0xff]  }
 0x1eb   :  { %4337 = vmatpush1.bf16.msra.mxu1 %v12347_v39 }
 0x1ec   :  { %4338 = vmatprep.subr.bf16.mxu1 %v12355_v40 }
 0x1ef   :  { %4339 = vmatpush1.bf16.msra.mxu1 %v12353_v41  ;;  %v12404_v41 = vld [vmem:[#allocation10 + $0x280] ss:$16 sps:$4 sm:$0xff]  }
 0x1f0   :  { %4340 = vmatprep.subr.bf16.mxu1 %v12361_v43  ;;  %v344_v43 = vsub.s32 4, %v15113_v3 }
 0x1f3   :  { %4341 = vmatpush1.bf16.msra.mxu1 %v12359_v45  ;;  %v323_v45 = vld [vmem:[#allocation8 + $0x8] sm:$0xff] }
 0x1f4   :  { %4342 = vmatprep.subr.bf16.mxu1 %v12367_v47  ;;  %v12415_v47 = vld [vmem:[#allocation10 + $0x2ac] ss:$16 sps:$4 sm:$0xff]   ;;  %v377_v48 = vrot.slane %v323_v45, %v344_v43 }
 0x1f7   :  { %4343 = vmatpush1.bf16.msra.mxu1 %v12365_v49 }
 0x1f8   :  { %4344 = vmatprep.subr.bf16.mxu1 %v12373_v51  ;;  %v348_v51 = vsub.s32 5, %v15113_v3 }
 0x1fb   :  { %4345 = vmatpush1.bf16.msra.mxu1 %v12371_v52  ;;  %v352_v52 = vsub.s32 6, %v15113_v3 }
 0x1fc   :  { %4346 = vmatprep.subr.bf16.mxu1 %v12379_v53 }
 0x1ff   :  { %4347 = vmatpush1.bf16.msra.mxu1 %v12377_v54  ;;  %v356_v54 = vsub.s32 7, %v15113_v3 }
 0x200   :  { %4357 = vmatprep.subr.bf16.mxu1 %v12385_v55 }
 0x26d   :  { %v568_v61 = vpop.f32.mrb[0].mxu1  ;;  %v15189_v30 = vpop.f32.mrb[0].mxu0 }
 0x26e   :  { %v569_v62 = vadd.f32 %v568_v61, %v329_v59  ;;  %v570_v63 = vpop.f32.mrb[1].mxu1  ;;  %v15195_v37 = vpop.f32.mrb[1].mxu0  ;;  %v12418_v61 = vld [vmem:[#allocation10 + $0x2c4] ss:$16 sps:$4 sm:$0xff]  }
 0x26f   :  { %v571_v1 = vadd.f32 %v570_v63, %v333_v60  ;;  %v572_v2 = vpop.f32.mrb[2].mxu1  ;;  %v736_v40 = vpop.f32.mrb[2].mxu0  ;;  %v12413_v60 = vld [vmem:[#allocation10 + $0x2a8] ss:$16 sps:$4 sm:$0xff]   ;;  %v381_v63 = vrot.slane %v323_v45, %v348_v51 }
 0x270   :  { %v862_v6 = vmax.f32 %v569_v62, 0.0  ;;  %v573_v7 = vpop.f32.mrb[3].mxu1  ;;  %v737_v42 = vpop.f32.mrb[3].mxu0  ;;  %v385_v2 = vrot.slane %v323_v45, %v352_v52  ;;  %v12434_v40 = vld [vmem:[#allocation10 + $0x320] ss:$16 sps:$4 sm:$0xff]  }
 0x271   :  { %v863_v8 = vmax.f32 %v571_v1, 0.0  ;;  %v15214_v7 = vsub.s32 2, %v15113_v3  ;;  %v12664_v3 = vld [vmem:[#allocation10 + $0x7e4] ss:$16 sps:$4 sm:$0xff]  }
 0x272   :  { %v878_v13 = vpack.c.bf16 %v862_v6, %v862_v6  ;;  %v12421_v6 = vld [vmem:[#allocation10 + $0x2cc] ss:$16 sps:$4 sm:$0xff]  }
 0x273   :  { %v879_v11 = vpack.c.bf16 %v863_v8, %v863_v8 }
 0x275   :  { %4020 = vmatprep.mubr.bf16.mxu0 %v879_v11  ;;  %4348 = vmatprep.mubr.bf16.mxu1 %v879_v11  ;;  %v15187_v4 = vpop.f32.mrb[4].mxu1  ;;  %v814_v49 = vpop.f32.mrb[4].mxu0 }
 0x276   :  { %4021 = vmatmul.mubr.bf16.vlgmr.msra.gmra.mrb[8].mxu0 %v878_v13  ;;  %4349 = vmatmul.mubr.bf16.vlgmr.msra.gmra.mrb[24].mxu1 %v878_v13  ;;  %v611_v16 = vpop.f32.mrb[5].mxu1  ;;  %v15207_v59 = vadd.f32 %v814_v49, %v377_v48  ;;  %v816_v1 = vpop.f32.mrb[5].mxu0  ;;  %v369_v13 = vrot.slane %v323_v45, %v15214_v7  ;;  %v12440_v48 = vld [vmem:[#allocation10 + $0x340] ss:$16 sps:$4 sm:$0xff]   ;;  %v12443_v49 = vld [vmem:[#allocation10 + $0x348] ss:$16 sps:$4 sm:$0xff]  }
 0x277   :  { %4030 = vmatpush1.bf16.msra.mxu0 %v12380_v9  ;;  %4358 = vmatpush1.bf16.msra.mxu1 %v12383_v10  ;;  %v612_v19 = vadd.f32 %v611_v16, %v341_v12  ;;  %v613_v20 = vpop.f32.mrb[6].mxu1  ;;  %v818_v9 = vpop.f32.mrb[6].mxu0  ;;  %v389_v10 = vrot.slane %v323_v45, %v356_v54  ;;  %v15218_v11 = vadd.f32 %v816_v1, %v381_v63  ;;  %v12454_v63 = vld [vmem:[#allocation10 + $0x384] ss:$16 sps:$4 sm:$0xff]   ;;  %v12457_v1 = vld [vmem:[#allocation10 + $0x38c] ss:$16 sps:$4 sm:$0xff]  }
 0x278   :  { %4031 = vmatprep.subr.bf16.mxu0 %v12388_v14  ;;  %4359 = vmatprep.subr.bf16.mxu1 %v12391_v15  ;;  %v614_v23 = vpop.f32.mrb[7].mxu1  ;;  %v819_v12 = vpop.f32.mrb[7].mxu0  ;;  %v12416_v14 = vld [vmem:[#allocation10 + $0x2c0] ss:$16 sps:$4 sm:$0xff]   ;;  %v12419_v15 = vld [vmem:[#allocation10 + $0x2c8] ss:$16 sps:$4 sm:$0xff]   ;;  %v373_v16 = vrot.slane %v323_v45, %v15183_v5 }
 0x279   :  { %v865_v24 = vmax.f32 %v612_v19, 0.0  ;;  %v12425_v23 = vld [vmem:[#allocation10 + $0x2e8] ss:$16 sps:$4 sm:$0xff]   ;;  %v12442_v45 = vld [vmem:[#allocation10 + $0x344] ss:$16 sps:$4 sm:$0xff]  }
 0x27a   :  { %v12463_v9 = vld [vmem:[#allocation10 + $0x3ac] ss:$16 sps:$4 sm:$0xff]   ;;  %v12458_v12 = vld [vmem:[#allocation10 + $0x3a0] ss:$16 sps:$4 sm:$0xff]  }
 0x27b   :  { %4032 = vmatpush1.bf16.msra.mxu0 %v12386_v17  ;;  %4360 = vmatpush1.bf16.msra.mxu1 %v12389_v18  ;;  %v881_v27 = vpack.c.bf16 %v865_v24, %v865_v24  ;;  %v12424_v17 = vld [vmem:[#allocation10 + $0x2e4] ss:$16 sps:$4 sm:$0xff]   ;;  %v12427_v18 = vld [vmem:[#allocation10 + $0x2ec] ss:$16 sps:$4 sm:$0xff]  }
 0x27c   :  { %4033 = vmatprep.subr.bf16.mxu0 %v12394_v21  ;;  %4361 = vmatprep.subr.bf16.mxu1 %v12397_v22  ;;  %v12422_v22 = vld [vmem:[#allocation10 + $0x2e0] ss:$16 sps:$4 sm:$0xff]  }
 0x27d   :  { %4061 = vmatprep.mubr.bf16.mxu0 %v881_v27  ;;  %4389 = vmatprep.mubr.bf16.mxu1 %v881_v27  ;;  %v15191_v32 = vpop.f32.mrb[8].mxu1  ;;  %v12433_v27 = vld [vmem:[#allocation10 + $0x30c] ss:$16 sps:$4 sm:$0xff]  }
 0x27e   :  { %v15193_v33 = vpop.f32.mrb[9].mxu1 }
 0x27f   :  { %4034 = vmatpush1.bf16.msra.mxu0 %v12392_v25  ;;  %4362 = vmatpush1.bf16.msra.mxu1 %v12395_v26  ;;  %v654_v36 = vpop.f32.mrb[10].mxu1  ;;  %v12430_v26 = vld [vmem:[#allocation10 + $0x304] ss:$16 sps:$4 sm:$0xff]  }
 0x280   :  { %4035 = vmatprep.subr.bf16.mxu0 %v12400_v28  ;;  %4363 = vmatprep.subr.bf16.mxu1 %v12403_v29  ;;  %v655_v39 = vpop.f32.mrb[11].mxu1  ;;  %v12428_v29 = vld [vmem:[#allocation10 + $0x300] ss:$16 sps:$4 sm:$0xff]  }
 0x283   :  { %4036 = vmatpush1.bf16.msra.mxu0 %v12398_v31  ;;  %4364 = vmatpush1.bf16.msra.mxu1 %v12401_v34  ;;  %v12431_v31 = vld [vmem:[#allocation10 + $0x308] ss:$16 sps:$4 sm:$0xff]   ;;  %v12436_v34 = vld [vmem:[#allocation10 + $0x324] ss:$16 sps:$4 sm:$0xff]  }
 0x284   :  { %4037 = vmatprep.subr.bf16.mxu0 %v12406_v35  ;;  %4365 = vmatprep.subr.bf16.mxu1 %v12409_v38  ;;  %v12439_v35 = vld [vmem:[#allocation10 + $0x32c] ss:$16 sps:$4 sm:$0xff]  }
 0x285   :  { %v15202_v53 = vpop.f32.mrb[12].mxu1 }
 0x286   :  { %v15205_v55 = vpop.f32.mrb[13].mxu1 }
 0x287   :  { %4038 = vmatpush1.bf16.msra.mxu0 %v12404_v41  ;;  %4366 = vmatpush1.bf16.msra.mxu1 %v12407_v44  ;;  %v695_v62 = vpop.f32.mrb[14].mxu1  ;;  %v12437_v41 = vld [vmem:[#allocation10 + $0x328] ss:$16 sps:$4 sm:$0xff]  }
 0x288   :  { %4039 = vmatprep.subr.bf16.mxu0 %v12412_v46  ;;  %4367 = vmatprep.subr.bf16.mxu1 %v12415_v47  ;;  %v696_v8 = vpop.f32.mrb[15].mxu1  ;;  %v12445_v46 = vld [vmem:[#allocation10 + $0x34c] ss:$16 sps:$4 sm:$0xff]   ;;  %v12449_v62 = vld [vmem:[#allocation10 + $0x368] ss:$16 sps:$4 sm:$0xff]  }
 0x289   :  { %v12460_v8 = vld [vmem:[#allocation10 + $0x3a4] ss:$16 sps:$4 sm:$0xff]  }
 0x28b   :  { %4040 = vmatpush1.bf16.msra.mxu0 %v12410_v50  ;;  %4368 = vmatpush1.bf16.msra.mxu1 %v12413_v60  ;;  %v12448_v50 = vld [vmem:[#allocation10 + $0x364] ss:$16 sps:$4 sm:$0xff]   ;;  %v12451_v60 = vld [vmem:[#allocation10 + $0x36c] ss:$16 sps:$4 sm:$0xff]  }
 0x28c   :  { %4041 = vmatprep.subr.bf16.mxu0 %v12418_v61  ;;  %4369 = vmatprep.subr.bf16.mxu1 %v12421_v6  ;;  %v12446_v61 = vld [vmem:[#allocation10 + $0x360] ss:$16 sps:$4 sm:$0xff]   ;;  %v12455_v6 = vld [vmem:[#allocation10 + $0x388] ss:$16 sps:$4 sm:$0xff]  }
 0x28d   :  { %v773_v19 = vpop.f32.mrb[16].mxu1 }
 0x28e   :  { %v15222_v20 = vadd.f32 %v773_v19, %v369_v13  ;;  %v775_v21 = vpop.f32.mrb[17].mxu1  ;;  %v12461_v13 = vld [vmem:[#allocation10 + $0x3a8] ss:$16 sps:$4 sm:$0xff]  }
 0x28f   :  { %4042 = vmatpush1.bf16.msra.mxu0 %v12416_v14  ;;  %4370 = vmatpush1.bf16.msra.mxu1 %v12419_v15  ;;  %v15224_v24 = vadd.f32 %v775_v21, %v373_v16  ;;  %v777_v25 = vpop.f32.mrb[18].mxu1  ;;  %v12466_v14 = vld [vmem:[#allocation10 + $0x3c4] ss:$16 sps:$4 sm:$0xff]   ;;  %v12469_v15 = vld [vmem:[#allocation10 + $0x3cc] ss:$16 sps:$4 sm:$0xff]   ;;  %v349_v16 = vrot.slane %v15173_v57, %v348_v51 }
 0x290   :  { %4043 = vmatprep.subr.bf16.mxu0 %v12424_v17  ;;  %4371 = vmatprep.subr.bf16.mxu1 %v12427_v18  ;;  %v778_v28 = vpop.f32.mrb[19].mxu1  ;;  %v12464_v18 = vld [vmem:[#allocation10 + $0x3c0] ss:$16 sps:$4 sm:$0xff]   ;;  %v12467_v19 = vld [vmem:[#allocation10 + $0x3c8] ss:$16 sps:$4 sm:$0xff]  }
 0x291   :  { %v12472_v21 = vld [vmem:[#allocation10 + $0x3e4] ss:$16 sps:$4 sm:$0xff]   ;;  %v12481_v51 = vld [vmem:[#allocation10 + $0x40c] ss:$16 sps:$4 sm:$0xff]   ;;  %v12479_v28 = vld [vmem:[#allocation10 + $0x408] ss:$16 sps:$4 sm:$0xff]  }
 0x293   :  { %4044 = vmatpush1.bf16.msra.mxu0 %v12422_v22  ;;  %4372 = vmatpush1.bf16.msra.mxu1 %v12425_v23  ;;  %v12475_v22 = vld [vmem:[#allocation10 + $0x3ec] ss:$16 sps:$4 sm:$0xff]   ;;  %v653_v23 = vadd.f32 %v15193_v33, %v349_v16  ;;  %v12482_v33 = vld [vmem:[#allocation10 + $0x420] ss:$16 sps:$4 sm:$0xff]   ;;  %v12521_v16 = vld [vmem:[#allocation10 + $0x4e8] ss:$16 sps:$4 sm:$0xff]  }
 0x294   :  { %4045 = vmatprep.subr.bf16.mxu0 %v12430_v26  ;;  %4373 = vmatprep.subr.bf16.mxu1 %v12433_v27  ;;  %v12470_v26 = vld [vmem:[#allocation10 + $0x3e0] ss:$16 sps:$4 sm:$0xff]   ;;  %v12473_v27 = vld [vmem:[#allocation10 + $0x3e8] ss:$16 sps:$4 sm:$0xff]  }
 0x295   :  { %v855_v36 = vpop.f32.mrb[20].mxu1 }
 0x296   :  { %v15226_v38 = vadd.f32 %v855_v36, %v385_v2  ;;  %v857_v39 = vpop.f32.mrb[21].mxu1  ;;  %v12452_v2 = vld [vmem:[#allocation10 + $0x380] ss:$16 sps:$4 sm:$0xff]   ;;  %v12485_v36 = vld [vmem:[#allocation10 + $0x428] ss:$16 sps:$4 sm:$0xff]  }
 0x297   :  { %4046 = vmatpush1.bf16.msra.mxu0 %v12428_v29  ;;  %4374 = vmatpush1.bf16.msra.mxu1 %v12431_v31  ;;  %v15228_v42 = vadd.f32 %v857_v39, %v389_v10  ;;  %v859_v44 = vpop.f32.mrb[22].mxu1  ;;  %v337_v10 = vrot.slane %v15173_v57, %v15214_v7  ;;  %v12478_v57 = vld [vmem:[#allocation10 + $0x404] ss:$16 sps:$4 sm:$0xff]   ;;  %v867_v29 = vmax.f32 %v653_v23, 0.0  ;;  %v12535_v23 = vld [vmem:[#allocation10 + $0x52c] ss:$16 sps:$4 sm:$0xff]  }
 0x298   :  { %4047 = vmatprep.subr.bf16.mxu0 %v12436_v34  ;;  %4375 = vmatprep.subr.bf16.mxu1 %v12439_v35  ;;  %v860_v47 = vpop.f32.mrb[23].mxu1  ;;  %v12484_v34 = vld [vmem:[#allocation10 + $0x424] ss:$16 sps:$4 sm:$0xff]   ;;  %v12487_v35 = vld [vmem:[#allocation10 + $0x42c] ss:$16 sps:$4 sm:$0xff]  }
 0x299   :  { %v610_v17 = vadd.f32 %v15187_v4, %v337_v10  ;;  %v12476_v4 = vld [vmem:[#allocation10 + $0x400] ss:$16 sps:$4 sm:$0xff]   ;;  %v883_v39 = vpack.c.bf16 %v867_v29, %v867_v29  ;;  %v12499_v47 = vld [vmem:[#allocation10 + $0x46c] ss:$16 sps:$4 sm:$0xff]  }
 0x29a   :  { %v12488_v44 = vld [vmem:[#allocation10 + $0x440] ss:$16 sps:$4 sm:$0xff]   ;;  %v12547_v29 = vld [vmem:[#allocation10 + $0x56c] ss:$16 sps:$4 sm:$0xff]  }
 0x29b   :  { %4048 = vmatpush1.bf16.msra.mxu0 %v12434_v40  ;;  %4376 = vmatpush1.bf16.msra.mxu1 %v12437_v41  ;;  %v864_v25 = vmax.f32 %v610_v17, 0.0  ;;  %v12490_v40 = vld [vmem:[#allocation10 + $0x444] ss:$16 sps:$4 sm:$0xff]   ;;  %v12493_v41 = vld [vmem:[#allocation10 + $0x44c] ss:$16 sps:$4 sm:$0xff]  }
 0x29c   :  { %4049 = vmatprep.subr.bf16.mxu0 %v12442_v45  ;;  %4377 = vmatprep.subr.bf16.mxu1 %v12445_v46  ;;  %v12491_v45 = vld [vmem:[#allocation10 + $0x448] ss:$16 sps:$4 sm:$0xff]   ;;  %v12496_v46 = vld [vmem:[#allocation10 + $0x464] ss:$16 sps:$4 sm:$0xff]   ;;  %v12512_v10 = vld [vmem:[#allocation10 + $0x4c0] ss:$16 sps:$4 sm:$0xff]  }
 0x29d   :  { %v880_v31 = vpack.c.bf16 %v864_v25, %v864_v25  ;;  %v12526_v17 = vld [vmem:[#allocation10 + $0x504] ss:$16 sps:$4 sm:$0xff]   ;;  %v12530_v25 = vld [vmem:[#allocation10 + $0x520] ss:$16 sps:$4 sm:$0xff]  }
 0x29f   :  { %4050 = vmatpush1.bf16.msra.mxu0 %v12440_v48  ;;  %4378 = vmatpush1.bf16.msra.mxu1 %v12443_v49  ;;  %v12494_v48 = vld [vmem:[#allocation10 + $0x460] ss:$16 sps:$4 sm:$0xff]   ;;  %v12497_v49 = vld [vmem:[#allocation10 + $0x468] ss:$16 sps:$4 sm:$0xff]  }
 0x2a0   :  { %4051 = vmatprep.subr.bf16.mxu0 %v12448_v50  ;;  %4379 = vmatprep.subr.bf16.mxu1 %v12451_v60  ;;  %v12502_v50 = vld [vmem:[#allocation10 + $0x484] ss:$16 sps:$4 sm:$0xff]   ;;  %v12505_v60 = vld [vmem:[#allocation10 + $0x48c] ss:$16 sps:$4 sm:$0xff]  }
 0x2a3   :  { %4052 = vmatpush1.bf16.msra.mxu0 %v12446_v61  ;;  %4380 = vmatpush1.bf16.msra.mxu1 %v12449_v62  ;;  %v12500_v61 = vld [vmem:[#allocation10 + $0x480] ss:$16 sps:$4 sm:$0xff]   ;;  %v12503_v62 = vld [vmem:[#allocation10 + $0x488] ss:$16 sps:$4 sm:$0xff]  }
 0x2a4   :  { %4053 = vmatprep.subr.bf16.mxu0 %v12454_v63  ;;  %4381 = vmatprep.subr.bf16.mxu1 %v12457_v1  ;;  %v12508_v63 = vld [vmem:[#allocation10 + $0x4a4] ss:$16 sps:$4 sm:$0xff]   ;;  %v12511_v1 = vld [vmem:[#allocation10 + $0x4ac] ss:$16 sps:$4 sm:$0xff]  }
 0x2a7   :  { %4054 = vmatpush1.bf16.msra.mxu0 %v12452_v2  ;;  %4382 = vmatpush1.bf16.msra.mxu1 %v12455_v6  ;;  %v12506_v2 = vld [vmem:[#allocation10 + $0x4a0] ss:$16 sps:$4 sm:$0xff]   ;;  %v12509_v6 = vld [vmem:[#allocation10 + $0x4a8] ss:$16 sps:$4 sm:$0xff]  }
 0x2a8   :  { %4055 = vmatprep.subr.bf16.mxu0 %v12460_v8  ;;  %4383 = vmatprep.subr.bf16.mxu1 %v12463_v9  ;;  %v12514_v8 = vld [vmem:[#allocation10 + $0x4c4] ss:$16 sps:$4 sm:$0xff]   ;;  %v12517_v9 = vld [vmem:[#allocation10 + $0x4cc] ss:$16 sps:$4 sm:$0xff]  }
 0x2ab   :  { %4056 = vmatpush1.bf16.msra.mxu0 %v12458_v12  ;;  %4384 = vmatpush1.bf16.msra.mxu1 %v12461_v13  ;;  %v12515_v12 = vld [vmem:[#allocation10 + $0x4c8] ss:$16 sps:$4 sm:$0xff]   ;;  %v12520_v13 = vld [vmem:[#allocation10 + $0x4e4] ss:$16 sps:$4 sm:$0xff]  }
 0x2ac   :  { %4057 = vmatprep.subr.bf16.mxu0 %v12466_v14  ;;  %4385 = vmatprep.subr.bf16.mxu1 %v12469_v15  ;;  %v12523_v14 = vld [vmem:[#allocation10 + $0x4ec] ss:$16 sps:$4 sm:$0xff]   ;;  %v12518_v15 = vld [vmem:[#allocation10 + $0x4e0] ss:$16 sps:$4 sm:$0xff]  }
 0x2af   :  { %4058 = vmatpush1.bf16.msra.mxu0 %v12464_v18  ;;  %4386 = vmatpush1.bf16.msra.mxu1 %v12467_v19  ;;  %v12529_v18 = vld [vmem:[#allocation10 + $0x50c] ss:$16 sps:$4 sm:$0xff]   ;;  %v12524_v19 = vld [vmem:[#allocation10 + $0x500] ss:$16 sps:$4 sm:$0xff]  }
 0x2b0   :  { %4059 = vmatprep.subr.bf16.mxu0 %v12472_v21  ;;  %4387 = vmatprep.subr.bf16.mxu1 %v12475_v22  ;;  %v12527_v21 = vld [vmem:[#allocation10 + $0x508] ss:$16 sps:$4 sm:$0xff]   ;;  %v12532_v22 = vld [vmem:[#allocation10 + $0x524] ss:$16 sps:$4 sm:$0xff]  }
 0x2b3   :  { %4060 = vmatpush1.bf16.msra.mxu0 %v12470_v26  ;;  %4388 = vmatpush1.bf16.msra.mxu1 %v12473_v27  ;;  %v12533_v26 = vld [vmem:[#allocation10 + $0x528] ss:$16 sps:$4 sm:$0xff]   ;;  %v12538_v27 = vld [vmem:[#allocation10 + $0x544] ss:$16 sps:$4 sm:$0xff]  }
 0x2b4   :  { %4070 = vmatprep.subr.bf16.mxu0 %v12478_v57  ;;  %4398 = vmatprep.subr.bf16.mxu1 %v12481_v51  ;;  %v12541_v57 = vld [vmem:[#allocation10 + $0x54c] ss:$16 sps:$4 sm:$0xff]   ;;  %v12536_v51 = vld [vmem:[#allocation10 + $0x540] ss:$16 sps:$4 sm:$0xff]  }
 0x2b6   :  { %4062 = vmatmul.mubr.bf16.vlgmr.msra.gmra.mrb[8].mxu0 %v880_v31  ;;  %4390 = vmatmul.mubr.bf16.vlgmr.msra.gmra.mrb[24].mxu1 %v880_v31  ;;  %v12542_v31 = vld [vmem:[#allocation10 + $0x560] ss:$16 sps:$4 sm:$0xff]  }
 0x2b7   :  { %4071 = vmatpush1.bf16.msra.mxu0 %v12476_v4  ;;  %4399 = vmatpush1.bf16.msra.mxu1 %v12479_v28  ;;  %v12539_v4 = vld [vmem:[#allocation10 + $0x548] ss:$16 sps:$4 sm:$0xff]   ;;  %v12544_v28 = vld [vmem:[#allocation10 + $0x564] ss:$16 sps:$4 sm:$0xff]  }
 0x2b8   :  { %4072 = vmatprep.subr.bf16.mxu0 %v12484_v34  ;;  %4400 = vmatprep.subr.bf16.mxu1 %v12487_v35  ;;  %v12545_v34 = vld [vmem:[#allocation10 + $0x568] ss:$16 sps:$4 sm:$0xff]   ;;  %v12550_v35 = vld [vmem:[#allocation10 + $0x584] ss:$16 sps:$4 sm:$0xff]  }
 0x2b9   :  { %4102 = vmatprep.mubr.bf16.mxu0 %v883_v39  ;;  %4430 = vmatprep.mubr.bf16.mxu1 %v883_v39  ;;  %v12551_v39 = vld [vmem:[#allocation10 + $0x588] ss:$16 sps:$4 sm:$0xff]  }
 0x2bb   :  { %4073 = vmatpush1.bf16.msra.mxu0 %v12482_v33  ;;  %4401 = vmatpush1.bf16.msra.mxu1 %v12485_v36  ;;  %v12553_v33 = vld [vmem:[#allocation10 + $0x58c] ss:$16 sps:$4 sm:$0xff]   ;;  %v12548_v36 = vld [vmem:[#allocation10 + $0x580] ss:$16 sps:$4 sm:$0xff]  }
 0x2bc   :  { %4074 = vmatprep.subr.bf16.mxu0 %v12490_v40  ;;  %4402 = vmatprep.subr.bf16.mxu1 %v12493_v41  ;;  %v12556_v40 = vld [vmem:[#allocation10 + $0x5a4] ss:$16 sps:$4 sm:$0xff]   ;;  %v12559_v41 = vld [vmem:[#allocation10 + $0x5ac] ss:$16 sps:$4 sm:$0xff]  }
 0x2bf   :  { %4075 = vmatpush1.bf16.msra.mxu0 %v12488_v44  ;;  %4403 = vmatpush1.bf16.msra.mxu1 %v12491_v45  ;;  %v12554_v44 = vld [vmem:[#allocation10 + $0x5a0] ss:$16 sps:$4 sm:$0xff]   ;;  %v12557_v45 = vld [vmem:[#allocation10 + $0x5a8] ss:$16 sps:$4 sm:$0xff]  }
 0x2c0   :  { %4076 = vmatprep.subr.bf16.mxu0 %v12496_v46  ;;  %4404 = vmatprep.subr.bf16.mxu1 %v12499_v47  ;;  %v15237_v46 = vld [vmem:[#allocation8] sm:$0xff] }
 0x2c1   :  { %v345_v47 = vrot.slane %v15237_v46, %v344_v43  ;;  %v12571_v43 = vld [vmem:[#allocation10 + $0x5ec] ss:$16 sps:$4 sm:$0xff]  }
 0x2c3   :  { %4077 = vmatpush1.bf16.msra.mxu0 %v12494_v48  ;;  %4405 = vmatpush1.bf16.msra.mxu1 %v12497_v49  ;;  %v12562_v48 = vld [vmem:[#allocation10 + $0x5c4] ss:$16 sps:$4 sm:$0xff]   ;;  %v12565_v49 = vld [vmem:[#allocation10 + $0x5cc] ss:$16 sps:$4 sm:$0xff]  }
 0x2c4   :  { %4078 = vmatprep.subr.bf16.mxu0 %v12502_v50  ;;  %4406 = vmatprep.subr.bf16.mxu1 %v12505_v60  ;;  %v12560_v50 = vld [vmem:[#allocation10 + $0x5c0] ss:$16 sps:$4 sm:$0xff]   ;;  %v12563_v60 = vld [vmem:[#allocation10 + $0x5c8] ss:$16 sps:$4 sm:$0xff]  }
 0x2c7   :  { %4079 = vmatpush1.bf16.msra.mxu0 %v12500_v61  ;;  %4407 = vmatpush1.bf16.msra.mxu1 %v12503_v62  ;;  %v357_v61 = vrot.slane %v15237_v46, %v356_v54  ;;  %v651_v62 = vadd.f32 %v15191_v32, %v345_v47  ;;  %v12572_v54 = vld [vmem:[#allocation10 + $0x600] ss:$16 sps:$4 sm:$0xff]   ;;  %v12617_v47 = vld [vmem:[#allocation10 + $0x6e8] ss:$16 sps:$4 sm:$0xff]  }
 0x2c8   :  { %4080 = vmatprep.subr.bf16.mxu0 %v12508_v63  ;;  %4408 = vmatprep.subr.bf16.mxu1 %v12511_v1  ;;  %v12568_v63 = vld [vmem:[#allocation10 + $0x5e4] ss:$16 sps:$4 sm:$0xff]   ;;  %v12566_v1 = vld [vmem:[#allocation10 + $0x5e0] ss:$16 sps:$4 sm:$0xff]  }
 0x2cb   :  { %4081 = vmatpush1.bf16.msra.mxu0 %v12506_v2  ;;  %4409 = vmatpush1.bf16.msra.mxu1 %v12509_v6  ;;  %v12569_v2 = vld [vmem:[#allocation10 + $0x5e8] ss:$16 sps:$4 sm:$0xff]   ;;  %v694_v6 = vadd.f32 %v15205_v55, %v357_v61  ;;  %v12628_v61 = vld [vmem:[#allocation10 + $0x724] ss:$16 sps:$4 sm:$0xff]  }
 0x2cc   :  { %4082 = vmatprep.subr.bf16.mxu0 %v12514_v8  ;;  %4410 = vmatprep.subr.bf16.mxu1 %v12517_v9  ;;  %v866_v8 = vmax.f32 %v651_v62, 0.0  ;;  %v12574_v9 = vld [vmem:[#allocation10 + $0x604] ss:$16 sps:$4 sm:$0xff]   ;;  %v12581_v55 = vld [vmem:[#allocation10 + $0x628] ss:$16 sps:$4 sm:$0xff]  }
 0x2cd   :  { %v869_v32 = vmax.f32 %v694_v6, 0.0  ;;  %v12631_v62 = vld [vmem:[#allocation10 + $0x72c] ss:$16 sps:$4 sm:$0xff]   ;;  %v12632_v6 = vld [vmem:[#allocation10 + $0x740] ss:$16 sps:$4 sm:$0xff]  }
 0x2cf   :  { %4083 = vmatpush1.bf16.msra.mxu0 %v12512_v10  ;;  %4411 = vmatpush1.bf16.msra.mxu1 %v12515_v12  ;;  %v12577_v10 = vld [vmem:[#allocation10 + $0x60c] ss:$16 sps:$4 sm:$0xff]   ;;  %v12575_v12 = vld [vmem:[#allocation10 + $0x608] ss:$16 sps:$4 sm:$0xff]  }
 0x2d0   :  { %4084 = vmatprep.subr.bf16.mxu0 %v12520_v13  ;;  %4412 = vmatprep.subr.bf16.mxu1 %v12523_v14  ;;  %v882_v13 = vpack.c.bf16 %v866_v8, %v866_v8  ;;  %v12580_v14 = vld [vmem:[#allocation10 + $0x624] ss:$16 sps:$4 sm:$0xff]   ;;  %v12635_v8 = vld [vmem:[#allocation10 + $0x748] ss:$16 sps:$4 sm:$0xff]  }
 0x2d3   :  { %4085 = vmatpush1.bf16.msra.mxu0 %v12518_v15  ;;  %4413 = vmatpush1.bf16.msra.mxu1 %v12521_v16  ;;  %v12583_v15 = vld [vmem:[#allocation10 + $0x62c] ss:$16 sps:$4 sm:$0xff]   ;;  %v885_v16 = vpack.c.bf16 %v869_v32, %v869_v32  ;;  %v12646_v32 = vld [vmem:[#allocation10 + $0x784] ss:$16 sps:$4 sm:$0xff]  }
 0x2d4   :  { %4086 = vmatprep.subr.bf16.mxu0 %v12526_v17  ;;  %4414 = vmatprep.subr.bf16.mxu1 %v12529_v18  ;;  %v12578_v17 = vld [vmem:[#allocation10 + $0x620] ss:$16 sps:$4 sm:$0xff]   ;;  %v12586_v18 = vld [vmem:[#allocation10 + $0x644] ss:$16 sps:$4 sm:$0xff]  }
 0x2d7   :  { %4087 = vmatpush1.bf16.msra.mxu0 %v12524_v19  ;;  %4415 = vmatpush1.bf16.msra.mxu1 %v12527_v21  ;;  %v12589_v19 = vld [vmem:[#allocation10 + $0x64c] ss:$16 sps:$4 sm:$0xff]   ;;  %v12584_v21 = vld [vmem:[#allocation10 + $0x640] ss:$16 sps:$4 sm:$0xff]  }
 0x2d8   :  { %4088 = vmatprep.subr.bf16.mxu0 %v12532_v22  ;;  %4416 = vmatprep.subr.bf16.mxu1 %v12535_v23  ;;  %v12587_v22 = vld [vmem:[#allocation10 + $0x648] ss:$16 sps:$4 sm:$0xff]   ;;  %v12592_v23 = vld [vmem:[#allocation10 + $0x664] ss:$16 sps:$4 sm:$0xff]  }
 0x2db   :  { %4089 = vmatpush1.bf16.msra.mxu0 %v12530_v25  ;;  %4417 = vmatpush1.bf16.msra.mxu1 %v12533_v26  ;;  %v12595_v25 = vld [vmem:[#allocation10 + $0x66c] ss:$16 sps:$4 sm:$0xff]   ;;  %v12590_v26 = vld [vmem:[#allocation10 + $0x660] ss:$16 sps:$4 sm:$0xff]  }
 0x2dc   :  { %4090 = vmatprep.subr.bf16.mxu0 %v12538_v27  ;;  %4418 = vmatprep.subr.bf16.mxu1 %v12541_v57  ;;  %v12593_v27 = vld [vmem:[#allocation10 + $0x668] ss:$16 sps:$4 sm:$0xff]   ;;  %v12598_v57 = vld [vmem:[#allocation10 + $0x684] ss:$16 sps:$4 sm:$0xff]  }
 0x2df   :  { %4091 = vmatpush1.bf16.msra.mxu0 %v12536_v51  ;;  %4419 = vmatpush1.bf16.msra.mxu1 %v12539_v4  ;;  %v12601_v51 = vld [vmem:[#allocation10 + $0x68c] ss:$16 sps:$4 sm:$0xff]   ;;  %v12596_v4 = vld [vmem:[#allocation10 + $0x680] ss:$16 sps:$4 sm:$0xff]  }
 0x2e0   :  { %4092 = vmatprep.subr.bf16.mxu0 %v12544_v28  ;;  %4420 = vmatprep.subr.bf16.mxu1 %v12547_v29  ;;  %v12599_v28 = vld [vmem:[#allocation10 + $0x688] ss:$16 sps:$4 sm:$0xff]   ;;  %v12604_v29 = vld [vmem:[#allocation10 + $0x6a4] ss:$16 sps:$4 sm:$0xff]  }
 0x2e3   :  { %4093 = vmatpush1.bf16.msra.mxu0 %v12542_v31  ;;  %4421 = vmatpush1.bf16.msra.mxu1 %v12545_v34  ;;  %v12607_v31 = vld [vmem:[#allocation10 + $0x6ac] ss:$16 sps:$4 sm:$0xff]   ;;  %v12602_v34 = vld [vmem:[#allocation10 + $0x6a0] ss:$16 sps:$4 sm:$0xff]  }
 0x2e4   :  { %4094 = vmatprep.subr.bf16.mxu0 %v12550_v35  ;;  %4422 = vmatprep.subr.bf16.mxu1 %v12553_v33  ;;  %v12605_v35 = vld [vmem:[#allocation10 + $0x6a8] ss:$16 sps:$4 sm:$0xff]   ;;  %v12610_v33 = vld [vmem:[#allocation10 + $0x6c4] ss:$16 sps:$4 sm:$0xff]  }
 0x2e7   :  { %4095 = vmatpush1.bf16.msra.mxu0 %v12548_v36  ;;  %4423 = vmatpush1.bf16.msra.mxu1 %v12551_v39  ;;  %v12613_v36 = vld [vmem:[#allocation10 + $0x6cc] ss:$16 sps:$4 sm:$0xff]   ;;  %v12608_v39 = vld [vmem:[#allocation10 + $0x6c0] ss:$16 sps:$4 sm:$0xff]  }
 0x2e8   :  { %4096 = vmatprep.subr.bf16.mxu0 %v12556_v40  ;;  %4424 = vmatprep.subr.bf16.mxu1 %v12559_v41  ;;  %v12611_v40 = vld [vmem:[#allocation10 + $0x6c8] ss:$16 sps:$4 sm:$0xff]   ;;  %v12616_v41 = vld [vmem:[#allocation10 + $0x6e4] ss:$16 sps:$4 sm:$0xff]  }
 0x2eb   :  { %4097 = vmatpush1.bf16.msra.mxu0 %v12554_v44  ;;  %4425 = vmatpush1.bf16.msra.mxu1 %v12557_v45  ;;  %v12619_v44 = vld [vmem:[#allocation10 + $0x6ec] ss:$16 sps:$4 sm:$0xff]   ;;  %v12614_v45 = vld [vmem:[#allocation10 + $0x6e0] ss:$16 sps:$4 sm:$0xff]  }
 0x2ec   :  { %4098 = vmatprep.subr.bf16.mxu0 %v12562_v48  ;;  %4426 = vmatprep.subr.bf16.mxu1 %v12565_v49  ;;  %v12622_v48 = vld [vmem:[#allocation10 + $0x704] ss:$16 sps:$4 sm:$0xff]   ;;  %v12625_v49 = vld [vmem:[#allocation10 + $0x70c] ss:$16 sps:$4 sm:$0xff]  }
 0x2ef   :  { %4099 = vmatpush1.bf16.msra.mxu0 %v12560_v50  ;;  %4427 = vmatpush1.bf16.msra.mxu1 %v12563_v60  ;;  %v12620_v50 = vld [vmem:[#allocation10 + $0x700] ss:$16 sps:$4 sm:$0xff]   ;;  %v12623_v60 = vld [vmem:[#allocation10 + $0x708] ss:$16 sps:$4 sm:$0xff]  }
 0x2f0   :  { %4100 = vmatprep.subr.bf16.mxu0 %v12568_v63  ;;  %4428 = vmatprep.subr.bf16.mxu1 %v12571_v43  ;;  %v12626_v63 = vld [vmem:[#allocation10 + $0x720] ss:$16 sps:$4 sm:$0xff]   ;;  %v12629_v43 = vld [vmem:[#allocation10 + $0x728] ss:$16 sps:$4 sm:$0xff]  }
 0x2f3   :  { %4101 = vmatpush1.bf16.msra.mxu0 %v12566_v1  ;;  %4429 = vmatpush1.bf16.msra.mxu1 %v12569_v2  ;;  %v12634_v1 = vld [vmem:[#allocation10 + $0x744] ss:$16 sps:$4 sm:$0xff]   ;;  %v12637_v2 = vld [vmem:[#allocation10 + $0x74c] ss:$16 sps:$4 sm:$0xff]  }
 0x2f4   :  { %4111 = vmatprep.subr.bf16.mxu0 %v12574_v9  ;;  %4439 = vmatprep.subr.bf16.mxu1 %v12577_v10  ;;  %v12640_v9 = vld [vmem:[#allocation10 + $0x764] ss:$16 sps:$4 sm:$0xff]   ;;  %v12643_v10 = vld [vmem:[#allocation10 + $0x76c] ss:$16 sps:$4 sm:$0xff]  }
 0x2f6   :  { %4103 = vmatmul.mubr.bf16.vlgmr.msra.gmra.mrb[8].mxu0 %v882_v13  ;;  %4431 = vmatmul.mubr.bf16.vlgmr.msra.gmra.mrb[24].mxu1 %v882_v13  ;;  %v12649_v13 = vld [vmem:[#allocation10 + $0x78c] ss:$16 sps:$4 sm:$0xff]  }
 0x2f7   :  { %4112 = vmatpush1.bf16.msra.mxu0 %v12572_v54  ;;  %4440 = vmatpush1.bf16.msra.mxu1 %v12575_v12  ;;  %v12638_v54 = vld [vmem:[#allocation10 + $0x760] ss:$16 sps:$4 sm:$0xff]   ;;  %v12641_v12 = vld [vmem:[#allocation10 + $0x768] ss:$16 sps:$4 sm:$0xff]  }
 0x2f8   :  { %4113 = vmatprep.subr.bf16.mxu0 %v12580_v14  ;;  %4441 = vmatprep.subr.bf16.mxu1 %v12583_v15  ;;  %v12644_v14 = vld [vmem:[#allocation10 + $0x780] ss:$16 sps:$4 sm:$0xff]   ;;  %v12647_v15 = vld [vmem:[#allocation10 + $0x788] ss:$16 sps:$4 sm:$0xff]  }
 0x2f9   :  { %4143 = vmatprep.mubr.bf16.mxu0 %v885_v16  ;;  %4471 = vmatprep.mubr.bf16.mxu1 %v885_v16  ;;  %v12652_v16 = vld [vmem:[#allocation10 + $0x7a4] ss:$16 sps:$4 sm:$0xff]  }
 0x2fb   :  { %4114 = vmatpush1.bf16.msra.mxu0 %v12578_v17  ;;  %4442 = vmatpush1.bf16.msra.mxu1 %v12581_v55  ;;  %v12655_v17 = vld [vmem:[#allocation10 + $0x7ac] ss:$16 sps:$4 sm:$0xff]   ;;  %v12650_v55 = vld [vmem:[#allocation10 + $0x7a0] ss:$16 sps:$4 sm:$0xff]  }
 0x2fc   :  { %4115 = vmatprep.subr.bf16.mxu0 %v12586_v18  ;;  %4443 = vmatprep.subr.bf16.mxu1 %v12589_v19  ;;  %v12653_v18 = vld [vmem:[#allocation10 + $0x7a8] ss:$16 sps:$4 sm:$0xff]   ;;  %v353_v19 = vrot.slane %v15237_v46, %v352_v52  ;;  %v12662_v46 = vld [vmem:[#allocation10 + $0x7e0] ss:$16 sps:$4 sm:$0xff]  }
 0x2ff   :  { %4116 = vmatpush1.bf16.msra.mxu0 %v12584_v21  ;;  %4444 = vmatpush1.bf16.msra.mxu1 %v12587_v22  ;;  %v12658_v21 = vld [vmem:[#allocation10 + $0x7c4] ss:$16 sps:$4 sm:$0xff]   ;;  %v12661_v22 = vld [vmem:[#allocation10 + $0x7cc] ss:$16 sps:$4 sm:$0xff]  }
 0x300   :  { %4117 = vmatprep.subr.bf16.mxu0 %v12592_v23  ;;  %4445 = vmatprep.subr.bf16.mxu1 %v12595_v25  ;;  %v15250_v23 = vld [vmem:[#allocation8 + $0x8] sm:$0xff] }
 0x301   :  { %v365_v25 = vrot.slane %v15250_v23, %v15176_v58 }
 0x303   :  { %4118 = vmatpush1.bf16.msra.mxu0 %v12590_v26  ;;  %4446 = vmatpush1.bf16.msra.mxu1 %v12593_v27  ;;  %v12656_v26 = vld [vmem:[#allocation10 + $0x7c0] ss:$16 sps:$4 sm:$0xff]   ;;  %v12659_v27 = vld [vmem:[#allocation10 + $0x7c8] ss:$16 sps:$4 sm:$0xff]   ;;  %v735_v52 = vadd.f32 %v15195_v37, %v365_v25  ;;  %v12727_v25 = vld [vmem:[#allocation10 + $0x92c] ss:$16 sps:$4 sm:$0xff]  }
 0x304   :  { %4119 = vmatprep.subr.bf16.mxu0 %v12598_v57  ;;  %4447 = vmatprep.subr.bf16.mxu1 %v12601_v51  ;;  %v692_v57 = vadd.f32 %v15202_v53, %v353_v19  ;;  %v12667_v51 = vld [vmem:[#allocation10 + $0x7ec] ss:$16 sps:$4 sm:$0xff]   ;;  %v12676_v53 = vld [vmem:[#allocation10 + $0x824] ss:$16 sps:$4 sm:$0xff]   ;;  %v12719_v19 = vld [vmem:[#allocation10 + $0x908] ss:$16 sps:$4 sm:$0xff]  }
 0x307   :  { %4120 = vmatpush1.bf16.msra.mxu0 %v12596_v4  ;;  %4448 = vmatpush1.bf16.msra.mxu1 %v12599_v28  ;;  %v12665_v4 = vld [vmem:[#allocation10 + $0x7e8] ss:$16 sps:$4 sm:$0xff]   ;;  %v868_v28 = vmax.f32 %v692_v57, 0.0  ;;  %v12728_v57 = vld [vmem:[#allocation10 + $0x940] ss:$16 sps:$4 sm:$0xff]  }
 0x308   :  { %4121 = vmatprep.subr.bf16.mxu0 %v12604_v29  ;;  %4449 = vmatprep.subr.bf16.mxu1 %v12607_v31  ;;  %v12670_v29 = vld [vmem:[#allocation10 + $0x804] ss:$16 sps:$4 sm:$0xff]   ;;  %v12673_v31 = vld [vmem:[#allocation10 + $0x80c] ss:$16 sps:$4 sm:$0xff]  }
 0x30b   :  { %4122 = vmatpush1.bf16.msra.mxu0 %v12602_v34  ;;  %4450 = vmatpush1.bf16.msra.mxu1 %v12605_v35  ;;  %v871_v34 = vmax.f32 %v735_v52, 0.0  ;;  %v12668_v35 = vld [vmem:[#allocation10 + $0x800] ss:$16 sps:$4 sm:$0xff]   ;;  %v12736_v52 = vld [vmem:[#allocation10 + $0x964] ss:$16 sps:$4 sm:$0xff]  }
 0x30c   :  { %4123 = vmatprep.subr.bf16.mxu0 %v12610_v33  ;;  %4451 = vmatprep.subr.bf16.mxu1 %v12613_v36  ;;  %v12671_v33 = vld [vmem:[#allocation10 + $0x808] ss:$16 sps:$4 sm:$0xff]   ;;  %v12679_v36 = vld [vmem:[#allocation10 + $0x82c] ss:$16 sps:$4 sm:$0xff]  }
 0x30d   :  { %v887_v37 = vpack.c.bf16 %v871_v34, %v871_v34  ;;  %v12745_v34 = vld [vmem:[#allocation10 + $0x98c] ss:$16 sps:$4 sm:$0xff]  }
 0x30f   :  { %4124 = vmatpush1.bf16.msra.mxu0 %v12608_v39  ;;  %4452 = vmatpush1.bf16.msra.mxu1 %v12611_v40  ;;  %v884_v39 = vpack.c.bf16 %v868_v28, %v868_v28  ;;  %v12674_v40 = vld [vmem:[#allocation10 + $0x820] ss:$16 sps:$4 sm:$0xff]   ;;  %v12737_v28 = vld [vmem:[#allocation10 + $0x968] ss:$16 sps:$4 sm:$0xff]  }
 0x310   :  { %4125 = vmatprep.subr.bf16.mxu0 %v12616_v41  ;;  %4453 = vmatprep.subr.bf16.mxu1 %v12619_v44  ;;  %v12677_v41 = vld [vmem:[#allocation10 + $0x828] ss:$16 sps:$4 sm:$0xff]   ;;  %v12682_v44 = vld [vmem:[#allocation10 + $0x844] ss:$16 sps:$4 sm:$0xff]  }
 0x313   :  { %4126 = vmatpush1.bf16.msra.mxu0 %v12614_v45  ;;  %4454 = vmatpush1.bf16.msra.mxu1 %v12617_v47  ;;  %v12685_v45 = vld [vmem:[#allocation10 + $0x84c] ss:$16 sps:$4 sm:$0xff]   ;;  %v12680_v47 = vld [vmem:[#allocation10 + $0x840] ss:$16 sps:$4 sm:$0xff]  }
 0x314   :  { %4127 = vmatprep.subr.bf16.mxu0 %v12622_v48  ;;  %4455 = vmatprep.subr.bf16.mxu1 %v12625_v49  ;;  %v12683_v48 = vld [vmem:[#allocation10 + $0x848] ss:$16 sps:$4 sm:$0xff]   ;;  %v12688_v49 = vld [vmem:[#allocation10 + $0x864] ss:$16 sps:$4 sm:$0xff]  }
 0x317   :  { %4128 = vmatpush1.bf16.msra.mxu0 %v12620_v50  ;;  %4456 = vmatpush1.bf16.msra.mxu1 %v12623_v60  ;;  %v12686_v50 = vld [vmem:[#allocation10 + $0x860] ss:$16 sps:$4 sm:$0xff]   ;;  %v12691_v60 = vld [vmem:[#allocation10 + $0x86c] ss:$16 sps:$4 sm:$0xff]  }
 0x318   :  { %4129 = vmatprep.subr.bf16.mxu0 %v12628_v61  ;;  %4457 = vmatprep.subr.bf16.mxu1 %v12631_v62  ;;  %v12689_v61 = vld [vmem:[#allocation10 + $0x868] ss:$16 sps:$4 sm:$0xff]   ;;  %v12694_v62 = vld [vmem:[#allocation10 + $0x884] ss:$16 sps:$4 sm:$0xff]  }
 0x31b   :  { %4130 = vmatpush1.bf16.msra.mxu0 %v12626_v63  ;;  %4458 = vmatpush1.bf16.msra.mxu1 %v12629_v43  ;;  %v12692_v63 = vld [vmem:[#allocation10 + $0x880] ss:$16 sps:$4 sm:$0xff]   ;;  %v12697_v43 = vld [vmem:[#allocation10 + $0x88c] ss:$16 sps:$4 sm:$0xff]  }
 0x31c   :  { %4131 = vmatprep.subr.bf16.mxu0 %v12634_v1  ;;  %4459 = vmatprep.subr.bf16.mxu1 %v12637_v2  ;;  %v12695_v1 = vld [vmem:[#allocation10 + $0x888] ss:$16 sps:$4 sm:$0xff]   ;;  %v12700_v2 = vld [vmem:[#allocation10 + $0x8a4] ss:$16 sps:$4 sm:$0xff]  }
 0x31f   :  { %4132 = vmatpush1.bf16.msra.mxu0 %v12632_v6  ;;  %4460 = vmatpush1.bf16.msra.mxu1 %v12635_v8  ;;  %v12698_v6 = vld [vmem:[#allocation10 + $0x8a0] ss:$16 sps:$4 sm:$0xff]   ;;  %v12703_v8 = vld [vmem:[#allocation10 + $0x8ac] ss:$16 sps:$4 sm:$0xff]  }
 0x320   :  { %4133 = vmatprep.subr.bf16.mxu0 %v12640_v9  ;;  %4461 = vmatprep.subr.bf16.mxu1 %v12643_v10  ;;  %v12701_v9 = vld [vmem:[#allocation10 + $0x8a8] ss:$16 sps:$4 sm:$0xff]   ;;  %v12706_v10 = vld [vmem:[#allocation10 + $0x8c4] ss:$16 sps:$4 sm:$0xff]  }
 0x323   :  { %4134 = vmatpush1.bf16.msra.mxu0 %v12638_v54  ;;  %4462 = vmatpush1.bf16.msra.mxu1 %v12641_v12  ;;  %v12704_v54 = vld [vmem:[#allocation10 + $0x8c0] ss:$16 sps:$4 sm:$0xff]   ;;  %v12709_v12 = vld [vmem:[#allocation10 + $0x8cc] ss:$16 sps:$4 sm:$0xff]  }
 0x324   :  { %4135 = vmatprep.subr.bf16.mxu0 %v12646_v32  ;;  %4463 = vmatprep.subr.bf16.mxu1 %v12649_v13  ;;  %v12707_v32 = vld [vmem:[#allocation10 + $0x8c8] ss:$16 sps:$4 sm:$0xff]   ;;  %v12712_v13 = vld [vmem:[#allocation10 + $0x8e4] ss:$16 sps:$4 sm:$0xff]  }
 0x327   :  { %4136 = vmatpush1.bf16.msra.mxu0 %v12644_v14  ;;  %4464 = vmatpush1.bf16.msra.mxu1 %v12647_v15  ;;  %v12710_v14 = vld [vmem:[#allocation10 + $0x8e0] ss:$16 sps:$4 sm:$0xff]   ;;  %v12715_v15 = vld [vmem:[#allocation10 + $0x8ec] ss:$16 sps:$4 sm:$0xff]  }
 0x328   :  { %4137 = vmatprep.subr.bf16.mxu0 %v12652_v16  ;;  %4465 = vmatprep.subr.bf16.mxu1 %v12655_v17  ;;  %v12713_v16 = vld [vmem:[#allocation10 + $0x8e8] ss:$16 sps:$4 sm:$0xff]   ;;  %v12718_v17 = vld [vmem:[#allocation10 + $0x904] ss:$16 sps:$4 sm:$0xff]  }
 0x32b   :  { %4138 = vmatpush1.bf16.msra.mxu0 %v12650_v55  ;;  %4466 = vmatpush1.bf16.msra.mxu1 %v12653_v18  ;;  %v12716_v55 = vld [vmem:[#allocation10 + $0x900] ss:$16 sps:$4 sm:$0xff]   ;;  %v12721_v18 = vld [vmem:[#allocation10 + $0x90c] ss:$16 sps:$4 sm:$0xff]  }
 0x32c   :  { %4139 = vmatprep.subr.bf16.mxu0 %v12658_v21  ;;  %4467 = vmatprep.subr.bf16.mxu1 %v12661_v22  ;;  %v12724_v21 = vld [vmem:[#allocation10 + $0x924] ss:$16 sps:$4 sm:$0xff]   ;;  %v12722_v22 = vld [vmem:[#allocation10 + $0x920] ss:$16 sps:$4 sm:$0xff]  }
 0x32f   :  { %4140 = vmatpush1.bf16.msra.mxu0 %v12656_v26  ;;  %4468 = vmatpush1.bf16.msra.mxu1 %v12659_v27  ;;  %v12725_v26 = vld [vmem:[#allocation10 + $0x928] ss:$16 sps:$4 sm:$0xff]   ;;  %v12730_v27 = vld [vmem:[#allocation10 + $0x944] ss:$16 sps:$4 sm:$0xff]  }
 0x330   :  { %4141 = vmatprep.subr.bf16.mxu0 %v12664_v3  ;;  %4469 = vmatprep.subr.bf16.mxu1 %v12667_v51  ;;  %v12733_v3 = vld [vmem:[#allocation10 + $0x94c] ss:$16 sps:$4 sm:$0xff]   ;;  %v12731_v51 = vld [vmem:[#allocation10 + $0x948] ss:$16 sps:$4 sm:$0xff]  }
 0x333   :  { %4142 = vmatpush1.bf16.msra.mxu0 %v12662_v46  ;;  %4470 = vmatpush1.bf16.msra.mxu1 %v12665_v4  ;;  %v12734_v46 = vld [vmem:[#allocation10 + $0x960] ss:$16 sps:$4 sm:$0xff]   ;;  %v12739_v4 = vld [vmem:[#allocation10 + $0x96c] ss:$16 sps:$4 sm:$0xff]  }
 0x334   :  { %4152 = vmatprep.subr.bf16.mxu0 %v12670_v29  ;;  %4480 = vmatprep.subr.bf16.mxu1 %v12673_v31  ;;  %v12742_v29 = vld [vmem:[#allocation10 + $0x984] ss:$16 sps:$4 sm:$0xff]   ;;  %v12740_v31 = vld [vmem:[#allocation10 + $0x980] ss:$16 sps:$4 sm:$0xff]  }
 0x336   :  { %4144 = vmatmul.mubr.bf16.vlgmr.msra.gmra.mrb[8].mxu0 %v884_v39  ;;  %4472 = vmatmul.mubr.bf16.vlgmr.msra.gmra.mrb[24].mxu1 %v884_v39  ;;  %v12751_v39 = vld [vmem:[#allocation10 + $0x9ac] ss:$16 sps:$4 sm:$0xff]  }
 0x337   :  { %4153 = vmatpush1.bf16.msra.mxu0 %v12668_v35  ;;  %4184 = vmatprep.mubr.bf16.mxu0 %v887_v37  ;;  %v361_v35 = vrot.slane %v15250_v23, %v15171_v56  ;;  %v873_v23 = vmax.f32 %v15224_v24, 0.0 }
 0x338   :  { %4481 = vmatpush1.bf16.msra.mxu1 %v12671_v33  ;;  %4512 = vmatprep.mubr.bf16.mxu1 %v887_v37  ;;  %v12743_v33 = vld [vmem:[#allocation10 + $0x988] ss:$16 sps:$4 sm:$0xff]  }
 0x339   :  { %4154 = vmatprep.subr.bf16.mxu0 %v12676_v53  ;;  %4482 = vmatprep.subr.bf16.mxu1 %v12679_v36  ;;  %v12748_v53 = vld [vmem:[#allocation10 + $0x9a4] ss:$16 sps:$4 sm:$0xff]   ;;  %v12746_v36 = vld [vmem:[#allocation10 + $0x9a0] ss:$16 sps:$4 sm:$0xff]   ;;  %v733_v37 = vadd.f32 %v15189_v30, %v361_v35  ;;  %v12761_v30 = vld [vmem:[#allocation10 + $0x9e8] ss:$16 sps:$4 sm:$0xff]   ;;  %v889_v24 = vpack.c.bf16 %v873_v23, %v873_v23 }
 0x33a   :  { %v12815_v35 = vld [vmem:[#allocation10 + $0xb08] ss:$16 sps:$4 sm:$0xff]   ;;  %v12835_v23 = vld [vmem:[#allocation10 + $0xb6c] ss:$16 sps:$4 sm:$0xff]  }
 0x33b   :  { %4155 = vmatpush1.bf16.msra.mxu0 %v12674_v40  ;;  %v12749_v40 = vld [vmem:[#allocation10 + $0x9a8] ss:$16 sps:$4 sm:$0xff]  }
 0x33c   :  { %4483 = vmatpush1.bf16.msra.mxu1 %v12677_v41  ;;  %4156 = vmatprep.subr.bf16.mxu0 %v12682_v44  ;;  %v12754_v41 = vld [vmem:[#allocation10 + $0x9c4] ss:$16 sps:$4 sm:$0xff]   ;;  %v12752_v44 = vld [vmem:[#allocation10 + $0x9c0] ss:$16 sps:$4 sm:$0xff]  }
 0x33d   :  { %4484 = vmatprep.subr.bf16.mxu1 %v12685_v45  ;;  %v12757_v45 = vld [vmem:[#allocation10 + $0x9cc] ss:$16 sps:$4 sm:$0xff]  }
 0x33f   :  { %4157 = vmatpush1.bf16.msra.mxu0 %v12680_v47  ;;  %v870_v47 = vmax.f32 %v733_v37, 0.0  ;;  %v12826_v37 = vld [vmem:[#allocation10 + $0xb44] ss:$16 sps:$4 sm:$0xff]  }
 0x340   :  { %4485 = vmatpush1.bf16.msra.mxu1 %v12683_v48  ;;  %4158 = vmatprep.subr.bf16.mxu0 %v12688_v49  ;;  %v12755_v48 = vld [vmem:[#allocation10 + $0x9c8] ss:$16 sps:$4 sm:$0xff]   ;;  %v12760_v49 = vld [vmem:[#allocation10 + $0x9e4] ss:$16 sps:$4 sm:$0xff]  }
 0x341   :  { %4486 = vmatprep.subr.bf16.mxu1 %v12691_v60  ;;  %v12763_v60 = vld [vmem:[#allocation10 + $0x9ec] ss:$16 sps:$4 sm:$0xff]  }
 0x343   :  { %4159 = vmatpush1.bf16.msra.mxu0 %v12686_v50  ;;  %v12758_v50 = vld [vmem:[#allocation10 + $0x9e0] ss:$16 sps:$4 sm:$0xff]  }
 0x344   :  { %4487 = vmatpush1.bf16.msra.mxu1 %v12689_v61  ;;  %4160 = vmatprep.subr.bf16.mxu0 %v12694_v62  ;;  %v12766_v61 = vld [vmem:[#allocation10 + $0xa04] ss:$16 sps:$4 sm:$0xff]   ;;  %v12769_v62 = vld [vmem:[#allocation10 + $0xa0c] ss:$16 sps:$4 sm:$0xff]  }
 0x345   :  { %4488 = vmatprep.subr.bf16.mxu1 %v12697_v43  ;;  %v12767_v43 = vld [vmem:[#allocation10 + $0xa08] ss:$16 sps:$4 sm:$0xff]  }
 0x347   :  { %4161 = vmatpush1.bf16.msra.mxu0 %v12692_v63  ;;  %v12764_v63 = vld [vmem:[#allocation10 + $0xa00] ss:$16 sps:$4 sm:$0xff]  }
 0x348   :  { %4489 = vmatpush1.bf16.msra.mxu1 %v12695_v1  ;;  %4162 = vmatprep.subr.bf16.mxu0 %v12700_v2  ;;  %v12772_v1 = vld [vmem:[#allocation10 + $0xa24] ss:$16 sps:$4 sm:$0xff]   ;;  %v886_v2 = vpack.c.bf16 %v870_v47, %v870_v47  ;;  %v12830_v47 = vld [vmem:[#allocation10 + $0xb60] ss:$16 sps:$4 sm:$0xff]  }
 0x349   :  { %4490 = vmatprep.subr.bf16.mxu1 %v12703_v8  ;;  %v12773_v8 = vld [vmem:[#allocation10 + $0xa28] ss:$16 sps:$4 sm:$0xff]  }
 0x34b   :  { %4163 = vmatpush1.bf16.msra.mxu0 %v12698_v6  ;;  %v12770_v6 = vld [vmem:[#allocation10 + $0xa20] ss:$16 sps:$4 sm:$0xff]  }
 0x34c   :  { %4491 = vmatpush1.bf16.msra.mxu1 %v12701_v9  ;;  %4164 = vmatprep.subr.bf16.mxu0 %v12706_v10  ;;  %v12775_v9 = vld [vmem:[#allocation10 + $0xa2c] ss:$16 sps:$4 sm:$0xff]   ;;  %v12778_v10 = vld [vmem:[#allocation10 + $0xa44] ss:$16 sps:$4 sm:$0xff]  }
 0x34d   :  { %4492 = vmatprep.subr.bf16.mxu1 %v12709_v12  ;;  %v12776_v12 = vld [vmem:[#allocation10 + $0xa40] ss:$16 sps:$4 sm:$0xff]  }
 0x34f   :  { %4165 = vmatpush1.bf16.msra.mxu0 %v12704_v54  ;;  %v12781_v54 = vld [vmem:[#allocation10 + $0xa4c] ss:$16 sps:$4 sm:$0xff]  }
 0x350   :  { %4493 = vmatpush1.bf16.msra.mxu1 %v12707_v32  ;;  %4166 = vmatprep.subr.bf16.mxu0 %v12712_v13  ;;  %v12779_v32 = vld [vmem:[#allocation10 + $0xa48] ss:$16 sps:$4 sm:$0xff]   ;;  %v12784_v13 = vld [vmem:[#allocation10 + $0xa64] ss:$16 sps:$4 sm:$0xff]  }
 0x351   :  { %4494 = vmatprep.subr.bf16.mxu1 %v12715_v15  ;;  %v12787_v15 = vld [vmem:[#allocation10 + $0xa6c] ss:$16 sps:$4 sm:$0xff]  }
 0x353   :  { %4167 = vmatpush1.bf16.msra.mxu0 %v12710_v14  ;;  %v12782_v14 = vld [vmem:[#allocation10 + $0xa60] ss:$16 sps:$4 sm:$0xff]  }
 0x354   :  { %4495 = vmatpush1.bf16.msra.mxu1 %v12713_v16  ;;  %4168 = vmatprep.subr.bf16.mxu0 %v12718_v17  ;;  %v12785_v16 = vld [vmem:[#allocation10 + $0xa68] ss:$16 sps:$4 sm:$0xff]   ;;  %v12790_v17 = vld [vmem:[#allocation10 + $0xa84] ss:$16 sps:$4 sm:$0xff]  }
 0x355   :  { %4496 = vmatprep.subr.bf16.mxu1 %v12721_v18  ;;  %v12793_v18 = vld [vmem:[#allocation10 + $0xa8c] ss:$16 sps:$4 sm:$0xff]  }
 0x357   :  { %4169 = vmatpush1.bf16.msra.mxu0 %v12716_v55  ;;  %v12788_v55 = vld [vmem:[#allocation10 + $0xa80] ss:$16 sps:$4 sm:$0xff]  }
 0x358   :  { %4497 = vmatpush1.bf16.msra.mxu1 %v12719_v19  ;;  %4170 = vmatprep.subr.bf16.mxu0 %v12724_v21  ;;  %v12791_v19 = vld [vmem:[#allocation10 + $0xa88] ss:$16 sps:$4 sm:$0xff]   ;;  %v12796_v21 = vld [vmem:[#allocation10 + $0xaa4] ss:$16 sps:$4 sm:$0xff]  }
 0x359   :  { %4498 = vmatprep.subr.bf16.mxu1 %v12727_v25  ;;  %v12799_v25 = vld [vmem:[#allocation10 + $0xaac] ss:$16 sps:$4 sm:$0xff]  }
 0x35b   :  { %4171 = vmatpush1.bf16.msra.mxu0 %v12722_v22  ;;  %v12794_v22 = vld [vmem:[#allocation10 + $0xaa0] ss:$16 sps:$4 sm:$0xff]  }
 0x35c   :  { %4499 = vmatpush1.bf16.msra.mxu1 %v12725_v26  ;;  %4172 = vmatprep.subr.bf16.mxu0 %v12730_v27  ;;  %v12797_v26 = vld [vmem:[#allocation10 + $0xaa8] ss:$16 sps:$4 sm:$0xff]   ;;  %v12802_v27 = vld [vmem:[#allocation10 + $0xac4] ss:$16 sps:$4 sm:$0xff]  }
 0x35d   :  { %4500 = vmatprep.subr.bf16.mxu1 %v12733_v3  ;;  %v12805_v3 = vld [vmem:[#allocation10 + $0xacc] ss:$16 sps:$4 sm:$0xff]  }
 0x35f   :  { %4173 = vmatpush1.bf16.msra.mxu0 %v12728_v57  ;;  %v12800_v57 = vld [vmem:[#allocation10 + $0xac0] ss:$16 sps:$4 sm:$0xff]  }
 0x360   :  { %4501 = vmatpush1.bf16.msra.mxu1 %v12731_v51  ;;  %4174 = vmatprep.subr.bf16.mxu0 %v12736_v52  ;;  %v12803_v51 = vld [vmem:[#allocation10 + $0xac8] ss:$16 sps:$4 sm:$0xff]   ;;  %v12808_v52 = vld [vmem:[#allocation10 + $0xae4] ss:$16 sps:$4 sm:$0xff]  }
 0x361   :  { %4502 = vmatprep.subr.bf16.mxu1 %v12739_v4  ;;  %v12811_v4 = vld [vmem:[#allocation10 + $0xaec] ss:$16 sps:$4 sm:$0xff]  }
 0x363   :  { %4175 = vmatpush1.bf16.msra.mxu0 %v12734_v46  ;;  %v12806_v46 = vld [vmem:[#allocation10 + $0xae0] ss:$16 sps:$4 sm:$0xff]  }
 0x364   :  { %4503 = vmatpush1.bf16.msra.mxu1 %v12737_v28  ;;  %4176 = vmatprep.subr.bf16.mxu0 %v12742_v29  ;;  %v12809_v28 = vld [vmem:[#allocation10 + $0xae8] ss:$16 sps:$4 sm:$0xff]   ;;  %v12814_v29 = vld [vmem:[#allocation10 + $0xb04] ss:$16 sps:$4 sm:$0xff]  }
 0x365   :  { %4504 = vmatprep.subr.bf16.mxu1 %v12745_v34  ;;  %v12817_v34 = vld [vmem:[#allocation10 + $0xb0c] ss:$16 sps:$4 sm:$0xff]  }
 0x367   :  { %4177 = vmatpush1.bf16.msra.mxu0 %v12740_v31  ;;  %v12812_v31 = vld [vmem:[#allocation10 + $0xb00] ss:$16 sps:$4 sm:$0xff]  }
 0x368   :  { %4505 = vmatpush1.bf16.msra.mxu1 %v12743_v33  ;;  %4178 = vmatprep.subr.bf16.mxu0 %v12748_v53  ;;  %v12820_v33 = vld [vmem:[#allocation10 + $0xb24] ss:$16 sps:$4 sm:$0xff]   ;;  %v12818_v53 = vld [vmem:[#allocation10 + $0xb20] ss:$16 sps:$4 sm:$0xff]  }
 0x369   :  { %4506 = vmatprep.subr.bf16.mxu1 %v12751_v39  ;;  %v12821_v39 = vld [vmem:[#allocation10 + $0xb28] ss:$16 sps:$4 sm:$0xff]  }
 0x36b   :  { %4179 = vmatpush1.bf16.msra.mxu0 %v12746_v36  ;;  %v12823_v36 = vld [vmem:[#allocation10 + $0xb2c] ss:$16 sps:$4 sm:$0xff]  }
 0x36c   :  { %4507 = vmatpush1.bf16.msra.mxu1 %v12749_v40  ;;  %4180 = vmatprep.subr.bf16.mxu0 %v12754_v41  ;;  %v12824_v40 = vld [vmem:[#allocation10 + $0xb40] ss:$16 sps:$4 sm:$0xff]   ;;  %v12829_v41 = vld [vmem:[#allocation10 + $0xb4c] ss:$16 sps:$4 sm:$0xff]  }
 0x36d   :  { %4508 = vmatprep.subr.bf16.mxu1 %v12757_v45  ;;  %v12832_v45 = vld [vmem:[#allocation10 + $0xb64] ss:$16 sps:$4 sm:$0xff]  }
 0x36f   :  { %4181 = vmatpush1.bf16.msra.mxu0 %v12752_v44  ;;  %v12827_v44 = vld [vmem:[#allocation10 + $0xb48] ss:$16 sps:$4 sm:$0xff]  }
 0x370   :  { %4509 = vmatpush1.bf16.msra.mxu1 %v12755_v48  ;;  %4182 = vmatprep.subr.bf16.mxu0 %v12760_v49  ;;  %v12833_v48 = vld [vmem:[#allocation10 + $0xb68] ss:$16 sps:$4 sm:$0xff]   ;;  %v12838_v49 = vld [vmem:[#allocation10 + $0xb84] ss:$16 sps:$4 sm:$0xff]  }
 0x371   :  { %4510 = vmatprep.subr.bf16.mxu1 %v12763_v60  ;;  %v12841_v60 = vld [vmem:[#allocation10 + $0xb8c] ss:$16 sps:$4 sm:$0xff]  }
 0x373   :  { %4183 = vmatpush1.bf16.msra.mxu0 %v12758_v50  ;;  %v12836_v50 = vld [vmem:[#allocation10 + $0xb80] ss:$16 sps:$4 sm:$0xff]  }
 0x374   :  { %4511 = vmatpush1.bf16.msra.mxu1 %v12761_v30  ;;  %4193 = vmatprep.subr.bf16.mxu0 %v12766_v61  ;;  %v12839_v30 = vld [vmem:[#allocation10 + $0xb88] ss:$16 sps:$4 sm:$0xff]   ;;  %v12844_v61 = vld [vmem:[#allocation10 + $0xba4] ss:$16 sps:$4 sm:$0xff]  }
 0x375   :  { %4521 = vmatprep.subr.bf16.mxu1 %v12769_v62  ;;  %v12842_v62 = vld [vmem:[#allocation10 + $0xba0] ss:$16 sps:$4 sm:$0xff]  }
 0x376   :  { %4185 = vmatmul.mubr.bf16.vlgmr.msra.gmra.mrb[8].mxu0 %v886_v2 }
 0x377   :  { %4513 = vmatmul.mubr.bf16.vlgmr.msra.gmra.mrb[24].mxu1 %v886_v2  ;;  %4194 = vmatpush1.bf16.msra.mxu0 %v12764_v63  ;;  %v12847_v63 = vld [vmem:[#allocation10 + $0xbac] ss:$16 sps:$4 sm:$0xff]   ;;  %v12848_v2 = vld [vmem:[#allocation10 + $0xbc0] ss:$16 sps:$4 sm:$0xff]  }
 0x378   :  { %4225 = vmatprep.mubr.bf16.mxu0 %v889_v24  ;;  %4522 = vmatpush1.bf16.msra.mxu1 %v12767_v43  ;;  %v12845_v43 = vld [vmem:[#allocation10 + $0xba8] ss:$16 sps:$4 sm:$0xff]  }
 0x379   :  { %4553 = vmatprep.mubr.bf16.mxu1 %v889_v24  ;;  %4195 = vmatprep.subr.bf16.mxu0 %v12772_v1  ;;  %v12850_v1 = vld [vmem:[#allocation10 + $0xbc4] ss:$16 sps:$4 sm:$0xff]   ;;  %v12853_v24 = vld [vmem:[#allocation10 + $0xbcc] ss:$16 sps:$4 sm:$0xff]  }
 0x37a   :  { %4523 = vmatprep.subr.bf16.mxu1 %v12775_v9  ;;  %v12854_v9 = vld [vmem:[#allocation10 + $0xbe0] ss:$16 sps:$4 sm:$0xff]  }
 0x37b   :  { %4196 = vmatpush1.bf16.msra.mxu0 %v12770_v6  ;;  %v12851_v6 = vld [vmem:[#allocation10 + $0xbc8] ss:$16 sps:$4 sm:$0xff]  }
 0x37c   :  { %4524 = vmatpush1.bf16.msra.mxu1 %v12773_v8  ;;  %4197 = vmatprep.subr.bf16.mxu0 %v12778_v10  ;;  %v12856_v8 = vld [vmem:[#allocation10 + $0xbe4] ss:$16 sps:$4 sm:$0xff]   ;;  %v12859_v10 = vld [vmem:[#allocation10 + $0xbec] ss:$16 sps:$4 sm:$0xff]  }
 0x37d   :  { %4525 = vmatprep.subr.bf16.mxu1 %v12781_v54  ;;  %v872_v54 = vmax.f32 %v15222_v20, 0.0  ;;  %v12866_v20 = vld [vmem:[#allocation10 + $0xc20] ss:$16 sps:$4 sm:$0xff]  }
 0x37f   :  { %4198 = vmatpush1.bf16.msra.mxu0 %v12776_v12  ;;  %v12857_v12 = vld [vmem:[#allocation10 + $0xbe8] ss:$16 sps:$4 sm:$0xff]  }
 0x380   :  { %4526 = vmatpush1.bf16.msra.mxu1 %v12779_v32  ;;  %4199 = vmatprep.subr.bf16.mxu0 %v12784_v13  ;;  %v12862_v32 = vld [vmem:[#allocation10 + $0xc04] ss:$16 sps:$4 sm:$0xff]   ;;  %v12860_v13 = vld [vmem:[#allocation10 + $0xc00] ss:$16 sps:$4 sm:$0xff]  }
 0x381   :  { %4527 = vmatprep.subr.bf16.mxu1 %v12787_v15  ;;  %v875_v15 = vmax.f32 %v15218_v11, 0.0  ;;  %v12872_v11 = vld [vmem:[#allocation10 + $0xc40] ss:$16 sps:$4 sm:$0xff]  }
 0x383   :  { %4200 = vmatpush1.bf16.msra.mxu0 %v12782_v14  ;;  %v12865_v14 = vld [vmem:[#allocation10 + $0xc0c] ss:$16 sps:$4 sm:$0xff]  }
 0x384   :  { %4528 = vmatpush1.bf16.msra.mxu1 %v12785_v16  ;;  %4201 = vmatprep.subr.bf16.mxu0 %v12790_v17  ;;  %v12863_v16 = vld [vmem:[#allocation10 + $0xc08] ss:$16 sps:$4 sm:$0xff]   ;;  %v12868_v17 = vld [vmem:[#allocation10 + $0xc24] ss:$16 sps:$4 sm:$0xff]  }
 0x385   :  { %4529 = vmatprep.subr.bf16.mxu1 %v12793_v18  ;;  %v891_v18 = vpack.c.bf16 %v875_v15, %v875_v15  ;;  %v12946_v15 = vld [vmem:[#allocation10 + $0xdc4] ss:$16 sps:$4 sm:$0xff]  }
 0x387   :  { %4202 = vmatpush1.bf16.msra.mxu0 %v12788_v55  ;;  %v888_v55 = vpack.c.bf16 %v872_v54, %v872_v54  ;;  %v12935_v54 = vld [vmem:[#allocation10 + $0xd88] ss:$16 sps:$4 sm:$0xff]  }
 0x388   :  { %4530 = vmatpush1.bf16.msra.mxu1 %v12791_v19  ;;  %4203 = vmatprep.subr.bf16.mxu0 %v12796_v21  ;;  %v12871_v19 = vld [vmem:[#allocation10 + $0xc2c] ss:$16 sps:$4 sm:$0xff]   ;;  %v12869_v21 = vld [vmem:[#allocation10 + $0xc28] ss:$16 sps:$4 sm:$0xff]  }
 0x389   :  { %4531 = vmatprep.subr.bf16.mxu1 %v12799_v25  ;;  %v12877_v25 = vld [vmem:[#allocation10 + $0xc4c] ss:$16 sps:$4 sm:$0xff]  }
 0x38b   :  { %4204 = vmatpush1.bf16.msra.mxu0 %v12794_v22  ;;  %v12874_v22 = vld [vmem:[#allocation10 + $0xc44] ss:$16 sps:$4 sm:$0xff]  }
 0x38c   :  { %4532 = vmatpush1.bf16.msra.mxu1 %v12797_v26  ;;  %4205 = vmatprep.subr.bf16.mxu0 %v12802_v27  ;;  %v12875_v26 = vld [vmem:[#allocation10 + $0xc48] ss:$16 sps:$4 sm:$0xff]   ;;  %v12880_v27 = vld [vmem:[#allocation10 + $0xc64] ss:$16 sps:$4 sm:$0xff]  }
 0x38d   :  { %4533 = vmatprep.subr.bf16.mxu1 %v12805_v3  ;;  %v12883_v3 = vld [vmem:[#allocation10 + $0xc6c] ss:$16 sps:$4 sm:$0xff]  }
 0x38f   :  { %4206 = vmatpush1.bf16.msra.mxu0 %v12800_v57  ;;  %v12878_v57 = vld [vmem:[#allocation10 + $0xc60] ss:$16 sps:$4 sm:$0xff]  }
 0x390   :  { %4534 = vmatpush1.bf16.msra.mxu1 %v12803_v51  ;;  %4207 = vmatprep.subr.bf16.mxu0 %v12808_v52  ;;  %v12881_v51 = vld [vmem:[#allocation10 + $0xc68] ss:$16 sps:$4 sm:$0xff]   ;;  %v12886_v52 = vld [vmem:[#allocation10 + $0xc84] ss:$16 sps:$4 sm:$0xff]  }
 0x391   :  { %4535 = vmatprep.subr.bf16.mxu1 %v12811_v4  ;;  %v12889_v4 = vld [vmem:[#allocation10 + $0xc8c] ss:$16 sps:$4 sm:$0xff]  }
 0x393   :  { %4208 = vmatpush1.bf16.msra.mxu0 %v12806_v46  ;;  %v12884_v46 = vld [vmem:[#allocation10 + $0xc80] ss:$16 sps:$4 sm:$0xff]  }
 0x394   :  { %4536 = vmatpush1.bf16.msra.mxu1 %v12809_v28  ;;  %4209 = vmatprep.subr.bf16.mxu0 %v12814_v29  ;;  %v12887_v28 = vld [vmem:[#allocation10 + $0xc88] ss:$16 sps:$4 sm:$0xff]   ;;  %v12892_v29 = vld [vmem:[#allocation10 + $0xca4] ss:$16 sps:$4 sm:$0xff]  }
 0x395   :  { %4537 = vmatprep.subr.bf16.mxu1 %v12817_v34  ;;  %v12895_v34 = vld [vmem:[#allocation10 + $0xcac] ss:$16 sps:$4 sm:$0xff]  }
 0x397   :  { %4210 = vmatpush1.bf16.msra.mxu0 %v12812_v31  ;;  %v12890_v31 = vld [vmem:[#allocation10 + $0xca0] ss:$16 sps:$4 sm:$0xff]  }
 0x398   :  { %4538 = vmatpush1.bf16.msra.mxu1 %v12815_v35  ;;  %4211 = vmatprep.subr.bf16.mxu0 %v12820_v33  ;;  %v12893_v35 = vld [vmem:[#allocation10 + $0xca8] ss:$16 sps:$4 sm:$0xff]   ;;  %v12898_v33 = vld [vmem:[#allocation10 + $0xcc4] ss:$16 sps:$4 sm:$0xff]  }
 0x399   :  { %4539 = vmatprep.subr.bf16.mxu1 %v12823_v36  ;;  %v12901_v36 = vld [vmem:[#allocation10 + $0xccc] ss:$16 sps:$4 sm:$0xff]  }
 0x39b   :  { %4212 = vmatpush1.bf16.msra.mxu0 %v12818_v53  ;;  %v12896_v53 = vld [vmem:[#allocation10 + $0xcc0] ss:$16 sps:$4 sm:$0xff]  }
 0x39c   :  { %4540 = vmatpush1.bf16.msra.mxu1 %v12821_v39  ;;  %4213 = vmatprep.subr.bf16.mxu0 %v12826_v37  ;;  %v12899_v39 = vld [vmem:[#allocation10 + $0xcc8] ss:$16 sps:$4 sm:$0xff]   ;;  %v12904_v37 = vld [vmem:[#allocation10 + $0xce4] ss:$16 sps:$4 sm:$0xff]  }
 0x39d   :  { %4541 = vmatprep.subr.bf16.mxu1 %v12829_v41  ;;  %v12907_v41 = vld [vmem:[#allocation10 + $0xcec] ss:$16 sps:$4 sm:$0xff]  }
 0x39f   :  { %4214 = vmatpush1.bf16.msra.mxu0 %v12824_v40  ;;  %v12902_v40 = vld [vmem:[#allocation10 + $0xce0] ss:$16 sps:$4 sm:$0xff]  }
 0x3a0   :  { %4542 = vmatpush1.bf16.msra.mxu1 %v12827_v44  ;;  %4215 = vmatprep.subr.bf16.mxu0 %v12832_v45  ;;  %v12905_v44 = vld [vmem:[#allocation10 + $0xce8] ss:$16 sps:$4 sm:$0xff]   ;;  %v12910_v45 = vld [vmem:[#allocation10 + $0xd04] ss:$16 sps:$4 sm:$0xff]  }
 0x3a1   :  { %4543 = vmatprep.subr.bf16.mxu1 %v12835_v23  ;;  %v12913_v23 = vld [vmem:[#allocation10 + $0xd0c] ss:$16 sps:$4 sm:$0xff]  }
 0x3a3   :  { %4216 = vmatpush1.bf16.msra.mxu0 %v12830_v47  ;;  %v12908_v47 = vld [vmem:[#allocation10 + $0xd00] ss:$16 sps:$4 sm:$0xff]  }
 0x3a4   :  { %4544 = vmatpush1.bf16.msra.mxu1 %v12833_v48  ;;  %4217 = vmatprep.subr.bf16.mxu0 %v12838_v49  ;;  %v12911_v48 = vld [vmem:[#allocation10 + $0xd08] ss:$16 sps:$4 sm:$0xff]   ;;  %v12916_v49 = vld [vmem:[#allocation10 + $0xd24] ss:$16 sps:$4 sm:$0xff]  }
 0x3a5   :  { %4545 = vmatprep.subr.bf16.mxu1 %v12841_v60  ;;  %v12919_v60 = vld [vmem:[#allocation10 + $0xd2c] ss:$16 sps:$4 sm:$0xff]  }
 0x3a7   :  { %4218 = vmatpush1.bf16.msra.mxu0 %v12836_v50  ;;  %v12914_v50 = vld [vmem:[#allocation10 + $0xd20] ss:$16 sps:$4 sm:$0xff]  }
 0x3a8   :  { %4546 = vmatpush1.bf16.msra.mxu1 %v12839_v30  ;;  %4219 = vmatprep.subr.bf16.mxu0 %v12844_v61  ;;  %v12917_v30 = vld [vmem:[#allocation10 + $0xd28] ss:$16 sps:$4 sm:$0xff]   ;;  %v12922_v61 = vld [vmem:[#allocation10 + $0xd44] ss:$16 sps:$4 sm:$0xff]  }
 0x3a9   :  { %4547 = vmatprep.subr.bf16.mxu1 %v12847_v63  ;;  %v12925_v63 = vld [vmem:[#allocation10 + $0xd4c] ss:$16 sps:$4 sm:$0xff]  }
 0x3ab   :  { %4220 = vmatpush1.bf16.msra.mxu0 %v12842_v62  ;;  %v12920_v62 = vld [vmem:[#allocation10 + $0xd40] ss:$16 sps:$4 sm:$0xff]  }
 0x3ac   :  { %4548 = vmatpush1.bf16.msra.mxu1 %v12845_v43  ;;  %4221 = vmatprep.subr.bf16.mxu0 %v12850_v1  ;;  %v12923_v43 = vld [vmem:[#allocation10 + $0xd48] ss:$16 sps:$4 sm:$0xff]   ;;  %v12928_v1 = vld [vmem:[#allocation10 + $0xd64] ss:$16 sps:$4 sm:$0xff]  }
 0x3ad   :  { %4549 = vmatprep.subr.bf16.mxu1 %v12853_v24  ;;  %v12931_v24 = vld [vmem:[#allocation10 + $0xd6c] ss:$16 sps:$4 sm:$0xff]  }
 0x3af   :  { %4222 = vmatpush1.bf16.msra.mxu0 %v12848_v2  ;;  %v12926_v2 = vld [vmem:[#allocation10 + $0xd60] ss:$16 sps:$4 sm:$0xff]  }
 0x3b0   :  { %4550 = vmatpush1.bf16.msra.mxu1 %v12851_v6  ;;  %4223 = vmatprep.subr.bf16.mxu0 %v12856_v8  ;;  %v12929_v6 = vld [vmem:[#allocation10 + $0xd68] ss:$16 sps:$4 sm:$0xff]   ;;  %v12934_v8 = vld [vmem:[#allocation10 + $0xd84] ss:$16 sps:$4 sm:$0xff]  }
 0x3b1   :  { %4551 = vmatprep.subr.bf16.mxu1 %v12859_v10  ;;  %v12937_v10 = vld [vmem:[#allocation10 + $0xd8c] ss:$16 sps:$4 sm:$0xff]  }
 0x3b3   :  { %4224 = vmatpush1.bf16.msra.mxu0 %v12854_v9  ;;  %v12932_v9 = vld [vmem:[#allocation10 + $0xd80] ss:$16 sps:$4 sm:$0xff]  }
 0x3b4   :  { %4552 = vmatpush1.bf16.msra.mxu1 %v12857_v12  ;;  %4234 = vmatprep.subr.bf16.mxu0 %v12862_v32  ;;  %v12940_v12 = vld [vmem:[#allocation10 + $0xda4] ss:$16 sps:$4 sm:$0xff]   ;;  %v12938_v32 = vld [vmem:[#allocation10 + $0xda0] ss:$16 sps:$4 sm:$0xff]  }
 0x3b5   :  { %4562 = vmatprep.subr.bf16.mxu1 %v12865_v14  ;;  %v12941_v14 = vld [vmem:[#allocation10 + $0xda8] ss:$16 sps:$4 sm:$0xff]  }
 0x3b6   :  { %4226 = vmatmul.mubr.bf16.vlgmr.msra.gmra.mrb[8].mxu0 %v888_v55 }
 0x3b7   :  { %4554 = vmatmul.mubr.bf16.vlgmr.msra.gmra.mrb[24].mxu1 %v888_v55  ;;  %4235 = vmatpush1.bf16.msra.mxu0 %v12860_v13  ;;  %v12943_v13 = vld [vmem:[#allocation10 + $0xdac] ss:$16 sps:$4 sm:$0xff]   ;;  %v12947_v55 = vld [vmem:[#allocation10 + $0xdc8] ss:$16 sps:$4 sm:$0xff]  }
 0x3b8   :  { %4266 = vmatprep.mubr.bf16.mxu0 %v891_v18  ;;  %4563 = vmatpush1.bf16.msra.mxu1 %v12863_v16  ;;  %v12944_v16 = vld [vmem:[#allocation10 + $0xdc0] ss:$16 sps:$4 sm:$0xff]  }
 0x3b9   :  { %4594 = vmatprep.mubr.bf16.mxu1 %v891_v18  ;;  %4236 = vmatprep.subr.bf16.mxu0 %v12868_v17  ;;  %v12949_v17 = vld [vmem:[#allocation10 + $0xdcc] ss:$16 sps:$4 sm:$0xff]   ;;  %v12952_v18 = vld [vmem:[#allocation10 + $0xde4] ss:$16 sps:$4 sm:$0xff]  }
 0x3ba   :  { %4564 = vmatprep.subr.bf16.mxu1 %v12871_v19  ;;  %v12950_v19 = vld [vmem:[#allocation10 + $0xde0] ss:$16 sps:$4 sm:$0xff]  }
 0x3bb   :  { %4237 = vmatpush1.bf16.msra.mxu0 %v12866_v20  ;;  %v12955_v20 = vld [vmem:[#allocation10 + $0xdec] ss:$16 sps:$4 sm:$0xff]  }
 0x3bc   :  { %4565 = vmatpush1.bf16.msra.mxu1 %v12869_v21  ;;  %4238 = vmatprep.subr.bf16.mxu0 %v12874_v22  ;;  %v874_v21 = vmax.f32 %v15207_v59, 0.0  ;;  %v12953_v22 = vld [vmem:[#allocation10 + $0xde8] ss:$16 sps:$4 sm:$0xff]  }
 0x3bd   :  { %4566 = vmatprep.subr.bf16.mxu1 %v12877_v25  ;;  %v12956_v25 = vld [vmem:[#allocation10 + $0xe00] ss:$16 sps:$4 sm:$0xff]   ;;  %v12965_v59 = vld [vmem:[#allocation10 + $0xe28] ss:$16 sps:$4 sm:$0xff]  }
 0x3bf   :  { %4239 = vmatpush1.bf16.msra.mxu0 %v12872_v11  ;;  %v12958_v11 = vld [vmem:[#allocation10 + $0xe04] ss:$16 sps:$4 sm:$0xff]  }
 0x3c0   :  { %4567 = vmatpush1.bf16.msra.mxu1 %v12875_v26  ;;  %4240 = vmatprep.subr.bf16.mxu0 %v12880_v27  ;;  %v12961_v26 = vld [vmem:[#allocation10 + $0xe0c] ss:$16 sps:$4 sm:$0xff]   ;;  %v877_v27 = vmax.f32 %v15228_v42, 0.0  ;;  %v12968_v42 = vld [vmem:[#allocation10 + $0xe40] ss:$16 sps:$4 sm:$0xff]  }
 0x3c1   :  { %4568 = vmatprep.subr.bf16.mxu1 %v12883_v3  ;;  %v12959_v3 = vld [vmem:[#allocation10 + $0xe08] ss:$16 sps:$4 sm:$0xff]  }
 0x3c3   :  { %4241 = vmatpush1.bf16.msra.mxu0 %v12878_v57  ;;  %v890_v57 = vpack.c.bf16 %v874_v21, %v874_v21  ;;  %v13034_v21 = vld [vmem:[#allocation10 + $0xfa0] ss:$16 sps:$4 sm:$0xff]  }
 0x3c4   :  { %4569 = vmatpush1.bf16.msra.mxu1 %v12881_v51  ;;  %4242 = vmatprep.subr.bf16.mxu0 %v12886_v52  ;;  %v12962_v51 = vld [vmem:[#allocation10 + $0xe20] ss:$16 sps:$4 sm:$0xff]   ;;  %v12964_v52 = vld [vmem:[#allocation10 + $0xe24] ss:$16 sps:$4 sm:$0xff]  }
 0x3c5   :  { %4570 = vmatprep.subr.bf16.mxu1 %v12889_v4  ;;  %v893_v4 = vpack.c.bf16 %v877_v27, %v877_v27  ;;  %v13045_v27 = vld [vmem:[#allocation10 + $0xfcc] ss:$16 sps:$4 sm:$0xff]  }
 0x3c7   :  { %4243 = vmatpush1.bf16.msra.mxu0 %v12884_v46  ;;  %v12967_v46 = vld [vmem:[#allocation10 + $0xe2c] ss:$16 sps:$4 sm:$0xff]  }
 0x3c8   :  { %4571 = vmatpush1.bf16.msra.mxu1 %v12887_v28  ;;  %4244 = vmatprep.subr.bf16.mxu0 %v12892_v29  ;;  %v12970_v28 = vld [vmem:[#allocation10 + $0xe44] ss:$16 sps:$4 sm:$0xff]   ;;  %v12973_v29 = vld [vmem:[#allocation10 + $0xe4c] ss:$16 sps:$4 sm:$0xff]  }
 0x3c9   :  { %4572 = vmatprep.subr.bf16.mxu1 %v12895_v34  ;;  %v12976_v34 = vld [vmem:[#allocation10 + $0xe64] ss:$16 sps:$4 sm:$0xff]  }
 0x3cb   :  { %4245 = vmatpush1.bf16.msra.mxu0 %v12890_v31  ;;  %v12971_v31 = vld [vmem:[#allocation10 + $0xe48] ss:$16 sps:$4 sm:$0xff]  }
 0x3cc   :  { %4573 = vmatpush1.bf16.msra.mxu1 %v12893_v35  ;;  %4246 = vmatprep.subr.bf16.mxu0 %v12898_v33  ;;  %v12974_v35 = vld [vmem:[#allocation10 + $0xe60] ss:$16 sps:$4 sm:$0xff]   ;;  %v12979_v33 = vld [vmem:[#allocation10 + $0xe6c] ss:$16 sps:$4 sm:$0xff]  }
 0x3cd   :  { %4574 = vmatprep.subr.bf16.mxu1 %v12901_v36  ;;  %v12982_v36 = vld [vmem:[#allocation10 + $0xe84] ss:$16 sps:$4 sm:$0xff]  }
 0x3cf   :  { %4247 = vmatpush1.bf16.msra.mxu0 %v12896_v53  ;;  %v12977_v53 = vld [vmem:[#allocation10 + $0xe68] ss:$16 sps:$4 sm:$0xff]  }
 0x3d0   :  { %4575 = vmatpush1.bf16.msra.mxu1 %v12899_v39  ;;  %4248 = vmatprep.subr.bf16.mxu0 %v12904_v37  ;;  %v12980_v39 = vld [vmem:[#allocation10 + $0xe80] ss:$16 sps:$4 sm:$0xff]   ;;  %v12985_v37 = vld [vmem:[#allocation10 + $0xe8c] ss:$16 sps:$4 sm:$0xff]  }
 0x3d1   :  { %4576 = vmatprep.subr.bf16.mxu1 %v12907_v41  ;;  %v12988_v41 = vld [vmem:[#allocation10 + $0xea4] ss:$16 sps:$4 sm:$0xff]  }
 0x3d3   :  { %4249 = vmatpush1.bf16.msra.mxu0 %v12902_v40  ;;  %v12983_v40 = vld [vmem:[#allocation10 + $0xe88] ss:$16 sps:$4 sm:$0xff]  }
 0x3d4   :  { %4577 = vmatpush1.bf16.msra.mxu1 %v12905_v44  ;;  %4250 = vmatprep.subr.bf16.mxu0 %v12910_v45  ;;  %v12986_v44 = vld [vmem:[#allocation10 + $0xea0] ss:$16 sps:$4 sm:$0xff]   ;;  %v12991_v45 = vld [vmem:[#allocation10 + $0xeac] ss:$16 sps:$4 sm:$0xff]  }
 0x3d5   :  { %4578 = vmatprep.subr.bf16.mxu1 %v12913_v23  ;;  %v12994_v23 = vld [vmem:[#allocation10 + $0xec4] ss:$16 sps:$4 sm:$0xff]  }
 0x3d7   :  { %4251 = vmatpush1.bf16.msra.mxu0 %v12908_v47  ;;  %v12989_v47 = vld [vmem:[#allocation10 + $0xea8] ss:$16 sps:$4 sm:$0xff]  }
 0x3d8   :  { %4579 = vmatpush1.bf16.msra.mxu1 %v12911_v48  ;;  %4252 = vmatprep.subr.bf16.mxu0 %v12916_v49  ;;  %v12992_v48 = vld [vmem:[#allocation10 + $0xec0] ss:$16 sps:$4 sm:$0xff]   ;;  %v12997_v49 = vld [vmem:[#allocation10 + $0xecc] ss:$16 sps:$4 sm:$0xff]  }
 0x3d9   :  { %4580 = vmatprep.subr.bf16.mxu1 %v12919_v60  ;;  %v13000_v60 = vld [vmem:[#allocation10 + $0xee4] ss:$16 sps:$4 sm:$0xff]  }
 0x3db   :  { %4253 = vmatpush1.bf16.msra.mxu0 %v12914_v50  ;;  %v12995_v50 = vld [vmem:[#allocation10 + $0xec8] ss:$16 sps:$4 sm:$0xff]  }
 0x3dc   :  { %4581 = vmatpush1.bf16.msra.mxu1 %v12917_v30  ;;  %4254 = vmatprep.subr.bf16.mxu0 %v12922_v61  ;;  %v12998_v30 = vld [vmem:[#allocation10 + $0xee0] ss:$16 sps:$4 sm:$0xff]   ;;  %v13003_v61 = vld [vmem:[#allocation10 + $0xeec] ss:$16 sps:$4 sm:$0xff]  }
 0x3dd   :  { %4582 = vmatprep.subr.bf16.mxu1 %v12925_v63  ;;  %v13006_v63 = vld [vmem:[#allocation10 + $0xf04] ss:$16 sps:$4 sm:$0xff]  }
 0x3df   :  { %4255 = vmatpush1.bf16.msra.mxu0 %v12920_v62  ;;  %v13001_v62 = vld [vmem:[#allocation10 + $0xee8] ss:$16 sps:$4 sm:$0xff]  }
 0x3e0   :  { %4583 = vmatpush1.bf16.msra.mxu1 %v12923_v43  ;;  %4256 = vmatprep.subr.bf16.mxu0 %v12928_v1  ;;  %v13004_v43 = vld [vmem:[#allocation10 + $0xf00] ss:$16 sps:$4 sm:$0xff]   ;;  %v13009_v1 = vld [vmem:[#allocation10 + $0xf0c] ss:$16 sps:$4 sm:$0xff]  }
 0x3e1   :  { %4584 = vmatprep.subr.bf16.mxu1 %v12931_v24  ;;  %v13012_v24 = vld [vmem:[#allocation10 + $0xf24] ss:$16 sps:$4 sm:$0xff]  }
 0x3e3   :  { %4257 = vmatpush1.bf16.msra.mxu0 %v12926_v2  ;;  %v13007_v2 = vld [vmem:[#allocation10 + $0xf08] ss:$16 sps:$4 sm:$0xff]  }
 0x3e4   :  { %4585 = vmatpush1.bf16.msra.mxu1 %v12929_v6  ;;  %4258 = vmatprep.subr.bf16.mxu0 %v12934_v8  ;;  %v13010_v6 = vld [vmem:[#allocation10 + $0xf20] ss:$16 sps:$4 sm:$0xff]   ;;  %v13015_v8 = vld [vmem:[#allocation10 + $0xf2c] ss:$16 sps:$4 sm:$0xff]  }
 0x3e5   :  { %4586 = vmatprep.subr.bf16.mxu1 %v12937_v10  ;;  %v13018_v10 = vld [vmem:[#allocation10 + $0xf44] ss:$16 sps:$4 sm:$0xff]  }
 0x3e7   :  { %4259 = vmatpush1.bf16.msra.mxu0 %v12932_v9  ;;  %v13013_v9 = vld [vmem:[#allocation10 + $0xf28] ss:$16 sps:$4 sm:$0xff]  }
 0x3e8   :  { %4587 = vmatpush1.bf16.msra.mxu1 %v12935_v54  ;;  %4260 = vmatprep.subr.bf16.mxu0 %v12940_v12  ;;  %v13016_v54 = vld [vmem:[#allocation10 + $0xf40] ss:$16 sps:$4 sm:$0xff]   ;;  %v13021_v12 = vld [vmem:[#allocation10 + $0xf4c] ss:$16 sps:$4 sm:$0xff]  }
 0x3e9   :  { %4588 = vmatprep.subr.bf16.mxu1 %v12943_v13  ;;  %v13024_v13 = vld [vmem:[#allocation10 + $0xf64] ss:$16 sps:$4 sm:$0xff]  }
 0x3eb   :  { %4261 = vmatpush1.bf16.msra.mxu0 %v12938_v32  ;;  %v13019_v32 = vld [vmem:[#allocation10 + $0xf48] ss:$16 sps:$4 sm:$0xff]  }
 0x3ec   :  { %4589 = vmatpush1.bf16.msra.mxu1 %v12941_v14  ;;  %4262 = vmatprep.subr.bf16.mxu0 %v12946_v15  ;;  %v13022_v14 = vld [vmem:[#allocation10 + $0xf60] ss:$16 sps:$4 sm:$0xff]   ;;  %v13027_v15 = vld [vmem:[#allocation10 + $0xf6c] ss:$16 sps:$4 sm:$0xff]  }
 0x3ed   :  { %4590 = vmatprep.subr.bf16.mxu1 %v12949_v17  ;;  %v13030_v17 = vld [vmem:[#allocation10 + $0xf84] ss:$16 sps:$4 sm:$0xff]  }
 0x3ef   :  { %4263 = vmatpush1.bf16.msra.mxu0 %v12944_v16  ;;  %v13025_v16 = vld [vmem:[#allocation10 + $0xf68] ss:$16 sps:$4 sm:$0xff]  }
 0x3f0   :  { %4591 = vmatpush1.bf16.msra.mxu1 %v12947_v55  ;;  %4264 = vmatprep.subr.bf16.mxu0 %v12952_v18  ;;  %v13028_v55 = vld [vmem:[#allocation10 + $0xf80] ss:$16 sps:$4 sm:$0xff]   ;;  %v13033_v18 = vld [vmem:[#allocation10 + $0xf8c] ss:$16 sps:$4 sm:$0xff]  }
 0x3f1   :  { %4592 = vmatprep.subr.bf16.mxu1 %v12955_v20  ;;  %v13036_v20 = vld [vmem:[#allocation10 + $0xfa4] ss:$16 sps:$4 sm:$0xff]  }
 0x3f3   :  { %4265 = vmatpush1.bf16.msra.mxu0 %v12950_v19  ;;  %v13031_v19 = vld [vmem:[#allocation10 + $0xf88] ss:$16 sps:$4 sm:$0xff]  }
 0x3f4   :  { %4593 = vmatpush1.bf16.msra.mxu1 %v12953_v22  ;;  %4275 = vmatprep.subr.bf16.mxu0 %v12958_v11  ;;  %v13039_v22 = vld [vmem:[#allocation10 + $0xfac] ss:$16 sps:$4 sm:$0xff]   ;;  %v13037_v11 = vld [vmem:[#allocation10 + $0xfa8] ss:$16 sps:$4 sm:$0xff]  }
 0x3f5   :  { %4603 = vmatprep.subr.bf16.mxu1 %v12961_v26  ;;  %v13040_v26 = vld [vmem:[#allocation10 + $0xfc0] ss:$16 sps:$4 sm:$0xff]  }
 0x3f6   :  { %4267 = vmatmul.mubr.bf16.vlgmr.msra.gmra.mrb[8].mxu0 %v890_v57 }
 0x3f7   :  { %4595 = vmatmul.mubr.bf16.vlgmr.msra.gmra.mrb[24].mxu1 %v890_v57  ;;  %4276 = vmatpush1.bf16.msra.mxu0 %v12956_v25  ;;  %v13042_v25 = vld [vmem:[#allocation10 + $0xfc4] ss:$16 sps:$4 sm:$0xff]   ;;  %v13043_v57 = vld [vmem:[#allocation10 + $0xfc8] ss:$16 sps:$4 sm:$0xff]  }
 0x3f8   :  { %4307 = vmatprep.mubr.bf16.mxu0 %v893_v4  ;;  %4604 = vmatpush1.bf16.msra.mxu1 %v12959_v3  ;;  %v13048_v3 = vld [vmem:[#allocation10 + $0xfe4] ss:$16 sps:$4 sm:$0xff]  }
 0x3f9   :  { %4635 = vmatprep.mubr.bf16.mxu1 %v893_v4  ;;  %4277 = vmatprep.subr.bf16.mxu0 %v12964_v52  ;;  %v13046_v52 = vld [vmem:[#allocation10 + $0xfe0] ss:$16 sps:$4 sm:$0xff]   ;;  %v13049_v4 = vld [vmem:[#allocation10 + $0xfe8] ss:$16 sps:$4 sm:$0xff]  }
 0x3fa   :  { %4605 = vmatprep.subr.bf16.mxu1 %v12967_v46  ;;  %v876_v46 = vmax.f32 %v15226_v38, 0.0  ;;  %v13058_v38 = vld [vmem:[#allocation13 + $0x20] ss:$16 sps:$4 sm:$0xff]  }
 0x3fb   :  { %4278 = vmatpush1.bf16.msra.mxu0 %v12962_v51  ;;  %v13051_v51 = vld [vmem:[#allocation10 + $0xfec] ss:$16 sps:$4 sm:$0xff]  }
 0x3fc   :  { %4606 = vmatpush1.bf16.msra.mxu1 %v12965_v59  ;;  %4279 = vmatprep.subr.bf16.mxu0 %v12970_v28  ;;  %v13054_v59 = vld [vmem:[#allocation13 + $0x4] ss:$16 sps:$4 sm:$0xff]   ;;  %v13057_v28 = vld [vmem:[#allocation13 + $0xc] ss:$16 sps:$4 sm:$0xff]  }
 0x3fd   :  { %4607 = vmatprep.subr.bf16.mxu1 %v12973_v29  ;;  %v13052_v29 = vld [vmem:[#allocation13] ss:$16 sps:$4 sm:$0xff]  }
 0x3ff   :  { %4280 = vmatpush1.bf16.msra.mxu0 %v12968_v42  ;;  %v4645_v42 = vld [vmem:[#allocation5 + $0x8] sm:$0xff] }
 0x400   :  { %4608 = vmatpush1.bf16.msra.mxu1 %v12971_v31  ;;  %4281 = vmatprep.subr.bf16.mxu0 %v12976_v34  ;;  %v892_v31 = vpack.c.bf16 %v876_v46, %v876_v46  ;;  %v13055_v34 = vld [vmem:[#allocation13 + $0x8] ss:$16 sps:$4 sm:$0xff]   ;;  %v13130_v46 = vld [vmem:[#allocation13 + $0x1a0] ss:$16 sps:$4 sm:$0xff]  }
 0x401   :  { %4609 = vmatprep.subr.bf16.mxu1 %v12979_v33  ;;  %v13063_v33 = vld [vmem:[#allocation13 + $0x2c] ss:$16 sps:$4 sm:$0xff]  }
 0x403   :  { %4282 = vmatpush1.bf16.msra.mxu0 %v12974_v35  ;;  %v13060_v35 = vld [vmem:[#allocation13 + $0x24] ss:$16 sps:$4 sm:$0xff]  }
 0x404   :  { %4610 = vmatpush1.bf16.msra.mxu1 %v12977_v53  ;;  %4283 = vmatprep.subr.bf16.mxu0 %v12982_v36  ;;  %v4651_v53 = vpack.c.bf16 %v4645_v42, %v4645_v42  ;;  %v13061_v36 = vld [vmem:[#allocation13 + $0x28] ss:$16 sps:$4 sm:$0xff]   ;;  %v13136_v42 = vld [vmem:[#allocation13 + $0x1c0] ss:$16 sps:$4 sm:$0xff]  }
 0x405   :  { %4611 = vmatprep.subr.bf16.mxu1 %v12985_v37  ;;  %v13069_v37 = vld [vmem:[#allocation13 + $0x4c] ss:$16 sps:$4 sm:$0xff]  }
 0x407   :  { %4284 = vmatpush1.bf16.msra.mxu0 %v12980_v39  ;;  %v13066_v39 = vld [vmem:[#allocation13 + $0x44] ss:$16 sps:$4 sm:$0xff]  }
 0x408   :  { %4612 = vmatpush1.bf16.msra.mxu1 %v12983_v40  ;;  %4285 = vmatprep.subr.bf16.mxu0 %v12988_v41  ;;  %v13064_v40 = vld [vmem:[#allocation13 + $0x40] ss:$16 sps:$4 sm:$0xff]   ;;  %v13067_v41 = vld [vmem:[#allocation13 + $0x48] ss:$16 sps:$4 sm:$0xff]  }
 0x409   :  { %4613 = vmatprep.subr.bf16.mxu1 %v12991_v45  ;;  %v13075_v45 = vld [vmem:[#allocation13 + $0x6c] ss:$16 sps:$4 sm:$0xff]  }
 0x40b   :  { %4286 = vmatpush1.bf16.msra.mxu0 %v12986_v44  ;;  %v13072_v44 = vld [vmem:[#allocation13 + $0x64] ss:$16 sps:$4 sm:$0xff]  }
 0x40c   :  { %4614 = vmatpush1.bf16.msra.mxu1 %v12989_v47  ;;  %4287 = vmatprep.subr.bf16.mxu0 %v12994_v23  ;;  %v13070_v47 = vld [vmem:[#allocation13 + $0x60] ss:$16 sps:$4 sm:$0xff]   ;;  %v13073_v23 = vld [vmem:[#allocation13 + $0x68] ss:$16 sps:$4 sm:$0xff]  }
 0x40d   :  { %4615 = vmatprep.subr.bf16.mxu1 %v12997_v49  ;;  %v13081_v49 = vld [vmem:[#allocation13 + $0x8c] ss:$16 sps:$4 sm:$0xff]  }
 0x40f   :  { %4288 = vmatpush1.bf16.msra.mxu0 %v12992_v48  ;;  %v13078_v48 = vld [vmem:[#allocation13 + $0x84] ss:$16 sps:$4 sm:$0xff]  }
 0x410   :  { %4616 = vmatpush1.bf16.msra.mxu1 %v12995_v50  ;;  %4289 = vmatprep.subr.bf16.mxu0 %v13000_v60  ;;  %v13076_v50 = vld [vmem:[#allocation13 + $0x80] ss:$16 sps:$4 sm:$0xff]   ;;  %v13079_v60 = vld [vmem:[#allocation13 + $0x88] ss:$16 sps:$4 sm:$0xff]  }
 0x411   :  { %4617 = vmatprep.subr.bf16.mxu1 %v13003_v61  ;;  %v13087_v61 = vld [vmem:[#allocation13 + $0xac] ss:$16 sps:$4 sm:$0xff]  }
 0x413   :  { %4290 = vmatpush1.bf16.msra.mxu0 %v12998_v30  ;;  %v13084_v30 = vld [vmem:[#allocation13 + $0xa4] ss:$16 sps:$4 sm:$0xff]  }
 0x414   :  { %4618 = vmatpush1.bf16.msra.mxu1 %v13001_v62  ;;  %4291 = vmatprep.subr.bf16.mxu0 %v13006_v63  ;;  %v13082_v62 = vld [vmem:[#allocation13 + $0xa0] ss:$16 sps:$4 sm:$0xff]   ;;  %v13085_v63 = vld [vmem:[#allocation13 + $0xa8] ss:$16 sps:$4 sm:$0xff]  }
 0x415   :  { %4619 = vmatprep.subr.bf16.mxu1 %v13009_v1  ;;  %v13093_v1 = vld [vmem:[#allocation13 + $0xcc] ss:$16 sps:$4 sm:$0xff]  }
 0x417   :  { %4292 = vmatpush1.bf16.msra.mxu0 %v13004_v43  ;;  %v13090_v43 = vld [vmem:[#allocation13 + $0xc4] ss:$16 sps:$4 sm:$0xff]  }
 0x418   :  { %4620 = vmatpush1.bf16.msra.mxu1 %v13007_v2  ;;  %4293 = vmatprep.subr.bf16.mxu0 %v13012_v24  ;;  %v13088_v2 = vld [vmem:[#allocation13 + $0xc0] ss:$16 sps:$4 sm:$0xff]   ;;  %v13091_v24 = vld [vmem:[#allocation13 + $0xc8] ss:$16 sps:$4 sm:$0xff]  }
 0x419   :  { %4621 = vmatprep.subr.bf16.mxu1 %v13015_v8  ;;  %v13099_v8 = vld [vmem:[#allocation13 + $0xec] ss:$16 sps:$4 sm:$0xff]  }
 0x41b   :  { %4294 = vmatpush1.bf16.msra.mxu0 %v13010_v6  ;;  %v13096_v6 = vld [vmem:[#allocation13 + $0xe4] ss:$16 sps:$4 sm:$0xff]  }
 0x41c   :  { %4622 = vmatpush1.bf16.msra.mxu1 %v13013_v9  ;;  %4295 = vmatprep.subr.bf16.mxu0 %v13018_v10  ;;  %v13094_v9 = vld [vmem:[#allocation13 + $0xe0] ss:$16 sps:$4 sm:$0xff]   ;;  %v13097_v10 = vld [vmem:[#allocation13 + $0xe8] ss:$16 sps:$4 sm:$0xff]  }
 0x41d   :  { %4623 = vmatprep.subr.bf16.mxu1 %v13021_v12  ;;  %v13105_v12 = vld [vmem:[#allocation13 + $0x10c] ss:$16 sps:$4 sm:$0xff]  }
 0x41f   :  { %4296 = vmatpush1.bf16.msra.mxu0 %v13016_v54  ;;  %v13102_v54 = vld [vmem:[#allocation13 + $0x104] ss:$16 sps:$4 sm:$0xff]  }
 0x420   :  { %4624 = vmatpush1.bf16.msra.mxu1 %v13019_v32  ;;  %4297 = vmatprep.subr.bf16.mxu0 %v13024_v13  ;;  %v13100_v32 = vld [vmem:[#allocation13 + $0x100] ss:$16 sps:$4 sm:$0xff]   ;;  %v13103_v13 = vld [vmem:[#allocation13 + $0x108] ss:$16 sps:$4 sm:$0xff]  }
 0x421   :  { %4625 = vmatprep.subr.bf16.mxu1 %v13027_v15  ;;  %v13111_v15 = vld [vmem:[#allocation13 + $0x12c] ss:$16 sps:$4 sm:$0xff]  }
 0x423   :  { %4298 = vmatpush1.bf16.msra.mxu0 %v13022_v14  ;;  %v13108_v14 = vld [vmem:[#allocation13 + $0x124] ss:$16 sps:$4 sm:$0xff]  }
 0x424   :  { %4626 = vmatpush1.bf16.msra.mxu1 %v13025_v16  ;;  %4299 = vmatprep.subr.bf16.mxu0 %v13030_v17  ;;  %v13106_v16 = vld [vmem:[#allocation13 + $0x120] ss:$16 sps:$4 sm:$0xff]   ;;  %v13109_v17 = vld [vmem:[#allocation13 + $0x128] ss:$16 sps:$4 sm:$0xff]  }
 0x425   :  { %4627 = vmatprep.subr.bf16.mxu1 %v13033_v18  ;;  %v13117_v18 = vld [vmem:[#allocation13 + $0x14c] ss:$16 sps:$4 sm:$0xff]  }
 0x427   :  { %4300 = vmatpush1.bf16.msra.mxu0 %v13028_v55  ;;  %v13114_v55 = vld [vmem:[#allocation13 + $0x144] ss:$16 sps:$4 sm:$0xff]  }
 0x428   :  { %4628 = vmatpush1.bf16.msra.mxu1 %v13031_v19  ;;  %4301 = vmatprep.subr.bf16.mxu0 %v13036_v20  ;;  %v13112_v19 = vld [vmem:[#allocation13 + $0x140] ss:$16 sps:$4 sm:$0xff]   ;;  %v13115_v20 = vld [vmem:[#allocation13 + $0x148] ss:$16 sps:$4 sm:$0xff]  }
 0x429   :  { %4629 = vmatprep.subr.bf16.mxu1 %v13039_v22  ;;  %v13123_v22 = vld [vmem:[#allocation13 + $0x16c] ss:$16 sps:$4 sm:$0xff]  }
 0x42b   :  { %4302 = vmatpush1.bf16.msra.mxu0 %v13034_v21  ;;  %v13120_v21 = vld [vmem:[#allocation13 + $0x164] ss:$16 sps:$4 sm:$0xff]  }
 0x42c   :  { %4630 = vmatpush1.bf16.msra.mxu1 %v13037_v11  ;;  %4303 = vmatprep.subr.bf16.mxu0 %v13042_v25  ;;  %v13118_v11 = vld [vmem:[#allocation13 + $0x160] ss:$16 sps:$4 sm:$0xff]   ;;  %v13121_v25 = vld [vmem:[#allocation13 + $0x168] ss:$16 sps:$4 sm:$0xff]  }
 0x42d   :  { %4631 = vmatprep.subr.bf16.mxu1 %v13045_v27  ;;  %v13129_v27 = vld [vmem:[#allocation13 + $0x18c] ss:$16 sps:$4 sm:$0xff]  }
 0x42f   :  { %4304 = vmatpush1.bf16.msra.mxu0 %v13040_v26  ;;  %v13126_v26 = vld [vmem:[#allocation13 + $0x184] ss:$16 sps:$4 sm:$0xff]  }
 0x430   :  { %4632 = vmatpush1.bf16.msra.mxu1 %v13043_v57  ;;  %4305 = vmatprep.subr.bf16.mxu0 %v13048_v3  ;;  %v13124_v57 = vld [vmem:[#allocation13 + $0x180] ss:$16 sps:$4 sm:$0xff]   ;;  %v13127_v3 = vld [vmem:[#allocation13 + $0x188] ss:$16 sps:$4 sm:$0xff]  }
 0x431   :  { %4633 = vmatprep.subr.bf16.mxu1 %v13051_v51  ;;  %v13132_v51 = vld [vmem:[#allocation13 + $0x1a4] ss:$16 sps:$4 sm:$0xff]  }
 0x433   :  { %4306 = vmatpush1.bf16.msra.mxu0 %v13046_v52  ;;  %v13135_v52 = vld [vmem:[#allocation13 + $0x1ac] ss:$16 sps:$4 sm:$0xff]  }
 0x434   :  { %4634 = vmatpush1.bf16.msra.mxu1 %v13049_v4  ;;  %5830 = vmatprep.subr.bf16.mxu0 %v13054_v59  ;;  %v13133_v4 = vld [vmem:[#allocation13 + $0x1a8] ss:$16 sps:$4 sm:$0xff]   ;;  %v13138_v59 = vld [vmem:[#allocation13 + $0x1c4] ss:$16 sps:$4 sm:$0xff]  }
 0x435   :  { %5953 = vmatprep.subr.bf16.mxu1 %v13057_v28  ;;  %v13141_v28 = vld [vmem:[#allocation13 + $0x1cc] ss:$16 sps:$4 sm:$0xff]  }
 0x436   :  { %4308 = vmatmul.mubr.bf16.vlgmr.msra.gmra.mrb[8].mxu0 %v892_v31 }
 0x437   :  { %4636 = vmatmul.mubr.bf16.vlgmr.msra.gmra.mrb[24].mxu1 %v892_v31  ;;  %5831 = vmatpush1.bf16.msra.mxu0 %v13052_v29  ;;  %v13139_v29 = vld [vmem:[#allocation13 + $0x1c8] ss:$16 sps:$4 sm:$0xff]   ;;  %v13144_v31 = vld [vmem:[#allocation13 + $0x1e4] ss:$16 sps:$4 sm:$0xff]  }
 0x438   :  { %5954 = vmatpush1.bf16.msra.mxu1 %v13055_v34  ;;  %5832 = vmatprep.subr.bf16.mxu0 %v13060_v35  ;;  %v13147_v34 = vld [vmem:[#allocation13 + $0x1ec] ss:$16 sps:$4 sm:$0xff]   ;;  %v13142_v35 = vld [vmem:[#allocation13 + $0x1e0] ss:$16 sps:$4 sm:$0xff]  }
 0x439   :  { %5955 = vmatprep.subr.bf16.mxu1 %v13063_v33  ;;  %5862 = vmatprep.mubr.bf16.mxu0 %v4651_v53  ;;  %v4644_v33 = vld [vmem:[#allocation5] sm:$0xff] }
 0x43a   :  { %5985 = vmatprep.mubr.bf16.mxu1 %v4651_v53  ;;  %v13145_v53 = vld [vmem:[#allocation13 + $0x1e8] ss:$16 sps:$4 sm:$0xff]  }
 0x43b   :  { %5833 = vmatpush1.bf16.msra.mxu0 %v13058_v38  ;;  %v13150_v38 = vld [vmem:[#allocation13 + $0x204] ss:$16 sps:$4 sm:$0xff]  }
 0x43c   :  { %5956 = vmatpush1.bf16.msra.mxu1 %v13061_v36  ;;  %5834 = vmatprep.subr.bf16.mxu0 %v13066_v39  ;;  %v13153_v36 = vld [vmem:[#allocation13 + $0x20c] ss:$16 sps:$4 sm:$0xff]   ;;  %v4650_v39 = vpack.c.bf16 %v4644_v33, %v4644_v33  ;;  %v13226_v33 = vld [vmem:[#allocation13 + $0x3a0] ss:$16 sps:$4 sm:$0xff]  }
 0x43d   :  { %5957 = vmatprep.subr.bf16.mxu1 %v13069_v37  ;;  %v4647_v37 = vld [vmem:[#allocation5 + $0x18] sm:$0xff] }
 0x43f   :  { %5835 = vmatpush1.bf16.msra.mxu0 %v13064_v40  ;;  %v13148_v40 = vld [vmem:[#allocation13 + $0x200] ss:$16 sps:$4 sm:$0xff]  }
 0x440   :  { %5958 = vmatpush1.bf16.msra.mxu1 %v13067_v41  ;;  %5836 = vmatprep.subr.bf16.mxu0 %v13072_v44  ;;  %v13151_v41 = vld [vmem:[#allocation13 + $0x208] ss:$16 sps:$4 sm:$0xff]   ;;  %v13156_v44 = vld [vmem:[#allocation13 + $0x224] ss:$16 sps:$4 sm:$0xff]  }
 0x441   :  { %5959 = vmatprep.subr.bf16.mxu1 %v13075_v45  ;;  %v13159_v45 = vld [vmem:[#allocation13 + $0x22c] ss:$16 sps:$4 sm:$0xff]  }
 0x443   :  { %5837 = vmatpush1.bf16.msra.mxu0 %v13070_v47  ;;  %v4653_v47 = vpack.c.bf16 %v4647_v37, %v4647_v37  ;;  %v13235_v37 = vld [vmem:[#allocation13 + $0x3c8] ss:$16 sps:$4 sm:$0xff]  }
 0x444   :  { %5960 = vmatpush1.bf16.msra.mxu1 %v13073_v23  ;;  %5838 = vmatprep.subr.bf16.mxu0 %v13078_v48  ;;  %v13154_v23 = vld [vmem:[#allocation13 + $0x220] ss:$16 sps:$4 sm:$0xff]   ;;  %v13157_v48 = vld [vmem:[#allocation13 + $0x228] ss:$16 sps:$4 sm:$0xff]  }
 0x445   :  { %5961 = vmatprep.subr.bf16.mxu1 %v13081_v49  ;;  %v13162_v49 = vld [vmem:[#allocation13 + $0x244] ss:$16 sps:$4 sm:$0xff]  }
 0x447   :  { %5839 = vmatpush1.bf16.msra.mxu0 %v13076_v50  ;;  %v13165_v50 = vld [vmem:[#allocation13 + $0x24c] ss:$16 sps:$4 sm:$0xff]  }
 0x448   :  { %5962 = vmatpush1.bf16.msra.mxu1 %v13079_v60  ;;  %5840 = vmatprep.subr.bf16.mxu0 %v13084_v30  ;;  %v13160_v60 = vld [vmem:[#allocation13 + $0x240] ss:$16 sps:$4 sm:$0xff]   ;;  %v13163_v30 = vld [vmem:[#allocation13 + $0x248] ss:$16 sps:$4 sm:$0xff]  }
 0x449   :  { %5963 = vmatprep.subr.bf16.mxu1 %v13087_v61  ;;  %v13168_v61 = vld [vmem:[#allocation13 + $0x264] ss:$16 sps:$4 sm:$0xff]  }
 0x44b   :  { %5841 = vmatpush1.bf16.msra.mxu0 %v13082_v62  ;;  %v13171_v62 = vld [vmem:[#allocation13 + $0x26c] ss:$16 sps:$4 sm:$0xff]  }
 0x44c   :  { %5964 = vmatpush1.bf16.msra.mxu1 %v13085_v63  ;;  %5842 = vmatprep.subr.bf16.mxu0 %v13090_v43  ;;  %v13166_v63 = vld [vmem:[#allocation13 + $0x260] ss:$16 sps:$4 sm:$0xff]   ;;  %v13169_v43 = vld [vmem:[#allocation13 + $0x268] ss:$16 sps:$4 sm:$0xff]  }
 0x44d   :  { %5965 = vmatprep.subr.bf16.mxu1 %v13093_v1  ;;  %v13174_v1 = vld [vmem:[#allocation13 + $0x284] ss:$16 sps:$4 sm:$0xff]  }
 0x44f   :  { %5843 = vmatpush1.bf16.msra.mxu0 %v13088_v2  ;;  %v13177_v2 = vld [vmem:[#allocation13 + $0x28c] ss:$16 sps:$4 sm:$0xff]  }
 0x450   :  { %5966 = vmatpush1.bf16.msra.mxu1 %v13091_v24  ;;  %5844 = vmatprep.subr.bf16.mxu0 %v13096_v6  ;;  %v13172_v24 = vld [vmem:[#allocation13 + $0x280] ss:$16 sps:$4 sm:$0xff]   ;;  %v13175_v6 = vld [vmem:[#allocation13 + $0x288] ss:$16 sps:$4 sm:$0xff]  }
 0x451   :  { %5967 = vmatprep.subr.bf16.mxu1 %v13099_v8  ;;  %v13180_v8 = vld [vmem:[#allocation13 + $0x2a4] ss:$16 sps:$4 sm:$0xff]  }
 0x453   :  { %5845 = vmatpush1.bf16.msra.mxu0 %v13094_v9  ;;  %v13183_v9 = vld [vmem:[#allocation13 + $0x2ac] ss:$16 sps:$4 sm:$0xff]  }
 0x454   :  { %5968 = vmatpush1.bf16.msra.mxu1 %v13097_v10  ;;  %5846 = vmatprep.subr.bf16.mxu0 %v13102_v54  ;;  %v13178_v10 = vld [vmem:[#allocation13 + $0x2a0] ss:$16 sps:$4 sm:$0xff]   ;;  %v13181_v54 = vld [vmem:[#allocation13 + $0x2a8] ss:$16 sps:$4 sm:$0xff]  }
 0x455   :  { %5969 = vmatprep.subr.bf16.mxu1 %v13105_v12  ;;  %v13186_v12 = vld [vmem:[#allocation13 + $0x2c4] ss:$16 sps:$4 sm:$0xff]  }
 0x457   :  { %5847 = vmatpush1.bf16.msra.mxu0 %v13100_v32  ;;  %v13189_v32 = vld [vmem:[#allocation13 + $0x2cc] ss:$16 sps:$4 sm:$0xff]  }
 0x458   :  { %5970 = vmatpush1.bf16.msra.mxu1 %v13103_v13  ;;  %5848 = vmatprep.subr.bf16.mxu0 %v13108_v14  ;;  %v13184_v13 = vld [vmem:[#allocation13 + $0x2c0] ss:$16 sps:$4 sm:$0xff]   ;;  %v13187_v14 = vld [vmem:[#allocation13 + $0x2c8] ss:$16 sps:$4 sm:$0xff]  }
 0x459   :  { %5971 = vmatprep.subr.bf16.mxu1 %v13111_v15  ;;  %v13192_v15 = vld [vmem:[#allocation13 + $0x2e4] ss:$16 sps:$4 sm:$0xff]  }
 0x45b   :  { %5849 = vmatpush1.bf16.msra.mxu0 %v13106_v16  ;;  %v13195_v16 = vld [vmem:[#allocation13 + $0x2ec] ss:$16 sps:$4 sm:$0xff]  }
 0x45c   :  { %5972 = vmatpush1.bf16.msra.mxu1 %v13109_v17  ;;  %5850 = vmatprep.subr.bf16.mxu0 %v13114_v55  ;;  %v13190_v17 = vld [vmem:[#allocation13 + $0x2e0] ss:$16 sps:$4 sm:$0xff]   ;;  %v13193_v55 = vld [vmem:[#allocation13 + $0x2e8] ss:$16 sps:$4 sm:$0xff]  }
 0x45d   :  { %5973 = vmatprep.subr.bf16.mxu1 %v13117_v18  ;;  %v13198_v18 = vld [vmem:[#allocation13 + $0x304] ss:$16 sps:$4 sm:$0xff]  }
 0x45f   :  { %5851 = vmatpush1.bf16.msra.mxu0 %v13112_v19  ;;  %v13201_v19 = vld [vmem:[#allocation13 + $0x30c] ss:$16 sps:$4 sm:$0xff]  }
 0x460   :  { %5974 = vmatpush1.bf16.msra.mxu1 %v13115_v20  ;;  %5852 = vmatprep.subr.bf16.mxu0 %v13120_v21  ;;  %v13196_v20 = vld [vmem:[#allocation13 + $0x300] ss:$16 sps:$4 sm:$0xff]   ;;  %v13199_v21 = vld [vmem:[#allocation13 + $0x308] ss:$16 sps:$4 sm:$0xff]  }
 0x461   :  { %5975 = vmatprep.subr.bf16.mxu1 %v13123_v22  ;;  %v13204_v22 = vld [vmem:[#allocation13 + $0x324] ss:$16 sps:$4 sm:$0xff]  }
 0x463   :  { %5853 = vmatpush1.bf16.msra.mxu0 %v13118_v11  ;;  %v13207_v11 = vld [vmem:[#allocation13 + $0x32c] ss:$16 sps:$4 sm:$0xff]  }
 0x464   :  { %5976 = vmatpush1.bf16.msra.mxu1 %v13121_v25  ;;  %5854 = vmatprep.subr.bf16.mxu0 %v13126_v26  ;;  %v13202_v25 = vld [vmem:[#allocation13 + $0x320] ss:$16 sps:$4 sm:$0xff]   ;;  %v13205_v26 = vld [vmem:[#allocation13 + $0x328] ss:$16 sps:$4 sm:$0xff]  }
 0x465   :  { %5977 = vmatprep.subr.bf16.mxu1 %v13129_v27  ;;  %v13210_v27 = vld [vmem:[#allocation13 + $0x344] ss:$16 sps:$4 sm:$0xff]  }
 0x467   :  { %5855 = vmatpush1.bf16.msra.mxu0 %v13124_v57  ;;  %v13213_v57 = vld [vmem:[#allocation13 + $0x34c] ss:$16 sps:$4 sm:$0xff]  }
 0x468   :  { %5978 = vmatpush1.bf16.msra.mxu1 %v13127_v3  ;;  %5856 = vmatprep.subr.bf16.mxu0 %v13132_v51  ;;  %v13208_v3 = vld [vmem:[#allocation13 + $0x340] ss:$16 sps:$4 sm:$0xff]   ;;  %v13211_v51 = vld [vmem:[#allocation13 + $0x348] ss:$16 sps:$4 sm:$0xff]  }
 0x469   :  { %5979 = vmatprep.subr.bf16.mxu1 %v13135_v52  ;;  %v13216_v52 = vld [vmem:[#allocation13 + $0x364] ss:$16 sps:$4 sm:$0xff]  }
 0x46b   :  { %5857 = vmatpush1.bf16.msra.mxu0 %v13130_v46  ;;  %v13219_v46 = vld [vmem:[#allocation13 + $0x36c] ss:$16 sps:$4 sm:$0xff]  }
 0x46c   :  { %5980 = vmatpush1.bf16.msra.mxu1 %v13133_v4  ;;  %5858 = vmatprep.subr.bf16.mxu0 %v13138_v59  ;;  %v13214_v4 = vld [vmem:[#allocation13 + $0x360] ss:$16 sps:$4 sm:$0xff]   ;;  %v13217_v59 = vld [vmem:[#allocation13 + $0x368] ss:$16 sps:$4 sm:$0xff]  }
 0x46d   :  { %5981 = vmatprep.subr.bf16.mxu1 %v13141_v28  ;;  %v13222_v28 = vld [vmem:[#allocation13 + $0x384] ss:$16 sps:$4 sm:$0xff]  }
 0x46f   :  { %5859 = vmatpush1.bf16.msra.mxu0 %v13136_v42  ;;  %v13225_v42 = vld [vmem:[#allocation13 + $0x38c] ss:$16 sps:$4 sm:$0xff]  }
 0x470   :  { %5982 = vmatpush1.bf16.msra.mxu1 %v13139_v29  ;;  %5860 = vmatprep.subr.bf16.mxu0 %v13144_v31  ;;  %v13220_v29 = vld [vmem:[#allocation13 + $0x380] ss:$16 sps:$4 sm:$0xff]   ;;  %v13223_v31 = vld [vmem:[#allocation13 + $0x388] ss:$16 sps:$4 sm:$0xff]  }
 0x471   :  { %5983 = vmatprep.subr.bf16.mxu1 %v13147_v34  ;;  %v13228_v34 = vld [vmem:[#allocation13 + $0x3a4] ss:$16 sps:$4 sm:$0xff]  }
 0x473   :  { %5861 = vmatpush1.bf16.msra.mxu0 %v13142_v35  ;;  %v13231_v35 = vld [vmem:[#allocation13 + $0x3ac] ss:$16 sps:$4 sm:$0xff]  }
 0x474   :  { %5984 = vmatpush1.bf16.msra.mxu1 %v13145_v53  ;;  %5871 = vmatprep.subr.bf16.mxu0 %v13150_v38  ;;  %v13229_v53 = vld [vmem:[#allocation13 + $0x3a8] ss:$16 sps:$4 sm:$0xff]   ;;  %v13234_v38 = vld [vmem:[#allocation13 + $0x3c4] ss:$16 sps:$4 sm:$0xff]  }
 0x475   :  { %5994 = vmatprep.subr.bf16.mxu1 %v13153_v36  ;;  %v13237_v36 = vld [vmem:[#allocation13 + $0x3cc] ss:$16 sps:$4 sm:$0xff]  }
 0x476   :  { %5863 = vmatmul.mubr.bf16.vlgmr.msra.gmra.mrb[12].mxu0 %v4650_v39 }
 0x477   :  { %5872 = vmatpush1.bf16.msra.mxu0 %v13148_v40  ;;  %5986 = vmatmul.mubr.bf16.vlgmr.msra.gmra.mrb[28].mxu1 %v4650_v39  ;;  %v13232_v39 = vld [vmem:[#allocation13 + $0x3c0] ss:$16 sps:$4 sm:$0xff]   ;;  %v13240_v40 = vld [vmem:[#allocation13 + $0x3e4] ss:$16 sps:$4 sm:$0xff]  }
 0x478   :  { %5995 = vmatpush1.bf16.msra.mxu1 %v13151_v41  ;;  %5873 = vmatprep.subr.bf16.mxu0 %v13156_v44  ;;  %v13243_v41 = vld [vmem:[#allocation13 + $0x3ec] ss:$16 sps:$4 sm:$0xff]   ;;  %v13238_v44 = vld [vmem:[#allocation13 + $0x3e0] ss:$16 sps:$4 sm:$0xff]  }
 0x479   :  { %5996 = vmatprep.subr.bf16.mxu1 %v13159_v45  ;;  %5903 = vmatprep.mubr.bf16.mxu0 %v4653_v47  ;;  %v4646_v45 = vld [vmem:[#allocation5 + $0x10] sm:$0xff] }
 0x47a   :  { %6026 = vmatprep.mubr.bf16.mxu1 %v4653_v47  ;;  %v13241_v47 = vld [vmem:[#allocation13 + $0x3e8] ss:$16 sps:$4 sm:$0xff]  }
 0x47b   :  { %5874 = vmatpush1.bf16.msra.mxu0 %v13154_v23  ;;  %v13246_v23 = vld [vmem:[#allocation13 + $0x404] ss:$16 sps:$4 sm:$0xff]  }
 0x47c   :  { %5997 = vmatpush1.bf16.msra.mxu1 %v13157_v48  ;;  %5875 = vmatprep.subr.bf16.mxu0 %v13162_v49  ;;  %v13249_v48 = vld [vmem:[#allocation13 + $0x40c] ss:$16 sps:$4 sm:$0xff]   ;;  %v4652_v49 = vpack.c.bf16 %v4646_v45, %v4646_v45  ;;  %v13322_v45 = vld [vmem:[#allocation13 + $0x5a0] ss:$16 sps:$4 sm:$0xff]  }
 0x47d   :  { %5998 = vmatprep.subr.bf16.mxu1 %v13165_v50  ;;  %v4649_v50 = vld [vmem:[#allocation5 + $0x28] sm:$0xff] }
 0x47f   :  { %5876 = vmatpush1.bf16.msra.mxu0 %v13160_v60  ;;  %v13244_v60 = vld [vmem:[#allocation13 + $0x400] ss:$16 sps:$4 sm:$0xff]  }
 0x480   :  { %5999 = vmatpush1.bf16.msra.mxu1 %v13163_v30  ;;  %5877 = vmatprep.subr.bf16.mxu0 %v13168_v61  ;;  %v13247_v30 = vld [vmem:[#allocation13 + $0x408] ss:$16 sps:$4 sm:$0xff]   ;;  %v13252_v61 = vld [vmem:[#allocation13 + $0x424] ss:$16 sps:$4 sm:$0xff]  }
 0x481   :  { %6000 = vmatprep.subr.bf16.mxu1 %v13171_v62  ;;  %v13255_v62 = vld [vmem:[#allocation13 + $0x42c] ss:$16 sps:$4 sm:$0xff]  }
 0x483   :  { %5878 = vmatpush1.bf16.msra.mxu0 %v13166_v63  ;;  %v4655_v63 = vpack.c.bf16 %v4649_v50, %v4649_v50  ;;  %v13331_v50 = vld [vmem:[#allocation13 + $0x5c8] ss:$16 sps:$4 sm:$0xff]  }
 0x484   :  { %6001 = vmatpush1.bf16.msra.mxu1 %v13169_v43  ;;  %5879 = vmatprep.subr.bf16.mxu0 %v13174_v1  ;;  %v13250_v43 = vld [vmem:[#allocation13 + $0x420] ss:$16 sps:$4 sm:$0xff]   ;;  %v13253_v1 = vld [vmem:[#allocation13 + $0x428] ss:$16 sps:$4 sm:$0xff]  }
 0x485   :  { %6002 = vmatprep.subr.bf16.mxu1 %v13177_v2  ;;  %v13258_v2 = vld [vmem:[#allocation13 + $0x444] ss:$16 sps:$4 sm:$0xff]  }
 0x487   :  { %5880 = vmatpush1.bf16.msra.mxu0 %v13172_v24  ;;  %v13261_v24 = vld [vmem:[#allocation13 + $0x44c] ss:$16 sps:$4 sm:$0xff]  }
 0x488   :  { %6003 = vmatpush1.bf16.msra.mxu1 %v13175_v6  ;;  %5881 = vmatprep.subr.bf16.mxu0 %v13180_v8  ;;  %v13256_v6 = vld [vmem:[#allocation13 + $0x440] ss:$16 sps:$4 sm:$0xff]   ;;  %v13259_v8 = vld [vmem:[#allocation13 + $0x448] ss:$16 sps:$4 sm:$0xff]  }
 0x489   :  { %6004 = vmatprep.subr.bf16.mxu1 %v13183_v9  ;;  %v13264_v9 = vld [vmem:[#allocation13 + $0x464] ss:$16 sps:$4 sm:$0xff]  }
 0x48b   :  { %5882 = vmatpush1.bf16.msra.mxu0 %v13178_v10  ;;  %v13267_v10 = vld [vmem:[#allocation13 + $0x46c] ss:$16 sps:$4 sm:$0xff]  }
 0x48c   :  { %6005 = vmatpush1.bf16.msra.mxu1 %v13181_v54  ;;  %5883 = vmatprep.subr.bf16.mxu0 %v13186_v12  ;;  %v13262_v54 = vld [vmem:[#allocation13 + $0x460] ss:$16 sps:$4 sm:$0xff]   ;;  %v13265_v12 = vld [vmem:[#allocation13 + $0x468] ss:$16 sps:$4 sm:$0xff]  }
 0x48d   :  { %6006 = vmatprep.subr.bf16.mxu1 %v13189_v32  ;;  %v13270_v32 = vld [vmem:[#allocation13 + $0x484] ss:$16 sps:$4 sm:$0xff]  }
 0x48f   :  { %5884 = vmatpush1.bf16.msra.mxu0 %v13184_v13  ;;  %v13273_v13 = vld [vmem:[#allocation13 + $0x48c] ss:$16 sps:$4 sm:$0xff]  }
 0x490   :  { %6007 = vmatpush1.bf16.msra.mxu1 %v13187_v14  ;;  %5885 = vmatprep.subr.bf16.mxu0 %v13192_v15  ;;  %v13268_v14 = vld [vmem:[#allocation13 + $0x480] ss:$16 sps:$4 sm:$0xff]   ;;  %v13271_v15 = vld [vmem:[#allocation13 + $0x488] ss:$16 sps:$4 sm:$0xff]  }
 0x491   :  { %6008 = vmatprep.subr.bf16.mxu1 %v13195_v16  ;;  %v13276_v16 = vld [vmem:[#allocation13 + $0x4a4] ss:$16 sps:$4 sm:$0xff]  }
 0x493   :  { %5886 = vmatpush1.bf16.msra.mxu0 %v13190_v17  ;;  %v13279_v17 = vld [vmem:[#allocation13 + $0x4ac] ss:$16 sps:$4 sm:$0xff]  }
 0x494   :  { %6009 = vmatpush1.bf16.msra.mxu1 %v13193_v55  ;;  %5887 = vmatprep.subr.bf16.mxu0 %v13198_v18  ;;  %v13274_v55 = vld [vmem:[#allocation13 + $0x4a0] ss:$16 sps:$4 sm:$0xff]   ;;  %v13277_v18 = vld [vmem:[#allocation13 + $0x4a8] ss:$16 sps:$4 sm:$0xff]  }
 0x495   :  { %6010 = vmatprep.subr.bf16.mxu1 %v13201_v19  ;;  %v13282_v19 = vld [vmem:[#allocation13 + $0x4c4] ss:$16 sps:$4 sm:$0xff]  }
 0x497   :  { %5888 = vmatpush1.bf16.msra.mxu0 %v13196_v20  ;;  %v13285_v20 = vld [vmem:[#allocation13 + $0x4cc] ss:$16 sps:$4 sm:$0xff]  }
 0x498   :  { %6011 = vmatpush1.bf16.msra.mxu1 %v13199_v21  ;;  %5889 = vmatprep.subr.bf16.mxu0 %v13204_v22  ;;  %v13280_v21 = vld [vmem:[#allocation13 + $0x4c0] ss:$16 sps:$4 sm:$0xff]   ;;  %v13283_v22 = vld [vmem:[#allocation13 + $0x4c8] ss:$16 sps:$4 sm:$0xff]  }
 0x499   :  { %6012 = vmatprep.subr.bf16.mxu1 %v13207_v11  ;;  %v13288_v11 = vld [vmem:[#allocation13 + $0x4e4] ss:$16 sps:$4 sm:$0xff]  }
 0x49b   :  { %5890 = vmatpush1.bf16.msra.mxu0 %v13202_v25  ;;  %v13291_v25 = vld [vmem:[#allocation13 + $0x4ec] ss:$16 sps:$4 sm:$0xff]  }
 0x49c   :  { %6013 = vmatpush1.bf16.msra.mxu1 %v13205_v26  ;;  %5891 = vmatprep.subr.bf16.mxu0 %v13210_v27  ;;  %v13286_v26 = vld [vmem:[#allocation13 + $0x4e0] ss:$16 sps:$4 sm:$0xff]   ;;  %v13289_v27 = vld [vmem:[#allocation13 + $0x4e8] ss:$16 sps:$4 sm:$0xff]  }
 0x49d   :  { %6014 = vmatprep.subr.bf16.mxu1 %v13213_v57  ;;  %v13294_v57 = vld [vmem:[#allocation13 + $0x504] ss:$16 sps:$4 sm:$0xff]  }
 0x49f   :  { %5892 = vmatpush1.bf16.msra.mxu0 %v13208_v3  ;;  %v13297_v3 = vld [vmem:[#allocation13 + $0x50c] ss:$16 sps:$4 sm:$0xff]  }
 0x4a0   :  { %6015 = vmatpush1.bf16.msra.mxu1 %v13211_v51  ;;  %5893 = vmatprep.subr.bf16.mxu0 %v13216_v52  ;;  %v13292_v51 = vld [vmem:[#allocation13 + $0x500] ss:$16 sps:$4 sm:$0xff]   ;;  %v13295_v52 = vld [vmem:[#allocation13 + $0x508] ss:$16 sps:$4 sm:$0xff]  }
 0x4a1   :  { %6016 = vmatprep.subr.bf16.mxu1 %v13219_v46  ;;  %v13300_v46 = vld [vmem:[#allocation13 + $0x524] ss:$16 sps:$4 sm:$0xff]  }
 0x4a3   :  { %5894 = vmatpush1.bf16.msra.mxu0 %v13214_v4  ;;  %v13303_v4 = vld [vmem:[#allocation13 + $0x52c] ss:$16 sps:$4 sm:$0xff]  }
 0x4a4   :  { %6017 = vmatpush1.bf16.msra.mxu1 %v13217_v59  ;;  %5895 = vmatprep.subr.bf16.mxu0 %v13222_v28  ;;  %v13298_v59 = vld [vmem:[#allocation13 + $0x520] ss:$16 sps:$4 sm:$0xff]   ;;  %v13301_v28 = vld [vmem:[#allocation13 + $0x528] ss:$16 sps:$4 sm:$0xff]  }
 0x4a5   :  { %6018 = vmatprep.subr.bf16.mxu1 %v13225_v42  ;;  %v13306_v42 = vld [vmem:[#allocation13 + $0x544] ss:$16 sps:$4 sm:$0xff]  }
 0x4a7   :  { %5896 = vmatpush1.bf16.msra.mxu0 %v13220_v29  ;;  %v13309_v29 = vld [vmem:[#allocation13 + $0x54c] ss:$16 sps:$4 sm:$0xff]  }
 0x4a8   :  { %6019 = vmatpush1.bf16.msra.mxu1 %v13223_v31  ;;  %5897 = vmatprep.subr.bf16.mxu0 %v13228_v34  ;;  %v13304_v31 = vld [vmem:[#allocation13 + $0x540] ss:$16 sps:$4 sm:$0xff]   ;;  %v13307_v34 = vld [vmem:[#allocation13 + $0x548] ss:$16 sps:$4 sm:$0xff]  }
 0x4a9   :  { %6020 = vmatprep.subr.bf16.mxu1 %v13231_v35  ;;  %v13312_v35 = vld [vmem:[#allocation13 + $0x564] ss:$16 sps:$4 sm:$0xff]  }
 0x4ab   :  { %5898 = vmatpush1.bf16.msra.mxu0 %v13226_v33  ;;  %v13315_v33 = vld [vmem:[#allocation13 + $0x56c] ss:$16 sps:$4 sm:$0xff]  }
 0x4ac   :  { %6021 = vmatpush1.bf16.msra.mxu1 %v13229_v53  ;;  %5899 = vmatprep.subr.bf16.mxu0 %v13234_v38  ;;  %v13310_v53 = vld [vmem:[#allocation13 + $0x560] ss:$16 sps:$4 sm:$0xff]   ;;  %v13313_v38 = vld [vmem:[#allocation13 + $0x568] ss:$16 sps:$4 sm:$0xff]  }
 0x4ad   :  { %6022 = vmatprep.subr.bf16.mxu1 %v13237_v36  ;;  %v13318_v36 = vld [vmem:[#allocation13 + $0x584] ss:$16 sps:$4 sm:$0xff]  }
 0x4af   :  { %5900 = vmatpush1.bf16.msra.mxu0 %v13232_v39  ;;  %v13321_v39 = vld [vmem:[#allocation13 + $0x58c] ss:$16 sps:$4 sm:$0xff]  }
 0x4b0   :  { %6023 = vmatpush1.bf16.msra.mxu1 %v13235_v37  ;;  %5901 = vmatprep.subr.bf16.mxu0 %v13240_v40  ;;  %v13316_v37 = vld [vmem:[#allocation13 + $0x580] ss:$16 sps:$4 sm:$0xff]   ;;  %v13319_v40 = vld [vmem:[#allocation13 + $0x588] ss:$16 sps:$4 sm:$0xff]  }
 0x4b1   :  { %6024 = vmatprep.subr.bf16.mxu1 %v13243_v41  ;;  %v13324_v41 = vld [vmem:[#allocation13 + $0x5a4] ss:$16 sps:$4 sm:$0xff]  }
 0x4b3   :  { %5902 = vmatpush1.bf16.msra.mxu0 %v13238_v44  ;;  %v13327_v44 = vld [vmem:[#allocation13 + $0x5ac] ss:$16 sps:$4 sm:$0xff]  }
 0x4b4   :  { %6025 = vmatpush1.bf16.msra.mxu1 %v13241_v47  ;;  %5912 = vmatprep.subr.bf16.mxu0 %v13246_v23  ;;  %v13325_v47 = vld [vmem:[#allocation13 + $0x5a8] ss:$16 sps:$4 sm:$0xff]   ;;  %v13330_v23 = vld [vmem:[#allocation13 + $0x5c4] ss:$16 sps:$4 sm:$0xff]  }
 0x4b5   :  { %6035 = vmatprep.subr.bf16.mxu1 %v13249_v48  ;;  %v13333_v48 = vld [vmem:[#allocation13 + $0x5cc] ss:$16 sps:$4 sm:$0xff]  }
 0x4b6   :  { %5904 = vmatmul.mubr.bf16.vlgmr.msra.gmra.mrb[12].mxu0 %v4652_v49 }
 0x4b7   :  { %5913 = vmatpush1.bf16.msra.mxu0 %v13244_v60  ;;  %6027 = vmatmul.mubr.bf16.vlgmr.msra.gmra.mrb[28].mxu1 %v4652_v49  ;;  %v13328_v49 = vld [vmem:[#allocation13 + $0x5c0] ss:$16 sps:$4 sm:$0xff]   ;;  %v13336_v60 = vld [vmem:[#allocation13 + $0x5e4] ss:$16 sps:$4 sm:$0xff]  }
 0x4b8   :  { %6036 = vmatpush1.bf16.msra.mxu1 %v13247_v30  ;;  %5914 = vmatprep.subr.bf16.mxu0 %v13252_v61  ;;  %v13339_v30 = vld [vmem:[#allocation13 + $0x5ec] ss:$16 sps:$4 sm:$0xff]   ;;  %v13334_v61 = vld [vmem:[#allocation13 + $0x5e0] ss:$16 sps:$4 sm:$0xff]  }
 0x4b9   :  { %6037 = vmatprep.subr.bf16.mxu1 %v13255_v62  ;;  %5944 = vmatprep.mubr.bf16.mxu0 %v4655_v63  ;;  %v4648_v62 = vld [vmem:[#allocation5 + $0x20] sm:$0xff] }
 0x4ba   :  { %6067 = vmatprep.mubr.bf16.mxu1 %v4655_v63  ;;  %v13337_v63 = vld [vmem:[#allocation13 + $0x5e8] ss:$16 sps:$4 sm:$0xff]  }
 0x4bb   :  { %5915 = vmatpush1.bf16.msra.mxu0 %v13250_v43  ;;  %v13342_v43 = vld [vmem:[#allocation17 + $0x4] ss:$16 sps:$4 sm:$0xff]  }
 0x4bc   :  { %6038 = vmatpush1.bf16.msra.mxu1 %v13253_v1  ;;  %5916 = vmatprep.subr.bf16.mxu0 %v13258_v2  ;;  %v13345_v1 = vld [vmem:[#allocation17 + $0x204] ss:$16 sps:$4 sm:$0xff]   ;;  %v4654_v2 = vpack.c.bf16 %v4648_v62, %v4648_v62 }
 0x4bd   :  { %6039 = vmatprep.subr.bf16.mxu1 %v13261_v24  ;;  %v13340_v24 = vld [vmem:[#allocation17] ss:$16 sps:$4 sm:$0xff]   ;;  %v13414_v62 = vld [vmem:[#allocation17 + $0x184] ss:$16 sps:$4 sm:$0xff]  }
 0x4bf   :  { %5917 = vmatpush1.bf16.msra.mxu0 %v13256_v6  ;;  %v13343_v6 = vld [vmem:[#allocation17 + $0x200] ss:$16 sps:$4 sm:$0xff]  }
 0x4c0   :  { %6040 = vmatpush1.bf16.msra.mxu1 %v13259_v8  ;;  %5918 = vmatprep.subr.bf16.mxu0 %v13264_v9  ;;  %v13348_v8 = vld [vmem:[#allocation17 + $0x24] ss:$16 sps:$4 sm:$0xff]  }
 0x4c1   :  { %6041 = vmatprep.subr.bf16.mxu1 %v13267_v10  ;;  %v13351_v9 = vld [vmem:[#allocation17 + $0x224] ss:$16 sps:$4 sm:$0xff]   ;;  %v13346_v10 = vld [vmem:[#allocation17 + $0x20] ss:$16 sps:$4 sm:$0xff]  }
 0x4c3   :  { %5919 = vmatpush1.bf16.msra.mxu0 %v13262_v54  ;;  %v13349_v54 = vld [vmem:[#allocation17 + $0x220] ss:$16 sps:$4 sm:$0xff]  }
 0x4c4   :  { %6042 = vmatpush1.bf16.msra.mxu1 %v13265_v12  ;;  %5920 = vmatprep.subr.bf16.mxu0 %v13270_v32  ;;  %v13354_v12 = vld [vmem:[#allocation17 + $0x44] ss:$16 sps:$4 sm:$0xff]  }
 0x4c5   :  { %6043 = vmatprep.subr.bf16.mxu1 %v13273_v13  ;;  %v13357_v32 = vld [vmem:[#allocation17 + $0x244] ss:$16 sps:$4 sm:$0xff]   ;;  %v13352_v13 = vld [vmem:[#allocation17 + $0x40] ss:$16 sps:$4 sm:$0xff]  }
 0x4c7   :  { %5921 = vmatpush1.bf16.msra.mxu0 %v13268_v14  ;;  %v13355_v14 = vld [vmem:[#allocation17 + $0x240] ss:$16 sps:$4 sm:$0xff]  }
 0x4c8   :  { %6044 = vmatpush1.bf16.msra.mxu1 %v13271_v15  ;;  %5922 = vmatprep.subr.bf16.mxu0 %v13276_v16  ;;  %v13360_v15 = vld [vmem:[#allocation17 + $0x64] ss:$16 sps:$4 sm:$0xff]  }
 0x4c9   :  { %6045 = vmatprep.subr.bf16.mxu1 %v13279_v17  ;;  %v13363_v16 = vld [vmem:[#allocation17 + $0x264] ss:$16 sps:$4 sm:$0xff]   ;;  %v13358_v17 = vld [vmem:[#allocation17 + $0x60] ss:$16 sps:$4 sm:$0xff]  }
 0x4cb   :  { %5923 = vmatpush1.bf16.msra.mxu0 %v13274_v55  ;;  %v13361_v55 = vld [vmem:[#allocation17 + $0x260] ss:$16 sps:$4 sm:$0xff]  }
 0x4cc   :  { %6046 = vmatpush1.bf16.msra.mxu1 %v13277_v18  ;;  %5924 = vmatprep.subr.bf16.mxu0 %v13282_v19  ;;  %v13366_v18 = vld [vmem:[#allocation17 + $0x84] ss:$16 sps:$4 sm:$0xff]  }
 0x4cd   :  { %6047 = vmatprep.subr.bf16.mxu1 %v13285_v20  ;;  %v13369_v19 = vld [vmem:[#allocation17 + $0x284] ss:$16 sps:$4 sm:$0xff]   ;;  %v13364_v20 = vld [vmem:[#allocation17 + $0x80] ss:$16 sps:$4 sm:$0xff]  }
 0x4cf   :  { %5925 = vmatpush1.bf16.msra.mxu0 %v13280_v21  ;;  %v13367_v21 = vld [vmem:[#allocation17 + $0x280] ss:$16 sps:$4 sm:$0xff]  }
 0x4d0   :  { %6048 = vmatpush1.bf16.msra.mxu1 %v13283_v22  ;;  %5926 = vmatprep.subr.bf16.mxu0 %v13288_v11  ;;  %v13372_v22 = vld [vmem:[#allocation17 + $0xa4] ss:$16 sps:$4 sm:$0xff]  }
 0x4d1   :  { %6049 = vmatprep.subr.bf16.mxu1 %v13291_v25  ;;  %v13375_v11 = vld [vmem:[#allocation17 + $0x2a4] ss:$16 sps:$4 sm:$0xff]   ;;  %v13370_v25 = vld [vmem:[#allocation17 + $0xa0] ss:$16 sps:$4 sm:$0xff]  }
 0x4d3   :  { %5927 = vmatpush1.bf16.msra.mxu0 %v13286_v26  ;;  %v13373_v26 = vld [vmem:[#allocation17 + $0x2a0] ss:$16 sps:$4 sm:$0xff]  }
 0x4d4   :  { %6050 = vmatpush1.bf16.msra.mxu1 %v13289_v27  ;;  %5928 = vmatprep.subr.bf16.mxu0 %v13294_v57  ;;  %v13378_v27 = vld [vmem:[#allocation17 + $0xc4] ss:$16 sps:$4 sm:$0xff]  }
 0x4d5   :  { %6051 = vmatprep.subr.bf16.mxu1 %v13297_v3  ;;  %v13381_v3 = vld [vmem:[#allocation17 + $0x2c4] ss:$16 sps:$4 sm:$0xff]  }
 0x4d7   :  { %5929 = vmatpush1.bf16.msra.mxu0 %v13292_v51 }
 0x4d8   :  { %6052 = vmatpush1.bf16.msra.mxu1 %v13295_v52  ;;  %5930 = vmatprep.subr.bf16.mxu0 %v13300_v46 }
 0x4d9   :  { %6053 = vmatprep.subr.bf16.mxu1 %v13303_v4 }
 0x4db   :  { %5931 = vmatpush1.bf16.msra.mxu0 %v13298_v59  ;;  %v13376_v59 = vld [vmem:[#allocation17 + $0xc0] ss:$16 sps:$4 sm:$0xff]  }
 0x4dc   :  { %6054 = vmatpush1.bf16.msra.mxu1 %v13301_v28  ;;  %5932 = vmatprep.subr.bf16.mxu0 %v13306_v42 }
 0x4dd   :  { %6055 = vmatprep.subr.bf16.mxu1 %v13309_v29  ;;  %v13379_v29 = vld [vmem:[#allocation17 + $0x2c0] ss:$16 sps:$4 sm:$0xff]  }
 0x4df   :  { %5933 = vmatpush1.bf16.msra.mxu0 %v13304_v31  ;;  %v13384_v31 = vld [vmem:[#allocation17 + $0xe4] ss:$16 sps:$4 sm:$0xff]  }
 0x4e0   :  { %6056 = vmatpush1.bf16.msra.mxu1 %v13307_v34  ;;  %5934 = vmatprep.subr.bf16.mxu0 %v13312_v35  ;;  %v13387_v35 = vld [vmem:[#allocation17 + $0x2e4] ss:$16 sps:$4 sm:$0xff]  }
 0x4e1   :  { %6057 = vmatprep.subr.bf16.mxu1 %v13315_v33  ;;  %v13382_v33 = vld [vmem:[#allocation17 + $0xe0] ss:$16 sps:$4 sm:$0xff]  }
 0x4e3   :  { %5935 = vmatpush1.bf16.msra.mxu0 %v13310_v53  ;;  %v13385_v53 = vld [vmem:[#allocation17 + $0x2e0] ss:$16 sps:$4 sm:$0xff]  }
 0x4e4   :  { %6058 = vmatpush1.bf16.msra.mxu1 %v13313_v38  ;;  %5936 = vmatprep.subr.bf16.mxu0 %v13318_v36  ;;  %v13390_v38 = vld [vmem:[#allocation17 + $0x104] ss:$16 sps:$4 sm:$0xff]  }
 0x4e5   :  { %6059 = vmatprep.subr.bf16.mxu1 %v13321_v39  ;;  %v13393_v36 = vld [vmem:[#allocation17 + $0x304] ss:$16 sps:$4 sm:$0xff]   ;;  %v13388_v39 = vld [vmem:[#allocation17 + $0x100] ss:$16 sps:$4 sm:$0xff]  }
 0x4e7   :  { %5937 = vmatpush1.bf16.msra.mxu0 %v13316_v37  ;;  %v13391_v37 = vld [vmem:[#allocation17 + $0x300] ss:$16 sps:$4 sm:$0xff]  }
 0x4e8   :  { %6060 = vmatpush1.bf16.msra.mxu1 %v13319_v40  ;;  %5938 = vmatprep.subr.bf16.mxu0 %v13324_v41  ;;  %v13396_v40 = vld [vmem:[#allocation17 + $0x124] ss:$16 sps:$4 sm:$0xff]  }
 0x4e9   :  { %6061 = vmatprep.subr.bf16.mxu1 %v13327_v44  ;;  %v13399_v41 = vld [vmem:[#allocation17 + $0x324] ss:$16 sps:$4 sm:$0xff]   ;;  %v13394_v44 = vld [vmem:[#allocation17 + $0x120] ss:$16 sps:$4 sm:$0xff]  }
 0x4eb   :  { %5939 = vmatpush1.bf16.msra.mxu0 %v13322_v45  ;;  %v13397_v45 = vld [vmem:[#allocation17 + $0x320] ss:$16 sps:$4 sm:$0xff]  }
 0x4ec   :  { %6062 = vmatpush1.bf16.msra.mxu1 %v13325_v47  ;;  %5940 = vmatprep.subr.bf16.mxu0 %v13330_v23  ;;  %v13402_v47 = vld [vmem:[#allocation17 + $0x144] ss:$16 sps:$4 sm:$0xff]  }
 0x4ed   :  { %6063 = vmatprep.subr.bf16.mxu1 %v13333_v48  ;;  %v13405_v23 = vld [vmem:[#allocation17 + $0x344] ss:$16 sps:$4 sm:$0xff]   ;;  %v13400_v48 = vld [vmem:[#allocation17 + $0x140] ss:$16 sps:$4 sm:$0xff]  }
 0x4ef   :  { %5941 = vmatpush1.bf16.msra.mxu0 %v13328_v49  ;;  %v13403_v49 = vld [vmem:[#allocation17 + $0x340] ss:$16 sps:$4 sm:$0xff]  }
 0x4f0   :  { %6064 = vmatpush1.bf16.msra.mxu1 %v13331_v50  ;;  %5942 = vmatprep.subr.bf16.mxu0 %v13336_v60  ;;  %v13408_v50 = vld [vmem:[#allocation17 + $0x164] ss:$16 sps:$4 sm:$0xff]  }
 0x4f1   :  { %6065 = vmatprep.subr.bf16.mxu1 %v13339_v30  ;;  %v13411_v60 = vld [vmem:[#allocation17 + $0x364] ss:$16 sps:$4 sm:$0xff]   ;;  %v13406_v30 = vld [vmem:[#allocation17 + $0x160] ss:$16 sps:$4 sm:$0xff]  }
 0x4f3   :  { %5943 = vmatpush1.bf16.msra.mxu0 %v13334_v61  ;;  %v13409_v61 = vld [vmem:[#allocation17 + $0x360] ss:$16 sps:$4 sm:$0xff]  }
 0x4f4   :  { %6066 = vmatpush1.bf16.msra.mxu1 %v13337_v63  ;;  %6980 = vmatprep.subr.bf16.mxu0 %v13342_v43  ;;  %v13417_v63 = vld [vmem:[#allocation17 + $0x384] ss:$16 sps:$4 sm:$0xff]   ;;  %v13412_v43 = vld [vmem:[#allocation17 + $0x180] ss:$16 sps:$4 sm:$0xff]  }
 0x4f5   :  { %7021 = vmatprep.subr.bf16.mxu1 %v13345_v1  ;;  %v13415_v1 = vld [vmem:[#allocation17 + $0x380] ss:$16 sps:$4 sm:$0xff]  }
 0x4f6   :  { %5945 = vmatmul.mubr.bf16.vlgmr.msra.gmra.mrb[12].mxu0 %v4654_v2 }
 0x4f7   :  { %6068 = vmatmul.mubr.bf16.vlgmr.msra.gmra.mrb[28].mxu1 %v4654_v2  ;;  %6981 = vmatpush1.bf16.msra.mxu0 %v13340_v24  ;;  %v13420_v2 = vld [vmem:[#allocation17 + $0x1a4] ss:$16 sps:$4 sm:$0xff]  }
 0x4f8   :  { %7022 = vmatpush1.bf16.msra.mxu1 %v13343_v6  ;;  %6982 = vmatprep.subr.bf16.mxu0 %v13348_v8  ;;  %v13423_v24 = vld [vmem:[#allocation17 + $0x3a4] ss:$16 sps:$4 sm:$0xff]   ;;  %v13418_v6 = vld [vmem:[#allocation17 + $0x1a0] ss:$16 sps:$4 sm:$0xff]  }
 0x4f9   :  { %7023 = vmatprep.subr.bf16.mxu1 %v13351_v9  ;;  %v13421_v8 = vld [vmem:[#allocation17 + $0x3a0] ss:$16 sps:$4 sm:$0xff]   ;;  %v13426_v9 = vld [vmem:[#allocation17 + $0x1c4] ss:$16 sps:$4 sm:$0xff]  }
 0x4fb   :  { %6983 = vmatpush1.bf16.msra.mxu0 %v13346_v10  ;;  %v13429_v10 = vld [vmem:[#allocation17 + $0x3c4] ss:$16 sps:$4 sm:$0xff]  }
 0x4fc   :  { %7024 = vmatpush1.bf16.msra.mxu1 %v13349_v54  ;;  %6984 = vmatprep.subr.bf16.mxu0 %v13354_v12  ;;  %v13424_v54 = vld [vmem:[#allocation17 + $0x1c0] ss:$16 sps:$4 sm:$0xff]  }
 0x4fd   :  { %7025 = vmatprep.subr.bf16.mxu1 %v13357_v32  ;;  %v13427_v12 = vld [vmem:[#allocation17 + $0x3c0] ss:$16 sps:$4 sm:$0xff]   ;;  %v13432_v32 = vld [vmem:[#allocation17 + $0x1e4] ss:$16 sps:$4 sm:$0xff]  }
 0x4ff   :  { %6985 = vmatpush1.bf16.msra.mxu0 %v13352_v13  ;;  %v13435_v13 = vld [vmem:[#allocation17 + $0x3e4] ss:$16 sps:$4 sm:$0xff]  }
 0x500   :  { %7026 = vmatpush1.bf16.msra.mxu1 %v13355_v14  ;;  %6986 = vmatprep.subr.bf16.mxu0 %v13360_v15  ;;  %v13430_v14 = vld [vmem:[#allocation17 + $0x1e0] ss:$16 sps:$4 sm:$0xff]  }
 0x501   :  { %7027 = vmatprep.subr.bf16.mxu1 %v13363_v16  ;;  %v13433_v15 = vld [vmem:[#allocation17 + $0x3e0] ss:$16 sps:$4 sm:$0xff]   ;;  %v13438_v16 = vld [vmem:[#allocation17 + $0xc] ss:$16 sps:$4 sm:$0xff]  }
 0x503   :  { %6987 = vmatpush1.bf16.msra.mxu0 %v13358_v17  ;;  %v13441_v17 = vld [vmem:[#allocation17 + $0x20c] ss:$16 sps:$4 sm:$0xff]  }
 0x504   :  { %7028 = vmatpush1.bf16.msra.mxu1 %v13361_v55  ;;  %6988 = vmatprep.subr.bf16.mxu0 %v13366_v18  ;;  %v4848_v55 = vld [vmem:[#allocation14] sm:$0xf] }
 0x505   :  { %7029 = vmatprep.subr.bf16.mxu1 %v13369_v19  ;;  %v4853_v18 = vrot.slane %v4848_v55, %v15171_v56  ;;  %v4861_v19 = vrot.slane %v4848_v55, %v15214_v7 }
 0x507   :  { %6989 = vmatpush1.bf16.msra.mxu0 %v13364_v20  ;;  %v4857_v20 = vrot.slane %v4848_v55, %v15176_v58 }
 0x508   :  { %7030 = vmatpush1.bf16.msra.mxu1 %v13367_v21  ;;  %6990 = vmatprep.subr.bf16.mxu0 %v13372_v22  ;;  %v4865_v21 = vrot.slane %v4848_v55, %v15183_v5  ;;  %v13492_v55 = vld [vmem:[#allocation17 + $0x12c] ss:$16 sps:$4 sm:$0xff]  }
 0x509   :  { %v15265_v57 = vpop.f32.mrb[8].mxu0  ;;  %7031 = vmatprep.subr.bf16.mxu1 %v13375_v11 }
 0x50a   :  { %v15267_v51 = vpop.f32.mrb[24].mxu1  ;;  %v15269_v52 = vpop.f32.mrb[9].mxu0 }
 0x50b   :  { %v15271_v46 = vpop.f32.mrb[25].mxu1  ;;  %v4313_v4 = vpop.f32.mrb[10].mxu0  ;;  %6991 = vmatpush1.bf16.msra.mxu0 %v13370_v25 }
 0x50c   :  { %v4641_v28 = vpop.f32.mrb[26].mxu1  ;;  %v4314_v42 = vpop.f32.mrb[11].mxu0  ;;  %7032 = vmatpush1.bf16.msra.mxu1 %v13373_v26  ;;  %6992 = vmatprep.subr.bf16.mxu0 %v13378_v27 }
 0x50d   :  { %v4642_v34 = vpop.f32.mrb[27].mxu1  ;;  %7033 = vmatprep.subr.bf16.mxu1 %v13381_v3 }
 0x50f   :  { %6993 = vmatpush1.bf16.msra.mxu0 %v13376_v59 }
 0x510   :  { %7034 = vmatpush1.bf16.msra.mxu1 %v13379_v29  ;;  %6994 = vmatprep.subr.bf16.mxu0 %v13384_v31 }
 0x511   :  { %7035 = vmatprep.subr.bf16.mxu1 %v13387_v35  ;;  %v13436_v35 = vld [vmem:[#allocation17 + $0x8] ss:$16 sps:$4 sm:$0xff]  }
 0x513   :  { %6995 = vmatpush1.bf16.msra.mxu0 %v13382_v33 }
 0x514   :  { %7036 = vmatpush1.bf16.msra.mxu1 %v13385_v53  ;;  %6996 = vmatprep.subr.bf16.mxu0 %v13390_v38  ;;  %v13439_v38 = vld [vmem:[#allocation17 + $0x208] ss:$16 sps:$4 sm:$0xff]  }
 0x515   :  { %7037 = vmatprep.subr.bf16.mxu1 %v13393_v36 }
 0x517   :  { %6997 = vmatpush1.bf16.msra.mxu0 %v13388_v39  ;;  %v13444_v39 = vld [vmem:[#allocation17 + $0x2c] ss:$16 sps:$4 sm:$0xff]  }
 0x518   :  { %7038 = vmatpush1.bf16.msra.mxu1 %v13391_v37  ;;  %6998 = vmatprep.subr.bf16.mxu0 %v13396_v40  ;;  %v13447_v37 = vld [vmem:[#allocation17 + $0x22c] ss:$16 sps:$4 sm:$0xff]   ;;  %v13442_v40 = vld [vmem:[#allocation17 + $0x28] ss:$16 sps:$4 sm:$0xff]  }
 0x519   :  { %7039 = vmatprep.subr.bf16.mxu1 %v13399_v41  ;;  %v13445_v41 = vld [vmem:[#allocation17 + $0x228] ss:$16 sps:$4 sm:$0xff]  }
 0x51b   :  { %6999 = vmatpush1.bf16.msra.mxu0 %v13394_v44  ;;  %v13450_v44 = vld [vmem:[#allocation17 + $0x4c] ss:$16 sps:$4 sm:$0xff]  }
 0x51c   :  { %7040 = vmatpush1.bf16.msra.mxu1 %v13397_v45  ;;  %7000 = vmatprep.subr.bf16.mxu0 %v13402_v47  ;;  %v13453_v45 = vld [vmem:[#allocation17 + $0x24c] ss:$16 sps:$4 sm:$0xff]   ;;  %v13448_v47 = vld [vmem:[#allocation17 + $0x48] ss:$16 sps:$4 sm:$0xff]  }
 0x51d   :  { %7041 = vmatprep.subr.bf16.mxu1 %v13405_v23  ;;  %v13451_v23 = vld [vmem:[#allocation17 + $0x248] ss:$16 sps:$4 sm:$0xff]  }
 0x51f   :  { %7001 = vmatpush1.bf16.msra.mxu0 %v13400_v48  ;;  %v13456_v48 = vld [vmem:[#allocation17 + $0x6c] ss:$16 sps:$4 sm:$0xff]  }
 0x520   :  { %7042 = vmatpush1.bf16.msra.mxu1 %v13403_v49  ;;  %7002 = vmatprep.subr.bf16.mxu0 %v13408_v50  ;;  %v13459_v49 = vld [vmem:[#allocation17 + $0x26c] ss:$16 sps:$4 sm:$0xff]   ;;  %v13454_v50 = vld [vmem:[#allocation17 + $0x68] ss:$16 sps:$4 sm:$0xff]  }
 0x521   :  { %7043 = vmatprep.subr.bf16.mxu1 %v13411_v60  ;;  %v13457_v60 = vld [vmem:[#allocation17 + $0x268] ss:$16 sps:$4 sm:$0xff]  }
 0x523   :  { %7003 = vmatpush1.bf16.msra.mxu0 %v13406_v30  ;;  %v13462_v30 = vld [vmem:[#allocation17 + $0x8c] ss:$16 sps:$4 sm:$0xff]  }
 0x524   :  { %7044 = vmatpush1.bf16.msra.mxu1 %v13409_v61  ;;  %7004 = vmatprep.subr.bf16.mxu0 %v13414_v62  ;;  %v13465_v61 = vld [vmem:[#allocation17 + $0x28c] ss:$16 sps:$4 sm:$0xff]   ;;  %v13460_v62 = vld [vmem:[#allocation17 + $0x88] ss:$16 sps:$4 sm:$0xff]  }
 0x525   :  { %7045 = vmatprep.subr.bf16.mxu1 %v13417_v63  ;;  %v13463_v63 = vld [vmem:[#allocation17 + $0x288] ss:$16 sps:$4 sm:$0xff]  }
 0x527   :  { %7005 = vmatpush1.bf16.msra.mxu0 %v13412_v43  ;;  %v13468_v43 = vld [vmem:[#allocation17 + $0xac] ss:$16 sps:$4 sm:$0xff]  }
 0x528   :  { %7046 = vmatpush1.bf16.msra.mxu1 %v13415_v1  ;;  %7006 = vmatprep.subr.bf16.mxu0 %v13420_v2  ;;  %v13471_v1 = vld [vmem:[#allocation17 + $0x2ac] ss:$16 sps:$4 sm:$0xff]   ;;  %v13466_v2 = vld [vmem:[#allocation17 + $0xa8] ss:$16 sps:$4 sm:$0xff]  }
 0x529   :  { %7047 = vmatprep.subr.bf16.mxu1 %v13423_v24  ;;  %v13469_v24 = vld [vmem:[#allocation17 + $0x2a8] ss:$16 sps:$4 sm:$0xff]  }
 0x52b   :  { %7007 = vmatpush1.bf16.msra.mxu0 %v13418_v6  ;;  %v13474_v6 = vld [vmem:[#allocation17 + $0xcc] ss:$16 sps:$4 sm:$0xff]  }
 0x52c   :  { %7048 = vmatpush1.bf16.msra.mxu1 %v13421_v8  ;;  %7008 = vmatprep.subr.bf16.mxu0 %v13426_v9  ;;  %v13477_v8 = vld [vmem:[#allocation17 + $0x2cc] ss:$16 sps:$4 sm:$0xff]   ;;  %v13472_v9 = vld [vmem:[#allocation17 + $0xc8] ss:$16 sps:$4 sm:$0xff]  }
 0x52d   :  { %7049 = vmatprep.subr.bf16.mxu1 %v13429_v10  ;;  %v13475_v10 = vld [vmem:[#allocation17 + $0x2c8] ss:$16 sps:$4 sm:$0xff]  }
 0x52f   :  { %7009 = vmatpush1.bf16.msra.mxu0 %v13424_v54  ;;  %v13480_v54 = vld [vmem:[#allocation17 + $0xec] ss:$16 sps:$4 sm:$0xff]  }
 0x530   :  { %7050 = vmatpush1.bf16.msra.mxu1 %v13427_v12  ;;  %7010 = vmatprep.subr.bf16.mxu0 %v13432_v32  ;;  %v13483_v12 = vld [vmem:[#allocation17 + $0x2ec] ss:$16 sps:$4 sm:$0xff]   ;;  %v13478_v32 = vld [vmem:[#allocation17 + $0xe8] ss:$16 sps:$4 sm:$0xff]  }
 0x531   :  { %7051 = vmatprep.subr.bf16.mxu1 %v13435_v13  ;;  %v13481_v13 = vld [vmem:[#allocation17 + $0x2e8] ss:$16 sps:$4 sm:$0xff]  }
 0x533   :  { %7011 = vmatpush1.bf16.msra.mxu0 %v13430_v14  ;;  %v13486_v14 = vld [vmem:[#allocation17 + $0x10c] ss:$16 sps:$4 sm:$0xff]  }
 0x534   :  { %7052 = vmatpush1.bf16.msra.mxu1 %v13433_v15  ;;  %7062 = vmatprep.subr.bf16.mxu0 %v13438_v16  ;;  %v13489_v15 = vld [vmem:[#allocation17 + $0x30c] ss:$16 sps:$4 sm:$0xff]   ;;  %v13484_v16 = vld [vmem:[#allocation17 + $0x108] ss:$16 sps:$4 sm:$0xff]  }
 0x535   :  { %7103 = vmatprep.subr.bf16.mxu1 %v13441_v17  ;;  %v13487_v17 = vld [vmem:[#allocation17 + $0x308] ss:$16 sps:$4 sm:$0xff]  }
 0x5c9   :  { %v5946_v22 = vpop.f32.mrb[12].mxu0 }
 0x5ca   :  { %v15277_v11 = vadd.f32 %v5946_v22, %v4853_v18  ;;  %v6069_v25 = vpop.f32.mrb[28].mxu1  ;;  %v5948_v26 = vpop.f32.mrb[13].mxu0  ;;  %v13495_v18 = vld [vmem:[#allocation17 + $0x32c] ss:$16 sps:$4 sm:$0xff]  }
 0x5cb   :  { %v15279_v27 = vadd.f32 %v6069_v25, %v4861_v19  ;;  %v15281_v3 = vadd.f32 %v5948_v26, %v4857_v20  ;;  %v6071_v4 = vpop.f32.mrb[29].mxu1  ;;  %v5950_v59 = vpop.f32.mrb[14].mxu0  ;;  %v13490_v19 = vld [vmem:[#allocation17 + $0x128] ss:$16 sps:$4 sm:$0xff]   ;;  %v13501_v22 = vld [vmem:[#allocation17 + $0x34c] ss:$16 sps:$4 sm:$0xff]  }
 0x5cc   :  { %v15283_v28 = vadd.f32 %v6071_v4, %v4865_v21  ;;  %v6073_v42 = vpop.f32.mrb[30].mxu1  ;;  %v5951_v29 = vpop.f32.mrb[15].mxu0  ;;  %v15289_v33 = vpack.c.bf16 %v15277_v11, %v15277_v11  ;;  %v13493_v20 = vld [vmem:[#allocation17 + $0x328] ss:$16 sps:$4 sm:$0xff]   ;;  %v13498_v21 = vld [vmem:[#allocation17 + $0x14c] ss:$16 sps:$4 sm:$0xff]  }
 0x5cd   :  { %v6209_v31 = vpack.c.bf16 %v15281_v3, %v15281_v3  ;;  %v6074_v34 = vpop.f32.mrb[31].mxu1  ;;  %v15295_v36 = vpack.c.bf16 %v15279_v27, %v15279_v27  ;;  %v13496_v25 = vld [vmem:[#allocation17 + $0x148] ss:$16 sps:$4 sm:$0xff]   ;;  %v13504_v4 = vld [vmem:[#allocation17 + $0x16c] ss:$16 sps:$4 sm:$0xff]  }
 0x5ce   :  { %v6211_v53 = vpack.c.bf16 %v15283_v28, %v15283_v28  ;;  %v13499_v26 = vld [vmem:[#allocation17 + $0x348] ss:$16 sps:$4 sm:$0xff]   ;;  %v13507_v59 = vld [vmem:[#allocation17 + $0x36c] ss:$16 sps:$4 sm:$0xff]  }
 0x5cf   :  { %7012 = vmatprep.mubr.bf16.mxu0 %v6209_v31  ;;  %v13502_v42 = vld [vmem:[#allocation17 + $0x168] ss:$16 sps:$4 sm:$0xff]   ;;  %v13513_v34 = vld [vmem:[#allocation17 + $0x38c] ss:$16 sps:$4 sm:$0xff]  }
 0x5d0   :  { %7053 = vmatprep.mubr.bf16.mxu1 %v6211_v53  ;;  %7013 = vmatmul.mubr.bf16.vlgmr.msra.gmra.mrb[16].mxu0 %v15289_v33  ;;  %v13505_v29 = vld [vmem:[#allocation17 + $0x368] ss:$16 sps:$4 sm:$0xff]  }
 0x5d1   :  { %7054 = vmatmul.mubr.bf16.vlgmr.msra.gmra.mrb[32].mxu1 %v15295_v36  ;;  %7063 = vmatpush1.bf16.msra.mxu0 %v13436_v35  ;;  %v13508_v35 = vld [vmem:[#allocation17 + $0x188] ss:$16 sps:$4 sm:$0xff]  }
 0x5d2   :  { %7104 = vmatpush1.bf16.msra.mxu1 %v13439_v38  ;;  %7094 = vmatprep.mubr.bf16.mxu0 %v6209_v31  ;;  %v13510_v31 = vld [vmem:[#allocation17 + $0x18c] ss:$16 sps:$4 sm:$0xff]  }
 0x5d3   :  { %7135 = vmatprep.mubr.bf16.mxu1 %v6211_v53  ;;  %7064 = vmatprep.subr.bf16.mxu0 %v13444_v39  ;;  %v13511_v53 = vld [vmem:[#allocation17 + $0x388] ss:$16 sps:$4 sm:$0xff]   ;;  %v13516_v38 = vld [vmem:[#allocation17 + $0x1ac] ss:$16 sps:$4 sm:$0xff]  }
 0x5d4   :  { %7105 = vmatprep.subr.bf16.mxu1 %v13447_v37  ;;  %v13519_v39 = vld [vmem:[#allocation17 + $0x3ac] ss:$16 sps:$4 sm:$0xff]   ;;  %v13514_v37 = vld [vmem:[#allocation17 + $0x1a8] ss:$16 sps:$4 sm:$0xff]  }
 0x5d5   :  { %7065 = vmatpush1.bf16.msra.mxu0 %v13442_v40  ;;  %v13517_v40 = vld [vmem:[#allocation17 + $0x3a8] ss:$16 sps:$4 sm:$0xff]  }
 0x5d6   :  { %7106 = vmatpush1.bf16.msra.mxu1 %v13445_v41  ;;  %7066 = vmatprep.subr.bf16.mxu0 %v13450_v44  ;;  %v13522_v41 = vld [vmem:[#allocation17 + $0x1cc] ss:$16 sps:$4 sm:$0xff]  }
 0x5d7   :  { %7107 = vmatprep.subr.bf16.mxu1 %v13453_v45  ;;  %v13525_v44 = vld [vmem:[#allocation17 + $0x3cc] ss:$16 sps:$4 sm:$0xff]   ;;  %v15299_v45 = vld [vmem:[#allocation11] sm:$0xf] }
 0x5d9   :  { %7067 = vmatpush1.bf16.msra.mxu0 %v13448_v47  ;;  %v13520_v47 = vld [vmem:[#allocation17 + $0x1c8] ss:$16 sps:$4 sm:$0xff]  }
 0x5da   :  { %7108 = vmatpush1.bf16.msra.mxu1 %v13451_v23  ;;  %7068 = vmatprep.subr.bf16.mxu0 %v13456_v48  ;;  %v13523_v23 = vld [vmem:[#allocation17 + $0x3c8] ss:$16 sps:$4 sm:$0xff]   ;;  %v13528_v48 = vld [vmem:[#allocation17 + $0x1ec] ss:$16 sps:$4 sm:$0xff]  }
 0x5db   :  { %7109 = vmatprep.subr.bf16.mxu1 %v13459_v49  ;;  %v13531_v49 = vld [vmem:[#allocation17 + $0x3ec] ss:$16 sps:$4 sm:$0xff]  }
 0x5dd   :  { %7069 = vmatpush1.bf16.msra.mxu0 %v13454_v50  ;;  %v1415_v50 = vrot.slane %v15299_v45, %v15176_v58 }
 0x5de   :  { %7110 = vmatpush1.bf16.msra.mxu1 %v13457_v60  ;;  %7070 = vmatprep.subr.bf16.mxu0 %v13462_v30  ;;  %v1423_v60 = vrot.slane %v15299_v45, %v15183_v5  ;;  %v13526_v30 = vld [vmem:[#allocation17 + $0x1e8] ss:$16 sps:$4 sm:$0xff]  }
 0x5df   :  { %7111 = vmatprep.subr.bf16.mxu1 %v13465_v61  ;;  %v13529_v61 = vld [vmem:[#allocation17 + $0x3e8] ss:$16 sps:$4 sm:$0xff]  }
 0x5e1   :  { %7071 = vmatpush1.bf16.msra.mxu0 %v13460_v62  ;;  %v13534_v62 = vld [vmem:[#allocation16 + $0x4] ss:$16 sps:$4 sm:$0xff]  }
 0x5e2   :  { %7112 = vmatpush1.bf16.msra.mxu1 %v13463_v63  ;;  %7072 = vmatprep.subr.bf16.mxu0 %v13468_v43  ;;  %v13537_v63 = vld [vmem:[#allocation16 + $0x204] ss:$16 sps:$4 sm:$0xff]   ;;  %v15306_v43 = vadd.f32 %v15269_v52, %v1415_v50 }
 0x5e3   :  { %7113 = vmatprep.subr.bf16.mxu1 %v13471_v1  ;;  %v15309_v1 = vadd.f32 %v15271_v46, %v1423_v60  ;;  %v13538_v46 = vld [vmem:[#allocation16 + $0x20] ss:$16 sps:$4 sm:$0xff]   ;;  %v13600_v50 = vld [vmem:[#allocation16 + $0x164] ss:$16 sps:$4 sm:$0xff]  }
 0x5e4   :  { %v13603_v60 = vld [vmem:[#allocation16 + $0x364] ss:$16 sps:$4 sm:$0xff]  }
 0x5e5   :  { %7073 = vmatpush1.bf16.msra.mxu0 %v13466_v2  ;;  %v13532_v2 = vld [vmem:[#allocation16] ss:$16 sps:$4 sm:$0xff]   ;;  %v15318_v52 = vpack.c.bf16 %v15309_v1, %v15309_v1 }
 0x5e6   :  { %7114 = vmatpush1.bf16.msra.mxu1 %v13469_v24  ;;  %7074 = vmatprep.subr.bf16.mxu0 %v13474_v6  ;;  %v13535_v24 = vld [vmem:[#allocation16 + $0x200] ss:$16 sps:$4 sm:$0xff]   ;;  %v13540_v6 = vld [vmem:[#allocation16 + $0x24] ss:$16 sps:$4 sm:$0xff]  }
 0x5e7   :  { %7115 = vmatprep.subr.bf16.mxu1 %v13477_v8  ;;  %v15313_v8 = vpack.c.bf16 %v15306_v43, %v15306_v43 }
 0x5e9   :  { %7075 = vmatpush1.bf16.msra.mxu0 %v13472_v9  ;;  %v13543_v9 = vld [vmem:[#allocation16 + $0x224] ss:$16 sps:$4 sm:$0xff]  }
 0x5ea   :  { %7116 = vmatpush1.bf16.msra.mxu1 %v13475_v10  ;;  %7076 = vmatprep.subr.bf16.mxu0 %v13480_v54  ;;  %v13541_v10 = vld [vmem:[#allocation16 + $0x220] ss:$16 sps:$4 sm:$0xff]   ;;  %v13546_v54 = vld [vmem:[#allocation16 + $0x44] ss:$16 sps:$4 sm:$0xff]  }
 0x5eb   :  { %7117 = vmatprep.subr.bf16.mxu1 %v13483_v12  ;;  %v13549_v12 = vld [vmem:[#allocation16 + $0x244] ss:$16 sps:$4 sm:$0xff]  }
 0x5ed   :  { %7077 = vmatpush1.bf16.msra.mxu0 %v13478_v32  ;;  %v13547_v32 = vld [vmem:[#allocation16 + $0x240] ss:$16 sps:$4 sm:$0xff]  }
 0x5ee   :  { %7118 = vmatpush1.bf16.msra.mxu1 %v13481_v13  ;;  %7078 = vmatprep.subr.bf16.mxu0 %v13486_v14  ;;  %v13552_v13 = vld [vmem:[#allocation16 + $0x64] ss:$16 sps:$4 sm:$0xff]   ;;  %v13550_v14 = vld [vmem:[#allocation16 + $0x60] ss:$16 sps:$4 sm:$0xff]  }
 0x5ef   :  { %7119 = vmatprep.subr.bf16.mxu1 %v13489_v15  ;;  %v13553_v15 = vld [vmem:[#allocation16 + $0x260] ss:$16 sps:$4 sm:$0xff]  }
 0x5f1   :  { %7079 = vmatpush1.bf16.msra.mxu0 %v13484_v16  ;;  %v13558_v16 = vld [vmem:[#allocation16 + $0x84] ss:$16 sps:$4 sm:$0xff]  }
 0x5f2   :  { %7120 = vmatpush1.bf16.msra.mxu1 %v13487_v17  ;;  %7080 = vmatprep.subr.bf16.mxu0 %v13492_v55  ;;  %v13561_v17 = vld [vmem:[#allocation16 + $0x284] ss:$16 sps:$4 sm:$0xff]   ;;  %v13556_v55 = vld [vmem:[#allocation16 + $0x80] ss:$16 sps:$4 sm:$0xff]  }
 0x5f3   :  { %7121 = vmatprep.subr.bf16.mxu1 %v13495_v18  ;;  %v13559_v18 = vld [vmem:[#allocation16 + $0x280] ss:$16 sps:$4 sm:$0xff]  }
 0x5f5   :  { %7081 = vmatpush1.bf16.msra.mxu0 %v13490_v19  ;;  %v13564_v19 = vld [vmem:[#allocation16 + $0xa4] ss:$16 sps:$4 sm:$0xff]  }
 0x5f6   :  { %7122 = vmatpush1.bf16.msra.mxu1 %v13493_v20  ;;  %7082 = vmatprep.subr.bf16.mxu0 %v13498_v21  ;;  %v13567_v20 = vld [vmem:[#allocation16 + $0x2a4] ss:$16 sps:$4 sm:$0xff]   ;;  %v13562_v21 = vld [vmem:[#allocation16 + $0xa0] ss:$16 sps:$4 sm:$0xff]  }
 0x5f7   :  { %7123 = vmatprep.subr.bf16.mxu1 %v13501_v22  ;;  %v13565_v22 = vld [vmem:[#allocation16 + $0x2a0] ss:$16 sps:$4 sm:$0xff]  }
 0x5f9   :  { %7083 = vmatpush1.bf16.msra.mxu0 %v13496_v25  ;;  %v13570_v25 = vld [vmem:[#allocation16 + $0xc4] ss:$16 sps:$4 sm:$0xff]  }
 0x5fa   :  { %7124 = vmatpush1.bf16.msra.mxu1 %v13499_v26  ;;  %7084 = vmatprep.subr.bf16.mxu0 %v13504_v4  ;;  %v13573_v26 = vld [vmem:[#allocation16 + $0x2c4] ss:$16 sps:$4 sm:$0xff]   ;;  %v13568_v4 = vld [vmem:[#allocation16 + $0xc0] ss:$16 sps:$4 sm:$0xff]  }
 0x5fb   :  { %7125 = vmatprep.subr.bf16.mxu1 %v13507_v59  ;;  %v13571_v59 = vld [vmem:[#allocation16 + $0x2c0] ss:$16 sps:$4 sm:$0xff]  }
 0x5fd   :  { %7085 = vmatpush1.bf16.msra.mxu0 %v13502_v42  ;;  %v13576_v42 = vld [vmem:[#allocation16 + $0xe4] ss:$16 sps:$4 sm:$0xff]  }
 0x5fe   :  { %7126 = vmatpush1.bf16.msra.mxu1 %v13505_v29  ;;  %7086 = vmatprep.subr.bf16.mxu0 %v13510_v31  ;;  %v13579_v29 = vld [vmem:[#allocation16 + $0x2e4] ss:$16 sps:$4 sm:$0xff]   ;;  %v13574_v31 = vld [vmem:[#allocation16 + $0xe0] ss:$16 sps:$4 sm:$0xff]  }
 0x5ff   :  { %7127 = vmatprep.subr.bf16.mxu1 %v13513_v34  ;;  %v13577_v34 = vld [vmem:[#allocation16 + $0x2e0] ss:$16 sps:$4 sm:$0xff]  }
 0x601   :  { %7087 = vmatpush1.bf16.msra.mxu0 %v13508_v35  ;;  %v13582_v35 = vld [vmem:[#allocation16 + $0x104] ss:$16 sps:$4 sm:$0xff]  }
 0x602   :  { %7128 = vmatpush1.bf16.msra.mxu1 %v13511_v53  ;;  %7088 = vmatprep.subr.bf16.mxu0 %v13516_v38  ;;  %v13585_v53 = vld [vmem:[#allocation16 + $0x304] ss:$16 sps:$4 sm:$0xff]   ;;  %v13580_v38 = vld [vmem:[#allocation16 + $0x100] ss:$16 sps:$4 sm:$0xff]  }
 0x603   :  { %7129 = vmatprep.subr.bf16.mxu1 %v13519_v39  ;;  %v13583_v39 = vld [vmem:[#allocation16 + $0x300] ss:$16 sps:$4 sm:$0xff]  }
 0x605   :  { %7089 = vmatpush1.bf16.msra.mxu0 %v13514_v37  ;;  %v13588_v37 = vld [vmem:[#allocation16 + $0x124] ss:$16 sps:$4 sm:$0xff]  }
 0x606   :  { %7130 = vmatpush1.bf16.msra.mxu1 %v13517_v40  ;;  %7090 = vmatprep.subr.bf16.mxu0 %v13522_v41  ;;  %v13591_v40 = vld [vmem:[#allocation16 + $0x324] ss:$16 sps:$4 sm:$0xff]   ;;  %v13586_v41 = vld [vmem:[#allocation16 + $0x120] ss:$16 sps:$4 sm:$0xff]  }
 0x607   :  { %7131 = vmatprep.subr.bf16.mxu1 %v13525_v44  ;;  %v13589_v44 = vld [vmem:[#allocation16 + $0x320] ss:$16 sps:$4 sm:$0xff]  }
 0x609   :  { %7091 = vmatpush1.bf16.msra.mxu0 %v13520_v47  ;;  %v13594_v47 = vld [vmem:[#allocation16 + $0x144] ss:$16 sps:$4 sm:$0xff]  }
 0x60a   :  { %7132 = vmatpush1.bf16.msra.mxu1 %v13523_v23  ;;  %7092 = vmatprep.subr.bf16.mxu0 %v13528_v48  ;;  %v13597_v23 = vld [vmem:[#allocation16 + $0x344] ss:$16 sps:$4 sm:$0xff]   ;;  %v13592_v48 = vld [vmem:[#allocation16 + $0x140] ss:$16 sps:$4 sm:$0xff]  }
 0x60b   :  { %7133 = vmatprep.subr.bf16.mxu1 %v13531_v49  ;;  %v13595_v49 = vld [vmem:[#allocation16 + $0x340] ss:$16 sps:$4 sm:$0xff]  }
 0x60d   :  { %7093 = vmatpush1.bf16.msra.mxu0 %v13526_v30  ;;  %v13598_v30 = vld [vmem:[#allocation16 + $0x160] ss:$16 sps:$4 sm:$0xff]  }
 0x60e   :  { %7134 = vmatpush1.bf16.msra.mxu1 %v13529_v61  ;;  %7784 = vmatprep.subr.bf16.mxu0 %v13534_v62  ;;  %v13601_v61 = vld [vmem:[#allocation16 + $0x360] ss:$16 sps:$4 sm:$0xff]   ;;  %v13606_v62 = vld [vmem:[#allocation16 + $0x184] ss:$16 sps:$4 sm:$0xff]  }
 0x60f   :  { %7825 = vmatprep.subr.bf16.mxu1 %v13537_v63  ;;  %v13609_v63 = vld [vmem:[#allocation16 + $0x384] ss:$16 sps:$4 sm:$0xff]  }
 0x610   :  { %7095 = vmatmul.mubr.bf16.vlgmr.msra.gmra.mrb[20].mxu0 %v15289_v33  ;;  %v13544_v33 = vld [vmem:[#allocation16 + $0x40] ss:$16 sps:$4 sm:$0xff]  }
 0x611   :  { %7136 = vmatmul.mubr.bf16.vlgmr.msra.gmra.mrb[36].mxu1 %v15295_v36  ;;  %7785 = vmatpush1.bf16.msra.mxu0 %v13532_v2  ;;  %v13555_v36 = vld [vmem:[#allocation16 + $0x264] ss:$16 sps:$4 sm:$0xff]   ;;  %v13604_v2 = vld [vmem:[#allocation16 + $0x180] ss:$16 sps:$4 sm:$0xff]  }
 0x612   :  { %7816 = vmatprep.mubr.bf16.mxu0 %v15313_v8  ;;  %7826 = vmatpush1.bf16.msra.mxu1 %v13535_v24  ;;  %v13607_v24 = vld [vmem:[#allocation16 + $0x380] ss:$16 sps:$4 sm:$0xff]  }
 0x613   :  { %7857 = vmatprep.mubr.bf16.mxu1 %v15318_v52  ;;  %7786 = vmatprep.subr.bf16.mxu0 %v13540_v6  ;;  %v13612_v6 = vld [vmem:[#allocation16 + $0x1a4] ss:$16 sps:$4 sm:$0xff]  }
 0x614   :  { %7827 = vmatprep.subr.bf16.mxu1 %v13543_v9  ;;  %v13615_v9 = vld [vmem:[#allocation16 + $0x3a4] ss:$16 sps:$4 sm:$0xff]  }
 0x615   :  { %7787 = vmatpush1.bf16.msra.mxu0 %v13538_v46  ;;  %v13610_v46 = vld [vmem:[#allocation16 + $0x1a0] ss:$16 sps:$4 sm:$0xff]  }
 0x616   :  { %7828 = vmatpush1.bf16.msra.mxu1 %v13541_v10  ;;  %7788 = vmatprep.subr.bf16.mxu0 %v13546_v54  ;;  %v13613_v10 = vld [vmem:[#allocation16 + $0x3a0] ss:$16 sps:$4 sm:$0xff]   ;;  %v13618_v54 = vld [vmem:[#allocation16 + $0x1c4] ss:$16 sps:$4 sm:$0xff]  }
 0x617   :  { %7829 = vmatprep.subr.bf16.mxu1 %v13549_v12  ;;  %v13621_v12 = vld [vmem:[#allocation16 + $0x3c4] ss:$16 sps:$4 sm:$0xff]  }
 0x619   :  { %7789 = vmatpush1.bf16.msra.mxu0 %v13544_v33  ;;  %v13616_v33 = vld [vmem:[#allocation16 + $0x1c0] ss:$16 sps:$4 sm:$0xff]  }
 0x61a   :  { %7830 = vmatpush1.bf16.msra.mxu1 %v13547_v32  ;;  %7790 = vmatprep.subr.bf16.mxu0 %v13552_v13  ;;  %v1411_v32 = vrot.slane %v15299_v45, %v15171_v56  ;;  %v13619_v13 = vld [vmem:[#allocation16 + $0x3c0] ss:$16 sps:$4 sm:$0xff]  }
 0x61b   :  { %7831 = vmatprep.subr.bf16.mxu1 %v13555_v36  ;;  %v13624_v36 = vld [vmem:[#allocation16 + $0x1e4] ss:$16 sps:$4 sm:$0xff]  }
 0x61d   :  { %7791 = vmatpush1.bf16.msra.mxu0 %v13550_v14  ;;  %v1419_v14 = vrot.slane %v15299_v45, %v15214_v7 }
 0x61e   :  { %7832 = vmatpush1.bf16.msra.mxu1 %v13553_v15  ;;  %7792 = vmatprep.subr.bf16.mxu0 %v13558_v16  ;;  %v13627_v15 = vld [vmem:[#allocation16 + $0x3e4] ss:$16 sps:$4 sm:$0xff]   ;;  %v13622_v16 = vld [vmem:[#allocation16 + $0x1e0] ss:$16 sps:$4 sm:$0xff]  }
 0x61f   :  { %7833 = vmatprep.subr.bf16.mxu1 %v13561_v17  ;;  %v15328_v17 = vadd.f32 %v15265_v57, %v1411_v32  ;;  %v13688_v32 = vld [vmem:[#allocation16 + $0x148] ss:$16 sps:$4 sm:$0xff]  }
 0x621   :  { %7793 = vmatpush1.bf16.msra.mxu0 %v13556_v55  ;;  %v13625_v55 = vld [vmem:[#allocation16 + $0x3e0] ss:$16 sps:$4 sm:$0xff]   ;;  %v15335_v45 = vpack.c.bf16 %v15328_v17, %v15328_v17 }
 0x622   :  { %7834 = vmatpush1.bf16.msra.mxu1 %v13559_v18  ;;  %7794 = vmatprep.subr.bf16.mxu0 %v13564_v19  ;;  %v13630_v18 = vld [vmem:[#allocation16 + $0xc] ss:$16 sps:$4 sm:$0xff]   ;;  %v15331_v19 = vadd.f32 %v15267_v51, %v1419_v14 }
 0x623   :  { %7835 = vmatprep.subr.bf16.mxu1 %v13567_v20  ;;  %v13633_v20 = vld [vmem:[#allocation16 + $0x20c] ss:$16 sps:$4 sm:$0xff]  }
 0x624   :  { %v15339_v57 = vpack.c.bf16 %v15331_v19, %v15331_v19  ;;  %v13639_v51 = vld [vmem:[#allocation16 + $0x22c] ss:$16 sps:$4 sm:$0xff]  }
 0x625   :  { %7795 = vmatpush1.bf16.msra.mxu0 %v13562_v21  ;;  %v13628_v21 = vld [vmem:[#allocation16 + $0x8] ss:$16 sps:$4 sm:$0xff]   ;;  %v13699_v14 = vld [vmem:[#allocation16 + $0x36c] ss:$16 sps:$4 sm:$0xff]  }
 0x626   :  { %7836 = vmatpush1.bf16.msra.mxu1 %v13565_v22  ;;  %7796 = vmatprep.subr.bf16.mxu0 %v13570_v25  ;;  %v13631_v22 = vld [vmem:[#allocation16 + $0x208] ss:$16 sps:$4 sm:$0xff]   ;;  %v13636_v25 = vld [vmem:[#allocation16 + $0x2c] ss:$16 sps:$4 sm:$0xff]  }
 0x627   :  { %7837 = vmatprep.subr.bf16.mxu1 %v13573_v26  ;;  %v13634_v26 = vld [vmem:[#allocation16 + $0x28] ss:$16 sps:$4 sm:$0xff]  }
 0x629   :  { %7797 = vmatpush1.bf16.msra.mxu0 %v13568_v4  ;;  %v13637_v4 = vld [vmem:[#allocation16 + $0x228] ss:$16 sps:$4 sm:$0xff]  }
 0x62a   :  { %7838 = vmatpush1.bf16.msra.mxu1 %v13571_v59  ;;  %7798 = vmatprep.subr.bf16.mxu0 %v13576_v42  ;;  %v13642_v59 = vld [vmem:[#allocation16 + $0x4c] ss:$16 sps:$4 sm:$0xff]  }
 0x62b   :  { %7839 = vmatprep.subr.bf16.mxu1 %v13579_v29  ;;  %v13645_v42 = vld [vmem:[#allocation16 + $0x24c] ss:$16 sps:$4 sm:$0xff]   ;;  %v13640_v29 = vld [vmem:[#allocation16 + $0x48] ss:$16 sps:$4 sm:$0xff]  }
 0x62d   :  { %7799 = vmatpush1.bf16.msra.mxu0 %v13574_v31  ;;  %v13643_v31 = vld [vmem:[#allocation16 + $0x248] ss:$16 sps:$4 sm:$0xff]  }
 0x62e   :  { %7840 = vmatpush1.bf16.msra.mxu1 %v13577_v34  ;;  %7800 = vmatprep.subr.bf16.mxu0 %v13582_v35  ;;  %v13648_v34 = vld [vmem:[#allocation16 + $0x6c] ss:$16 sps:$4 sm:$0xff]  }
 0x62f   :  { %7841 = vmatprep.subr.bf16.mxu1 %v13585_v53  ;;  %v13651_v35 = vld [vmem:[#allocation16 + $0x26c] ss:$16 sps:$4 sm:$0xff]   ;;  %v13646_v53 = vld [vmem:[#allocation16 + $0x68] ss:$16 sps:$4 sm:$0xff]  }
 0x631   :  { %7801 = vmatpush1.bf16.msra.mxu0 %v13580_v38  ;;  %v13654_v38 = vld [vmem:[#allocation16 + $0x8c] ss:$16 sps:$4 sm:$0xff]  }
 0x632   :  { %7842 = vmatpush1.bf16.msra.mxu1 %v13583_v39  ;;  %7802 = vmatprep.subr.bf16.mxu0 %v13588_v37  ;;  %v13657_v39 = vld [vmem:[#allocation16 + $0x28c] ss:$16 sps:$4 sm:$0xff]   ;;  %v13655_v37 = vld [vmem:[#allocation16 + $0x288] ss:$16 sps:$4 sm:$0xff]  }
 0x633   :  { %7843 = vmatprep.subr.bf16.mxu1 %v13591_v40  ;;  %v13660_v40 = vld [vmem:[#allocation16 + $0xac] ss:$16 sps:$4 sm:$0xff]  }
 0x635   :  { %7803 = vmatpush1.bf16.msra.mxu0 %v13586_v41  ;;  %v13663_v41 = vld [vmem:[#allocation16 + $0x2ac] ss:$16 sps:$4 sm:$0xff]  }
 0x636   :  { %7844 = vmatpush1.bf16.msra.mxu1 %v13589_v44  ;;  %7804 = vmatprep.subr.bf16.mxu0 %v13594_v47  ;;  %v13658_v44 = vld [vmem:[#allocation16 + $0xa8] ss:$16 sps:$4 sm:$0xff]  }
 0x637   :  { %7845 = vmatprep.subr.bf16.mxu1 %v13597_v23  ;;  %v13661_v47 = vld [vmem:[#allocation16 + $0x2a8] ss:$16 sps:$4 sm:$0xff]   ;;  %v13666_v23 = vld [vmem:[#allocation16 + $0xcc] ss:$16 sps:$4 sm:$0xff]  }
 0x639   :  { %7805 = vmatpush1.bf16.msra.mxu0 %v13592_v48  ;;  %v13669_v48 = vld [vmem:[#allocation16 + $0x2cc] ss:$16 sps:$4 sm:$0xff]  }
 0x63a   :  { %7846 = vmatpush1.bf16.msra.mxu1 %v13595_v49  ;;  %7806 = vmatprep.subr.bf16.mxu0 %v13600_v50  ;;  %v13664_v49 = vld [vmem:[#allocation16 + $0xc8] ss:$16 sps:$4 sm:$0xff]  }
 0x63b   :  { %7847 = vmatprep.subr.bf16.mxu1 %v13603_v60  ;;  %v13667_v50 = vld [vmem:[#allocation16 + $0x2c8] ss:$16 sps:$4 sm:$0xff]   ;;  %v13672_v60 = vld [vmem:[#allocation16 + $0xec] ss:$16 sps:$4 sm:$0xff]  }
 0x63d   :  { %7807 = vmatpush1.bf16.msra.mxu0 %v13598_v30  ;;  %v13675_v30 = vld [vmem:[#allocation16 + $0x2ec] ss:$16 sps:$4 sm:$0xff]  }
 0x63e   :  { %7848 = vmatpush1.bf16.msra.mxu1 %v13601_v61  ;;  %7808 = vmatprep.subr.bf16.mxu0 %v13606_v62  ;;  %v13670_v61 = vld [vmem:[#allocation16 + $0xe8] ss:$16 sps:$4 sm:$0xff]  }
 0x63f   :  { %7849 = vmatprep.subr.bf16.mxu1 %v13609_v63  ;;  %v13673_v62 = vld [vmem:[#allocation16 + $0x2e8] ss:$16 sps:$4 sm:$0xff]   ;;  %v13678_v63 = vld [vmem:[#allocation16 + $0x10c] ss:$16 sps:$4 sm:$0xff]  }
 0x641   :  { %7809 = vmatpush1.bf16.msra.mxu0 %v13604_v2  ;;  %v13681_v2 = vld [vmem:[#allocation16 + $0x30c] ss:$16 sps:$4 sm:$0xff]  }
 0x642   :  { %7850 = vmatpush1.bf16.msra.mxu1 %v13607_v24  ;;  %7810 = vmatprep.subr.bf16.mxu0 %v13612_v6  ;;  %v13676_v24 = vld [vmem:[#allocation16 + $0x108] ss:$16 sps:$4 sm:$0xff]  }
 0x643   :  { %7851 = vmatprep.subr.bf16.mxu1 %v13615_v9  ;;  %v13679_v6 = vld [vmem:[#allocation16 + $0x308] ss:$16 sps:$4 sm:$0xff]   ;;  %v13684_v9 = vld [vmem:[#allocation16 + $0x12c] ss:$16 sps:$4 sm:$0xff]  }
 0x645   :  { %7811 = vmatpush1.bf16.msra.mxu0 %v13610_v46  ;;  %v13687_v46 = vld [vmem:[#allocation16 + $0x32c] ss:$16 sps:$4 sm:$0xff]  }
 0x646   :  { %7852 = vmatpush1.bf16.msra.mxu1 %v13613_v10  ;;  %7812 = vmatprep.subr.bf16.mxu0 %v13618_v54  ;;  %v13682_v10 = vld [vmem:[#allocation16 + $0x128] ss:$16 sps:$4 sm:$0xff]  }
 0x647   :  { %7853 = vmatprep.subr.bf16.mxu1 %v13621_v12  ;;  %v13685_v54 = vld [vmem:[#allocation16 + $0x328] ss:$16 sps:$4 sm:$0xff]   ;;  %v13690_v12 = vld [vmem:[#allocation16 + $0x14c] ss:$16 sps:$4 sm:$0xff]  }
 0x649   :  { %7813 = vmatpush1.bf16.msra.mxu0 %v13616_v33  ;;  %v13693_v33 = vld [vmem:[#allocation16 + $0x34c] ss:$16 sps:$4 sm:$0xff]  }
 0x64a   :  { %7854 = vmatpush1.bf16.msra.mxu1 %v13619_v13  ;;  %7814 = vmatprep.subr.bf16.mxu0 %v13624_v36  ;;  %v13691_v13 = vld [vmem:[#allocation16 + $0x348] ss:$16 sps:$4 sm:$0xff]   ;;  %v13696_v36 = vld [vmem:[#allocation16 + $0x16c] ss:$16 sps:$4 sm:$0xff]  }
 0x64b   :  { %7855 = vmatprep.subr.bf16.mxu1 %v13627_v15  ;;  %v13694_v15 = vld [vmem:[#allocation16 + $0x168] ss:$16 sps:$4 sm:$0xff]  }
 0x64d   :  { %7815 = vmatpush1.bf16.msra.mxu0 %v13622_v16  ;;  %v13697_v16 = vld [vmem:[#allocation16 + $0x368] ss:$16 sps:$4 sm:$0xff]  }
 0x64e   :  { %7856 = vmatpush1.bf16.msra.mxu1 %v13625_v55  ;;  %7866 = vmatprep.subr.bf16.mxu0 %v13630_v18  ;;  %v13702_v55 = vld [vmem:[#allocation16 + $0x18c] ss:$16 sps:$4 sm:$0xff]  }
 0x64f   :  { %7907 = vmatprep.subr.bf16.mxu1 %v13633_v20  ;;  %v13705_v18 = vld [vmem:[#allocation16 + $0x38c] ss:$16 sps:$4 sm:$0xff]   ;;  %v13700_v20 = vld [vmem:[#allocation16 + $0x188] ss:$16 sps:$4 sm:$0xff]  }
 0x650   :  { %7817 = vmatmul.mubr.bf16.vlgmr.msra.gmra.mrb[24].mxu0 %v15335_v45 }
 0x651   :  { %7858 = vmatmul.mubr.bf16.vlgmr.msra.gmra.mrb[40].mxu1 %v15339_v57  ;;  %7867 = vmatpush1.bf16.msra.mxu0 %v13628_v21  ;;  %v13703_v21 = vld [vmem:[#allocation16 + $0x388] ss:$16 sps:$4 sm:$0xff]  }
 0x652   :  { %7898 = vmatprep.mubr.bf16.mxu0 %v15313_v8  ;;  %7908 = vmatpush1.bf16.msra.mxu1 %v13631_v22  ;;  %v13649_v8 = vld [vmem:[#allocation16 + $0x268] ss:$16 sps:$4 sm:$0xff]   ;;  %v13708_v22 = vld [vmem:[#allocation16 + $0x1ac] ss:$16 sps:$4 sm:$0xff]  }
 0x653   :  { %7939 = vmatprep.mubr.bf16.mxu1 %v15318_v52  ;;  %7868 = vmatprep.subr.bf16.mxu0 %v13636_v25  ;;  %v13652_v52 = vld [vmem:[#allocation16 + $0x88] ss:$16 sps:$4 sm:$0xff]   ;;  %v13711_v25 = vld [vmem:[#allocation16 + $0x3ac] ss:$16 sps:$4 sm:$0xff]  }
 0x654   :  { %7909 = vmatprep.subr.bf16.mxu1 %v13639_v51  ;;  %v13706_v51 = vld [vmem:[#allocation16 + $0x1a8] ss:$16 sps:$4 sm:$0xff]  }
 0x655   :  { %7869 = vmatpush1.bf16.msra.mxu0 %v13634_v26  ;;  %v13709_v26 = vld [vmem:[#allocation16 + $0x3a8] ss:$16 sps:$4 sm:$0xff]  }
 0x656   :  { %7910 = vmatpush1.bf16.msra.mxu1 %v13637_v4  ;;  %7870 = vmatprep.subr.bf16.mxu0 %v13642_v59  ;;  %v13714_v4 = vld [vmem:[#allocation16 + $0x1cc] ss:$16 sps:$4 sm:$0xff]  }
 0x657   :  { %7911 = vmatprep.subr.bf16.mxu1 %v13645_v42  ;;  %v13717_v59 = vld [vmem:[#allocation16 + $0x3cc] ss:$16 sps:$4 sm:$0xff]   ;;  %v13712_v42 = vld [vmem:[#allocation16 + $0x1c8] ss:$16 sps:$4 sm:$0xff]  }
 0x659   :  { %7871 = vmatpush1.bf16.msra.mxu0 %v13640_v29  ;;  %v13715_v29 = vld [vmem:[#allocation16 + $0x3c8] ss:$16 sps:$4 sm:$0xff]  }
 0x65a   :  { %7912 = vmatpush1.bf16.msra.mxu1 %v13643_v31  ;;  %7872 = vmatprep.subr.bf16.mxu0 %v13648_v34  ;;  %v13720_v31 = vld [vmem:[#allocation16 + $0x1ec] ss:$16 sps:$4 sm:$0xff]  }
 0x65b   :  { %7913 = vmatprep.subr.bf16.mxu1 %v13651_v35  ;;  %v13723_v34 = vld [vmem:[#allocation16 + $0x3ec] ss:$16 sps:$4 sm:$0xff]   ;;  %v13718_v35 = vld [vmem:[#allocation16 + $0x1e8] ss:$16 sps:$4 sm:$0xff]  }
 0x65d   :  { %7873 = vmatpush1.bf16.msra.mxu0 %v13646_v53  ;;  %v13721_v53 = vld [vmem:[#allocation16 + $0x3e8] ss:$16 sps:$4 sm:$0xff]  }
 0x65e   :  { %7914 = vmatpush1.bf16.msra.mxu1 %v13649_v8  ;;  %7874 = vmatprep.subr.bf16.mxu0 %v13654_v38  ;;  %v13724_v8 = vld [vmem:[#allocation20 + $0x40] sm:$0xff]  }
 0x65f   :  { %7915 = vmatprep.subr.bf16.mxu1 %v13657_v39  ;;  %v13725_v38 = vld [vmem:[#allocation20] sm:$0xff]   ;;  %v13726_v39 = vld [vmem:[#allocation20 + $0x48] sm:$0xff]  }
 0x661   :  { %7875 = vmatpush1.bf16.msra.mxu0 %v13652_v52  ;;  %v13727_v52 = vld [vmem:[#allocation20 + $0x8] sm:$0xff]  }
 0x662   :  { %7916 = vmatpush1.bf16.msra.mxu1 %v13655_v37  ;;  %7876 = vmatprep.subr.bf16.mxu0 %v13660_v40  ;;  %v13728_v37 = vld [vmem:[#allocation20 + $0x50] sm:$0xff]  }
 0x663   :  { %7917 = vmatprep.subr.bf16.mxu1 %v13663_v41  ;;  %v13729_v40 = vld [vmem:[#allocation20 + $0x10] sm:$0xff]  }
 0x665   :  { %7877 = vmatpush1.bf16.msra.mxu0 %v13658_v44 }
 0x666   :  { %7918 = vmatpush1.bf16.msra.mxu1 %v13661_v47  ;;  %7878 = vmatprep.subr.bf16.mxu0 %v13666_v23 }
 0x667   :  { %7919 = vmatprep.subr.bf16.mxu1 %v13669_v48 }
 0x669   :  { %7879 = vmatpush1.bf16.msra.mxu0 %v13664_v49 }
 0x66a   :  { %7920 = vmatpush1.bf16.msra.mxu1 %v13667_v50  ;;  %7880 = vmatprep.subr.bf16.mxu0 %v13672_v60  ;;  %v13730_v50 = vld [vmem:[#allocation20 + $0x58] sm:$0xff]  }
 0x66b   :  { %7921 = vmatprep.subr.bf16.mxu1 %v13675_v30  ;;  %v13731_v30 = vld [vmem:[#allocation20 + $0x18] sm:$0xff]  }
 0x66d   :  { %7881 = vmatpush1.bf16.msra.mxu0 %v13670_v61 }
 0x66e   :  { %7922 = vmatpush1.bf16.msra.mxu1 %v13673_v62  ;;  %7882 = vmatprep.subr.bf16.mxu0 %v13678_v63  ;;  %v13732_v62 = vld [vmem:[#allocation20 + $0x60] sm:$0xff]  }
 0x66f   :  { %7923 = vmatprep.subr.bf16.mxu1 %v13681_v2  ;;  %v13733_v63 = vld [vmem:[#allocation20 + $0x20] sm:$0xff]   ;;  %v13734_v2 = vld [vmem:[#allocation20 + $0x68] sm:$0xff]  }
 0x671   :  { %7883 = vmatpush1.bf16.msra.mxu0 %v13676_v24  ;;  %v13735_v24 = vld [vmem:[#allocation20 + $0x28] sm:$0xff]  }
 0x672   :  { %7924 = vmatpush1.bf16.msra.mxu1 %v13679_v6  ;;  %7884 = vmatprep.subr.bf16.mxu0 %v13684_v9  ;;  %v13736_v6 = vld [vmem:[#allocation20 + $0x70] sm:$0xff]  }
 0x673   :  { %7925 = vmatprep.subr.bf16.mxu1 %v13687_v46  ;;  %v13737_v9 = vld [vmem:[#allocation20 + $0x30] sm:$0xff]   ;;  %v13738_v46 = vld [vmem:[#allocation20 + $0x78] sm:$0xff]  }
 0x675   :  { %7885 = vmatpush1.bf16.msra.mxu0 %v13682_v10  ;;  %v13739_v10 = vld [vmem:[#allocation20 + $0x38] sm:$0xff]  }
 0x676   :  { %7926 = vmatpush1.bf16.msra.mxu1 %v13685_v54  ;;  %7886 = vmatprep.subr.bf16.mxu0 %v13690_v12  ;;  %v13740_v54 = vld [vmem:[#allocation20 + $0xc0] sm:$0xff]  }
 0x677   :  { %7927 = vmatprep.subr.bf16.mxu1 %v13693_v33  ;;  %v13741_v12 = vld [vmem:[#allocation20 + $0x80] sm:$0xff]   ;;  %v13742_v33 = vld [vmem:[#allocation20 + $0xc8] sm:$0xff]  }
 0x679   :  { %7887 = vmatpush1.bf16.msra.mxu0 %v13688_v32  ;;  %v13743_v32 = vld [vmem:[#allocation20 + $0x88] sm:$0xff]  }
 0x67a   :  { %7928 = vmatpush1.bf16.msra.mxu1 %v13691_v13  ;;  %7888 = vmatprep.subr.bf16.mxu0 %v13696_v36  ;;  %v13744_v13 = vld [vmem:[#allocation20 + $0xd0] sm:$0xff]  }
 0x67b   :  { %7929 = vmatprep.subr.bf16.mxu1 %v13699_v14  ;;  %v13745_v36 = vld [vmem:[#allocation20 + $0x90] sm:$0xff]  }
 0x67d   :  { %7889 = vmatpush1.bf16.msra.mxu0 %v13694_v15 }
 0x67e   :  { %7930 = vmatpush1.bf16.msra.mxu1 %v13697_v16  ;;  %7890 = vmatprep.subr.bf16.mxu0 %v13702_v55 }
 0x67f   :  { %7931 = vmatprep.subr.bf16.mxu1 %v13705_v18 }
 0x681   :  { %7891 = vmatpush1.bf16.msra.mxu0 %v13700_v20 }
 0x682   :  { %7932 = vmatpush1.bf16.msra.mxu1 %v13703_v21  ;;  %7892 = vmatprep.subr.bf16.mxu0 %v13708_v22  ;;  %v13746_v21 = vld [vmem:[#allocation20 + $0xd8] sm:$0xff]  }
 0x683   :  { %7933 = vmatprep.subr.bf16.mxu1 %v13711_v25 }
 0x685   :  { %7893 = vmatpush1.bf16.msra.mxu0 %v13706_v51 }
 0x686   :  { %7934 = vmatpush1.bf16.msra.mxu1 %v13709_v26  ;;  %7894 = vmatprep.subr.bf16.mxu0 %v13714_v4  ;;  %v13747_v26 = vld [vmem:[#allocation20 + $0x98] sm:$0xff]  }
 0x687   :  { %7935 = vmatprep.subr.bf16.mxu1 %v13717_v59  ;;  %v13748_v59 = vld [vmem:[#allocation20 + $0xe0] sm:$0xff]  }
 0x689   :  { %7895 = vmatpush1.bf16.msra.mxu0 %v13712_v42  ;;  %v13749_v42 = vld [vmem:[#allocation20 + $0xa0] sm:$0xff]  }
 0x68a   :  { %7936 = vmatpush1.bf16.msra.mxu1 %v13715_v29  ;;  %7896 = vmatprep.subr.bf16.mxu0 %v13720_v31  ;;  %v13750_v29 = vld [vmem:[#allocation20 + $0xe8] sm:$0xff]  }
 0x68b   :  { %7937 = vmatprep.subr.bf16.mxu1 %v13723_v34  ;;  %v13751_v31 = vld [vmem:[#allocation20 + $0xa8] sm:$0xff]   ;;  %v13752_v34 = vld [vmem:[#allocation20 + $0xf0] sm:$0xff]  }
 0x68d   :  { %7897 = vmatpush1.bf16.msra.mxu0 %v13718_v35  ;;  %v13753_v35 = vld [vmem:[#allocation20 + $0xb0] sm:$0xff]  }
 0x68e   :  { %7938 = vmatpush1.bf16.msra.mxu1 %v13721_v53  ;;  %12049 = vmatprep.subr.bf16.mxu0 %v13724_v8  ;;  %v13754_v53 = vld [vmem:[#allocation20 + $0xf8] sm:$0xff]  }
 0x68f   :  { %12071 = vmatprep.subr.bf16.mxu1 %v13740_v54  ;;  %v13755_v8 = vld [vmem:[#allocation20 + $0xb8] sm:$0xff]  }
 0x690   :  { %7899 = vmatmul.mubr.bf16.vlgmr.msra.gmra.mrb[28].mxu0 %v15335_v45 }
 0x691   :  { %7940 = vmatmul.mubr.bf16.vlgmr.msra.gmra.mrb[44].mxu1 %v15339_v57  ;;  %12050 = vmatpush3.bf16.msra.mxu0 %v13725_v38  ;;  %v7948_v38 = vld [vmem:[#allocation19] sm:$0xf] }
 0x692   :  { %12051 = vmatprep.subr.bf16.mxu0 %v13726_v39  ;;  %12072 = vmatpush3.bf16.msra.mxu1 %v13741_v12 }
 0x693   :  { %12073 = vmatprep.subr.bf16.mxu1 %v13742_v33 }
 0x695   :  { %12052 = vmatpush3.bf16.msra.mxu0 %v13727_v52 }
 0x696   :  { %12053 = vmatprep.subr.bf16.mxu0 %v13728_v37  ;;  %12074 = vmatpush3.bf16.msra.mxu1 %v13743_v32  ;;  %v7965_v32 = vrot.slane %v7948_v38, %v15183_v5 }
 0x697   :  { %12075 = vmatprep.subr.bf16.mxu1 %v13744_v13 }
 0x699   :  { %12054 = vmatpush3.bf16.msra.mxu0 %v13729_v40  ;;  %v7953_v40 = vrot.slane %v7948_v38, %v15171_v56 }
 0x69a   :  { %12055 = vmatprep.subr.bf16.mxu0 %v13730_v50  ;;  %12076 = vmatpush3.bf16.msra.mxu1 %v13745_v36 }
 0x69b   :  { %12077 = vmatprep.subr.bf16.mxu1 %v13746_v21 }
 0x69d   :  { %12056 = vmatpush3.bf16.msra.mxu0 %v13731_v30 }
 0x69e   :  { %12057 = vmatprep.subr.bf16.mxu0 %v13732_v62  ;;  %12078 = vmatpush3.bf16.msra.mxu1 %v13747_v26 }
 0x69f   :  { %12079 = vmatprep.subr.bf16.mxu1 %v13748_v59 }
 0x6a1   :  { %12058 = vmatpush3.bf16.msra.mxu0 %v13733_v63 }
 0x6a2   :  { %12059 = vmatprep.subr.bf16.mxu0 %v13734_v2  ;;  %12080 = vmatpush3.bf16.msra.mxu1 %v13749_v42 }
 0x6a3   :  { %v7014_v41 = vpop.f32.mrb[16].mxu0  ;;  %12081 = vmatprep.subr.bf16.mxu1 %v13750_v29 }
 0x6a4   :  { %v7055_v44 = vpop.f32.mrb[32].mxu1  ;;  %v7016_v47 = vpop.f32.mrb[17].mxu0 }
 0x6a5   :  { %v15347_v23 = vadd.f32 %v7055_v44, %v7014_v41  ;;  %v7057_v48 = vpop.f32.mrb[33].mxu1  ;;  %v7018_v49 = vpop.f32.mrb[18].mxu0  ;;  %12060 = vmatpush3.bf16.msra.mxu0 %v13735_v24 }
 0x6a6   :  { %v15349_v60 = vadd.f32 %v7057_v48, %v7016_v47  ;;  %v7059_v45 = vpop.f32.mrb[34].mxu1  ;;  %v7019_v57 = vpop.f32.mrb[19].mxu0  ;;  %12061 = vmatprep.subr.bf16.mxu0 %v13736_v6  ;;  %12082 = vmatpush3.bf16.msra.mxu1 %v13751_v31  ;;  %v7957_v48 = vrot.slane %v7948_v38, %v15176_v58  ;;  %v11718_v31 = vld [vmem:[#allocation22] ss:$0 sm:$0xff] }
 0x6a7   :  { %v7060_v61 = vpop.f32.mrb[35].mxu1  ;;  %12083 = vmatprep.subr.bf16.mxu1 %v13752_v34 }
 0x6a9   :  { %12062 = vmatpush3.bf16.msra.mxu0 %v13737_v9 }
 0x6aa   :  { %12063 = vmatprep.subr.bf16.mxu0 %v13738_v46  ;;  %12084 = vmatpush3.bf16.msra.mxu1 %v13753_v35 }
 0x6ab   :  { %12085 = vmatprep.subr.bf16.mxu1 %v13754_v53 }
 0x6ad   :  { %12064 = vmatpush3.bf16.msra.mxu0 %v13739_v10  ;;  %v7961_v10 = vrot.slane %v7948_v38, %v15214_v7 }
 0x6ae   :  { %12086 = vmatpush3.bf16.msra.mxu1 %v13755_v8 }
 0x6e3   :  { %v7096_v14 = vpop.f32.mrb[20].mxu0 }
 0x6e4   :  { %v7137_v15 = vpop.f32.mrb[36].mxu1  ;;  %v7098_v16 = vpop.f32.mrb[21].mxu0 }
 0x6e5   :  { %v7138_v55 = vadd.f32 %v7137_v15, %v7096_v14  ;;  %v7139_v18 = vpop.f32.mrb[37].mxu1  ;;  %v7100_v20 = vpop.f32.mrb[22].mxu0 }
 0x6e6   :  { %v7140_v22 = vadd.f32 %v7139_v18, %v7098_v16  ;;  %v7141_v25 = vpop.f32.mrb[38].mxu1  ;;  %v7101_v51 = vpop.f32.mrb[23].mxu0 }
 0x6e7   :  { %v7142_v4 = vpop.f32.mrb[39].mxu1 }
 0x723   :  { %v7818_v39 = vpop.f32.mrb[24].mxu0 }
 0x724   :  { %v7819_v52 = vadd.f32 %v7818_v39, %v15347_v23  ;;  %v7859_v37 = vpop.f32.mrb[40].mxu1  ;;  %v7820_v41 = vpop.f32.mrb[25].mxu0 }
 0x725   :  { %v7821_v44 = vadd.f32 %v7820_v41, %v15349_v60  ;;  %v7861_v47 = vpop.f32.mrb[41].mxu1  ;;  %v7822_v49 = vpop.f32.mrb[26].mxu0  ;;  %v13758_v41 = vld [vmem:[#allocation25 + $0x4] ss:$16 sps:$4 sm:$0xff]  }
 0x726   :  { %v7860_v50 = vadd.f32 %v7859_v37, %v7819_v52  ;;  %v7863_v45 = vpop.f32.mrb[42].mxu1  ;;  %v7823_v57 = vpop.f32.mrb[27].mxu0  ;;  %v14708_v37 = vmov 1   ;;  %9258 = vmatprep.subr.bf16.mxu0 %v13758_v41  ;;  %v13767_v49 = vld [vmem:[#allocation25 + $0x224] ss:$16 sps:$4 sm:$0xff]  }
 0x727   :  { %v7862_v30 = vadd.f32 %v7861_v47, %v7821_v44  ;;  %v7864_v61 = vpop.f32.mrb[43].mxu1  ;;  %12279 = vset.pattern.permute.xlu1 %v14708_v37  ;;  %12278 = vset.pattern.permute.xlu0 %v14708_v37  ;;  %v13759_v44 = vld [vmem:[#allocation25 + $0x200] ss:$16 sps:$4 sm:$0xff]   ;;  %v13761_v47 = vld [vmem:[#allocation25 + $0x204] ss:$16 sps:$4 sm:$0xff]  }
 0x728   :  { %v7970_v62 = vadd.f32 %v7953_v40, %v7860_v50  ;;  %v13756_v40 = vld [vmem:[#allocation25] ss:$16 sps:$4 sm:$0xff]   ;;  %9299 = vmatprep.subr.bf16.mxu1 %v13761_v47  ;;  %v13770_v57 = vld [vmem:[#allocation25 + $0x44] ss:$16 sps:$4 sm:$0xff]  }
 0x729   :  { %v7971_v63 = vadd.f32 %v7957_v48, %v7862_v30  ;;  %v13764_v48 = vld [vmem:[#allocation25 + $0x24] ss:$16 sps:$4 sm:$0xff]   ;;  %v13762_v50 = vld [vmem:[#allocation25 + $0x20] ss:$16 sps:$4 sm:$0xff]  }
 0x72a   :  { %14180 = vtanh.f32 %v7970_v62  ;;  %v13765_v45 = vld [vmem:[#allocation25 + $0x220] ss:$16 sps:$4 sm:$0xff]   ;;  %v13773_v30 = vld [vmem:[#allocation25 + $0x244] ss:$16 sps:$4 sm:$0xff]  }
 0x72b   :  { %14182 = vtanh.f32 %v7971_v63  ;;  %v13768_v61 = vld [vmem:[#allocation25 + $0x40] ss:$16 sps:$4 sm:$0xff]   ;;  %v13776_v63 = vld [vmem:[#allocation25 + $0x64] ss:$16 sps:$4 sm:$0xff]  }
 0x72c   :  { %v13771_v62 = vld [vmem:[#allocation25 + $0x240] ss:$16 sps:$4 sm:$0xff]   ;;  %v13833_v37 = vld [vmem:[#allocation25 + $0x384] ss:$16 sps:$4 sm:$0xff]  }
 0x72d   :  { %v13831_v41 = vld [vmem:[#allocation25 + $0x380] ss:$16 sps:$4 sm:$0xff]   ;;  %v13839_v47 = vld [vmem:[#allocation25 + $0x3a4] ss:$16 sps:$4 sm:$0xff]  }
 0x734   :  { %v14181_v23 = vpop.eup %14180 }
 0x735   :  { %v14183_v2 = vpop.eup %14182  ;;  %v7978_v6 = vpack.c.bf16 %v14181_v23, %v14181_v23  ;;  %v13779_v23 = vld [vmem:[#allocation25 + $0x264] ss:$16 sps:$4 sm:$0xff]  }
 0x736   :  { %v7979_v24 = vpack.c.bf16 %v14183_v2, %v14183_v2  ;;  %v13774_v2 = vld [vmem:[#allocation25 + $0x60] ss:$16 sps:$4 sm:$0xff]  }
 0x738   :  { %8277 = vmatprep.mubr.bf16.mxu0 %v7979_v24  ;;  %v13777_v24 = vld [vmem:[#allocation25 + $0x260] ss:$16 sps:$4 sm:$0xff]  }
 0x739   :  { %8278 = vmatmul.mubr.bf16.vlgmr.msra.gmra.mrb[32].mxu0 %v7978_v6  ;;  %v13782_v6 = vld [vmem:[#allocation25 + $0x84] ss:$16 sps:$4 sm:$0xff]  }
 0x73a   :  { %9259 = vmatpush1.bf16.msra.mxu0 %v13756_v40  ;;  %v13828_v40 = vld [vmem:[#allocation25 + $0x180] ss:$16 sps:$4 sm:$0xff]  }
 0x73b   :  { %9260 = vmatprep.subr.bf16.mxu0 %v13764_v48  ;;  %v13834_v48 = vld [vmem:[#allocation25 + $0x1a0] ss:$16 sps:$4 sm:$0xff]  }
 0x73e   :  { %9261 = vmatpush1.bf16.msra.mxu0 %v13762_v50  ;;  %v13842_v50 = vld [vmem:[#allocation25 + $0x1c4] ss:$16 sps:$4 sm:$0xff]  }
 0x73f   :  { %9262 = vmatprep.subr.bf16.mxu0 %v13770_v57  ;;  %v13840_v57 = vld [vmem:[#allocation25 + $0x1c0] ss:$16 sps:$4 sm:$0xff]  }
 0x742   :  { %9263 = vmatpush1.bf16.msra.mxu0 %v13768_v61 }
 0x743   :  { %9264 = vmatprep.subr.bf16.mxu0 %v13776_v63 }
 0x746   :  { %9265 = vmatpush1.bf16.msra.mxu0 %v13774_v2 }
 0x747   :  { %9266 = vmatprep.subr.bf16.mxu0 %v13782_v6 }
 0x763   :  { %v7900_v60 = vpop.f32.mrb[28].mxu0 }
 0x764   :  { %v7901_v9 = vadd.f32 %v7900_v60, %v7138_v55  ;;  %v7941_v46 = vpop.f32.mrb[44].mxu1  ;;  %v7902_v54 = vpop.f32.mrb[29].mxu0  ;;  %v13785_v60 = vld [vmem:[#allocation25 + $0x284] ss:$16 sps:$4 sm:$0xff]  }
 0x765   :  { %v7903_v12 = vadd.f32 %v7902_v54, %v7140_v22  ;;  %v7943_v33 = vpop.f32.mrb[45].mxu1  ;;  %v7904_v13 = vpop.f32.mrb[30].mxu0  ;;  %v13791_v54 = vld [vmem:[#allocation25 + $0x2a4] ss:$16 sps:$4 sm:$0xff]  }
 0x766   :  { %v7942_v36 = vadd.f32 %v7941_v46, %v7901_v9  ;;  %v7945_v14 = vpop.f32.mrb[46].mxu1  ;;  %v7905_v15 = vpop.f32.mrb[31].mxu0  ;;  %v13780_v9 = vld [vmem:[#allocation25 + $0x80] ss:$16 sps:$4 sm:$0xff]   ;;  %v13797_v13 = vld [vmem:[#allocation25 + $0x2c4] ss:$16 sps:$4 sm:$0xff]  }
 0x767   :  { %v7944_v16 = vadd.f32 %v7943_v33, %v7903_v12  ;;  %v7946_v18 = vpop.f32.mrb[47].mxu1  ;;  %v13783_v46 = vld [vmem:[#allocation25 + $0x280] ss:$16 sps:$4 sm:$0xff]   ;;  %9267 = vmatpush1.bf16.msra.mxu0 %v13780_v9  ;;  %v13800_v15 = vld [vmem:[#allocation25 + $0xe4] ss:$16 sps:$4 sm:$0xff]  }
 0x768   :  { %v7972_v20 = vadd.f32 %v7961_v10, %v7942_v36  ;;  %v13788_v10 = vld [vmem:[#allocation25 + $0xa4] ss:$16 sps:$4 sm:$0xff]   ;;  %v13786_v12 = vld [vmem:[#allocation25 + $0xa0] ss:$16 sps:$4 sm:$0xff]  }
 0x769   :  { %v7973_v21 = vadd.f32 %v7965_v32, %v7944_v16  ;;  %9268 = vmatprep.subr.bf16.mxu0 %v13788_v10  ;;  %v13789_v33 = vld [vmem:[#allocation25 + $0x2a0] ss:$16 sps:$4 sm:$0xff]   ;;  %v13794_v32 = vld [vmem:[#allocation25 + $0xc4] ss:$16 sps:$4 sm:$0xff]  }
 0x76a   :  { %14184 = vtanh.f32 %v7972_v20  ;;  %v13792_v36 = vld [vmem:[#allocation25 + $0xc0] ss:$16 sps:$4 sm:$0xff]   ;;  %v13803_v16 = vld [vmem:[#allocation25 + $0x2e4] ss:$16 sps:$4 sm:$0xff]  }
 0x76b   :  { %14186 = vtanh.f32 %v7973_v21  ;;  %9269 = vmatpush1.bf16.msra.mxu0 %v13786_v12  ;;  %v13795_v14 = vld [vmem:[#allocation25 + $0x2c0] ss:$16 sps:$4 sm:$0xff]   ;;  %v13806_v21 = vld [vmem:[#allocation25 + $0x104] ss:$16 sps:$4 sm:$0xff]   ;;  %v13857_v12 = vld [vmem:[#allocation25 + $0x20c] ss:$16 sps:$4 sm:$0xff]  }
 0x76c   :  { %9270 = vmatprep.subr.bf16.mxu0 %v13794_v32  ;;  %v13798_v18 = vld [vmem:[#allocation25 + $0xe0] ss:$16 sps:$4 sm:$0xff]   ;;  %v13851_v9 = vld [vmem:[#allocation25 + $0x3e4] ss:$16 sps:$4 sm:$0xff]  }
 0x76d   :  { %v13801_v20 = vld [vmem:[#allocation25 + $0x2e0] ss:$16 sps:$4 sm:$0xff]  }
 0x76e   :  { %v13849_v10 = vld [vmem:[#allocation25 + $0x3e0] ss:$16 sps:$4 sm:$0xff]  }
 0x76f   :  { %9271 = vmatpush1.bf16.msra.mxu0 %v13792_v36 }
 0x770   :  { %9272 = vmatprep.subr.bf16.mxu0 %v13800_v15 }
 0x773   :  { %9273 = vmatpush1.bf16.msra.mxu0 %v13798_v18 }
 0x774   :  { %v14185_v25 = vpop.eup %14184  ;;  %9274 = vmatprep.subr.bf16.mxu0 %v13806_v21  ;;  %v13855_v21 = vld [vmem:[#allocation25 + $0x208] ss:$16 sps:$4 sm:$0xff]  }
 0x775   :  { %v14187_v55 = vpop.eup %14186  ;;  %v7980_v26 = vpack.c.bf16 %v14185_v25, %v14185_v25  ;;  %v13809_v25 = vld [vmem:[#allocation25 + $0x304] ss:$16 sps:$4 sm:$0xff]  }
 0x776   :  { %v7981_v51 = vpack.c.bf16 %v14187_v55, %v14187_v55  ;;  %v13804_v55 = vld [vmem:[#allocation25 + $0x100] ss:$16 sps:$4 sm:$0xff]  }
 0x777   :  { %9275 = vmatpush1.bf16.msra.mxu0 %v13804_v55  ;;  %v13869_v55 = vld [vmem:[#allocation25 + $0x24c] ss:$16 sps:$4 sm:$0xff]  }
 0x778   :  { %8317 = vmatprep.mubr.bf16.mxu1 %v7981_v51  ;;  %v13807_v51 = vld [vmem:[#allocation25 + $0x300] ss:$16 sps:$4 sm:$0xff]  }
 0x779   :  { %8318 = vmatmul.mubr.bf16.vlgmr.msra.gmra.mrb[48].mxu1 %v7980_v26  ;;  %v13812_v26 = vld [vmem:[#allocation25 + $0x124] ss:$16 sps:$4 sm:$0xff]  }
 0x77a   :  { %9300 = vmatpush1.bf16.msra.mxu1 %v13759_v44  ;;  %9276 = vmatprep.subr.bf16.mxu0 %v13812_v26  ;;  %v13836_v44 = vld [vmem:[#allocation25 + $0x1a4] ss:$16 sps:$4 sm:$0xff]   ;;  %v13867_v26 = vld [vmem:[#allocation25 + $0x248] ss:$16 sps:$4 sm:$0xff]  }
 0x77b   :  { %9301 = vmatprep.subr.bf16.mxu1 %v13767_v49  ;;  %v13837_v49 = vld [vmem:[#allocation25 + $0x3a0] ss:$16 sps:$4 sm:$0xff]  }
 0x77e   :  { %9302 = vmatpush1.bf16.msra.mxu1 %v13765_v45  ;;  %v13845_v45 = vld [vmem:[#allocation25 + $0x3c4] ss:$16 sps:$4 sm:$0xff]  }
 0x77f   :  { %9303 = vmatprep.subr.bf16.mxu1 %v13773_v30  ;;  %v13843_v30 = vld [vmem:[#allocation25 + $0x3c0] ss:$16 sps:$4 sm:$0xff]  }
 0x782   :  { %9304 = vmatpush1.bf16.msra.mxu1 %v13771_v62 }
 0x783   :  { %9305 = vmatprep.subr.bf16.mxu1 %v13779_v23 }
 0x786   :  { %9306 = vmatpush1.bf16.msra.mxu1 %v13777_v24 }
 0x787   :  { %9307 = vmatprep.subr.bf16.mxu1 %v13785_v60  ;;  %v13848_v60 = vld [vmem:[#allocation25 + $0x1e4] ss:$16 sps:$4 sm:$0xff]  }
 0x78a   :  { %9308 = vmatpush1.bf16.msra.mxu1 %v13783_v46  ;;  %v13846_v46 = vld [vmem:[#allocation25 + $0x1e0] ss:$16 sps:$4 sm:$0xff]  }
 0x78b   :  { %9309 = vmatprep.subr.bf16.mxu1 %v13791_v54  ;;  %v13854_v54 = vld [vmem:[#allocation25 + $0xc] ss:$16 sps:$4 sm:$0xff]  }
 0x78e   :  { %9310 = vmatpush1.bf16.msra.mxu1 %v13789_v33 }
 0x78f   :  { %9311 = vmatprep.subr.bf16.mxu1 %v13797_v13 }
 0x792   :  { %9312 = vmatpush1.bf16.msra.mxu1 %v13795_v14 }
 0x793   :  { %9313 = vmatprep.subr.bf16.mxu1 %v13803_v16 }
 0x796   :  { %9314 = vmatpush1.bf16.msra.mxu1 %v13801_v20  ;;  %v13852_v20 = vld [vmem:[#allocation25 + $0x8] ss:$16 sps:$4 sm:$0xff]  }
 0x797   :  { %9315 = vmatprep.subr.bf16.mxu1 %v13809_v25  ;;  %v13863_v25 = vld [vmem:[#allocation25 + $0x22c] ss:$16 sps:$4 sm:$0xff]  }
 0x79a   :  { %9316 = vmatpush1.bf16.msra.mxu1 %v13807_v51  ;;  %v13864_v51 = vld [vmem:[#allocation25 + $0x48] ss:$16 sps:$4 sm:$0xff]  }
 0x80c   :  { %v12065_v22 = vpop.f32.mrb[32].mxu0 }
 0x80d   :  { %v12066_v4 = vpop.f32.mrb[33].mxu0 }
 0x80e   :  { %v12067_v59 = vadd.f32 %v12066_v4, %v12065_v22  ;;  %v12068_v42 = vpop.f32.mrb[34].mxu0  ;;  %v13815_v22 = vld [vmem:[#allocation25 + $0x324] ss:$16 sps:$4 sm:$0xff]   ;;  %v13810_v4 = vld [vmem:[#allocation25 + $0x120] ss:$16 sps:$4 sm:$0xff]  }
 0x80f   :  { %v12069_v29 = vpop.f32.mrb[35].mxu0  ;;  %v13818_v42 = vld [vmem:[#allocation25 + $0x144] ss:$16 sps:$4 sm:$0xff]   ;;  %9317 = vmatprep.subr.bf16.mxu1 %v13815_v22  ;;  %9277 = vmatpush1.bf16.msra.mxu0 %v13810_v4  ;;  %v13872_v22 = vld [vmem:[#allocation25 + $0x6c] ss:$16 sps:$4 sm:$0xff]  }
 0x810   :  { %v8280_v53 = vadd.f32 %v12067_v59, %v11718_v31  ;;  %v13813_v59 = vld [vmem:[#allocation25 + $0x320] ss:$16 sps:$4 sm:$0xff]   ;;  %v13821_v29 = vld [vmem:[#allocation25 + $0x344] ss:$16 sps:$4 sm:$0xff]   ;;  %9278 = vmatprep.subr.bf16.mxu0 %v13818_v42  ;;  %v13875_v4 = vld [vmem:[#allocation25 + $0x26c] ss:$16 sps:$4 sm:$0xff]  }
 0x811   :  { %v13816_v31 = vld [vmem:[#allocation25 + $0x140] ss:$16 sps:$4 sm:$0xff]   ;;  %9318 = vmatpush1.bf16.msra.mxu1 %v13813_v59  ;;  %v13870_v59 = vld [vmem:[#allocation25 + $0x68] ss:$16 sps:$4 sm:$0xff]  }
 0x812   :  { %9319 = vmatprep.subr.bf16.mxu1 %v13821_v29  ;;  %v13873_v42 = vld [vmem:[#allocation25 + $0x268] ss:$16 sps:$4 sm:$0xff]   ;;  %v13878_v29 = vld [vmem:[#allocation25 + $0x8c] ss:$16 sps:$4 sm:$0xff]  }
 0x813   :  { %9279 = vmatpush1.bf16.msra.mxu0 %v13816_v31  ;;  %v13881_v31 = vld [vmem:[#allocation25 + $0x28c] ss:$16 sps:$4 sm:$0xff]  }
 0x84c   :  { %v12087_v34 = vpop.f32.mrb[48].mxu1 }
 0x84d   :  { %v12088_v35 = vpop.f32.mrb[49].mxu1 }
 0x84e   :  { %v12089_v8 = vadd.f32 %v12088_v35, %v12087_v34  ;;  %v12090_v38 = vpop.f32.mrb[50].mxu1  ;;  %v13819_v34 = vld [vmem:[#allocation25 + $0x340] ss:$16 sps:$4 sm:$0xff]   ;;  %v13824_v35 = vld [vmem:[#allocation25 + $0x164] ss:$16 sps:$4 sm:$0xff]  }
 0x84f   :  { %v12091_v39 = vpop.f32.mrb[51].mxu1  ;;  %9320 = vmatpush1.bf16.msra.mxu1 %v13819_v34  ;;  %9280 = vmatprep.subr.bf16.mxu0 %v13824_v35  ;;  %v13825_v38 = vld [vmem:[#allocation25 + $0x360] ss:$16 sps:$4 sm:$0xff]   ;;  %v13876_v34 = vld [vmem:[#allocation25 + $0x88] ss:$16 sps:$4 sm:$0xff]  }
 0x850   :  { %v15357_v52 = vadd.f32 %v12089_v8, %v8280_v53  ;;  %v13827_v53 = vld [vmem:[#allocation25 + $0x364] ss:$16 sps:$4 sm:$0xff]   ;;  %v13822_v8 = vld [vmem:[#allocation25 + $0x160] ss:$16 sps:$4 sm:$0xff]   ;;  %v13879_v35 = vld [vmem:[#allocation25 + $0x288] ss:$16 sps:$4 sm:$0xff]  }
 0x851   :  { %v13830_v39 = vld [vmem:[#allocation25 + $0x184] ss:$16 sps:$4 sm:$0xff]   ;;  %9321 = vmatprep.subr.bf16.mxu1 %v13827_v53  ;;  %9281 = vmatpush1.bf16.msra.mxu0 %v13822_v8  ;;  %v13884_v53 = vld [vmem:[#allocation25 + $0xac] ss:$16 sps:$4 sm:$0xff]  }
 0x852   :  { %8326 = vrot.lane.b32.xlu0 %v15357_v52, %s14707_s19  ;;  %9282 = vmatprep.subr.bf16.mxu0 %v13830_v39  ;;  %v13887_v8 = vld [vmem:[#allocation25 + $0x2ac] ss:$16 sps:$4 sm:$0xff]   ;;  %v13885_v39 = vld [vmem:[#allocation25 + $0x2a8] ss:$16 sps:$4 sm:$0xff]  }
 0x853   :  { %9322 = vmatpush1.bf16.msra.mxu1 %v13825_v38  ;;  %v13882_v38 = vld [vmem:[#allocation25 + $0xa8] ss:$16 sps:$4 sm:$0xff]  }
 0x854   :  { %9323 = vmatprep.subr.bf16.mxu1 %v13833_v37  ;;  %v13890_v37 = vld [vmem:[#allocation25 + $0xcc] ss:$16 sps:$4 sm:$0xff]  }
 0x855   :  { %9283 = vmatpush1.bf16.msra.mxu0 %v13828_v40  ;;  %v13893_v40 = vld [vmem:[#allocation25 + $0x2cc] ss:$16 sps:$4 sm:$0xff]  }
 0x856   :  { %9284 = vmatprep.subr.bf16.mxu0 %v13836_v44  ;;  %v13891_v44 = vld [vmem:[#allocation25 + $0x2c8] ss:$16 sps:$4 sm:$0xff]  }
 0x857   :  { %9324 = vmatpush1.bf16.msra.mxu1 %v13831_v41  ;;  %v13888_v41 = vld [vmem:[#allocation25 + $0xc8] ss:$16 sps:$4 sm:$0xff]  }
 0x858   :  { %9325 = vmatprep.subr.bf16.mxu1 %v13839_v47  ;;  %v13896_v47 = vld [vmem:[#allocation25 + $0xec] ss:$16 sps:$4 sm:$0xff]  }
 0x859   :  { %9285 = vmatpush1.bf16.msra.mxu0 %v13834_v48  ;;  %v13899_v48 = vld [vmem:[#allocation25 + $0x2ec] ss:$16 sps:$4 sm:$0xff]  }
 0x85a   :  { %9286 = vmatprep.subr.bf16.mxu0 %v13842_v50  ;;  %v13897_v50 = vld [vmem:[#allocation25 + $0x2e8] ss:$16 sps:$4 sm:$0xff]  }
 0x85b   :  { %9326 = vmatpush1.bf16.msra.mxu1 %v13837_v49  ;;  %v13894_v49 = vld [vmem:[#allocation25 + $0xe8] ss:$16 sps:$4 sm:$0xff]  }
 0x85c   :  { %9327 = vmatprep.subr.bf16.mxu1 %v13845_v45  ;;  %v13902_v45 = vld [vmem:[#allocation25 + $0x10c] ss:$16 sps:$4 sm:$0xff]  }
 0x85d   :  { %9287 = vmatpush1.bf16.msra.mxu0 %v13840_v57  ;;  %v13905_v57 = vld [vmem:[#allocation25 + $0x30c] ss:$16 sps:$4 sm:$0xff]  }
 0x85e   :  { %9288 = vmatprep.subr.bf16.mxu0 %v13848_v60  ;;  %v13912_v60 = vld [vmem:[#allocation25 + $0x148] ss:$16 sps:$4 sm:$0xff]  }
 0x85f   :  { %9328 = vmatpush1.bf16.msra.mxu1 %v13843_v30  ;;  %v13900_v30 = vld [vmem:[#allocation25 + $0x108] ss:$16 sps:$4 sm:$0xff]  }
 0x860   :  { %9329 = vmatprep.subr.bf16.mxu1 %v13851_v9  ;;  %v13915_v9 = vld [vmem:[#allocation25 + $0x348] ss:$16 sps:$4 sm:$0xff]  }
 0x861   :  { %9289 = vmatpush1.bf16.msra.mxu0 %v13846_v46  ;;  %v13920_v46 = vld [vmem:[#allocation25 + $0x16c] ss:$16 sps:$4 sm:$0xff]  }
 0x862   :  { %9340 = vmatprep.subr.bf16.mxu0 %v13854_v54  ;;  %v13918_v54 = vld [vmem:[#allocation25 + $0x168] ss:$16 sps:$4 sm:$0xff]  }
 0x863   :  { %9330 = vmatpush1.bf16.msra.mxu1 %v13849_v10  ;;  %v13923_v10 = vld [vmem:[#allocation25 + $0x36c] ss:$16 sps:$4 sm:$0xff]  }
 0x864   :  { %9381 = vmatprep.subr.bf16.mxu1 %v13857_v12  ;;  %v13921_v12 = vld [vmem:[#allocation25 + $0x368] ss:$16 sps:$4 sm:$0xff]  }
 0x8c4   :  { %v8327_v61 = vpop.permute.xlu0 %8326 }
 0x8c5   :  { %v8329_v62 = vsub.f32 %v15357_v52, %v8327_v61  ;;  %v13903_v61 = vld [vmem:[#allocation25 + $0x308] ss:$16 sps:$4 sm:$0xff]  }
 0x8c7   :  { %v8330_v63 = vmul.f32 1.442695, %v8329_v62  ;;  %v13908_v62 = vld [vmem:[#allocation25 + $0x12c] ss:$16 sps:$4 sm:$0xff]  }
 0x8c9   :  { %14188 = vpow2.f32 %v8330_v63  ;;  %v13911_v63 = vld [vmem:[#allocation25 + $0x32c] ss:$16 sps:$4 sm:$0xff]  }
 0x8d3   :  { %v14189_v23 = vpop.eup %14188 }
 0x8d4   :  { %v8332_v2 = vadd.f32 1.0, %v14189_v23  ;;  %v13906_v23 = vld [vmem:[#allocation25 + $0x128] ss:$16 sps:$4 sm:$0xff]  }
 0x8d6   :  { %14190 = vrcp.f32 %v8332_v2  ;;  %v13909_v2 = vld [vmem:[#allocation25 + $0x328] ss:$16 sps:$4 sm:$0xff]  }
 0x8e0   :  { %v14191_v24 = vpop.eup %14190 }
 0x8e1   :  { %8338 = vperm.xlu1 %12279, %v14191_v24   ;;  %v8335_v6 = vsub.f32 1.0, %v14191_v24  ;;  %v13914_v24 = vld [vmem:[#allocation25 + $0x14c] ss:$16 sps:$4 sm:$0xff]  }
 0x8e3   :  { %8347 = vperm.xlu0 %12278, %v8335_v6   ;;  %v13917_v6 = vld [vmem:[#allocation25 + $0x34c] ss:$16 sps:$4 sm:$0xff]  }
 0x962   :  { %v15361_v52 = vpop.permute.xlu0 %8347 }
 0x963   :  { %v8350_v33 = vmul.f32 %v15277_v11, %v15361_v52  ;;  %v8352_v32 = vmul.f32 %v15279_v27, %v15361_v52  ;;  %v8351_v13 = vmul.f32 %v15281_v3, %v15361_v52  ;;  %v8353_v36 = vmul.f32 %v15283_v28, %v15361_v52  ;;  %v13860_v11 = vld [vmem:[#allocation25 + $0x2c] ss:$16 sps:$4 sm:$0xff]   ;;  %v13858_v27 = vld [vmem:[#allocation25 + $0x28] ss:$16 sps:$4 sm:$0xff]  }
 0x964   :  { %v13861_v3 = vld [vmem:[#allocation25 + $0x228] ss:$16 sps:$4 sm:$0xff]   ;;  %v13866_v28 = vld [vmem:[#allocation25 + $0x4c] ss:$16 sps:$4 sm:$0xff]  }
 0x965   :  { %v15371_v14 = vpack.c.bf16 %v8350_v33, %v8350_v33  ;;  %v15373_v15 = vpack.c.bf16 %v8352_v32, %v8352_v32  ;;  %v8487_v16 = vpack.c.bf16 %v8351_v13, %v8351_v13  ;;  %v8489_v18 = vpack.c.bf16 %v8353_v36, %v8353_v36  ;;  %v13926_v33 = vld [vmem:[#allocation25 + $0x18c] ss:$16 sps:$4 sm:$0xff]   ;;  %v13924_v13 = vld [vmem:[#allocation25 + $0x188] ss:$16 sps:$4 sm:$0xff]  }
 0x966   :  { %v13929_v32 = vld [vmem:[#allocation25 + $0x38c] ss:$16 sps:$4 sm:$0xff]   ;;  %v13927_v36 = vld [vmem:[#allocation25 + $0x388] ss:$16 sps:$4 sm:$0xff]  }
 0x967   :  { %9290 = vmatprep.mubr.bf16.mxu0 %v8487_v16  ;;  %9331 = vmatprep.mubr.bf16.mxu1 %v8489_v18 }
 0x968   :  { %9291 = vmatmul.mubr.bf16.vlgmr.msra.gmra.mrb[36].mxu0 %v15371_v14  ;;  %9332 = vmatmul.mubr.bf16.vlgmr.msra.gmra.mrb[52].mxu1 %v15373_v15 }
 0x969   :  { %9341 = vmatpush1.bf16.msra.mxu0 %v13852_v20  ;;  %9382 = vmatpush1.bf16.msra.mxu1 %v13855_v21  ;;  %v13930_v20 = vld [vmem:[#allocation25 + $0x1a8] ss:$16 sps:$4 sm:$0xff]  }
 0x96a   :  { %9372 = vmatprep.mubr.bf16.mxu0 %v8487_v16  ;;  %9413 = vmatprep.mubr.bf16.mxu1 %v8489_v18  ;;  %v13932_v16 = vld [vmem:[#allocation25 + $0x1ac] ss:$16 sps:$4 sm:$0xff]   ;;  %v13933_v21 = vld [vmem:[#allocation25 + $0x3a8] ss:$16 sps:$4 sm:$0xff]  }
 0x96b   :  { %9342 = vmatprep.subr.bf16.mxu0 %v13860_v11  ;;  %9383 = vmatprep.subr.bf16.mxu1 %v13863_v25  ;;  %v13935_v18 = vld [vmem:[#allocation25 + $0x3ac] ss:$16 sps:$4 sm:$0xff]  }
 0x96c   :  { %v13938_v11 = vld [vmem:[#allocation25 + $0x1cc] ss:$16 sps:$4 sm:$0xff]  }
 0x96d   :  { %9343 = vmatpush1.bf16.msra.mxu0 %v13858_v27  ;;  %9384 = vmatpush1.bf16.msra.mxu1 %v13861_v3  ;;  %v13941_v25 = vld [vmem:[#allocation25 + $0x3cc] ss:$16 sps:$4 sm:$0xff]   ;;  %v13936_v27 = vld [vmem:[#allocation25 + $0x1c8] ss:$16 sps:$4 sm:$0xff]  }
 0x96e   :  { %9344 = vmatprep.subr.bf16.mxu0 %v13866_v28  ;;  %9385 = vmatprep.subr.bf16.mxu1 %v13869_v55  ;;  %v13939_v3 = vld [vmem:[#allocation25 + $0x3c8] ss:$16 sps:$4 sm:$0xff]   ;;  %v13944_v28 = vld [vmem:[#allocation25 + $0x1ec] ss:$16 sps:$4 sm:$0xff]  }
 0x96f   :  { %v13947_v55 = vld [vmem:[#allocation25 + $0x3ec] ss:$16 sps:$4 sm:$0xff]  }
 0x971   :  { %9345 = vmatpush1.bf16.msra.mxu0 %v13864_v51  ;;  %9386 = vmatpush1.bf16.msra.mxu1 %v13867_v26  ;;  %v15377_v51 = vpop.permute.xlu1 %8338  ;;  %v13942_v26 = vld [vmem:[#allocation25 + $0x1e8] ss:$16 sps:$4 sm:$0xff]  }
 0x972   :  { %9346 = vmatprep.subr.bf16.mxu0 %v13872_v22  ;;  %9387 = vmatprep.subr.bf16.mxu1 %v13875_v4  ;;  %v13945_v22 = vld [vmem:[#allocation25 + $0x3e8] ss:$16 sps:$4 sm:$0xff]   ;;  %v13950_v4 = vld [vmem:[#allocation23 + $0x4] ss:$16 sps:$4 sm:$0xff]  }
 0x975   :  { %9347 = vmatpush1.bf16.msra.mxu0 %v13870_v59  ;;  %9388 = vmatpush1.bf16.msra.mxu1 %v13873_v42  ;;  %v13953_v59 = vld [vmem:[#allocation23 + $0x204] ss:$16 sps:$4 sm:$0xff]   ;;  %v8342_v42 = vmul.f32 %v15306_v43, %v15377_v51  ;;  %v13954_v43 = vld [vmem:[#allocation23 + $0x20] ss:$16 sps:$4 sm:$0xff]  }
 0x976   :  { %9348 = vmatprep.subr.bf16.mxu0 %v13878_v29  ;;  %9389 = vmatprep.subr.bf16.mxu1 %v13881_v31  ;;  %v8344_v29 = vmul.f32 %v15309_v1, %v15377_v51  ;;  %v13948_v31 = vld [vmem:[#allocation23] ss:$16 sps:$4 sm:$0xff]  }
 0x977   :  { %v13957_v1 = vld [vmem:[#allocation23 + $0x220] ss:$16 sps:$4 sm:$0xff]  }
 0x979   :  { %9349 = vmatpush1.bf16.msra.mxu0 %v13876_v34  ;;  %9390 = vmatpush1.bf16.msra.mxu1 %v13879_v35  ;;  %v13951_v34 = vld [vmem:[#allocation23 + $0x200] ss:$16 sps:$4 sm:$0xff]   ;;  %v15383_v35 = vpack.c.bf16 %v8342_v42, %v8342_v42  ;;  %v14031_v42 = vld [vmem:[#allocation23 + $0x3a4] ss:$16 sps:$4 sm:$0xff]  }
 0x97a   :  { %9350 = vmatprep.subr.bf16.mxu0 %v13884_v53  ;;  %9391 = vmatprep.subr.bf16.mxu1 %v13887_v8  ;;  %v13956_v53 = vld [vmem:[#allocation23 + $0x24] ss:$16 sps:$4 sm:$0xff]  }
 0x97b   :  { %v13959_v8 = vld [vmem:[#allocation23 + $0x224] ss:$16 sps:$4 sm:$0xff]  }
 0x97d   :  { %9351 = vmatpush1.bf16.msra.mxu0 %v13882_v38  ;;  %9392 = vmatpush1.bf16.msra.mxu1 %v13885_v39  ;;  %v15387_v38 = vpack.c.bf16 %v8344_v29, %v8344_v29  ;;  %v13962_v39 = vld [vmem:[#allocation23 + $0x44] ss:$16 sps:$4 sm:$0xff]   ;;  %v14026_v29 = vld [vmem:[#allocation23 + $0x1a0] ss:$16 sps:$4 sm:$0xff]  }
 0x97e   :  { %9352 = vmatprep.subr.bf16.mxu0 %v13890_v37  ;;  %9393 = vmatprep.subr.bf16.mxu1 %v13893_v40  ;;  %v13965_v37 = vld [vmem:[#allocation23 + $0x244] ss:$16 sps:$4 sm:$0xff]   ;;  %v13960_v40 = vld [vmem:[#allocation23 + $0x40] ss:$16 sps:$4 sm:$0xff]  }
 0x981   :  { %9353 = vmatpush1.bf16.msra.mxu0 %v13888_v41  ;;  %9394 = vmatpush1.bf16.msra.mxu1 %v13891_v44  ;;  %v13971_v41 = vld [vmem:[#allocation23 + $0x264] ss:$16 sps:$4 sm:$0xff]   ;;  %v13966_v44 = vld [vmem:[#allocation23 + $0x60] ss:$16 sps:$4 sm:$0xff]  }
 0x982   :  { %9354 = vmatprep.subr.bf16.mxu0 %v13896_v47  ;;  %9395 = vmatprep.subr.bf16.mxu1 %v13899_v48  ;;  %v13969_v47 = vld [vmem:[#allocation23 + $0x260] ss:$16 sps:$4 sm:$0xff]   ;;  %v13974_v48 = vld [vmem:[#allocation23 + $0x84] ss:$16 sps:$4 sm:$0xff]  }
 0x985   :  { %9355 = vmatpush1.bf16.msra.mxu0 %v13894_v49  ;;  %9396 = vmatpush1.bf16.msra.mxu1 %v13897_v50  ;;  %v13977_v49 = vld [vmem:[#allocation23 + $0x284] ss:$16 sps:$4 sm:$0xff]   ;;  %v13972_v50 = vld [vmem:[#allocation23 + $0x80] ss:$16 sps:$4 sm:$0xff]  }
 0x986   :  { %9356 = vmatprep.subr.bf16.mxu0 %v13902_v45  ;;  %9397 = vmatprep.subr.bf16.mxu1 %v13905_v57  ;;  %v13975_v45 = vld [vmem:[#allocation23 + $0x280] ss:$16 sps:$4 sm:$0xff]   ;;  %v13980_v57 = vld [vmem:[#allocation23 + $0xa4] ss:$16 sps:$4 sm:$0xff]  }
 0x989   :  { %9357 = vmatpush1.bf16.msra.mxu0 %v13900_v30  ;;  %9398 = vmatpush1.bf16.msra.mxu1 %v13903_v61  ;;  %v13983_v30 = vld [vmem:[#allocation23 + $0x2a4] ss:$16 sps:$4 sm:$0xff]   ;;  %v13978_v61 = vld [vmem:[#allocation23 + $0xa0] ss:$16 sps:$4 sm:$0xff]  }
 0x98a   :  { %9358 = vmatprep.subr.bf16.mxu0 %v13908_v62  ;;  %9399 = vmatprep.subr.bf16.mxu1 %v13911_v63  ;;  %v13981_v62 = vld [vmem:[#allocation23 + $0x2a0] ss:$16 sps:$4 sm:$0xff]   ;;  %v13986_v63 = vld [vmem:[#allocation23 + $0xc4] ss:$16 sps:$4 sm:$0xff]  }
 0x98d   :  { %9359 = vmatpush1.bf16.msra.mxu0 %v13906_v23  ;;  %9400 = vmatpush1.bf16.msra.mxu1 %v13909_v2  ;;  %v13989_v23 = vld [vmem:[#allocation23 + $0x2c4] ss:$16 sps:$4 sm:$0xff]   ;;  %v13984_v2 = vld [vmem:[#allocation23 + $0xc0] ss:$16 sps:$4 sm:$0xff]  }
 0x98e   :  { %9360 = vmatprep.subr.bf16.mxu0 %v13914_v24  ;;  %9401 = vmatprep.subr.bf16.mxu1 %v13917_v6  ;;  %v13987_v24 = vld [vmem:[#allocation23 + $0x2c0] ss:$16 sps:$4 sm:$0xff]   ;;  %v13992_v6 = vld [vmem:[#allocation23 + $0xe4] ss:$16 sps:$4 sm:$0xff]  }
 0x991   :  { %9361 = vmatpush1.bf16.msra.mxu0 %v13912_v60  ;;  %9402 = vmatpush1.bf16.msra.mxu1 %v13915_v9  ;;  %v13995_v60 = vld [vmem:[#allocation23 + $0x2e4] ss:$16 sps:$4 sm:$0xff]   ;;  %v13990_v9 = vld [vmem:[#allocation23 + $0xe0] ss:$16 sps:$4 sm:$0xff]  }
 0x992   :  { %9362 = vmatprep.subr.bf16.mxu0 %v13920_v46  ;;  %9403 = vmatprep.subr.bf16.mxu1 %v13923_v10  ;;  %v13993_v46 = vld [vmem:[#allocation23 + $0x2e0] ss:$16 sps:$4 sm:$0xff]   ;;  %v13998_v10 = vld [vmem:[#allocation23 + $0x104] ss:$16 sps:$4 sm:$0xff]  }
 0x995   :  { %9363 = vmatpush1.bf16.msra.mxu0 %v13918_v54  ;;  %9404 = vmatpush1.bf16.msra.mxu1 %v13921_v12  ;;  %v14001_v54 = vld [vmem:[#allocation23 + $0x304] ss:$16 sps:$4 sm:$0xff]   ;;  %v13996_v12 = vld [vmem:[#allocation23 + $0x100] ss:$16 sps:$4 sm:$0xff]  }
 0x996   :  { %9364 = vmatprep.subr.bf16.mxu0 %v13926_v33  ;;  %9405 = vmatprep.subr.bf16.mxu1 %v13929_v32  ;;  %v13999_v33 = vld [vmem:[#allocation23 + $0x300] ss:$16 sps:$4 sm:$0xff]   ;;  %v14004_v32 = vld [vmem:[#allocation23 + $0x124] ss:$16 sps:$4 sm:$0xff]  }
 0x999   :  { %9365 = vmatpush1.bf16.msra.mxu0 %v13924_v13  ;;  %9406 = vmatpush1.bf16.msra.mxu1 %v13927_v36  ;;  %v14007_v13 = vld [vmem:[#allocation23 + $0x324] ss:$16 sps:$4 sm:$0xff]   ;;  %v14002_v36 = vld [vmem:[#allocation23 + $0x120] ss:$16 sps:$4 sm:$0xff]  }
 0x99a   :  { %9366 = vmatprep.subr.bf16.mxu0 %v13932_v16  ;;  %9407 = vmatprep.subr.bf16.mxu1 %v13935_v18  ;;  %v14005_v16 = vld [vmem:[#allocation23 + $0x320] ss:$16 sps:$4 sm:$0xff]   ;;  %v14010_v18 = vld [vmem:[#allocation23 + $0x144] ss:$16 sps:$4 sm:$0xff]  }
 0x99d   :  { %9367 = vmatpush1.bf16.msra.mxu0 %v13930_v20  ;;  %9408 = vmatpush1.bf16.msra.mxu1 %v13933_v21  ;;  %v14013_v20 = vld [vmem:[#allocation23 + $0x344] ss:$16 sps:$4 sm:$0xff]   ;;  %v14008_v21 = vld [vmem:[#allocation23 + $0x140] ss:$16 sps:$4 sm:$0xff]  }
 0x99e   :  { %9368 = vmatprep.subr.bf16.mxu0 %v13938_v11  ;;  %9409 = vmatprep.subr.bf16.mxu1 %v13941_v25  ;;  %v14011_v11 = vld [vmem:[#allocation23 + $0x340] ss:$16 sps:$4 sm:$0xff]   ;;  %v14016_v25 = vld [vmem:[#allocation23 + $0x164] ss:$16 sps:$4 sm:$0xff]  }
 0x9a1   :  { %9369 = vmatpush1.bf16.msra.mxu0 %v13936_v27  ;;  %9410 = vmatpush1.bf16.msra.mxu1 %v13939_v3  ;;  %v14019_v27 = vld [vmem:[#allocation23 + $0x364] ss:$16 sps:$4 sm:$0xff]   ;;  %v14014_v3 = vld [vmem:[#allocation23 + $0x160] ss:$16 sps:$4 sm:$0xff]  }
 0x9a2   :  { %9370 = vmatprep.subr.bf16.mxu0 %v13944_v28  ;;  %9411 = vmatprep.subr.bf16.mxu1 %v13947_v55  ;;  %v14017_v28 = vld [vmem:[#allocation23 + $0x360] ss:$16 sps:$4 sm:$0xff]   ;;  %v14022_v55 = vld [vmem:[#allocation23 + $0x184] ss:$16 sps:$4 sm:$0xff]  }
 0x9a5   :  { %9371 = vmatpush1.bf16.msra.mxu0 %v13942_v26  ;;  %9412 = vmatpush1.bf16.msra.mxu1 %v13945_v22  ;;  %v14025_v26 = vld [vmem:[#allocation23 + $0x384] ss:$16 sps:$4 sm:$0xff]   ;;  %v14020_v22 = vld [vmem:[#allocation23 + $0x180] ss:$16 sps:$4 sm:$0xff]  }
 0x9a6   :  { %10062 = vmatprep.subr.bf16.mxu0 %v13950_v4  ;;  %10103 = vmatprep.subr.bf16.mxu1 %v13953_v59  ;;  %v14023_v4 = vld [vmem:[#allocation23 + $0x380] ss:$16 sps:$4 sm:$0xff]   ;;  %v14028_v59 = vld [vmem:[#allocation23 + $0x1a4] ss:$16 sps:$4 sm:$0xff]  }
 0x9a8   :  { %9373 = vmatmul.mubr.bf16.vlgmr.msra.gmra.mrb[40].mxu0 %v15371_v14  ;;  %9414 = vmatmul.mubr.bf16.vlgmr.msra.gmra.mrb[56].mxu1 %v15373_v15  ;;  %v13963_v14 = vld [vmem:[#allocation23 + $0x240] ss:$16 sps:$4 sm:$0xff]   ;;  %v13968_v15 = vld [vmem:[#allocation23 + $0x64] ss:$16 sps:$4 sm:$0xff]  }
 0x9a9   :  { %10063 = vmatpush1.bf16.msra.mxu0 %v13948_v31  ;;  %10094 = vmatprep.mubr.bf16.mxu0 %v15383_v35  ;;  %v14029_v31 = vld [vmem:[#allocation23 + $0x3a0] ss:$16 sps:$4 sm:$0xff]  }
 0x9aa   :  { %10104 = vmatpush1.bf16.msra.mxu1 %v13951_v34  ;;  %10135 = vmatprep.mubr.bf16.mxu1 %v15387_v38  ;;  %v14034_v34 = vld [vmem:[#allocation23 + $0x1c4] ss:$16 sps:$4 sm:$0xff]  }
 0x9ab   :  { %10064 = vmatprep.subr.bf16.mxu0 %v13956_v53  ;;  %10105 = vmatprep.subr.bf16.mxu1 %v13959_v8  ;;  %v14037_v53 = vld [vmem:[#allocation23 + $0x3c4] ss:$16 sps:$4 sm:$0xff]   ;;  %v14032_v8 = vld [vmem:[#allocation23 + $0x1c0] ss:$16 sps:$4 sm:$0xff]  }
 0x9ad   :  { %10065 = vmatpush1.bf16.msra.mxu0 %v13954_v43  ;;  %v14035_v43 = vld [vmem:[#allocation23 + $0x3c0] ss:$16 sps:$4 sm:$0xff]  }
 0x9ae   :  { %10106 = vmatpush1.bf16.msra.mxu1 %v13957_v1  ;;  %10066 = vmatprep.subr.bf16.mxu0 %v13962_v39  ;;  %v14040_v1 = vld [vmem:[#allocation23 + $0x1e4] ss:$16 sps:$4 sm:$0xff]  }
 0x9af   :  { %10107 = vmatprep.subr.bf16.mxu1 %v13965_v37  ;;  %v14043_v39 = vld [vmem:[#allocation23 + $0x3e4] ss:$16 sps:$4 sm:$0xff]   ;;  %v14038_v37 = vld [vmem:[#allocation23 + $0x1e0] ss:$16 sps:$4 sm:$0xff]  }
 0x9b1   :  { %10067 = vmatpush1.bf16.msra.mxu0 %v13960_v40  ;;  %v8341_v40 = vmul.f32 %v15328_v17, %v15377_v51  ;;  %v14052_v17 = vld [vmem:[#allocation23 + $0x2c] ss:$16 sps:$4 sm:$0xff]  }
 0x9b2   :  { %10108 = vmatpush1.bf16.msra.mxu1 %v13963_v14  ;;  %10068 = vmatprep.subr.bf16.mxu0 %v13968_v15  ;;  %v14041_v14 = vld [vmem:[#allocation23 + $0x3e0] ss:$16 sps:$4 sm:$0xff]   ;;  %v14046_v15 = vld [vmem:[#allocation23 + $0xc] ss:$16 sps:$4 sm:$0xff]  }
 0x9b3   :  { %10109 = vmatprep.subr.bf16.mxu1 %v13971_v41  ;;  %v8343_v41 = vmul.f32 %v15331_v19, %v15377_v51  ;;  %v14050_v19 = vld [vmem:[#allocation23 + $0x28] ss:$16 sps:$4 sm:$0xff]  }
 0x9b5   :  { %10069 = vmatpush1.bf16.msra.mxu0 %v13966_v44  ;;  %v14049_v44 = vld [vmem:[#allocation23 + $0x20c] ss:$16 sps:$4 sm:$0xff]  }
 0x9b6   :  { %10110 = vmatpush1.bf16.msra.mxu1 %v13969_v47  ;;  %10070 = vmatprep.subr.bf16.mxu0 %v13974_v48  ;;  %v14044_v47 = vld [vmem:[#allocation23 + $0x8] ss:$16 sps:$4 sm:$0xff]   ;;  %v15395_v48 = vpack.c.bf16 %v8341_v40, %v8341_v40  ;;  %v14124_v40 = vld [vmem:[#allocation23 + $0x1ac] ss:$16 sps:$4 sm:$0xff]  }
 0x9b7   :  { %10111 = vmatprep.subr.bf16.mxu1 %v13977_v49  ;;  %v14047_v49 = vld [vmem:[#allocation23 + $0x208] ss:$16 sps:$4 sm:$0xff]  }
 0x9b9   :  { %10071 = vmatpush1.bf16.msra.mxu0 %v13972_v50  ;;  %v15397_v50 = vpack.c.bf16 %v8343_v41, %v8343_v41  ;;  %v14125_v41 = vld [vmem:[#allocation23 + $0x3a8] ss:$16 sps:$4 sm:$0xff]  }
 0x9ba   :  { %10112 = vmatpush1.bf16.msra.mxu1 %v13975_v45  ;;  %10072 = vmatprep.subr.bf16.mxu0 %v13980_v57  ;;  %v14055_v45 = vld [vmem:[#allocation23 + $0x22c] ss:$16 sps:$4 sm:$0xff]   ;;  %v14053_v57 = vld [vmem:[#allocation23 + $0x228] ss:$16 sps:$4 sm:$0xff]  }
 0x9bb   :  { %10113 = vmatprep.subr.bf16.mxu1 %v13983_v30  ;;  %v14058_v30 = vld [vmem:[#allocation23 + $0x4c] ss:$16 sps:$4 sm:$0xff]  }
 0x9bd   :  { %10073 = vmatpush1.bf16.msra.mxu0 %v13978_v61  ;;  %v14061_v61 = vld [vmem:[#allocation23 + $0x24c] ss:$16 sps:$4 sm:$0xff]  }
 0x9be   :  { %10114 = vmatpush1.bf16.msra.mxu1 %v13981_v62  ;;  %10074 = vmatprep.subr.bf16.mxu0 %v13986_v63  ;;  %v14056_v62 = vld [vmem:[#allocation23 + $0x48] ss:$16 sps:$4 sm:$0xff]  }
 0x9bf   :  { %10115 = vmatprep.subr.bf16.mxu1 %v13989_v23  ;;  %v14059_v63 = vld [vmem:[#allocation23 + $0x248] ss:$16 sps:$4 sm:$0xff]   ;;  %v14064_v23 = vld [vmem:[#allocation23 + $0x6c] ss:$16 sps:$4 sm:$0xff]  }
 0x9c1   :  { %10075 = vmatpush1.bf16.msra.mxu0 %v13984_v2  ;;  %v14067_v2 = vld [vmem:[#allocation23 + $0x26c] ss:$16 sps:$4 sm:$0xff]  }
 0x9c2   :  { %10116 = vmatpush1.bf16.msra.mxu1 %v13987_v24  ;;  %10076 = vmatprep.subr.bf16.mxu0 %v13992_v6  ;;  %v14062_v24 = vld [vmem:[#allocation23 + $0x68] ss:$16 sps:$4 sm:$0xff]   ;;  %v14070_v6 = vld [vmem:[#allocation23 + $0x8c] ss:$16 sps:$4 sm:$0xff]  }
 0x9c3   :  { %10117 = vmatprep.subr.bf16.mxu1 %v13995_v60  ;;  %v14073_v60 = vld [vmem:[#allocation23 + $0x28c] ss:$16 sps:$4 sm:$0xff]  }
 0x9c5   :  { %10077 = vmatpush1.bf16.msra.mxu0 %v13990_v9  ;;  %v14071_v9 = vld [vmem:[#allocation23 + $0x288] ss:$16 sps:$4 sm:$0xff]  }
 0x9c6   :  { %10118 = vmatpush1.bf16.msra.mxu1 %v13993_v46  ;;  %10078 = vmatprep.subr.bf16.mxu0 %v13998_v10  ;;  %v14076_v46 = vld [vmem:[#allocation23 + $0xac] ss:$16 sps:$4 sm:$0xff]  }
 0x9c7   :  { %10119 = vmatprep.subr.bf16.mxu1 %v14001_v54  ;;  %v14079_v10 = vld [vmem:[#allocation23 + $0x2ac] ss:$16 sps:$4 sm:$0xff]   ;;  %v14074_v54 = vld [vmem:[#allocation23 + $0xa8] ss:$16 sps:$4 sm:$0xff]  }
 0x9c9   :  { %10079 = vmatpush1.bf16.msra.mxu0 %v13996_v12  ;;  %v14077_v12 = vld [vmem:[#allocation23 + $0x2a8] ss:$16 sps:$4 sm:$0xff]  }
 0x9ca   :  { %10120 = vmatpush1.bf16.msra.mxu1 %v13999_v33  ;;  %10080 = vmatprep.subr.bf16.mxu0 %v14004_v32  ;;  %v14082_v33 = vld [vmem:[#allocation23 + $0xcc] ss:$16 sps:$4 sm:$0xff]  }
 0x9cb   :  { %10121 = vmatprep.subr.bf16.mxu1 %v14007_v13  ;;  %v14085_v32 = vld [vmem:[#allocation23 + $0x2cc] ss:$16 sps:$4 sm:$0xff]   ;;  %v14080_v13 = vld [vmem:[#allocation23 + $0xc8] ss:$16 sps:$4 sm:$0xff]  }
 0x9cd   :  { %10081 = vmatpush1.bf16.msra.mxu0 %v14002_v36  ;;  %v14083_v36 = vld [vmem:[#allocation23 + $0x2c8] ss:$16 sps:$4 sm:$0xff]  }
 0x9ce   :  { %10122 = vmatpush1.bf16.msra.mxu1 %v14005_v16  ;;  %10082 = vmatprep.subr.bf16.mxu0 %v14010_v18  ;;  %v14088_v16 = vld [vmem:[#allocation23 + $0xec] ss:$16 sps:$4 sm:$0xff]  }
 0x9cf   :  { %10123 = vmatprep.subr.bf16.mxu1 %v14013_v20  ;;  %v14091_v18 = vld [vmem:[#allocation23 + $0x2ec] ss:$16 sps:$4 sm:$0xff]   ;;  %v14086_v20 = vld [vmem:[#allocation23 + $0xe8] ss:$16 sps:$4 sm:$0xff]  }
 0x9d1   :  { %10083 = vmatpush1.bf16.msra.mxu0 %v14008_v21  ;;  %v14089_v21 = vld [vmem:[#allocation23 + $0x2e8] ss:$16 sps:$4 sm:$0xff]  }
 0x9d2   :  { %10124 = vmatpush1.bf16.msra.mxu1 %v14011_v11  ;;  %10084 = vmatprep.subr.bf16.mxu0 %v14016_v25  ;;  %v14094_v11 = vld [vmem:[#allocation23 + $0x10c] ss:$16 sps:$4 sm:$0xff]  }
 0x9d3   :  { %10125 = vmatprep.subr.bf16.mxu1 %v14019_v27  ;;  %v14097_v25 = vld [vmem:[#allocation23 + $0x30c] ss:$16 sps:$4 sm:$0xff]   ;;  %v14092_v27 = vld [vmem:[#allocation23 + $0x108] ss:$16 sps:$4 sm:$0xff]  }
 0x9d5   :  { %10085 = vmatpush1.bf16.msra.mxu0 %v14014_v3  ;;  %v14095_v3 = vld [vmem:[#allocation23 + $0x308] ss:$16 sps:$4 sm:$0xff]  }
 0x9d6   :  { %10126 = vmatpush1.bf16.msra.mxu1 %v14017_v28  ;;  %10086 = vmatprep.subr.bf16.mxu0 %v14022_v55  ;;  %v14100_v28 = vld [vmem:[#allocation23 + $0x12c] ss:$16 sps:$4 sm:$0xff]  }
 0x9d7   :  { %10127 = vmatprep.subr.bf16.mxu1 %v14025_v26  ;;  %v14103_v55 = vld [vmem:[#allocation23 + $0x32c] ss:$16 sps:$4 sm:$0xff]   ;;  %v14098_v26 = vld [vmem:[#allocation23 + $0x128] ss:$16 sps:$4 sm:$0xff]  }
 0x9d9   :  { %10087 = vmatpush1.bf16.msra.mxu0 %v14020_v22  ;;  %v14101_v22 = vld [vmem:[#allocation23 + $0x328] ss:$16 sps:$4 sm:$0xff]  }
 0x9da   :  { %10128 = vmatpush1.bf16.msra.mxu1 %v14023_v4  ;;  %10088 = vmatprep.subr.bf16.mxu0 %v14028_v59  ;;  %v14106_v4 = vld [vmem:[#allocation23 + $0x14c] ss:$16 sps:$4 sm:$0xff]  }
 0x9db   :  { %10129 = vmatprep.subr.bf16.mxu1 %v14031_v42  ;;  %v14109_v59 = vld [vmem:[#allocation23 + $0x34c] ss:$16 sps:$4 sm:$0xff]   ;;  %v14104_v42 = vld [vmem:[#allocation23 + $0x148] ss:$16 sps:$4 sm:$0xff]  }
 0x9dd   :  { %10089 = vmatpush1.bf16.msra.mxu0 %v14026_v29  ;;  %v14107_v29 = vld [vmem:[#allocation23 + $0x348] ss:$16 sps:$4 sm:$0xff]  }
 0x9de   :  { %10130 = vmatpush1.bf16.msra.mxu1 %v14029_v31  ;;  %10090 = vmatprep.subr.bf16.mxu0 %v14034_v34  ;;  %v14112_v31 = vld [vmem:[#allocation23 + $0x16c] ss:$16 sps:$4 sm:$0xff]  }
 0x9df   :  { %10131 = vmatprep.subr.bf16.mxu1 %v14037_v53  ;;  %v14115_v34 = vld [vmem:[#allocation23 + $0x36c] ss:$16 sps:$4 sm:$0xff]   ;;  %v14110_v53 = vld [vmem:[#allocation23 + $0x168] ss:$16 sps:$4 sm:$0xff]  }
 0x9e1   :  { %10091 = vmatpush1.bf16.msra.mxu0 %v14032_v8  ;;  %v14113_v8 = vld [vmem:[#allocation23 + $0x368] ss:$16 sps:$4 sm:$0xff]  }
 0x9e2   :  { %10132 = vmatpush1.bf16.msra.mxu1 %v14035_v43  ;;  %10092 = vmatprep.subr.bf16.mxu0 %v14040_v1  ;;  %v14118_v43 = vld [vmem:[#allocation23 + $0x18c] ss:$16 sps:$4 sm:$0xff]  }
 0x9e3   :  { %10133 = vmatprep.subr.bf16.mxu1 %v14043_v39  ;;  %v14121_v1 = vld [vmem:[#allocation23 + $0x38c] ss:$16 sps:$4 sm:$0xff]   ;;  %v14116_v39 = vld [vmem:[#allocation23 + $0x188] ss:$16 sps:$4 sm:$0xff]  }
 0x9e5   :  { %10093 = vmatpush1.bf16.msra.mxu0 %v14038_v37  ;;  %v14119_v37 = vld [vmem:[#allocation23 + $0x388] ss:$16 sps:$4 sm:$0xff]  }
 0x9e6   :  { %10134 = vmatpush1.bf16.msra.mxu1 %v14041_v14  ;;  %10144 = vmatprep.subr.bf16.mxu0 %v14046_v15  ;;  %v14127_v14 = vld [vmem:[#allocation23 + $0x3ac] ss:$16 sps:$4 sm:$0xff]   ;;  %v14122_v15 = vld [vmem:[#allocation23 + $0x1a8] ss:$16 sps:$4 sm:$0xff]  }
 0x9e7   :  { %10185 = vmatprep.subr.bf16.mxu1 %v14049_v44  ;;  %v14130_v44 = vld [vmem:[#allocation23 + $0x1cc] ss:$16 sps:$4 sm:$0xff]  }
 0x9e8   :  { %10095 = vmatmul.mubr.bf16.vlgmr.msra.gmra.mrb[44].mxu0 %v15395_v48 }
 0x9e9   :  { %10136 = vmatmul.mubr.bf16.vlgmr.msra.gmra.mrb[60].mxu1 %v15397_v50  ;;  %10145 = vmatpush1.bf16.msra.mxu0 %v14044_v47  ;;  %v14133_v47 = vld [vmem:[#allocation23 + $0x3cc] ss:$16 sps:$4 sm:$0xff]  }
 0x9ea   :  { %10176 = vmatprep.mubr.bf16.mxu0 %v15383_v35  ;;  %10186 = vmatpush1.bf16.msra.mxu1 %v14047_v49  ;;  %v14065_v35 = vld [vmem:[#allocation23 + $0x268] ss:$16 sps:$4 sm:$0xff]  }
 0x9eb   :  { %10217 = vmatprep.mubr.bf16.mxu1 %v15387_v38  ;;  %10146 = vmatprep.subr.bf16.mxu0 %v14052_v17  ;;  %v14068_v38 = vld [vmem:[#allocation23 + $0x88] ss:$16 sps:$4 sm:$0xff]  }
 0x9ec   :  { %10187 = vmatprep.subr.bf16.mxu1 %v14055_v45  ;;  %v14128_v49 = vld [vmem:[#allocation23 + $0x1c8] ss:$16 sps:$4 sm:$0xff]   ;;  %v14136_v45 = vld [vmem:[#allocation23 + $0x1ec] ss:$16 sps:$4 sm:$0xff]  }
 0x9ed   :  { %10147 = vmatpush1.bf16.msra.mxu0 %v14050_v19  ;;  %v14131_v17 = vld [vmem:[#allocation23 + $0x3c8] ss:$16 sps:$4 sm:$0xff]   ;;  %v14139_v19 = vld [vmem:[#allocation23 + $0x3ec] ss:$16 sps:$4 sm:$0xff]  }
 0x9ee   :  { %10188 = vmatpush1.bf16.msra.mxu1 %v14053_v57  ;;  %10148 = vmatprep.subr.bf16.mxu0 %v14058_v30  ;;  %v14134_v57 = vld [vmem:[#allocation23 + $0x1e8] ss:$16 sps:$4 sm:$0xff]  }
 0x9ef   :  { %10189 = vmatprep.subr.bf16.mxu1 %v14061_v61  ;;  %v14137_v30 = vld [vmem:[#allocation23 + $0x3e8] ss:$16 sps:$4 sm:$0xff]  }
 0x9f0   :  { %v14140_v61 = vld [vmem:[#allocation28 + $0x40] sm:$0xff]  }
 0x9f1   :  { %10149 = vmatpush1.bf16.msra.mxu0 %v14056_v62  ;;  %v14141_v62 = vld [vmem:[#allocation28] sm:$0xff]  }
 0x9f2   :  { %10190 = vmatpush1.bf16.msra.mxu1 %v14059_v63  ;;  %10150 = vmatprep.subr.bf16.mxu0 %v14064_v23  ;;  %v14142_v63 = vld [vmem:[#allocation28 + $0x48] sm:$0xff]  }
 0x9f3   :  { %10191 = vmatprep.subr.bf16.mxu1 %v14067_v2  ;;  %v14143_v23 = vld [vmem:[#allocation28 + $0x8] sm:$0xff]   ;;  %v14144_v2 = vld [vmem:[#allocation28 + $0x50] sm:$0xff]  }
 0x9f5   :  { %10151 = vmatpush1.bf16.msra.mxu0 %v14062_v24  ;;  %v14145_v24 = vld [vmem:[#allocation28 + $0x10] sm:$0xff]  }
 0x9f6   :  { %10192 = vmatpush1.bf16.msra.mxu1 %v14065_v35  ;;  %10152 = vmatprep.subr.bf16.mxu0 %v14070_v6  ;;  %v14146_v35 = vld [vmem:[#allocation28 + $0x58] sm:$0xff]  }
 0x9f7   :  { %10193 = vmatprep.subr.bf16.mxu1 %v14073_v60  ;;  %v14147_v6 = vld [vmem:[#allocation28 + $0x18] sm:$0xff]   ;;  %v14148_v60 = vld [vmem:[#allocation28 + $0x60] sm:$0xff]  }
 0x9f9   :  { %10153 = vmatpush1.bf16.msra.mxu0 %v14068_v38  ;;  %v14149_v38 = vld [vmem:[#allocation28 + $0x20] sm:$0xff]  }
 0x9fa   :  { %10194 = vmatpush1.bf16.msra.mxu1 %v14071_v9  ;;  %10154 = vmatprep.subr.bf16.mxu0 %v14076_v46 }
 0x9fb   :  { %10195 = vmatprep.subr.bf16.mxu1 %v14079_v10 }
 0x9fd   :  { %10155 = vmatpush1.bf16.msra.mxu0 %v14074_v54  ;;  %v14150_v54 = vld [vmem:[#allocation28 + $0x68] sm:$0xff]  }
 0x9fe   :  { %10196 = vmatpush1.bf16.msra.mxu1 %v14077_v12  ;;  %10156 = vmatprep.subr.bf16.mxu0 %v14082_v33 }
 0x9ff   :  { %10197 = vmatprep.subr.bf16.mxu1 %v14085_v32 }
 0xa01   :  { %10157 = vmatpush1.bf16.msra.mxu0 %v14080_v13  ;;  %v14151_v13 = vld [vmem:[#allocation28 + $0x28] sm:$0xff]  }
 0xa02   :  { %10198 = vmatpush1.bf16.msra.mxu1 %v14083_v36  ;;  %10158 = vmatprep.subr.bf16.mxu0 %v14088_v16 }
 0xa03   :  { %10199 = vmatprep.subr.bf16.mxu1 %v14091_v18  ;;  %v14152_v18 = vld [vmem:[#allocation28 + $0x70] sm:$0xff]  }
 0xa05   :  { %10159 = vmatpush1.bf16.msra.mxu0 %v14086_v20  ;;  %v14153_v20 = vld [vmem:[#allocation28 + $0x30] sm:$0xff]  }
 0xa06   :  { %10200 = vmatpush1.bf16.msra.mxu1 %v14089_v21  ;;  %10160 = vmatprep.subr.bf16.mxu0 %v14094_v11  ;;  %v14154_v21 = vld [vmem:[#allocation28 + $0x78] sm:$0xff]  }
 0xa07   :  { %10201 = vmatprep.subr.bf16.mxu1 %v14097_v25  ;;  %v14155_v11 = vld [vmem:[#allocation28 + $0x38] sm:$0xff]   ;;  %v14156_v25 = vld [vmem:[#allocation28 + $0xc0] sm:$0xff]  }
 0xa09   :  { %10161 = vmatpush1.bf16.msra.mxu0 %v14092_v27  ;;  %v14157_v27 = vld [vmem:[#allocation28 + $0x80] sm:$0xff]  }
 0xa0a   :  { %10202 = vmatpush1.bf16.msra.mxu1 %v14095_v3  ;;  %10162 = vmatprep.subr.bf16.mxu0 %v14100_v28  ;;  %v14158_v3 = vld [vmem:[#allocation28 + $0xc8] sm:$0xff]  }
 0xa0b   :  { %10203 = vmatprep.subr.bf16.mxu1 %v14103_v55  ;;  %v14159_v28 = vld [vmem:[#allocation28 + $0x88] sm:$0xff]   ;;  %v14160_v55 = vld [vmem:[#allocation28 + $0xd0] sm:$0xff]  }
 0xa0d   :  { %10163 = vmatpush1.bf16.msra.mxu0 %v14098_v26  ;;  %v14161_v26 = vld [vmem:[#allocation28 + $0x90] sm:$0xff]  }
 0xa0e   :  { %10204 = vmatpush1.bf16.msra.mxu1 %v14101_v22  ;;  %10164 = vmatprep.subr.bf16.mxu0 %v14106_v4  ;;  %v14162_v22 = vld [vmem:[#allocation28 + $0xd8] sm:$0xff]  }
 0xa0f   :  { %10205 = vmatprep.subr.bf16.mxu1 %v14109_v59  ;;  %v14163_v4 = vld [vmem:[#allocation28 + $0x98] sm:$0xff]   ;;  %v14164_v59 = vld [vmem:[#allocation28 + $0xe0] sm:$0xff]  }
 0xa11   :  { %10165 = vmatpush1.bf16.msra.mxu0 %v14104_v42  ;;  %v14165_v42 = vld [vmem:[#allocation28 + $0xa0] sm:$0xff]  }
 0xa12   :  { %10206 = vmatpush1.bf16.msra.mxu1 %v14107_v29  ;;  %10166 = vmatprep.subr.bf16.mxu0 %v14112_v31 }
 0xa13   :  { %10207 = vmatprep.subr.bf16.mxu1 %v14115_v34 }
 0xa15   :  { %10167 = vmatpush1.bf16.msra.mxu0 %v14110_v53 }
 0xa16   :  { %10208 = vmatpush1.bf16.msra.mxu1 %v14113_v8  ;;  %10168 = vmatprep.subr.bf16.mxu0 %v14118_v43  ;;  %v14166_v43 = vld [vmem:[#allocation28 + $0xe8] sm:$0xff]  }
 0xa17   :  { %10209 = vmatprep.subr.bf16.mxu1 %v14121_v1 }
 0xa19   :  { %10169 = vmatpush1.bf16.msra.mxu0 %v14116_v39 }
 0xa1a   :  { %10210 = vmatpush1.bf16.msra.mxu1 %v14119_v37  ;;  %10170 = vmatprep.subr.bf16.mxu0 %v14124_v40  ;;  %v14167_v40 = vld [vmem:[#allocation28 + $0xa8] sm:$0xff]  }
 0xa1b   :  { %10211 = vmatprep.subr.bf16.mxu1 %v14127_v14 }
 0xa1d   :  { %10171 = vmatpush1.bf16.msra.mxu0 %v14122_v15 }
 0xa1e   :  { %10212 = vmatpush1.bf16.msra.mxu1 %v14125_v41  ;;  %10172 = vmatprep.subr.bf16.mxu0 %v14130_v44  ;;  %v14168_v41 = vld [vmem:[#allocation28 + $0xf0] sm:$0xff]  }
 0xa1f   :  { %10213 = vmatprep.subr.bf16.mxu1 %v14133_v47  ;;  %v14169_v44 = vld [vmem:[#allocation28 + $0xb0] sm:$0xff]   ;;  %v14170_v47 = vld [vmem:[#allocation28 + $0xf8] sm:$0xff]  }
 0xa21   :  { %10173 = vmatpush1.bf16.msra.mxu0 %v14128_v49  ;;  %v14171_v49 = vld [vmem:[#allocation28 + $0xb8] sm:$0xff]  }
 0xa22   :  { %10214 = vmatpush1.bf16.msra.mxu1 %v14131_v17  ;;  %10174 = vmatprep.subr.bf16.mxu0 %v14136_v45  ;;  %v10226_v17 = vld [vmem:[#allocation26] sm:$0xf] }
 0xa23   :  { %10215 = vmatprep.subr.bf16.mxu1 %v14139_v19 }
 0xa25   :  { %10175 = vmatpush1.bf16.msra.mxu0 %v14134_v57 }
 0xa26   :  { %10216 = vmatpush1.bf16.msra.mxu1 %v14137_v30  ;;  %12093 = vmatprep.subr.bf16.mxu0 %v14140_v61  ;;  %v10231_v30 = vrot.slane %v10226_v17, %v15171_v56 }
 0xa27   :  { %12115 = vmatprep.subr.bf16.mxu1 %v14156_v25 }
 0xa28   :  { %10177 = vmatmul.mubr.bf16.vlgmr.msra.gmra.mrb[48].mxu0 %v15395_v48 }
 0xa29   :  { %10218 = vmatmul.mubr.bf16.vlgmr.msra.gmra.mrb[64].mxu1 %v15397_v50  ;;  %12094 = vmatpush3.bf16.msra.mxu0 %v14141_v62 }
 0xa2a   :  { %12095 = vmatprep.subr.bf16.mxu0 %v14142_v63  ;;  %12116 = vmatpush3.bf16.msra.mxu1 %v14157_v27 }
 0xa2b   :  { %12117 = vmatprep.subr.bf16.mxu1 %v14158_v3 }
 0xa2d   :  { %12096 = vmatpush3.bf16.msra.mxu0 %v14143_v23  ;;  %v10235_v23 = vrot.slane %v10226_v17, %v15176_v58 }
 0xa2e   :  { %12097 = vmatprep.subr.bf16.mxu0 %v14144_v2  ;;  %12118 = vmatpush3.bf16.msra.mxu1 %v14159_v28 }
 0xa2f   :  { %12119 = vmatprep.subr.bf16.mxu1 %v14160_v55 }
 0xa31   :  { %12098 = vmatpush3.bf16.msra.mxu0 %v14145_v24 }
 0xa32   :  { %12099 = vmatprep.subr.bf16.mxu0 %v14146_v35  ;;  %12120 = vmatpush3.bf16.msra.mxu1 %v14161_v26 }
 0xa33   :  { %12121 = vmatprep.subr.bf16.mxu1 %v14162_v22 }
 0xa35   :  { %12100 = vmatpush3.bf16.msra.mxu0 %v14147_v6 }
 0xa36   :  { %12101 = vmatprep.subr.bf16.mxu0 %v14148_v60  ;;  %12122 = vmatpush3.bf16.msra.mxu1 %v14163_v4 }
 0xa37   :  { %12123 = vmatprep.subr.bf16.mxu1 %v14164_v59  ;;  %v14709_v59 = vmov 0.0  }
 0xa39   :  { %12102 = vmatpush3.bf16.msra.mxu0 %v14149_v38 }
 0xa3a   :  { %12103 = vmatprep.subr.bf16.mxu0 %v14150_v54  ;;  %12124 = vmatpush3.bf16.msra.mxu1 %v14165_v42  ;;  %v14173_v42 = vld [vmem:[#allocation31 + $0x8] sm:$0xff]  }
 0xa3b   :  { %v9292_v9 = vpop.f32.mrb[36].mxu0  ;;  %v9333_v48 = vpop.f32.mrb[52].mxu1  ;;  %12125 = vmatprep.subr.bf16.mxu1 %v14166_v43 }
 0xa3c   :  { %v15405_v46 = vadd.f32 %v9333_v48, %v9292_v9  ;;  %v9294_v50 = vpop.f32.mrb[37].mxu0  ;;  %v9335_v10 = vpop.f32.mrb[53].mxu1 }
 0xa3d   :  { %v15407_v12 = vadd.f32 %v9335_v10, %v9294_v50  ;;  %v9296_v33 = vpop.f32.mrb[38].mxu0  ;;  %v9337_v32 = vpop.f32.mrb[54].mxu1  ;;  %12104 = vmatpush3.bf16.msra.mxu0 %v14151_v13 }
 0xa3e   :  { %v9297_v36 = vpop.f32.mrb[39].mxu0  ;;  %v9338_v16 = vpop.f32.mrb[55].mxu1  ;;  %12105 = vmatprep.subr.bf16.mxu0 %v14152_v18  ;;  %12126 = vmatpush3.bf16.msra.mxu1 %v14167_v40  ;;  %v10239_v32 = vrot.slane %v10226_v17, %v15214_v7  ;;  %v14172_v7 = vld [vmem:[#allocation31] sm:$0xff]  }
 0xa3f   :  { %12127 = vmatprep.subr.bf16.mxu1 %v14168_v41  ;;  %v10243_v16 = vrot.slane %v10226_v17, %v15183_v5  ;;  %v14174_v5 = vld [vmem:[#allocation31 + $0x10] sm:$0xff]  }
 0xa41   :  { %12106 = vmatpush3.bf16.msra.mxu0 %v14153_v20 }
 0xa42   :  { %12107 = vmatprep.subr.bf16.mxu0 %v14154_v21  ;;  %12128 = vmatpush3.bf16.msra.mxu1 %v14169_v44 }
 0xa43   :  { %12129 = vmatprep.subr.bf16.mxu1 %v14170_v47 }
 0xa45   :  { %12108 = vmatpush3.bf16.msra.mxu0 %v14155_v11 }
 0xa46   :  { %12130 = vmatpush3.bf16.msra.mxu1 %v14171_v49  ;;  %12146 = vmatprep.subr.bf16.mxu0 %v14709_v59 }
 0xa7b   :  { %v9374_v29 = vpop.f32.mrb[40].mxu0  ;;  %v9415_v31 = vpop.f32.mrb[56].mxu1 }
 0xa7c   :  { %v9416_v34 = vadd.f32 %v9415_v31, %v9374_v29  ;;  %v9376_v53 = vpop.f32.mrb[41].mxu0  ;;  %v9417_v8 = vpop.f32.mrb[57].mxu1  ;;  %v14175_v29 = vld [vmem:[#allocation31 + $0x18] sm:$0xff]   ;;  %v14176_v31 = vld [vmem:[#allocation31 + $0x20] sm:$0xff]  }
 0xa7d   :  { %v9418_v1 = vadd.f32 %v9417_v8, %v9376_v53  ;;  %v9378_v39 = vpop.f32.mrb[42].mxu0  ;;  %v9419_v37 = vpop.f32.mrb[58].mxu1  ;;  %v14178_v53 = vld [vmem:[#allocation31 + $0x30] sm:$0xff]   ;;  %v14179_v8 = vld [vmem:[#allocation31 + $0x38] sm:$0xff]  }
 0xa7e   :  { %v9379_v14 = vpop.f32.mrb[43].mxu0  ;;  %v9420_v15 = vpop.f32.mrb[59].mxu1 }
 0xa7f   :  { %v12007_v14 = vld [vmem:[#allocation29] ss:$0 sm:$0xff] }
 0xabb   :  { %v10096_v45 = vpop.f32.mrb[44].mxu0 }
 0xabc   :  { %v10097_v19 = vadd.f32 %v10096_v45, %v15405_v46  ;;  %v10137_v57 = vpop.f32.mrb[60].mxu1  ;;  %v10098_v61 = vpop.f32.mrb[45].mxu0 }
 0xabd   :  { %v10099_v62 = vadd.f32 %v10098_v61, %v15407_v12  ;;  %v10139_v63 = vpop.f32.mrb[61].mxu1  ;;  %v10100_v2 = vpop.f32.mrb[46].mxu0  ;;  %v12040_v61 = vld [vmem:[#allocation32] ss:$0 sm:$0xff] }
 0xabe   :  { %v10138_v24 = vadd.f32 %v10137_v57, %v10097_v19  ;;  %v10141_v35 = vpop.f32.mrb[62].mxu1  ;;  %v10101_v6 = vpop.f32.mrb[47].mxu0 }
 0xabf   :  { %v10140_v60 = vadd.f32 %v10139_v63, %v10099_v62  ;;  %v10142_v38 = vpop.f32.mrb[63].mxu1 }
 0xac0   :  { %v10248_v9 = vadd.f32 %v10231_v30, %v10138_v24  ;;  %v10717_v30 = vand.u32 127, %v326_v0 }
 0xac1   :  { %v10249_v48 = vadd.f32 %v10235_v23, %v10140_v60 }
 0xac2   :  { %v10252_v50 = vmax.f32 %v10248_v9, 0.0  ;;  %vm10718_vm4 = vcmp.eq.s32.totalorder %v10717_v30, 126  ;;  %vm10721_vm5 = vcmp.eq.s32.totalorder %v10717_v30, 127 }
 0xac3   :  { %v10253_v10 = vmax.f32 %v10249_v48, 0.0  ;;  %v10719_v2 = vsel %vm10718_vm4, %v15377_v51, 0.0  ;;  %v10722_v60 = vsel %vm10721_vm5, %v15361_v52, 0.0 }
 0xac4   :  { %v10256_v54 = vpack.c.bf16 %v10252_v50, %v10252_v50 }
 0xac5   :  { %v10257_v46 = vpack.c.bf16 %v10253_v10, %v10253_v10 }
 0xac7   :  { %10555 = vmatprep.mubr.bf16.mxu0 %v10257_v46 }
 0xac8   :  { %10556 = vmatmul.mubr.bf16.vlgmr.msra.gmra.mrb[52].mxu0 %v10256_v54 }
 0xac9   :  { %12147 = vmatpush3.bf16.msra.mxu0 %v14172_v7  ;;  %12162 = vmatprep.mubr.msk.bf16.mxu0 %vm14710_vm3, %v14709_v59 }
 0xaca   :  { %12148 = vmatprep.subr.bf16.mxu0 %v14709_v59 }
 0xacd   :  { %12149 = vmatpush3.bf16.msra.mxu0 %v14173_v42 }
 0xace   :  { %12150 = vmatprep.subr.bf16.mxu0 %v14709_v59 }
 0xad1   :  { %12151 = vmatpush3.bf16.msra.mxu0 %v14174_v5 }
 0xad2   :  { %12152 = vmatprep.subr.bf16.mxu0 %v14709_v59 }
 0xad5   :  { %12153 = vmatpush3.bf16.msra.mxu0 %v14175_v29 }
 0xad6   :  { %12154 = vmatprep.subr.bf16.mxu0 %v14709_v59 }
 0xad9   :  { %12155 = vmatpush3.bf16.msra.mxu0 %v14176_v31 }
 0xada   :  { %12156 = vmatprep.subr.bf16.mxu0 %v14709_v59 }
 0xafb   :  { %v10178_v56 = vpop.f32.mrb[48].mxu0 }
 0xafc   :  { %v10179_v33 = vadd.f32 %v10178_v56, %v9416_v34  ;;  %v10219_v12 = vpop.f32.mrb[64].mxu1  ;;  %v10180_v58 = vpop.f32.mrb[49].mxu0  ;;  %v14177_v34 = vld [vmem:[#allocation31 + $0x28] sm:$0xff]  }
 0xafd   :  { %v10181_v13 = vadd.f32 %v10180_v58, %v9418_v1  ;;  %v10221_v36 = vpop.f32.mrb[65].mxu1  ;;  %v10182_v18 = vpop.f32.mrb[50].mxu0  ;;  %12157 = vmatpush3.bf16.msra.mxu0 %v14177_v34 }
 0xafe   :  { %v10220_v20 = vadd.f32 %v10219_v12, %v10179_v33  ;;  %v10223_v21 = vpop.f32.mrb[66].mxu1  ;;  %v10183_v11 = vpop.f32.mrb[51].mxu0  ;;  %12158 = vmatprep.subr.bf16.mxu0 %v14709_v59 }
 0xaff   :  { %v10222_v25 = vadd.f32 %v10221_v36, %v10181_v13  ;;  %v10224_v27 = vpop.f32.mrb[67].mxu1 }
 0xb00   :  { %v10250_v3 = vadd.f32 %v10239_v32, %v10220_v20 }
 0xb01   :  { %v10251_v28 = vadd.f32 %v10243_v16, %v10222_v25  ;;  %12159 = vmatpush3.bf16.msra.mxu0 %v14178_v53 }
 0xb02   :  { %v10254_v55 = vmax.f32 %v10250_v3, 0.0  ;;  %12160 = vmatprep.subr.bf16.mxu0 %v14709_v59 }
 0xb03   :  { %v10255_v26 = vmax.f32 %v10251_v28, 0.0 }
 0xb04   :  { %v10258_v4 = vpack.c.bf16 %v10254_v55, %v10254_v55 }
 0xb05   :  { %v10259_v22 = vpack.c.bf16 %v10255_v26, %v10255_v26  ;;  %12161 = vmatpush3.bf16.msra.mxu0 %v14179_v8 }
 0xb07   :  { %10595 = vmatprep.mubr.bf16.mxu1 %v10259_v22 }
 0xb08   :  { %10596 = vmatmul.mubr.bf16.vlgmr.msra.gmra.mrb[68].mxu1 %v10258_v4 }
 0xb9b   :  { %v12109_v43 = vpop.f32.mrb[52].mxu0 }
 0xb9c   :  { %v12110_v1 = vpop.f32.mrb[53].mxu0 }
 0xb9d   :  { %v12111_v39 = vadd.f32 %v12110_v1, %v12109_v43  ;;  %v12112_v37 = vpop.f32.mrb[54].mxu0 }
 0xb9e   :  { %v12113_v40 = vpop.f32.mrb[55].mxu0 }
 0xb9f   :  { %v10558_v44 = vadd.f32 %v12111_v39, %v12007_v14 }
 0xbdb   :  { %v12131_v15 = vpop.f32.mrb[68].mxu1 }
 0xbdc   :  { %v12132_v41 = vpop.f32.mrb[69].mxu1 }
 0xbdd   :  { %v12133_v47 = vadd.f32 %v12132_v41, %v12131_v15  ;;  %v12134_v49 = vpop.f32.mrb[70].mxu1 }
 0xbde   :  { %v12135_v17 = vpop.f32.mrb[71].mxu1 }
 0xbdf   :  { %v10598_v45 = vadd.f32 %v12133_v47, %v10558_v44 }
 0xbe1   :  { %v10603_v19 = vmax.f32 %v10598_v45, 0.0 }
 0xbe3   :  { %v10604_v57 = vpack.c.bf16 %v10603_v19, %v10603_v19 }
 0xbe5   :  { %12163 = vmatmul.mubr.bf16.vlgmr.msra.gmra.mrb[56].mxu0 %v10604_v57 }
 0xcb8   :  { %v10710_v62 = vpop.f32.mrb[56].mxu0 }
 0xcb9   :  { %v10711_v63 = vadd.f32 %v12040_v61, %v10710_v62  ;;  %v12164_v23 = vpop.f32.mrb[57].mxu0 }
 0xcba   :  { %v10713_v24 = vpop.f32.mrb[58].mxu0 }
 0xcbb   :  { %v10720_v35 = vadd.f32 %v10719_v2, %v10711_v63  ;;  %v12165_v6 = vpop.f32.mrb[59].mxu0 }
 0xcbd   :  { %v10723_v38 = vadd.f32 %v10722_v60, %v10720_v35 }
 0xcbf   :  { %10724 = vst [vmem:[#allocation34] sm:$0xff] %v10723_v38 }
 0xcc0   :  { %14645 = shalt.err (!%p14642_p10)
}
 0xcc1   :  { %s14646_s0 = scalar_lea.hbm %s15450_s20, 128 }
 0xcc2   :  { %p14647_p11 = scmp.ne.s32.totalorder %s15450_s20, %s14646_s0  ;;  %p14650_p12 = scmp.lt.u32.totalorder %s14646_s0, %s15450_s20 }
 0xcc4   :  { %p14652_p13 = pnand %p14650_p12, %p14647_p11 }
 0xcc6   :  { %14655 = shalt.err (!%p14652_p13)
}
 0xcc7   :  { %10734 = dma.vmem_to_hbm [thread:$0]  %s10732_s17, 128, %s15450_s20, [#allocation4]  }
 0xcc8   :  { %14678 = dma.done.wait [#allocation4], 128  }
 0xcc9   :  { %14679 = vsyncadd [#allocation4], 4294967168 }
 0xcca   :  { %10738 = vsyncpa [#allocation3], 1 }
 0xccb   :  { %10739 = vsyncpa [#allocation6], 1 }
 0xccc   :  { %10740 = vsyncpa [#allocation9], 1 }
 0xccd   :  { %10741 = vsyncpa [#allocation12], 1 }
 0xcce   :  { %10742 = vsyncpa [#allocation15], 1 }
 0xccf   :  { %10743 = vsyncpa [#allocation18], 1 }
 0xcd0   :  { %10744 = vsyncpa [#allocation21], 1 }
 0xcd1   :  { %10745 = vsyncpa [#allocation24], 1 }
 0xcd2   :  { %10746 = vsyncpa [#allocation27], 1 }
 0xcd3   :  { %10747 = vsyncpa [#allocation30], 1 }
 0xcd4   :  { %10748 = vsyncpa [#allocation33], 1 }
 0xcd5   :  { %10749 = vsyncpa [#allocation4], 1 }

</bundles_post_ra>
